<compile_context>
chip_gen: v6e
topology: v6e:2x2x1
jax: 0.10.0
libtpu: 0.0.40
codegen_flags: <defaults>
</compile_context>

<pallas_src>
import functools

import numpy as np
import jax
import jax.numpy as jnp
from jax.experimental import pallas as pl
from jax.experimental.pallas import tpu as pltpu

_BN_EPS = 1e-5
_OFF = 8          # sublane-aligned column offset of the conv halo buffers


# ----------------------------------------------------------------------------
# In-kernel helpers
# ----------------------------------------------------------------------------
def _store_padded(pad_ref, val3d, h, w):
    """Zero the halo buffer and store `val3d` (h, w, C) at its interior."""
    pad_ref[...] = jnp.zeros(pad_ref.shape, jnp.float32)
    pad_ref[1:h + 1, _OFF:_OFF + w, :] = val3d


def _im2col_3x3(pad_ref, h, w):
    """Build the (h*w, 9*C) im2col patch from a zero-padded VMEM scratch.

    pad_ref: (h+2, w+16, C). The valid image sits at rows [1, h+1) and columns
    [_OFF, _OFF+w); the surrounding zero halo is what the 3x3 window reads.
    """
    xp = pad_ref[...]
    c = xp.shape[-1]
    cols = []
    for kh in range(3):
        for kw in range(3):
            win = xp[kh:kh + h, _OFF - 1 + kw:_OFF - 1 + kw + w, :]
            cols.append(win.reshape(h * w, c))
    return jnp.concatenate(cols, axis=1)          # (h*w, 9*c)


# ----------------------------------------------------------------------------
# Fused kernel: the whole ActionPredictionBlock for one batch element
# ----------------------------------------------------------------------------
def _fused_block_kernel(*refs, last, H, W, F, A):
    (x_ref, w1_ref, b1_ref, w2_ref, b2_ref, w3_ref, b3_ref,
     wac_ref, bac_ref, se_ref, so_ref) = refs[:11]
    if last:
        xo_ref, y_ref, pad1, pad2, pad3 = refs[11:]
    else:
        (up_ref, w4_ref, b4_ref, xo_ref, y_ref,
         pad1, pad2, pad3, pad4) = refs[11:]

    f32 = jnp.float32
    F2, H2, W2 = F // 2, H // 2, W // 2
    HW = H * W

    x3 = x_ref[0]                                   # (H, W, F)
    x_flat = x3.reshape(HW, F)

    # acb1: 1x1 conv, F -> F/2  (pre-activation ReLU, BN scale folded into w)
    h1 = jnp.dot(jnp.maximum(x_flat, 0.0), w1_ref[...],
                 preferred_element_type=f32) + b1_ref[...]

    # acb2: 3x3 conv, F/2 -> F, + residual x   (single K = 9*F/2 matmul)
    _store_padded(pad1, jnp.maximum(h1, 0.0).reshape(H, W, F2), H, W)
    a2 = (jnp.dot(_im2col_3x3(pad1, H, W), w2_ref[...],
                  preferred_element_type=f32) + b2_ref[...]) + x_flat  # (HW, F)

    # acb3: 3x3 conv, F -> F
    _store_padded(pad2, jnp.maximum(a2, 0.0).reshape(H, W, F), H, W)
    b_flat = jnp.dot(_im2col_3x3(pad2, H, W), w3_ref[...],
                     preferred_element_type=f32) + b3_ref[...]

    # MaxMin 2x2/stride-2 pooling: maxpool(x) - maxpool(-x) = max + min.
    # H-direction via a trivial outer-dim split; W-direction stride-2 picks
    # via precomputed 0/1 selection matmuls (host-built, DMA'd once).
    be = b_flat.reshape(H2, 2, W, F)
    hmax = jnp.maximum(be[:, 0], be[:, 1]).reshape(H2 * W, F)
    hmin = jnp.minimum(be[:, 0], be[:, 1]).reshape(H2 * W, F)
    se = se_ref[...]
    so = so_ref[...]
    pooled = (jnp.maximum(jnp.dot(se, hmax, preferred_element_type=f32),
                          jnp.dot(so, hmax, preferred_element_type=f32))
              + jnp.minimum(jnp.dot(se, hmin, preferred_element_type=f32),
                            jnp.dot(so, hmin, preferred_element_type=f32)))

    # ac: 3x3 conv, F -> A, plain conv + bias  (heatmaps)
    _store_padded(pad3, jnp.maximum(pooled, 0.0).reshape(H2, W2, F), H2, W2)
    y_flat = jnp.dot(_im2col_3x3(pad3, H2, W2), wac_ref[...],
                     preferred_element_type=f32) + bac_ref[...]
    y_ref[0] = y_flat.reshape(H2, W2, A).astype(y_ref.dtype)

    if last:
        xo_ref[0] = pooled.reshape(H2, W2, F).astype(xo_ref.dtype)
        return

    # 2x nearest upsample of ReLU(y) as a precomputed 0/1 selection matmul
    # (ReLU commutes with nearest-neighbor duplication).
    up = jnp.dot(up_ref[...], jnp.maximum(y_flat, 0.0),
                 preferred_element_type=f32)        # (HW, A) == ReLU(up(y))

    # acb4: 3x3 conv, A -> F; final residual x_out = a2 + b + acb4(up(y))
    _store_padded(pad4, up.reshape(H, W, A), H, W)
    h4 = jnp.dot(_im2col_3x3(pad4, H, W), w4_ref[...],
                 preferred_element_type=f32) + b4_ref[...]
    xo_ref[0] = (a2 + b_flat + h4).reshape(H, W, F).astype(xo_ref.dtype)


# ----------------------------------------------------------------------------
# Host-side (numpy, cached) selection matrices
# ----------------------------------------------------------------------------
@functools.lru_cache(maxsize=None)
def _pool_selectors(H, W):
    H2, W2 = H // 2, W // 2
    r = np.arange(H2 * W2)[:, None]
    c = np.arange(H2 * W)[None, :]
    same_row = (c // W) == (r // W2)
    sel_even = (same_row & ((c % W) == 2 * (r % W2))).astype(np.float32)
    sel_odd = (same_row & ((c % W) == 2 * (r % W2) + 1)).astype(np.float32)
    return sel_even, sel_odd


@functools.lru_cache(maxsize=None)
def _upsample_selector(H, W):
    H2, W2 = H // 2, W // 2
    r = np.arange(H * W)[:, None]
    c = np.arange(H2 * W2)[None, :]
    sel = (((r // W) // 2 == (c // W2)) & (((r % W) // 2) == (c % W2)))
    return sel.astype(np.float32)


# ----------------------------------------------------------------------------
# pallas_call wrapper (one fused call per forward)
# ----------------------------------------------------------------------------
def _fused_block_call(x_nhwc, params, *, last):
    N, H, W, F = x_nhwc.shape
    F2, H2, W2 = F // 2, H // 2, W // 2
    A = params["ac"][0].shape[-1]

    w1, s1, b1 = params["acb1"]
    w2, s2, b2 = params["acb2"]
    w3, s3, b3 = params["acb3"]
    wac, bac = params["ac"]

    sel_even, sel_odd = _pool_selectors(H, W)

    # Fold BN scale into conv weights (tiny host-side XLA ops).
    inputs = [x_nhwc, w1 * s1, b1, w2 * s2, b2, w3 * s3, b3, wac, bac,
              sel_even, sel_odd]

    if last:
        x_out_shape = (N, H2, W2, F)
    else:
        w4, s4, b4 = params["acb4"]
        inputs += [_upsample_selector(H, W), w4 * s4, b4]
        x_out_shape = (N, H, W, F)

    in_specs = [pl.BlockSpec((1, H, W, F), lambda n: (n, 0, 0, 0))]
    in_specs += [pl.BlockSpec(jnp.shape(a), lambda n, nd=jnp.ndim(a): (0,) * nd)
                 for a in inputs[1:]]

    scratch = [pltpu.VMEM((H + 2, W + 16, F2), jnp.float32),   # acb2 halo
               pltpu.VMEM((H + 2, W + 16, F), jnp.float32),    # acb3 halo
               pltpu.VMEM((H2 + 2, W2 + 16, F), jnp.float32)]  # ac halo
    if not last:
        scratch.append(pltpu.VMEM((H + 2, W + 16, A), jnp.float32))  # acb4 halo

    out_shape = (jax.ShapeDtypeStruct(x_out_shape, jnp.float32),
                 jax.ShapeDtypeStruct((N, H2, W2, A), jnp.float32))
    out_specs = [pl.BlockSpec((1,) + x_out_shape[1:], lambda n: (n, 0, 0, 0)),
                 pl.BlockSpec((1, H2, W2, A), lambda n: (n, 0, 0, 0))]

    kernel = functools.partial(_fused_block_kernel, last=last,
                               H=H, W=W, F=F, A=A)
    return pl.pallas_call(
        kernel,
        grid=(N,),
        in_specs=in_specs,
        out_specs=out_specs,
        out_shape=out_shape,
        scratch_shapes=scratch,
        compiler_params=pltpu.CompilerParams(
            dimension_semantics=("parallel",)),    # batch -> v7x's 2 TensorCores
    )(*inputs)


@functools.partial(jax.jit, static_argnames=("last",))
def action_prediction_block(x_nchw, params, *, last=False):
    x_nhwc = jnp.transpose(x_nchw, (0, 2, 3, 1))   # NCHW -> NHWC (tiny XLA op)
    x_out, y = _fused_block_call(x_nhwc, params, last=last)
    return (jnp.transpose(x_out, (0, 3, 1, 2)),    # back to NCHW like PyTorch
            jnp.transpose(y, (0, 3, 1, 2)))


# ----------------------------------------------------------------------------
# Deterministic parameter init (synthetic; no checkpoint load)
# ----------------------------------------------------------------------------
def _conv_init(key, kh, kw, cin, cout):
    fan_in = float(kh * kw * cin)
    w = jax.random.normal(key, (kh, kw, cin, cout), jnp.float32) / jnp.sqrt(fan_in)
    return w.reshape(kh * kw * cin, cout)    # im2col row order = (kh, kw, cin)


def init_params(key, F, A):
    keys = jax.random.split(key, 16)

    def bn(kg, kb, c):
        gamma = 1.0 + 0.1 * jax.random.normal(kg, (1, c), jnp.float32)
        beta = 0.1 * jax.random.normal(kb, (1, c), jnp.float32)
        scale = gamma / jnp.sqrt(1.0 + _BN_EPS)   # running_mean=0, running_var=1
        return scale, beta

    F2 = F // 2
    p = {}
    p["acb1"] = (_conv_init(keys[0], 1, 1, F, F2),) + bn(keys[1], keys[2], F2)
    p["acb2"] = (_conv_init(keys[3], 3, 3, F2, F),) + bn(keys[4], keys[5], F)
    p["acb3"] = (_conv_init(keys[6], 3, 3, F, F),) + bn(keys[7], keys[8], F)
    p["ac"] = (_conv_init(keys[9], 3, 3, F, A),
               0.1 * jax.random.normal(keys[10], (1, A), jnp.float32))
    p["acb4"] = (_conv_init(keys[11], 3, 3, A, F),) + bn(keys[12], keys[13], F)
    return p


if __name__ == "__main__":
    key = jax.random.PRNGKey(0)
    kx, kp = jax.random.split(key)

    N, F, A, H, W = 2, 8, 4, 16, 16          # num_filters=8, num_actions=4
    x = jax.random.normal(kx, (N, F, H, W), jnp.float32)   # NCHW, like PyTorch
    params = init_params(kp, F, A)

    x_out, y_out = action_prediction_block(x, params, last=False)
    jax.block_until_ready((x_out, y_out))
    assert x_out.shape == (N, F, H, W)
    assert y_out.shape == (N, A, H // 2, W // 2)

    x_last, y_last = action_prediction_block(x, params, last=True)
    jax.block_until_ready((x_last, y_last))
    assert x_last.shape == (N, F, H // 2, W // 2)
    assert y_last.shape == (N, A, H // 2, W // 2)

    print("KERNEL_OK")
</pallas_src>

<mosaic_0001>
module attributes {stable_mosaic.version = 11 : i64} {
  func.func @_fused_block_kernel(%arg0: i32, %arg1: memref<1x16x16x8xf32, #tpu.memory_space<vmem>>, %arg2: memref<8x4xf32, #tpu.memory_space<vmem>>, %arg3: memref<1x4xf32, #tpu.memory_space<vmem>>, %arg4: memref<36x8xf32, #tpu.memory_space<vmem>>, %arg5: memref<1x8xf32, #tpu.memory_space<vmem>>, %arg6: memref<72x8xf32, #tpu.memory_space<vmem>>, %arg7: memref<1x8xf32, #tpu.memory_space<vmem>>, %arg8: memref<72x4xf32, #tpu.memory_space<vmem>>, %arg9: memref<1x4xf32, #tpu.memory_space<vmem>>, %arg10: memref<64x128xf32, #tpu.memory_space<vmem>>, %arg11: memref<64x128xf32, #tpu.memory_space<vmem>>, %arg12: memref<256x64xf32, #tpu.memory_space<vmem>>, %arg13: memref<36x8xf32, #tpu.memory_space<vmem>>, %arg14: memref<1x8xf32, #tpu.memory_space<vmem>>, %arg15: memref<1x16x16x8xf32, #tpu.memory_space<vmem>>, %arg16: memref<1x8x8x4xf32, #tpu.memory_space<vmem>>, %arg17: memref<18x32x4xf32, #tpu.memory_space<vmem>>, %arg18: memref<18x32x8xf32, #tpu.memory_space<vmem>>, %arg19: memref<10x24x8xf32, #tpu.memory_space<vmem>>, %arg20: memref<18x32x4xf32, #tpu.memory_space<vmem>>) attributes {dimension_semantics = [#tpu.dimension_semantics<parallel>], iteration_bounds = array<i64: 2>, scalar_prefetch = 0 : i64, scratch_operands = 4 : i64, tpu.core_type = #tpu.core_type<tc>, window_params = [{transform_indices = @transform_0, window_bounds = array<i64: 1, 16, 16, 8>}, {pipeline_mode = #tpu.pipeline_mode<synchronous>, transform_indices = @transform_1, window_bounds = array<i64: 8, 4>}, {pipeline_mode = #tpu.pipeline_mode<synchronous>, transform_indices = @transform_2, window_bounds = array<i64: 1, 4>}, {pipeline_mode = #tpu.pipeline_mode<synchronous>, transform_indices = @transform_3, window_bounds = array<i64: 36, 8>}, {pipeline_mode = #tpu.pipeline_mode<synchronous>, transform_indices = @transform_4, window_bounds = array<i64: 1, 8>}, {pipeline_mode = #tpu.pipeline_mode<synchronous>, transform_indices = @transform_5, window_bounds = array<i64: 72, 8>}, {pipeline_mode = #tpu.pipeline_mode<synchronous>, transform_indices = @transform_6, window_bounds = array<i64: 1, 8>}, {pipeline_mode = #tpu.pipeline_mode<synchronous>, transform_indices = @transform_7, window_bounds = array<i64: 72, 4>}, {pipeline_mode = #tpu.pipeline_mode<synchronous>, transform_indices = @transform_8, window_bounds = array<i64: 1, 4>}, {pipeline_mode = #tpu.pipeline_mode<synchronous>, transform_indices = @transform_9, window_bounds = array<i64: 64, 128>}, {pipeline_mode = #tpu.pipeline_mode<synchronous>, transform_indices = @transform_10, window_bounds = array<i64: 64, 128>}, {pipeline_mode = #tpu.pipeline_mode<synchronous>, transform_indices = @transform_11, window_bounds = array<i64: 256, 64>}, {pipeline_mode = #tpu.pipeline_mode<synchronous>, transform_indices = @transform_12, window_bounds = array<i64: 36, 8>}, {pipeline_mode = #tpu.pipeline_mode<synchronous>, transform_indices = @transform_13, window_bounds = array<i64: 1, 8>}, {transform_indices = @transform_14, window_bounds = array<i64: 1, 16, 16, 8>}, {transform_indices = @transform_15, window_bounds = array<i64: 1, 8, 8, 4>}]} {
    %c0 = arith.constant 0 : index
    %c0_0 = arith.constant 0 : index
    %c0_1 = arith.constant 0 : index
    %c0_2 = arith.constant 0 : index
    %0 = vector.load %arg1[%c0, %c0_0, %c0_1, %c0_2] : memref<1x16x16x8xf32, #tpu.memory_space<vmem>>, vector<1x16x16x8xf32>
    %1 = vector.shape_cast %0 : vector<1x16x16x8xf32> to vector<16x16x8xf32>
    %2 = vector.shape_cast %1 : vector<16x16x8xf32> to vector<256x8xf32>
    %cst = arith.constant 0.000000e+00 : f32
    %3 = vector.broadcast %cst : f32 to vector<256x8xf32>
    %4 = arith.maximumf %2, %3 : vector<256x8xf32>
    %c0_3 = arith.constant 0 : index
    %c0_4 = arith.constant 0 : index
    %5 = vector.load %arg2[%c0_3, %c0_4] : memref<8x4xf32, #tpu.memory_space<vmem>>, vector<8x4xf32>
    %cst_5 = arith.constant dense<0.000000e+00> : vector<256x4xf32>
    %6 = tpu.matmul %4, %5, %cst_5 {dimension_numbers = #tpu.dot_dimension_numbers<[1], [0], [0], [1], [0, 0, 1, 1], [], []>} : vector<256x8xf32>, vector<8x4xf32>, vector<256x4xf32> -> vector<256x4xf32>
    %c0_6 = arith.constant 0 : index
    %c0_7 = arith.constant 0 : index
    %7 = vector.load %arg3[%c0_6, %c0_7] : memref<1x4xf32, #tpu.memory_space<vmem>>, vector<1x4xf32>
    %8 = vector.broadcast %7 : vector<1x4xf32> to vector<256x4xf32>
    %9 = arith.addf %6, %8 : vector<256x4xf32>
    %cst_8 = arith.constant 0.000000e+00 : f32
    %10 = vector.broadcast %cst_8 : f32 to vector<256x4xf32>
    %11 = arith.maximumf %9, %10 : vector<256x4xf32>
    %12 = vector.shape_cast %11 : vector<256x4xf32> to vector<16x16x4xf32>
    %cst_9 = arith.constant 0.000000e+00 : f32
    %13 = vector.broadcast %cst_9 : f32 to vector<18x32x4xf32>
    %c0_10 = arith.constant 0 : index
    %c0_11 = arith.constant 0 : index
    %c0_12 = arith.constant 0 : index
    %14 = vector.load %arg17[%c0_10, %c0_11, %c0_12] : memref<18x32x4xf32, #tpu.memory_space<vmem>>, vector<18x32x4xf32>
    tpu.vector_store %arg17[%c0_10, %c0_11, %c0_12], %13 {strides = array<i32>} : memref<18x32x4xf32, #tpu.memory_space<vmem>>, vector<18x32x4xf32>,
    %c1 = arith.constant 1 : index
    %c8 = arith.constant 8 : index
    %c0_13 = arith.constant 0 : index
    %15 = vector.load %arg17[%c1, %c8, %c0_13] : memref<18x32x4xf32, #tpu.memory_space<vmem>>, vector<16x16x4xf32>
    tpu.vector_store %arg17[%c1, %c8, %c0_13], %12 {strides = array<i32>} : memref<18x32x4xf32, #tpu.memory_space<vmem>>, vector<16x16x4xf32>,
    %c0_14 = arith.constant 0 : index
    %c0_15 = arith.constant 0 : index
    %c0_16 = arith.constant 0 : index
    %16 = vector.load %arg17[%c0_14, %c0_15, %c0_16] : memref<18x32x4xf32, #tpu.memory_space<vmem>>, vector<18x32x4xf32>
    %17 = vector.extract_strided_slice %16 {offsets = [0, 7, 0], sizes = [16, 16, 4], strides = [1, 1, 1]} : vector<18x32x4xf32> to vector<16x16x4xf32>
    %18 = vector.shape_cast %17 : vector<16x16x4xf32> to vector<256x4xf32>
    %19 = vector.extract_strided_slice %16 {offsets = [0, 8, 0], sizes = [16, 16, 4], strides = [1, 1, 1]} : vector<18x32x4xf32> to vector<16x16x4xf32>
    %20 = vector.shape_cast %19 : vector<16x16x4xf32> to vector<256x4xf32>
    %21 = vector.extract_strided_slice %16 {offsets = [0, 9, 0], sizes = [16, 16, 4], strides = [1, 1, 1]} : vector<18x32x4xf32> to vector<16x16x4xf32>
    %22 = vector.shape_cast %21 : vector<16x16x4xf32> to vector<256x4xf32>
    %23 = vector.extract_strided_slice %16 {offsets = [1, 7, 0], sizes = [16, 16, 4], strides = [1, 1, 1]} : vector<18x32x4xf32> to vector<16x16x4xf32>
    %24 = vector.shape_cast %23 : vector<16x16x4xf32> to vector<256x4xf32>
    %25 = vector.extract_strided_slice %16 {offsets = [1, 8, 0], sizes = [16, 16, 4], strides = [1, 1, 1]} : vector<18x32x4xf32> to vector<16x16x4xf32>
    %26 = vector.shape_cast %25 : vector<16x16x4xf32> to vector<256x4xf32>
    %27 = vector.extract_strided_slice %16 {offsets = [1, 9, 0], sizes = [16, 16, 4], strides = [1, 1, 1]} : vector<18x32x4xf32> to vector<16x16x4xf32>
    %28 = vector.shape_cast %27 : vector<16x16x4xf32> to vector<256x4xf32>
    %29 = vector.extract_strided_slice %16 {offsets = [2, 7, 0], sizes = [16, 16, 4], strides = [1, 1, 1]} : vector<18x32x4xf32> to vector<16x16x4xf32>
    %30 = vector.shape_cast %29 : vector<16x16x4xf32> to vector<256x4xf32>
    %31 = vector.extract_strided_slice %16 {offsets = [2, 8, 0], sizes = [16, 16, 4], strides = [1, 1, 1]} : vector<18x32x4xf32> to vector<16x16x4xf32>
    %32 = vector.shape_cast %31 : vector<16x16x4xf32> to vector<256x4xf32>
    %33 = vector.extract_strided_slice %16 {offsets = [2, 9, 0], sizes = [16, 16, 4], strides = [1, 1, 1]} : vector<18x32x4xf32> to vector<16x16x4xf32>
    %34 = vector.shape_cast %33 : vector<16x16x4xf32> to vector<256x4xf32>
    %35 = tpu.concatenate %18, %20, %22, %24, %26, %28, %30, %32, %34 in 1 : vector<256x4xf32>, vector<256x4xf32>, vector<256x4xf32>, vector<256x4xf32>, vector<256x4xf32>, vector<256x4xf32>, vector<256x4xf32>, vector<256x4xf32>, vector<256x4xf32> -> vector<256x36xf32>
    %c0_17 = arith.constant 0 : index
    %c0_18 = arith.constant 0 : index
    %36 = vector.load %arg4[%c0_17, %c0_18] : memref<36x8xf32, #tpu.memory_space<vmem>>, vector<36x8xf32>
    %cst_19 = arith.constant dense<0.000000e+00> : vector<256x8xf32>
    %37 = tpu.matmul %35, %36, %cst_19 {dimension_numbers = #tpu.dot_dimension_numbers<[1], [0], [0], [1], [0, 0, 1, 1], [], []>} : vector<256x36xf32>, vector<36x8xf32>, vector<256x8xf32> -> vector<256x8xf32>
    %c0_20 = arith.constant 0 : index
    %c0_21 = arith.constant 0 : index
    %38 = vector.load %arg5[%c0_20, %c0_21] : memref<1x8xf32, #tpu.memory_space<vmem>>, vector<1x8xf32>
    %39 = vector.broadcast %38 : vector<1x8xf32> to vector<256x8xf32>
    %40 = arith.addf %37, %39 : vector<256x8xf32>
    %41 = arith.addf %40, %2 : vector<256x8xf32>
    %cst_22 = arith.constant 0.000000e+00 : f32
    %42 = vector.broadcast %cst_22 : f32 to vector<256x8xf32>
    %43 = arith.maximumf %41, %42 : vector<256x8xf32>
    %44 = vector.shape_cast %43 : vector<256x8xf32> to vector<16x16x8xf32>
    %cst_23 = arith.constant 0.000000e+00 : f32
    %45 = vector.broadcast %cst_23 : f32 to vector<18x32x8xf32>
    %c0_24 = arith.constant 0 : index
    %c0_25 = arith.constant 0 : index
    %c0_26 = arith.constant 0 : index
    %46 = vector.load %arg18[%c0_24, %c0_25, %c0_26] : memref<18x32x8xf32, #tpu.memory_space<vmem>>, vector<18x32x8xf32>
    tpu.vector_store %arg18[%c0_24, %c0_25, %c0_26], %45 {strides = array<i32>} : memref<18x32x8xf32, #tpu.memory_space<vmem>>, vector<18x32x8xf32>,
    %c1_27 = arith.constant 1 : index
    %c8_28 = arith.constant 8 : index
    %c0_29 = arith.constant 0 : index
    %47 = vector.load %arg18[%c1_27, %c8_28, %c0_29] : memref<18x32x8xf32, #tpu.memory_space<vmem>>, vector<16x16x8xf32>
    tpu.vector_store %arg18[%c1_27, %c8_28, %c0_29], %44 {strides = array<i32>} : memref<18x32x8xf32, #tpu.memory_space<vmem>>, vector<16x16x8xf32>,
    %c0_30 = arith.constant 0 : index
    %c0_31 = arith.constant 0 : index
    %c0_32 = arith.constant 0 : index
    %48 = vector.load %arg18[%c0_30, %c0_31, %c0_32] : memref<18x32x8xf32, #tpu.memory_space<vmem>>, vector<18x32x8xf32>
    %49 = vector.extract_strided_slice %48 {offsets = [0, 7, 0], sizes = [16, 16, 8], strides = [1, 1, 1]} : vector<18x32x8xf32> to vector<16x16x8xf32>
    %50 = vector.shape_cast %49 : vector<16x16x8xf32> to vector<256x8xf32>
    %51 = vector.extract_strided_slice %48 {offsets = [0, 8, 0], sizes = [16, 16, 8], strides = [1, 1, 1]} : vector<18x32x8xf32> to vector<16x16x8xf32>
    %52 = vector.shape_cast %51 : vector<16x16x8xf32> to vector<256x8xf32>
    %53 = vector.extract_strided_slice %48 {offsets = [0, 9, 0], sizes = [16, 16, 8], strides = [1, 1, 1]} : vector<18x32x8xf32> to vector<16x16x8xf32>
    %54 = vector.shape_cast %53 : vector<16x16x8xf32> to vector<256x8xf32>
    %55 = vector.extract_strided_slice %48 {offsets = [1, 7, 0], sizes = [16, 16, 8], strides = [1, 1, 1]} : vector<18x32x8xf32> to vector<16x16x8xf32>
    %56 = vector.shape_cast %55 : vector<16x16x8xf32> to vector<256x8xf32>
    %57 = vector.extract_strided_slice %48 {offsets = [1, 8, 0], sizes = [16, 16, 8], strides = [1, 1, 1]} : vector<18x32x8xf32> to vector<16x16x8xf32>
    %58 = vector.shape_cast %57 : vector<16x16x8xf32> to vector<256x8xf32>
    %59 = vector.extract_strided_slice %48 {offsets = [1, 9, 0], sizes = [16, 16, 8], strides = [1, 1, 1]} : vector<18x32x8xf32> to vector<16x16x8xf32>
    %60 = vector.shape_cast %59 : vector<16x16x8xf32> to vector<256x8xf32>
    %61 = vector.extract_strided_slice %48 {offsets = [2, 7, 0], sizes = [16, 16, 8], strides = [1, 1, 1]} : vector<18x32x8xf32> to vector<16x16x8xf32>
    %62 = vector.shape_cast %61 : vector<16x16x8xf32> to vector<256x8xf32>
    %63 = vector.extract_strided_slice %48 {offsets = [2, 8, 0], sizes = [16, 16, 8], strides = [1, 1, 1]} : vector<18x32x8xf32> to vector<16x16x8xf32>
    %64 = vector.shape_cast %63 : vector<16x16x8xf32> to vector<256x8xf32>
    %65 = vector.extract_strided_slice %48 {offsets = [2, 9, 0], sizes = [16, 16, 8], strides = [1, 1, 1]} : vector<18x32x8xf32> to vector<16x16x8xf32>
    %66 = vector.shape_cast %65 : vector<16x16x8xf32> to vector<256x8xf32>
    %67 = tpu.concatenate %50, %52, %54, %56, %58, %60, %62, %64, %66 in 1 : vector<256x8xf32>, vector<256x8xf32>, vector<256x8xf32>, vector<256x8xf32>, vector<256x8xf32>, vector<256x8xf32>, vector<256x8xf32>, vector<256x8xf32>, vector<256x8xf32> -> vector<256x72xf32>
    %c0_33 = arith.constant 0 : index
    %c0_34 = arith.constant 0 : index
    %68 = vector.load %arg6[%c0_33, %c0_34] : memref<72x8xf32, #tpu.memory_space<vmem>>, vector<72x8xf32>
    %cst_35 = arith.constant dense<0.000000e+00> : vector<256x8xf32>
    %69 = tpu.matmul %67, %68, %cst_35 {dimension_numbers = #tpu.dot_dimension_numbers<[1], [0], [0], [1], [0, 0, 1, 1], [], []>} : vector<256x72xf32>, vector<72x8xf32>, vector<256x8xf32> -> vector<256x8xf32>
    %c0_36 = arith.constant 0 : index
    %c0_37 = arith.constant 0 : index
    %70 = vector.load %arg7[%c0_36, %c0_37] : memref<1x8xf32, #tpu.memory_space<vmem>>, vector<1x8xf32>
    %71 = vector.broadcast %70 : vector<1x8xf32> to vector<256x8xf32>
    %72 = arith.addf %69, %71 : vector<256x8xf32>
    %73 = vector.shape_cast %72 : vector<256x8xf32> to vector<8x2x16x8xf32>
    %74 = vector.extract_strided_slice %73 {offsets = [0, 0, 0, 0], sizes = [8, 1, 16, 8], strides = [1, 1, 1, 1]} : vector<8x2x16x8xf32> to vector<8x1x16x8xf32>
    %75 = vector.shape_cast %74 : vector<8x1x16x8xf32> to vector<8x16x8xf32>
    %76 = vector.extract_strided_slice %73 {offsets = [0, 1, 0, 0], sizes = [8, 1, 16, 8], strides = [1, 1, 1, 1]} : vector<8x2x16x8xf32> to vector<8x1x16x8xf32>
    %77 = vector.shape_cast %76 : vector<8x1x16x8xf32> to vector<8x16x8xf32>
    %78 = arith.maximumf %75, %77 : vector<8x16x8xf32>
    %79 = vector.shape_cast %78 : vector<8x16x8xf32> to vector<128x8xf32>
    %80 = vector.extract_strided_slice %73 {offsets = [0, 0, 0, 0], sizes = [8, 1, 16, 8], strides = [1, 1, 1, 1]} : vector<8x2x16x8xf32> to vector<8x1x16x8xf32>
    %81 = vector.shape_cast %80 : vector<8x1x16x8xf32> to vector<8x16x8xf32>
    %82 = vector.extract_strided_slice %73 {offsets = [0, 1, 0, 0], sizes = [8, 1, 16, 8], strides = [1, 1, 1, 1]} : vector<8x2x16x8xf32> to vector<8x1x16x8xf32>
    %83 = vector.shape_cast %82 : vector<8x1x16x8xf32> to vector<8x16x8xf32>
    %84 = arith.minimumf %81, %83 : vector<8x16x8xf32>
    %85 = vector.shape_cast %84 : vector<8x16x8xf32> to vector<128x8xf32>
    %c0_38 = arith.constant 0 : index
    %c0_39 = arith.constant 0 : index
    %86 = vector.load %arg10[%c0_38, %c0_39] : memref<64x128xf32, #tpu.memory_space<vmem>>, vector<64x128xf32>
    %c0_40 = arith.constant 0 : index
    %c0_41 = arith.constant 0 : index
    %87 = vector.load %arg11[%c0_40, %c0_41] : memref<64x128xf32, #tpu.memory_space<vmem>>, vector<64x128xf32>
    %cst_42 = arith.constant dense<0.000000e+00> : vector<64x8xf32>
    %88 = tpu.matmul %86, %79, %cst_42 {dimension_numbers = #tpu.dot_dimension_numbers<[1], [0], [0], [1], [0, 0, 1, 1], [], []>} : vector<64x128xf32>, vector<128x8xf32>, vector<64x8xf32> -> vector<64x8xf32>
    %cst_43 = arith.constant dense<0.000000e+00> : vector<64x8xf32>
    %89 = tpu.matmul %87, %79, %cst_43 {dimension_numbers = #tpu.dot_dimension_numbers<[1], [0], [0], [1], [0, 0, 1, 1], [], []>} : vector<64x128xf32>, vector<128x8xf32>, vector<64x8xf32> -> vector<64x8xf32>
    %90 = arith.maximumf %88, %89 : vector<64x8xf32>
    %cst_44 = arith.constant dense<0.000000e+00> : vector<64x8xf32>
    %91 = tpu.matmul %86, %85, %cst_44 {dimension_numbers = #tpu.dot_dimension_numbers<[1], [0], [0], [1], [0, 0, 1, 1], [], []>} : vector<64x128xf32>, vector<128x8xf32>, vector<64x8xf32> -> vector<64x8xf32>
    %cst_45 = arith.constant dense<0.000000e+00> : vector<64x8xf32>
    %92 = tpu.matmul %87, %85, %cst_45 {dimension_numbers = #tpu.dot_dimension_numbers<[1], [0], [0], [1], [0, 0, 1, 1], [], []>} : vector<64x128xf32>, vector<128x8xf32>, vector<64x8xf32> -> vector<64x8xf32>
    %93 = arith.minimumf %91, %92 : vector<64x8xf32>
    %94 = arith.addf %90, %93 : vector<64x8xf32>
    %cst_46 = arith.constant 0.000000e+00 : f32
    %95 = vector.broadcast %cst_46 : f32 to vector<64x8xf32>
    %96 = arith.maximumf %94, %95 : vector<64x8xf32>
    %97 = vector.shape_cast %96 : vector<64x8xf32> to vector<8x8x8xf32>
    %cst_47 = arith.constant 0.000000e+00 : f32
    %98 = vector.broadcast %cst_47 : f32 to vector<10x24x8xf32>
    %c0_48 = arith.constant 0 : index
    %c0_49 = arith.constant 0 : index
    %c0_50 = arith.constant 0 : index
    %99 = vector.load %arg19[%c0_48, %c0_49, %c0_50] : memref<10x24x8xf32, #tpu.memory_space<vmem>>, vector<10x24x8xf32>
    tpu.vector_store %arg19[%c0_48, %c0_49, %c0_50], %98 {strides = array<i32>} : memref<10x24x8xf32, #tpu.memory_space<vmem>>, vector<10x24x8xf32>,
    %c1_51 = arith.constant 1 : index
    %c8_52 = arith.constant 8 : index
    %c0_53 = arith.constant 0 : index
    %100 = vector.load %arg19[%c1_51, %c8_52, %c0_53] : memref<10x24x8xf32, #tpu.memory_space<vmem>>, vector<8x8x8xf32>
    tpu.vector_store %arg19[%c1_51, %c8_52, %c0_53], %97 {strides = array<i32>} : memref<10x24x8xf32, #tpu.memory_space<vmem>>, vector<8x8x8xf32>,
    %c0_54 = arith.constant 0 : index
    %c0_55 = arith.constant 0 : index
    %c0_56 = arith.constant 0 : index
    %101 = vector.load %arg19[%c0_54, %c0_55, %c0_56] : memref<10x24x8xf32, #tpu.memory_space<vmem>>, vector<10x24x8xf32>
    %102 = vector.extract_strided_slice %101 {offsets = [0, 7, 0], sizes = [8, 8, 8], strides = [1, 1, 1]} : vector<10x24x8xf32> to vector<8x8x8xf32>
    %103 = vector.shape_cast %102 : vector<8x8x8xf32> to vector<64x8xf32>
    %104 = vector.extract_strided_slice %101 {offsets = [0, 8, 0], sizes = [8, 8, 8], strides = [1, 1, 1]} : vector<10x24x8xf32> to vector<8x8x8xf32>
    %105 = vector.shape_cast %104 : vector<8x8x8xf32> to vector<64x8xf32>
    %106 = vector.extract_strided_slice %101 {offsets = [0, 9, 0], sizes = [8, 8, 8], strides = [1, 1, 1]} : vector<10x24x8xf32> to vector<8x8x8xf32>
    %107 = vector.shape_cast %106 : vector<8x8x8xf32> to vector<64x8xf32>
    %108 = vector.extract_strided_slice %101 {offsets = [1, 7, 0], sizes = [8, 8, 8], strides = [1, 1, 1]} : vector<10x24x8xf32> to vector<8x8x8xf32>
    %109 = vector.shape_cast %108 : vector<8x8x8xf32> to vector<64x8xf32>
    %110 = vector.extract_strided_slice %101 {offsets = [1, 8, 0], sizes = [8, 8, 8], strides = [1, 1, 1]} : vector<10x24x8xf32> to vector<8x8x8xf32>
    %111 = vector.shape_cast %110 : vector<8x8x8xf32> to vector<64x8xf32>
    %112 = vector.extract_strided_slice %101 {offsets = [1, 9, 0], sizes = [8, 8, 8], strides = [1, 1, 1]} : vector<10x24x8xf32> to vector<8x8x8xf32>
    %113 = vector.shape_cast %112 : vector<8x8x8xf32> to vector<64x8xf32>
    %114 = vector.extract_strided_slice %101 {offsets = [2, 7, 0], sizes = [8, 8, 8], strides = [1, 1, 1]} : vector<10x24x8xf32> to vector<8x8x8xf32>
    %115 = vector.shape_cast %114 : vector<8x8x8xf32> to vector<64x8xf32>
    %116 = vector.extract_strided_slice %101 {offsets = [2, 8, 0], sizes = [8, 8, 8], strides = [1, 1, 1]} : vector<10x24x8xf32> to vector<8x8x8xf32>
    %117 = vector.shape_cast %116 : vector<8x8x8xf32> to vector<64x8xf32>
    %118 = vector.extract_strided_slice %101 {offsets = [2, 9, 0], sizes = [8, 8, 8], strides = [1, 1, 1]} : vector<10x24x8xf32> to vector<8x8x8xf32>
    %119 = vector.shape_cast %118 : vector<8x8x8xf32> to vector<64x8xf32>
    %120 = tpu.concatenate %103, %105, %107, %109, %111, %113, %115, %117, %119 in 1 : vector<64x8xf32>, vector<64x8xf32>, vector<64x8xf32>, vector<64x8xf32>, vector<64x8xf32>, vector<64x8xf32>, vector<64x8xf32>, vector<64x8xf32>, vector<64x8xf32> -> vector<64x72xf32>
    %c0_57 = arith.constant 0 : index
    %c0_58 = arith.constant 0 : index
    %121 = vector.load %arg8[%c0_57, %c0_58] : memref<72x4xf32, #tpu.memory_space<vmem>>, vector<72x4xf32>
    %cst_59 = arith.constant dense<0.000000e+00> : vector<64x4xf32>
    %122 = tpu.matmul %120, %121, %cst_59 {dimension_numbers = #tpu.dot_dimension_numbers<[1], [0], [0], [1], [0, 0, 1, 1], [], []>} : vector<64x72xf32>, vector<72x4xf32>, vector<64x4xf32> -> vector<64x4xf32>
    %c0_60 = arith.constant 0 : index
    %c0_61 = arith.constant 0 : index
    %123 = vector.load %arg9[%c0_60, %c0_61] : memref<1x4xf32, #tpu.memory_space<vmem>>, vector<1x4xf32>
    %124 = vector.broadcast %123 : vector<1x4xf32> to vector<64x4xf32>
    %125 = arith.addf %122, %124 : vector<64x4xf32>
    %126 = vector.shape_cast %125 : vector<64x4xf32> to vector<8x8x4xf32>
    %c0_62 = arith.constant 0 : index
    %c0_63 = arith.constant 0 : index
    %c0_64 = arith.constant 0 : index
    %c0_65 = arith.constant 0 : index
    %127 = vector.load %arg16[%c0_62, %c0_63, %c0_64, %c0_65] : memref<1x8x8x4xf32, #tpu.memory_space<vmem>>, vector<1x8x8x4xf32>
    %128 = vector.shape_cast %127 : vector<1x8x8x4xf32> to vector<8x8x4xf32>
    %129 = vector.shape_cast %126 : vector<8x8x4xf32> to vector<1x8x8x4xf32>
    tpu.vector_store %arg16[%c0_62, %c0_63, %c0_64, %c0_65], %129 {strides = array<i32>} : memref<1x8x8x4xf32, #tpu.memory_space<vmem>>, vector<1x8x8x4xf32>,
    %c0_66 = arith.constant 0 : index
    %c0_67 = arith.constant 0 : index
    %130 = vector.load %arg12[%c0_66, %c0_67] : memref<256x64xf32, #tpu.memory_space<vmem>>, vector<256x64xf32>
    %cst_68 = arith.constant 0.000000e+00 : f32
    %131 = vector.broadcast %cst_68 : f32 to vector<64x4xf32>
    %132 = arith.maximumf %125, %131 : vector<64x4xf32>
    %cst_69 = arith.constant dense<0.000000e+00> : vector<256x4xf32>
    %133 = tpu.matmul %130, %132, %cst_69 {dimension_numbers = #tpu.dot_dimension_numbers<[1], [0], [0], [1], [0, 0, 1, 1], [], []>} : vector<256x64xf32>, vector<64x4xf32>, vector<256x4xf32> -> vector<256x4xf32>
    %134 = vector.shape_cast %133 : vector<256x4xf32> to vector<16x16x4xf32>
    %cst_70 = arith.constant 0.000000e+00 : f32
    %135 = vector.broadcast %cst_70 : f32 to vector<18x32x4xf32>
    %c0_71 = arith.constant 0 : index
    %c0_72 = arith.constant 0 : index
    %c0_73 = arith.constant 0 : index
    %136 = vector.load %arg20[%c0_71, %c0_72, %c0_73] : memref<18x32x4xf32, #tpu.memory_space<vmem>>, vector<18x32x4xf32>
    tpu.vector_store %arg20[%c0_71, %c0_72, %c0_73], %135 {strides = array<i32>} : memref<18x32x4xf32, #tpu.memory_space<vmem>>, vector<18x32x4xf32>,
    %c1_74 = arith.constant 1 : index
    %c8_75 = arith.constant 8 : index
    %c0_76 = arith.constant 0 : index
    %137 = vector.load %arg20[%c1_74, %c8_75, %c0_76] : memref<18x32x4xf32, #tpu.memory_space<vmem>>, vector<16x16x4xf32>
    tpu.vector_store %arg20[%c1_74, %c8_75, %c0_76], %134 {strides = array<i32>} : memref<18x32x4xf32, #tpu.memory_space<vmem>>, vector<16x16x4xf32>,
    %c0_77 = arith.constant 0 : index
    %c0_78 = arith.constant 0 : index
    %c0_79 = arith.constant 0 : index
    %138 = vector.load %arg20[%c0_77, %c0_78, %c0_79] : memref<18x32x4xf32, #tpu.memory_space<vmem>>, vector<18x32x4xf32>
    %139 = vector.extract_strided_slice %138 {offsets = [0, 7, 0], sizes = [16, 16, 4], strides = [1, 1, 1]} : vector<18x32x4xf32> to vector<16x16x4xf32>
    %140 = vector.shape_cast %139 : vector<16x16x4xf32> to vector<256x4xf32>
    %141 = vector.extract_strided_slice %138 {offsets = [0, 8, 0], sizes = [16, 16, 4], strides = [1, 1, 1]} : vector<18x32x4xf32> to vector<16x16x4xf32>
    %142 = vector.shape_cast %141 : vector<16x16x4xf32> to vector<256x4xf32>
    %143 = vector.extract_strided_slice %138 {offsets = [0, 9, 0], sizes = [16, 16, 4], strides = [1, 1, 1]} : vector<18x32x4xf32> to vector<16x16x4xf32>
    %144 = vector.shape_cast %143 : vector<16x16x4xf32> to vector<256x4xf32>
    %145 = vector.extract_strided_slice %138 {offsets = [1, 7, 0], sizes = [16, 16, 4], strides = [1, 1, 1]} : vector<18x32x4xf32> to vector<16x16x4xf32>
    %146 = vector.shape_cast %145 : vector<16x16x4xf32> to vector<256x4xf32>
    %147 = vector.extract_strided_slice %138 {offsets = [1, 8, 0], sizes = [16, 16, 4], strides = [1, 1, 1]} : vector<18x32x4xf32> to vector<16x16x4xf32>
    %148 = vector.shape_cast %147 : vector<16x16x4xf32> to vector<256x4xf32>
    %149 = vector.extract_strided_slice %138 {offsets = [1, 9, 0], sizes = [16, 16, 4], strides = [1, 1, 1]} : vector<18x32x4xf32> to vector<16x16x4xf32>
    %150 = vector.shape_cast %149 : vector<16x16x4xf32> to vector<256x4xf32>
    %151 = vector.extract_strided_slice %138 {offsets = [2, 7, 0], sizes = [16, 16, 4], strides = [1, 1, 1]} : vector<18x32x4xf32> to vector<16x16x4xf32>
    %152 = vector.shape_cast %151 : vector<16x16x4xf32> to vector<256x4xf32>
    %153 = vector.extract_strided_slice %138 {offsets = [2, 8, 0], sizes = [16, 16, 4], strides = [1, 1, 1]} : vector<18x32x4xf32> to vector<16x16x4xf32>
    %154 = vector.shape_cast %153 : vector<16x16x4xf32> to vector<256x4xf32>
    %155 = vector.extract_strided_slice %138 {offsets = [2, 9, 0], sizes = [16, 16, 4], strides = [1, 1, 1]} : vector<18x32x4xf32> to vector<16x16x4xf32>
    %156 = vector.shape_cast %155 : vector<16x16x4xf32> to vector<256x4xf32>
    %157 = tpu.concatenate %140, %142, %144, %146, %148, %150, %152, %154, %156 in 1 : vector<256x4xf32>, vector<256x4xf32>, vector<256x4xf32>, vector<256x4xf32>, vector<256x4xf32>, vector<256x4xf32>, vector<256x4xf32>, vector<256x4xf32>, vector<256x4xf32> -> vector<256x36xf32>
    %c0_80 = arith.constant 0 : index
    %c0_81 = arith.constant 0 : index
    %158 = vector.load %arg13[%c0_80, %c0_81] : memref<36x8xf32, #tpu.memory_space<vmem>>, vector<36x8xf32>
    %cst_82 = arith.constant dense<0.000000e+00> : vector<256x8xf32>
    %159 = tpu.matmul %157, %158, %cst_82 {dimension_numbers = #tpu.dot_dimension_numbers<[1], [0], [0], [1], [0, 0, 1, 1], [], []>} : vector<256x36xf32>, vector<36x8xf32>, vector<256x8xf32> -> vector<256x8xf32>
    %c0_83 = arith.constant 0 : index
    %c0_84 = arith.constant 0 : index
    %160 = vector.load %arg14[%c0_83, %c0_84] : memref<1x8xf32, #tpu.memory_space<vmem>>, vector<1x8xf32>
    %161 = vector.broadcast %160 : vector<1x8xf32> to vector<256x8xf32>
    %162 = arith.addf %159, %161 : vector<256x8xf32>
    %163 = arith.addf %41, %72 : vector<256x8xf32>
    %164 = arith.addf %163, %162 : vector<256x8xf32>
    %165 = vector.shape_cast %164 : vector<256x8xf32> to vector<16x16x8xf32>
    %c0_85 = arith.constant 0 : index
    %c0_86 = arith.constant 0 : index
    %c0_87 = arith.constant 0 : index
    %c0_88 = arith.constant 0 : index
    %166 = vector.load %arg15[%c0_85, %c0_86, %c0_87, %c0_88] : memref<1x16x16x8xf32, #tpu.memory_space<vmem>>, vector<1x16x16x8xf32>
    %167 = vector.shape_cast %166 : vector<1x16x16x8xf32> to vector<16x16x8xf32>
    %168 = vector.shape_cast %165 : vector<16x16x8xf32> to vector<1x16x16x8xf32>
    tpu.vector_store %arg15[%c0_85, %c0_86, %c0_87, %c0_88], %168 {strides = array<i32>} : memref<1x16x16x8xf32, #tpu.memory_space<vmem>>, vector<1x16x16x8xf32>,
    return
  }
  func.func @transform_0(%arg0: i32) -> (i32, i32, i32, i32) {
    %c0_i32 = arith.constant 0 : i32
    %c0_i32_0 = arith.constant 0 : i32
    %c0_i32_1 = arith.constant 0 : i32
    %c0_i32_2 = arith.constant 0 : i32
    return %arg0, %c0_i32, %c0_i32_0, %c0_i32_1 : i32, i32, i32, i32
  }
  func.func @transform_1(%arg0: i32) -> (i32, i32) {
    %c0_i32 = arith.constant 0 : i32
    %c0_i32_0 = arith.constant 0 : i32
    %c0_i32_1 = arith.constant 0 : i32
    return %c0_i32, %c0_i32_0 : i32, i32
  }
  func.func @transform_2(%arg0: i32) -> (i32, i32) {
    %c0_i32 = arith.constant 0 : i32
    %c0_i32_0 = arith.constant 0 : i32
    %c0_i32_1 = arith.constant 0 : i32
    return %c0_i32, %c0_i32_0 : i32, i32
  }
  func.func @transform_3(%arg0: i32) -> (i32, i32) {
    %c0_i32 = arith.constant 0 : i32
    %c0_i32_0 = arith.constant 0 : i32
    %c0_i32_1 = arith.constant 0 : i32
    return %c0_i32, %c0_i32_0 : i32, i32
  }
  func.func @transform_4(%arg0: i32) -> (i32, i32) {
    %c0_i32 = arith.constant 0 : i32
    %c0_i32_0 = arith.constant 0 : i32
    %c0_i32_1 = arith.constant 0 : i32
    return %c0_i32, %c0_i32_0 : i32, i32
  }
  func.func @transform_5(%arg0: i32) -> (i32, i32) {
    %c0_i32 = arith.constant 0 : i32
    %c0_i32_0 = arith.constant 0 : i32
    %c0_i32_1 = arith.constant 0 : i32
    return %c0_i32, %c0_i32_0 : i32, i32
  }
  func.func @transform_6(%arg0: i32) -> (i32, i32) {
    %c0_i32 = arith.constant 0 : i32
    %c0_i32_0 = arith.constant 0 : i32
    %c0_i32_1 = arith.constant 0 : i32
    return %c0_i32, %c0_i32_0 : i32, i32
  }
  func.func @transform_7(%arg0: i32) -> (i32, i32) {
    %c0_i32 = arith.constant 0 : i32
    %c0_i32_0 = arith.constant 0 : i32
    %c0_i32_1 = arith.constant 0 : i32
    return %c0_i32, %c0_i32_0 : i32, i32
  }
  func.func @transform_8(%arg0: i32) -> (i32, i32) {
    %c0_i32 = arith.constant 0 : i32
    %c0_i32_0 = arith.constant 0 : i32
    %c0_i32_1 = arith.constant 0 : i32
    return %c0_i32, %c0_i32_0 : i32, i32
  }
  func.func @transform_9(%arg0: i32) -> (i32, i32) {
    %c0_i32 = arith.constant 0 : i32
    %c0_i32_0 = arith.constant 0 : i32
    %c0_i32_1 = arith.constant 0 : i32
    return %c0_i32, %c0_i32_0 : i32, i32
  }
  func.func @transform_10(%arg0: i32) -> (i32, i32) {
    %c0_i32 = arith.constant 0 : i32
    %c0_i32_0 = arith.constant 0 : i32
    %c0_i32_1 = arith.constant 0 : i32
    return %c0_i32, %c0_i32_0 : i32, i32
  }
  func.func @transform_11(%arg0: i32) -> (i32, i32) {
    %c0_i32 = arith.constant 0 : i32
    %c0_i32_0 = arith.constant 0 : i32
    %c0_i32_1 = arith.constant 0 : i32
    return %c0_i32, %c0_i32_0 : i32, i32
  }
  func.func @transform_12(%arg0: i32) -> (i32, i32) {
    %c0_i32 = arith.constant 0 : i32
    %c0_i32_0 = arith.constant 0 : i32
    %c0_i32_1 = arith.constant 0 : i32
    return %c0_i32, %c0_i32_0 : i32, i32
  }
  func.func @transform_13(%arg0: i32) -> (i32, i32) {
    %c0_i32 = arith.constant 0 : i32
    %c0_i32_0 = arith.constant 0 : i32
    %c0_i32_1 = arith.constant 0 : i32
    return %c0_i32, %c0_i32_0 : i32, i32
  }
  func.func @transform_14(%arg0: i32) -> (i32, i32, i32, i32) {
    %c0_i32 = arith.constant 0 : i32
    %c0_i32_0 = arith.constant 0 : i32
    %c0_i32_1 = arith.constant 0 : i32
    %c0_i32_2 = arith.constant 0 : i32
    return %arg0, %c0_i32, %c0_i32_0, %c0_i32_1 : i32, i32, i32, i32
  }
  func.func @transform_15(%arg0: i32) -> (i32, i32, i32, i32) {
    %c0_i32 = arith.constant 0 : i32
    %c0_i32_0 = arith.constant 0 : i32
    %c0_i32_1 = arith.constant 0 : i32
    %c0_i32_2 = arith.constant 0 : i32
    return %arg0, %c0_i32, %c0_i32_0, %c0_i32_1 : i32, i32, i32, i32
  }
}

</mosaic_0001>

<bundles_post_ra>
// kernel: action_prediction_block.1
= control target key start
LH: loop header
LB: loop body
LE: loop exit
PB: predicated region body
PF: predicated region fallthrough
CT: control target
= control target key end

     0   :  { %s9264_s18 = smov 0   ;;  %s15088_s0 = inlined_call_operand.vmem [shape: f32[2,16,16,8], index: 0, kind: input, shape index: {}]   ;;  %s15089_s1 = inlined_call_operand.vmem [shape: f32[8,4], index: 1, kind: input, shape index: {}]   ;;  %s15090_s2 = inlined_call_operand.vmem [shape: f32[1,4], index: 2, kind: input, shape index: {}]   ;;  %s15091_s3 = inlined_call_operand.vmem [shape: f32[36,8], index: 3, kind: input, shape index: {}]   ;;  %s15092_s4 = inlined_call_operand.vmem [shape: f32[1,8], index: 4, kind: input, shape index: {}]   ;;  %s15093_s5 = inlined_call_operand.vmem [shape: f32[72,8], index: 5, kind: input, shape index: {}]   ;;  %s15094_s6 = inlined_call_operand.vmem [shape: f32[1,8], index: 6, kind: input, shape index: {}]   ;;  %s15095_s7 = inlined_call_operand.vmem [shape: f32[72,4], index: 7, kind: input, shape index: {}]   ;;  %s15096_s8 = inlined_call_operand.vmem [shape: f32[1,4], index: 8, kind: input, shape index: {}]   ;;  %s15097_s9 = inlined_call_operand.vmem [shape: f32[64,128], index: 9, kind: input, shape index: {}]   ;;  %s15098_s10 = inlined_call_operand.vmem [shape: f32[64,128], index: 10, kind: input, shape index: {}]   ;;  %s15099_s11 = inlined_call_operand.vmem [shape: f32[256,64], index: 11, kind: input, shape index: {}]   ;;  %s15100_s12 = inlined_call_operand.vmem [shape: f32[36,8], index: 12, kind: input, shape index: {}]   ;;  %s15101_s13 = inlined_call_operand.vmem [shape: f32[1,8], index: 13, kind: input, shape index: {}]   ;;  %s15102_s14 = inlined_call_operand.vmem [shape: f32[2,16,16,8], index: 14, kind: output, shape index: {0}]   ;;  %s15103_s15 = inlined_call_operand.vmem [shape: f32[2,8,8,4], index: 15, kind: output, shape index: {1}]  }
   0x1 LB: > { %s8099_s19 = sadd.s32 4294967295, %s9169_s18   ;;  %p8103_p0 = scmp.ge.s32.totalorder %s9169_s18, 1  ;;  %s9169_s18 = sphi %s9264_s18, %s26_s18  }
   0x2   : > { %p440_p1 = scmp.lt.s32.totalorder %s9169_s18, 3 }
   0x4   : > { %p441_p2 = pnand %p8103_p0, %p440_p1 }
   0x6   : > { %444 = sbr.rel (%p441_p2) target bundleno = 3320 (0xcf8), region = 76 }
   0xb   : > { %v572_v0 = vld [vmem:[%s15089_s1] sm:$0xff]  ;;  %p493_p3 = scmp.lt.s32.totalorder %s8099_s19, 1  ;;  %vm580_vm0 = vcmask 64512   ;;  %vm934_vm1 = vcmask 31744   ;;  %v9171_v31 = vmov 0.0   ;;  %s15149_s26 = smov 4  }
   0xc   : > { %8591 = vmatprep.subr.mxu0 %v572_v0  ;;  %941 = vst.msk [vmem:[#allocation2 + $0x30] sm:$0xff] %vm934_vm1, %v9171_v31  ;;  %935 = vst.msk [vmem:[#allocation2] sm:$0xff] %vm934_vm1, %v9171_v31  ;;  %vm1289_vm2 = vcmask 1046528   ;;  %s9173_s27 = smov 8   ;;  %v9838_v54 = vld [vmem:[%s15090_s2] ss:$0 sm:$0xff] }
   0xd   : > { %8592 = vmatpush3.msra.mxu0 %v572_v0  ;;  %s15330_s19 = smov (!%p493_p3, %s8099_s19), 1  ;;  %936 = vst.msk [vmem:[#allocation2 + $0x8] sm:$0xff] %vm934_vm1, %v9171_v31  ;;  %937 = vst.msk [vmem:[#allocation2 + $0x10] sm:$0xff] %vm934_vm1, %v9171_v31  ;;  %s15105_s30 = smov 16   ;;  %vm1160_vm3 = vcmask 1040384   ;;  %vm2537_vm4 = vcmask 1043456  }
   0xe   : > { %s15104_s22 = sshll.u32 %s15330_s19, 8  ;;  %938 = vst.msk [vmem:[#allocation2 + $0x18] sm:$0xff] %vm934_vm1, %v9171_v31  ;;  %939 = vst.msk [vmem:[#allocation2 + $0x20] sm:$0xff] %vm934_vm1, %v9171_v31  ;;  %s15107_s16 = smov 12   ;;  %vm2230_vm5 = vcmask 97280   ;;  %vm2263_vm6 = vcmask 130048  }
   0xf   : > { %s9283_s25 = scalar_lea.vmem %s15088_s0, %s15104_s22  ;;  %940 = vst.msk [vmem:[#allocation2 + $0x28] sm:$0xff] %vm934_vm1, %v9171_v31  ;;  %942 = vst.msk [vmem:[#allocation2 + $0x38] sm:$0xff] %vm934_vm1, %v9171_v31  ;;  %s15109_s17 = smov 20   ;;  %vm2329_vm7 = vcmask 195584   ;;  %vm2296_vm8 = vcmask 162816   ;;  %vm2362_vm9 = vcmask 228352  }
  0x10   : > { %v508_v1 = vld [vmem:[%s9283_s25] sm:$0xff]  ;;  %v509_v2 = vld [vmem:[%s9283_s25 + $0x8] sm:$0xff]  ;;  %v510_v3 = vld [vmem:[%s9283_s25 + $0x10] sm:$0xff]  ;;  %943 = vst.msk [vmem:[#allocation2 + $0x40] sm:$0xff] %vm934_vm1, %v9171_v31  ;;  %s15145_s20 = smov 28   ;;  %s15165_s21 = smov 32  }
  0x11   : > { %v540_v4 = vmax.f32 %v508_v1, 0.0  ;;  %v541_v5 = vmax.f32 %v509_v2, 0.0  ;;  %v542_v6 = vmax.f32 %v510_v3, 0.0  ;;  %v511_v7 = vld [vmem:[%s9283_s25 + $0x18] sm:$0xff]  ;;  %v512_v8 = vld [vmem:[%s9283_s25 + $0x20] sm:$0xff]  ;;  %v513_v11 = vld [vmem:[%s9283_s25 + $0x28] sm:$0xff] }
  0x12   : > { %v543_v9 = vmax.f32 %v511_v7, 0.0  ;;  %v544_v10 = vmax.f32 %v512_v8, 0.0  ;;  %v514_v12 = vld [vmem:[%s9283_s25 + $0x30] sm:$0xff]  ;;  %v545_v13 = vmax.f32 %v513_v11, 0.0  ;;  %v515_v15 = vld [vmem:[%s9283_s25 + $0x38] sm:$0xff]  ;;  %v516_v16 = vld [vmem:[%s9283_s25 + $0x40] sm:$0xff] }
  0x13   : > { %8593 = vmatprep.mubr.msk.f32.mxu0 %vm580_vm0, %v540_v4  ;;  %v546_v14 = vmax.f32 %v514_v12, 0.0  ;;  %v547_v17 = vmax.f32 %v515_v15, 0.0  ;;  %v548_v18 = vmax.f32 %v516_v16, 0.0  ;;  %v517_v19 = vld [vmem:[%s9283_s25 + $0x48] sm:$0xff]  ;;  %v518_v20 = vld [vmem:[%s9283_s25 + $0x50] sm:$0xff]  ;;  %v519_v23 = vld [vmem:[%s9283_s25 + $0x58] sm:$0xff] }
  0x14   : > { %8594 = vmatmul.mubr.msk.f32.vlgmr.msra.gmra.mxu0 %vm580_vm0, %v541_v5  ;;  %v549_v21 = vmax.f32 %v517_v19, 0.0  ;;  %v550_v22 = vmax.f32 %v518_v20, 0.0  ;;  %v520_v24 = vld [vmem:[%s9283_s25 + $0x60] sm:$0xff]  ;;  %v551_v25 = vmax.f32 %v519_v23, 0.0  ;;  %v521_v27 = vld [vmem:[%s9283_s25 + $0x68] sm:$0xff]  ;;  %v522_v28 = vld [vmem:[%s9283_s25 + $0x70] sm:$0xff] }
  0x15   : > { %8596 = vmatprep.mubr.msk.f32.mxu0 %vm580_vm0, %v542_v6  ;;  %v552_v26 = vmax.f32 %v520_v24, 0.0  ;;  %v553_v29 = vmax.f32 %v521_v27, 0.0  ;;  %v554_v30 = vmax.f32 %v522_v28, 0.0  ;;  %944 = vst.msk [vmem:[#allocation2 + $0x48] sm:$0xff] %vm934_vm1, %v9171_v31  ;;  %945 = vst.msk [vmem:[#allocation2 + $0x50] sm:$0xff] %vm934_vm1, %v9171_v31  ;;  %v523_v32 = vld [vmem:[%s9283_s25 + $0x78] sm:$0xff] }
  0x16   : > { %946 = vst.msk [vmem:[#allocation2 + $0x58] sm:$0xff] %vm934_vm1, %v9171_v31  ;;  %947 = vst.msk [vmem:[#allocation2 + $0x60] sm:$0xff] %vm934_vm1, %v9171_v31  ;;  %v555_v33 = vmax.f32 %v523_v32, 0.0  ;;  %v9809_v34 = vld [vmem:[#allocation2 + $0x8] sm:$0xff]  ;;  %v9811_v35 = vld [vmem:[#allocation2 + $0x10] sm:$0xff]  ;;  %s15160_s22 = smov 24  }
  0x17   : > { %948 = vst.msk [vmem:[#allocation2 + $0x68] sm:$0xff] %vm934_vm1, %v9171_v31  ;;  %949 = vst.msk [vmem:[#allocation2 + $0x70] sm:$0xff] %vm934_vm1, %v9171_v31  ;;  %v1290_v36 = vrot.slane %v9809_v34, 1  ;;  %v1291_v37 = vrot.slane %v9811_v35, 1  ;;  %1398 = vrot.lane.b32.xlu0 %v9809_v34, %s15149_s26  ;;  %v1043_v39 = vld [vmem:[#allocation2 + $0x18] sm:$0xff]  ;;  %v524_v42 = vld [vmem:[%s9283_s25 + $0x80] sm:$0xff] }
  0x18   : > { %8597 = vmatmul.mubr.msk.f32.gmra.mxu0 %vm580_vm0, %v543_v9  ;;  %950 = vst.msk [vmem:[#allocation2 + $0x78] sm:$0xff] %vm934_vm1, %v9171_v31  ;;  %951 = vst.msk [vmem:[#allocation2 + $0x80] sm:$0xff] %vm934_vm1, %v9171_v31  ;;  %v1293_v40 = vrot.slane %v1043_v39, 1  ;;  %v556_v43 = vmax.f32 %v524_v42, 0.0  ;;  %v525_v44 = vld [vmem:[%s9283_s25 + $0x88] sm:$0xff]  ;;  %v526_v46 = vld [vmem:[%s9283_s25 + $0x90] sm:$0xff] }
  0x19   : > { %8599 = vmatprep.mubr.msk.f32.mxu0 %vm580_vm0, %v544_v10  ;;  %952 = vst.msk [vmem:[#allocation2 + $0x88] sm:$0xff] %vm934_vm1, %v9171_v31  ;;  %953 = vst.msk [vmem:[#allocation2 + $0x90] sm:$0xff] %vm934_vm1, %v9171_v31  ;;  %v1292_v38 = vsel %vm1289_vm2, %v1290_v36, %v1291_v37  ;;  %v557_v45 = vmax.f32 %v525_v44, 0.0  ;;  %v558_v47 = vmax.f32 %v526_v46, 0.0  ;;  %v527_v48 = vld [vmem:[%s9283_s25 + $0x98] sm:$0xff]  ;;  %v528_v50 = vld [vmem:[%s9283_s25 + $0xa0] sm:$0xff] }
  0x1a   : > { %954 = vst.msk [vmem:[#allocation2 + $0x98] sm:$0xff] %vm934_vm1, %v9171_v31  ;;  %955 = vst.msk [vmem:[#allocation2 + $0xa0] sm:$0xff] %vm934_vm1, %v9171_v31  ;;  %1494 = vrot.lane.b32.xlu1 %v1292_v38, %s9173_s27  ;;  %v1294_v41 = vsel %vm1289_vm2, %v1291_v37, %v1293_v40  ;;  %v559_v49 = vmax.f32 %v527_v48, 0.0  ;;  %v560_v51 = vmax.f32 %v528_v50, 0.0  ;;  %v529_v52 = vld [vmem:[%s9283_s25 + $0xa8] sm:$0xff]  ;;  %v530_v2 = vld [vmem:[%s9283_s25 + $0xb0] sm:$0xff] }
  0x1b   : > { %956 = vst.msk [vmem:[#allocation2 + $0xa8] sm:$0xff] %vm934_vm1, %v9171_v31  ;;  %957 = vst.msk [vmem:[#allocation2 + $0xb0] sm:$0xff] %vm934_vm1, %v9171_v31  ;;  %1400 = vrot.lane.b32.xlu0 %v9811_v35, %s15149_s26  ;;  %v561_v53 = vmax.f32 %v529_v52, 0.0  ;;  %v562_v4 = vmax.f32 %v530_v2, 0.0  ;;  %v531_v5 = vld [vmem:[%s9283_s25 + $0xb8] sm:$0xff]  ;;  %v1044_v46 = vld [vmem:[#allocation2 + $0x20] sm:$0xff] }
  0x1c   : > { %8600 = vmatmul.mubr.msk.f32.gmra.mxu0 %vm580_vm0, %v545_v13  ;;  %958 = vst.msk [vmem:[#allocation2 + $0xb8] sm:$0xff] %vm934_vm1, %v9171_v31  ;;  %959 = vst.msk [vmem:[#allocation2 + $0xc0] sm:$0xff] %vm934_vm1, %v9171_v31  ;;  %v563_v8 = vmax.f32 %v531_v5, 0.0  ;;  %vm2395_vm10 = vcmask 261120   ;;  %vm15111_vm11 = vcmask 293888   ;;  %s9180_s24 = smov 40  }
  0x1d   : > { %8602 = vmatprep.mubr.msk.f32.mxu0 %vm580_vm0, %v546_v14  ;;  %960 = vst.msk [vmem:[#allocation2 + $0xc8] sm:$0xff] %vm934_vm1, %v9171_v31  ;;  %961 = vst.msk [vmem:[#allocation2 + $0xd0] sm:$0xff] %vm934_vm1, %v9171_v31  ;;  %v1051_v50 = vld [vmem:[#allocation2 + $0x58] sm:$0xff]  ;;  %s9181_s29 = smov 56   ;;  %s9182_s28 = smov 48   ;;  %vm4220_vm12 = vcmask 392192  }
  0x1e   : > { %962 = vst.msk [vmem:[#allocation2 + $0xd8] sm:$0xff] %vm934_vm1, %v9171_v31  ;;  %963 = vst.msk [vmem:[#allocation2 + $0xe0] sm:$0xff] %vm934_vm1, %v9171_v31  ;;  %1496 = vrot.lane.b32.xlu1 %v1294_v41, %s9173_s27  ;;  %s15151_s23 = smov 64   ;;  %vm4187_vm13 = vcmask 326656   ;;  %vm4253_vm14 = vcmask 457728   ;;  %vm4286_vm15 = vcmask 523264  }
  0x1f   : > { %964 = vst.msk [vmem:[#allocation2 + $0xe8] sm:$0xff] %vm934_vm1, %v9171_v31  ;;  %965 = vst.msk [vmem:[#allocation2 + $0xf0] sm:$0xff] %vm934_vm1, %v9171_v31 }
  0x20   : > { %8603 = vmatmul.mubr.msk.f32.gmra.mxu0 %vm580_vm0, %v547_v17  ;;  %966 = vst.msk [vmem:[#allocation2 + $0xf8] sm:$0xff] %vm934_vm1, %v9171_v31  ;;  %967 = vst.msk [vmem:[#allocation2 + $0x100] sm:$0xff] %vm934_vm1, %v9171_v31 }
  0x21   : > { %8605 = vmatprep.mubr.msk.f32.mxu0 %vm580_vm0, %v548_v18  ;;  %968 = vst.msk [vmem:[#allocation2 + $0x108] sm:$0xff] %vm934_vm1, %v9171_v31  ;;  %969 = vst.msk [vmem:[#allocation2 + $0x110] sm:$0xff] %vm934_vm1, %v9171_v31 }
  0x22   : > { %970 = vst.msk [vmem:[#allocation2 + $0x118] sm:$0xff] %vm934_vm1, %v9171_v31  ;;  %971 = vst.msk [vmem:[#allocation2 + $0x120] sm:$0xff] %vm934_vm1, %v9171_v31 }
  0x23   : > { %972 = vst.msk [vmem:[#allocation2 + $0x128] sm:$0xff] %vm934_vm1, %v9171_v31  ;;  %973 = vst.msk [vmem:[#allocation2 + $0x130] sm:$0xff] %vm934_vm1, %v9171_v31 }
  0x24   : > { %8606 = vmatmul.mubr.msk.f32.gmra.mxu0 %vm580_vm0, %v549_v21  ;;  %974 = vst.msk [vmem:[#allocation2 + $0x138] sm:$0xff] %vm934_vm1, %v9171_v31  ;;  %975 = vst.msk [vmem:[#allocation2 + $0x140] sm:$0xff] %vm934_vm1, %v9171_v31 }
  0x25   : > { %8608 = vmatprep.mubr.msk.f32.mxu0 %vm580_vm0, %v550_v22  ;;  %976 = vst.msk [vmem:[#allocation2 + $0x148] sm:$0xff] %vm934_vm1, %v9171_v31  ;;  %977 = vst.msk [vmem:[#allocation2 + $0x150] sm:$0xff] %vm934_vm1, %v9171_v31  ;;  %v1047_v22 = vld [vmem:[#allocation2 + $0x38] sm:$0xff] }
  0x26   : > { %978 = vst.msk [vmem:[#allocation2 + $0x158] sm:$0xff] %vm934_vm1, %v9171_v31  ;;  %979 = vst.msk [vmem:[#allocation2 + $0x160] sm:$0xff] %vm934_vm1, %v9171_v31 }
  0x27   : > { %980 = vst.msk [vmem:[#allocation2 + $0x168] sm:$0xff] %vm934_vm1, %v9171_v31  ;;  %981 = vst.msk [vmem:[#allocation2 + $0x170] sm:$0xff] %vm934_vm1, %v9171_v31 }
  0x28   : > { %8609 = vmatmul.mubr.msk.f32.gmra.mxu0 %vm580_vm0, %v551_v25  ;;  %982 = vst.msk [vmem:[#allocation2 + $0x178] sm:$0xff] %vm934_vm1, %v9171_v31  ;;  %983 = vst.msk [vmem:[#allocation2 + $0x180] sm:$0xff] %vm934_vm1, %v9171_v31 }
  0x29   : > { %8611 = vmatprep.mubr.msk.f32.mxu0 %vm580_vm0, %v552_v26  ;;  %984 = vst.msk [vmem:[#allocation2 + $0x188] sm:$0xff] %vm934_vm1, %v9171_v31  ;;  %985 = vst.msk [vmem:[#allocation2 + $0x190] sm:$0xff] %vm934_vm1, %v9171_v31 }
  0x2a   : > { %986 = vst.msk [vmem:[#allocation2 + $0x198] sm:$0xff] %vm934_vm1, %v9171_v31  ;;  %987 = vst.msk [vmem:[#allocation2 + $0x1a0] sm:$0xff] %vm934_vm1, %v9171_v31 }
  0x2b   : > { %988 = vst.msk [vmem:[#allocation2 + $0x1a8] sm:$0xff] %vm934_vm1, %v9171_v31  ;;  %989 = vst.msk [vmem:[#allocation2 + $0x1b0] sm:$0xff] %vm934_vm1, %v9171_v31 }
  0x2c   : > { %8612 = vmatmul.mubr.msk.f32.gmra.mxu0 %vm580_vm0, %v553_v29  ;;  %990 = vst.msk [vmem:[#allocation2 + $0x1b8] sm:$0xff] %vm934_vm1, %v9171_v31  ;;  %991 = vst.msk [vmem:[#allocation2 + $0x1c0] sm:$0xff] %vm934_vm1, %v9171_v31 }
  0x2d   : > { %8614 = vmatprep.mubr.msk.f32.mxu0 %vm580_vm0, %v554_v30  ;;  %992 = vst.msk [vmem:[#allocation2 + $0x1c8] sm:$0xff] %vm934_vm1, %v9171_v31  ;;  %993 = vst.msk [vmem:[#allocation2 + $0x1d0] sm:$0xff] %vm934_vm1, %v9171_v31  ;;  %v1298_v30 = vrot.slane %v1047_v22, 1 }
  0x2e   : > { %994 = vst.msk [vmem:[#allocation2 + $0x1d8] sm:$0xff] %vm934_vm1, %v9171_v31  ;;  %995 = vst.msk [vmem:[#allocation2 + $0x1e0] sm:$0xff] %vm934_vm1, %v9171_v31 }
  0x2f   : > { %996 = vst.msk [vmem:[#allocation2 + $0x1e8] sm:$0xff] %vm934_vm1, %v9171_v31  ;;  %997 = vst.msk [vmem:[#allocation2 + $0x1f0] sm:$0xff] %vm934_vm1, %v9171_v31 }
  0x30   : > { %998 = vst.msk [vmem:[#allocation2 + $0x1f8] sm:$0xff] %vm934_vm1, %v9171_v31  ;;  %999 = vst.msk [vmem:[#allocation2 + $0x200] sm:$0xff] %vm934_vm1, %v9171_v31  ;;  %8615 = vmatmul.mubr.msk.f32.gmra.mxu0 %vm580_vm0, %v555_v33 }
  0x31   : > { %1000 = vst.msk [vmem:[#allocation2 + $0x208] sm:$0xff] %vm934_vm1, %v9171_v31  ;;  %1001 = vst.msk [vmem:[#allocation2 + $0x210] sm:$0xff] %vm934_vm1, %v9171_v31  ;;  %8617 = vmatprep.mubr.msk.f32.mxu0 %vm580_vm0, %v556_v43 }
  0x32   : > { %1002 = vst.msk [vmem:[#allocation2 + $0x218] sm:$0xff] %vm934_vm1, %v9171_v31  ;;  %1003 = vst.msk [vmem:[#allocation2 + $0x220] sm:$0xff] %vm934_vm1, %v9171_v31 }
  0x33   : > { %1004 = vst.msk [vmem:[#allocation2 + $0x228] sm:$0xff] %vm934_vm1, %v9171_v31  ;;  %1005 = vst.msk [vmem:[#allocation2 + $0x230] sm:$0xff] %vm934_vm1, %v9171_v31 }
  0x34   : > { %1006 = vst.msk [vmem:[#allocation2 + $0x238] sm:$0xff] %vm934_vm1, %v9171_v31  ;;  %6094 = vst.msk [vmem:[#allocation5] sm:$0xff] %vm934_vm1, %v9171_v31  ;;  %8618 = vmatmul.mubr.msk.f32.gmra.mxu0 %vm580_vm0, %v557_v45 }
  0x35   : > { %2830 = vst.msk [vmem:[#allocation3] sm:$0xff] %vm580_vm0, %v9171_v31  ;;  %2831 = vst.msk [vmem:[#allocation3 + $0x8] sm:$0xff] %vm580_vm0, %v9171_v31  ;;  %8620 = vmatprep.mubr.msk.f32.mxu0 %vm580_vm0, %v558_v47 }
  0x36   : > { %2832 = vst.msk [vmem:[#allocation3 + $0x10] sm:$0xff] %vm580_vm0, %v9171_v31  ;;  %2833 = vst.msk [vmem:[#allocation3 + $0x18] sm:$0xff] %vm580_vm0, %v9171_v31 }
  0x37   : > { %2834 = vst.msk [vmem:[#allocation3 + $0x20] sm:$0xff] %vm580_vm0, %v9171_v31  ;;  %2835 = vst.msk [vmem:[#allocation3 + $0x28] sm:$0xff] %vm580_vm0, %v9171_v31 }
  0x38   : > { %2836 = vst.msk [vmem:[#allocation3 + $0x30] sm:$0xff] %vm580_vm0, %v9171_v31  ;;  %2837 = vst.msk [vmem:[#allocation3 + $0x38] sm:$0xff] %vm580_vm0, %v9171_v31  ;;  %8621 = vmatmul.mubr.msk.f32.gmra.mxu0 %vm580_vm0, %v559_v49 }
  0x39   : > { %2838 = vst.msk [vmem:[#allocation3 + $0x40] sm:$0xff] %vm580_vm0, %v9171_v31  ;;  %2839 = vst.msk [vmem:[#allocation3 + $0x48] sm:$0xff] %vm580_vm0, %v9171_v31  ;;  %8623 = vmatprep.mubr.msk.f32.mxu0 %vm580_vm0, %v560_v51 }
  0x3a   : > { %2840 = vst.msk [vmem:[#allocation3 + $0x50] sm:$0xff] %vm580_vm0, %v9171_v31  ;;  %2841 = vst.msk [vmem:[#allocation3 + $0x58] sm:$0xff] %vm580_vm0, %v9171_v31 }
  0x3b   : > { %2842 = vst.msk [vmem:[#allocation3 + $0x60] sm:$0xff] %vm580_vm0, %v9171_v31  ;;  %2843 = vst.msk [vmem:[#allocation3 + $0x68] sm:$0xff] %vm580_vm0, %v9171_v31 }
  0x3c   : > { %2844 = vst.msk [vmem:[#allocation3 + $0x70] sm:$0xff] %vm580_vm0, %v9171_v31  ;;  %2845 = vst.msk [vmem:[#allocation3 + $0x78] sm:$0xff] %vm580_vm0, %v9171_v31  ;;  %8624 = vmatmul.mubr.msk.f32.gmra.mxu0 %vm580_vm0, %v561_v53  ;;  %v1166_v53 = vrot.slane %v1044_v46, 7 }
  0x3d   : > { %2846 = vst.msk [vmem:[#allocation3 + $0x80] sm:$0xff] %vm580_vm0, %v9171_v31  ;;  %2847 = vst.msk [vmem:[#allocation3 + $0x88] sm:$0xff] %vm580_vm0, %v9171_v31  ;;  %8626 = vmatprep.mubr.msk.f32.mxu0 %vm580_vm0, %v562_v4 }
  0x3e   : > { %2848 = vst.msk [vmem:[#allocation3 + $0x90] sm:$0xff] %vm580_vm0, %v9171_v31  ;;  %2849 = vst.msk [vmem:[#allocation3 + $0x98] sm:$0xff] %vm580_vm0, %v9171_v31 }
  0x3f   : > { %2850 = vst.msk [vmem:[#allocation3 + $0xa0] sm:$0xff] %vm580_vm0, %v9171_v31  ;;  %2851 = vst.msk [vmem:[#allocation3 + $0xa8] sm:$0xff] %vm580_vm0, %v9171_v31 }
  0x40   : > { %2852 = vst.msk [vmem:[#allocation3 + $0xb0] sm:$0xff] %vm580_vm0, %v9171_v31  ;;  %2853 = vst.msk [vmem:[#allocation3 + $0xb8] sm:$0xff] %vm580_vm0, %v9171_v31  ;;  %8627 = vmatmul.mubr.msk.f32.gmra.mxu0 %vm580_vm0, %v563_v8  ;;  %v2429_v8 = vld [vmem:[%s15091_s3 + $0x8] sm:$0xff] }
  0x41   : > { %2854 = vst.msk [vmem:[#allocation3 + $0xc0] sm:$0xff] %vm580_vm0, %v9171_v31  ;;  %2855 = vst.msk [vmem:[#allocation3 + $0xc8] sm:$0xff] %vm580_vm0, %v9171_v31 }
  0x42   : > { %2856 = vst.msk [vmem:[#allocation3 + $0xd0] sm:$0xff] %vm580_vm0, %v9171_v31  ;;  %2857 = vst.msk [vmem:[#allocation3 + $0xd8] sm:$0xff] %vm580_vm0, %v9171_v31 }
  0x43   : > { %2858 = vst.msk [vmem:[#allocation3 + $0xe0] sm:$0xff] %vm580_vm0, %v9171_v31  ;;  %2859 = vst.msk [vmem:[#allocation3 + $0xe8] sm:$0xff] %vm580_vm0, %v9171_v31 }
  0x44   : > { %2860 = vst.msk [vmem:[#allocation3 + $0xf0] sm:$0xff] %vm580_vm0, %v9171_v31  ;;  %2861 = vst.msk [vmem:[#allocation3 + $0xf8] sm:$0xff] %vm580_vm0, %v9171_v31 }
  0x45   : > { %2862 = vst.msk [vmem:[#allocation3 + $0x100] sm:$0xff] %vm580_vm0, %v9171_v31  ;;  %2863 = vst.msk [vmem:[#allocation3 + $0x108] sm:$0xff] %vm580_vm0, %v9171_v31 }
  0x46   : > { %2864 = vst.msk [vmem:[#allocation3 + $0x110] sm:$0xff] %vm580_vm0, %v9171_v31  ;;  %2865 = vst.msk [vmem:[#allocation3 + $0x118] sm:$0xff] %vm580_vm0, %v9171_v31 }
  0x47   : > { %2866 = vst.msk [vmem:[#allocation3 + $0x120] sm:$0xff] %vm580_vm0, %v9171_v31  ;;  %2867 = vst.msk [vmem:[#allocation3 + $0x128] sm:$0xff] %vm580_vm0, %v9171_v31 }
  0x48   : > { %2868 = vst.msk [vmem:[#allocation3 + $0x130] sm:$0xff] %vm580_vm0, %v9171_v31  ;;  %2869 = vst.msk [vmem:[#allocation3 + $0x138] sm:$0xff] %vm580_vm0, %v9171_v31 }
  0x49   : > { %2870 = vst.msk [vmem:[#allocation3 + $0x140] sm:$0xff] %vm580_vm0, %v9171_v31  ;;  %2871 = vst.msk [vmem:[#allocation3 + $0x148] sm:$0xff] %vm580_vm0, %v9171_v31 }
  0x4a   : > { %2872 = vst.msk [vmem:[#allocation3 + $0x150] sm:$0xff] %vm580_vm0, %v9171_v31  ;;  %2873 = vst.msk [vmem:[#allocation3 + $0x158] sm:$0xff] %vm580_vm0, %v9171_v31 }
  0x4b   : > { %2874 = vst.msk [vmem:[#allocation3 + $0x160] sm:$0xff] %vm580_vm0, %v9171_v31  ;;  %2875 = vst.msk [vmem:[#allocation3 + $0x168] sm:$0xff] %vm580_vm0, %v9171_v31 }
  0x4c   : > { %2876 = vst.msk [vmem:[#allocation3 + $0x170] sm:$0xff] %vm580_vm0, %v9171_v31  ;;  %2877 = vst.msk [vmem:[#allocation3 + $0x178] sm:$0xff] %vm580_vm0, %v9171_v31 }
  0x4d   : > { %2878 = vst.msk [vmem:[#allocation3 + $0x180] sm:$0xff] %vm580_vm0, %v9171_v31  ;;  %2879 = vst.msk [vmem:[#allocation3 + $0x188] sm:$0xff] %vm580_vm0, %v9171_v31 }
  0x4e   : > { %2880 = vst.msk [vmem:[#allocation3 + $0x190] sm:$0xff] %vm580_vm0, %v9171_v31  ;;  %2881 = vst.msk [vmem:[#allocation3 + $0x198] sm:$0xff] %vm580_vm0, %v9171_v31 }
  0x4f   : > { %2882 = vst.msk [vmem:[#allocation3 + $0x1a0] sm:$0xff] %vm580_vm0, %v9171_v31  ;;  %2883 = vst.msk [vmem:[#allocation3 + $0x1a8] sm:$0xff] %vm580_vm0, %v9171_v31 }
  0x50   : > { %2884 = vst.msk [vmem:[#allocation3 + $0x1b0] sm:$0xff] %vm580_vm0, %v9171_v31  ;;  %2885 = vst.msk [vmem:[#allocation3 + $0x1b8] sm:$0xff] %vm580_vm0, %v9171_v31 }
  0x51   : > { %2886 = vst.msk [vmem:[#allocation3 + $0x1c0] sm:$0xff] %vm580_vm0, %v9171_v31  ;;  %2887 = vst.msk [vmem:[#allocation3 + $0x1c8] sm:$0xff] %vm580_vm0, %v9171_v31 }
  0x52   : > { %2888 = vst.msk [vmem:[#allocation3 + $0x1d0] sm:$0xff] %vm580_vm0, %v9171_v31  ;;  %2889 = vst.msk [vmem:[#allocation3 + $0x1d8] sm:$0xff] %vm580_vm0, %v9171_v31 }
  0x53   : > { %2890 = vst.msk [vmem:[#allocation3 + $0x1e0] sm:$0xff] %vm580_vm0, %v9171_v31  ;;  %2891 = vst.msk [vmem:[#allocation3 + $0x1e8] sm:$0xff] %vm580_vm0, %v9171_v31 }
  0x54   : > { %2892 = vst.msk [vmem:[#allocation3 + $0x1f0] sm:$0xff] %vm580_vm0, %v9171_v31  ;;  %2893 = vst.msk [vmem:[#allocation3 + $0x1f8] sm:$0xff] %vm580_vm0, %v9171_v31 }
  0x55   : > { %2894 = vst.msk [vmem:[#allocation3 + $0x200] sm:$0xff] %vm580_vm0, %v9171_v31  ;;  %2895 = vst.msk [vmem:[#allocation3 + $0x208] sm:$0xff] %vm580_vm0, %v9171_v31 }
  0x56   : > { %2896 = vst.msk [vmem:[#allocation3 + $0x210] sm:$0xff] %vm580_vm0, %v9171_v31  ;;  %2897 = vst.msk [vmem:[#allocation3 + $0x218] sm:$0xff] %vm580_vm0, %v9171_v31 }
  0x57   : > { %2898 = vst.msk [vmem:[#allocation3 + $0x220] sm:$0xff] %vm580_vm0, %v9171_v31  ;;  %2899 = vst.msk [vmem:[#allocation3 + $0x228] sm:$0xff] %vm580_vm0, %v9171_v31 }
  0x58   : > { %2900 = vst.msk [vmem:[#allocation3 + $0x230] sm:$0xff] %vm580_vm0, %v9171_v31  ;;  %2901 = vst.msk [vmem:[#allocation3 + $0x238] sm:$0xff] %vm580_vm0, %v9171_v31 }
  0x59   : > { %5157 = vst.msk [vmem:[#allocation4] sm:$0xff] %vm580_vm0, %v9171_v31  ;;  %5158 = vst.msk [vmem:[#allocation4 + $0x8] sm:$0xff] %vm580_vm0, %v9171_v31 }
  0x5a   : > { %5159 = vst.msk [vmem:[#allocation4 + $0x10] sm:$0xff] %vm580_vm0, %v9171_v31  ;;  %5160 = vst.msk [vmem:[#allocation4 + $0x18] sm:$0xff] %vm580_vm0, %v9171_v31 }
  0x5b   : > { %5161 = vst.msk [vmem:[#allocation4 + $0x20] sm:$0xff] %vm580_vm0, %v9171_v31  ;;  %5162 = vst.msk [vmem:[#allocation4 + $0x28] sm:$0xff] %vm580_vm0, %v9171_v31 }
  0x5c   : > { %5163 = vst.msk [vmem:[#allocation4 + $0x30] sm:$0xff] %vm580_vm0, %v9171_v31  ;;  %5164 = vst.msk [vmem:[#allocation4 + $0x38] sm:$0xff] %vm580_vm0, %v9171_v31 }
  0x5d   : > { %5165 = vst.msk [vmem:[#allocation4 + $0x40] sm:$0xff] %vm580_vm0, %v9171_v31  ;;  %5166 = vst.msk [vmem:[#allocation4 + $0x48] sm:$0xff] %vm580_vm0, %v9171_v31 }
  0x5e   : > { %5167 = vst.msk [vmem:[#allocation4 + $0x50] sm:$0xff] %vm580_vm0, %v9171_v31  ;;  %5168 = vst.msk [vmem:[#allocation4 + $0x58] sm:$0xff] %vm580_vm0, %v9171_v31 }
  0x5f   : > { %5169 = vst.msk [vmem:[#allocation4 + $0x60] sm:$0xff] %vm580_vm0, %v9171_v31  ;;  %5170 = vst.msk [vmem:[#allocation4 + $0x68] sm:$0xff] %vm580_vm0, %v9171_v31 }
  0x60   : > { %5171 = vst.msk [vmem:[#allocation4 + $0x70] sm:$0xff] %vm580_vm0, %v9171_v31  ;;  %5172 = vst.msk [vmem:[#allocation4 + $0x78] sm:$0xff] %vm580_vm0, %v9171_v31 }
  0x61   : > { %5173 = vst.msk [vmem:[#allocation4 + $0x80] sm:$0xff] %vm580_vm0, %v9171_v31  ;;  %5174 = vst.msk [vmem:[#allocation4 + $0x88] sm:$0xff] %vm580_vm0, %v9171_v31 }
  0x62   : > { %5175 = vst.msk [vmem:[#allocation4 + $0x90] sm:$0xff] %vm580_vm0, %v9171_v31  ;;  %5176 = vst.msk [vmem:[#allocation4 + $0x98] sm:$0xff] %vm580_vm0, %v9171_v31 }
  0x63   : > { %5177 = vst.msk [vmem:[#allocation4 + $0xa0] sm:$0xff] %vm580_vm0, %v9171_v31  ;;  %5178 = vst.msk [vmem:[#allocation4 + $0xa8] sm:$0xff] %vm580_vm0, %v9171_v31 }
  0x64   : > { %5179 = vst.msk [vmem:[#allocation4 + $0xb0] sm:$0xff] %vm580_vm0, %v9171_v31  ;;  %5180 = vst.msk [vmem:[#allocation4 + $0xb8] sm:$0xff] %vm580_vm0, %v9171_v31 }
  0x65   : > { %5181 = vst.msk [vmem:[#allocation4 + $0xc0] sm:$0xff] %vm580_vm0, %v9171_v31  ;;  %5182 = vst.msk [vmem:[#allocation4 + $0xc8] sm:$0xff] %vm580_vm0, %v9171_v31 }
  0x66   : > { %5183 = vst.msk [vmem:[#allocation4 + $0xd0] sm:$0xff] %vm580_vm0, %v9171_v31  ;;  %5184 = vst.msk [vmem:[#allocation4 + $0xd8] sm:$0xff] %vm580_vm0, %v9171_v31 }
  0x67   : > { %5185 = vst.msk [vmem:[#allocation4 + $0xe0] sm:$0xff] %vm580_vm0, %v9171_v31  ;;  %5186 = vst.msk [vmem:[#allocation4 + $0xe8] sm:$0xff] %vm580_vm0, %v9171_v31 }
  0x68   : > { %6095 = vst.msk [vmem:[#allocation5 + $0x8] sm:$0xff] %vm934_vm1, %v9171_v31  ;;  %6096 = vst.msk [vmem:[#allocation5 + $0x10] sm:$0xff] %vm934_vm1, %v9171_v31 }
  0x69   : > { %6097 = vst.msk [vmem:[#allocation5 + $0x18] sm:$0xff] %vm934_vm1, %v9171_v31  ;;  %6098 = vst.msk [vmem:[#allocation5 + $0x20] sm:$0xff] %vm934_vm1, %v9171_v31 }
  0x6a   : > { %6099 = vst.msk [vmem:[#allocation5 + $0x28] sm:$0xff] %vm934_vm1, %v9171_v31  ;;  %6100 = vst.msk [vmem:[#allocation5 + $0x30] sm:$0xff] %vm934_vm1, %v9171_v31 }
  0x6b   : > { %6101 = vst.msk [vmem:[#allocation5 + $0x38] sm:$0xff] %vm934_vm1, %v9171_v31  ;;  %6102 = vst.msk [vmem:[#allocation5 + $0x40] sm:$0xff] %vm934_vm1, %v9171_v31 }
  0x6c   : > { %6103 = vst.msk [vmem:[#allocation5 + $0x48] sm:$0xff] %vm934_vm1, %v9171_v31  ;;  %6104 = vst.msk [vmem:[#allocation5 + $0x50] sm:$0xff] %vm934_vm1, %v9171_v31 }
  0x6d   : > { %6105 = vst.msk [vmem:[#allocation5 + $0x58] sm:$0xff] %vm934_vm1, %v9171_v31  ;;  %6106 = vst.msk [vmem:[#allocation5 + $0x60] sm:$0xff] %vm934_vm1, %v9171_v31 }
  0x6e   : > { %6107 = vst.msk [vmem:[#allocation5 + $0x68] sm:$0xff] %vm934_vm1, %v9171_v31  ;;  %6108 = vst.msk [vmem:[#allocation5 + $0x70] sm:$0xff] %vm934_vm1, %v9171_v31 }
  0x6f   : > { %6109 = vst.msk [vmem:[#allocation5 + $0x78] sm:$0xff] %vm934_vm1, %v9171_v31  ;;  %6110 = vst.msk [vmem:[#allocation5 + $0x80] sm:$0xff] %vm934_vm1, %v9171_v31 }
  0x70   : > { %6111 = vst.msk [vmem:[#allocation5 + $0x88] sm:$0xff] %vm934_vm1, %v9171_v31  ;;  %6112 = vst.msk [vmem:[#allocation5 + $0x90] sm:$0xff] %vm934_vm1, %v9171_v31 }
  0x71   : > { %6113 = vst.msk [vmem:[#allocation5 + $0x98] sm:$0xff] %vm934_vm1, %v9171_v31  ;;  %6114 = vst.msk [vmem:[#allocation5 + $0xa0] sm:$0xff] %vm934_vm1, %v9171_v31 }
  0x72   : > { %6115 = vst.msk [vmem:[#allocation5 + $0xa8] sm:$0xff] %vm934_vm1, %v9171_v31  ;;  %6116 = vst.msk [vmem:[#allocation5 + $0xb0] sm:$0xff] %vm934_vm1, %v9171_v31 }
  0x73   : > { %6117 = vst.msk [vmem:[#allocation5 + $0xb8] sm:$0xff] %vm934_vm1, %v9171_v31  ;;  %6118 = vst.msk [vmem:[#allocation5 + $0xc0] sm:$0xff] %vm934_vm1, %v9171_v31 }
  0x74   : > { %6119 = vst.msk [vmem:[#allocation5 + $0xc8] sm:$0xff] %vm934_vm1, %v9171_v31  ;;  %6120 = vst.msk [vmem:[#allocation5 + $0xd0] sm:$0xff] %vm934_vm1, %v9171_v31 }
  0x75   : > { %6121 = vst.msk [vmem:[#allocation5 + $0xd8] sm:$0xff] %vm934_vm1, %v9171_v31  ;;  %6122 = vst.msk [vmem:[#allocation5 + $0xe0] sm:$0xff] %vm934_vm1, %v9171_v31 }
  0x76   : > { %6123 = vst.msk [vmem:[#allocation5 + $0xe8] sm:$0xff] %vm934_vm1, %v9171_v31  ;;  %6124 = vst.msk [vmem:[#allocation5 + $0xf0] sm:$0xff] %vm934_vm1, %v9171_v31 }
  0x77   : > { %6125 = vst.msk [vmem:[#allocation5 + $0xf8] sm:$0xff] %vm934_vm1, %v9171_v31  ;;  %6126 = vst.msk [vmem:[#allocation5 + $0x100] sm:$0xff] %vm934_vm1, %v9171_v31 }
  0x78   : > { %6127 = vst.msk [vmem:[#allocation5 + $0x108] sm:$0xff] %vm934_vm1, %v9171_v31  ;;  %6128 = vst.msk [vmem:[#allocation5 + $0x110] sm:$0xff] %vm934_vm1, %v9171_v31 }
  0x79   : > { %6129 = vst.msk [vmem:[#allocation5 + $0x118] sm:$0xff] %vm934_vm1, %v9171_v31  ;;  %6130 = vst.msk [vmem:[#allocation5 + $0x120] sm:$0xff] %vm934_vm1, %v9171_v31 }
  0x7a   : > { %6131 = vst.msk [vmem:[#allocation5 + $0x128] sm:$0xff] %vm934_vm1, %v9171_v31  ;;  %6132 = vst.msk [vmem:[#allocation5 + $0x130] sm:$0xff] %vm934_vm1, %v9171_v31 }
  0x7b   : > { %6133 = vst.msk [vmem:[#allocation5 + $0x138] sm:$0xff] %vm934_vm1, %v9171_v31  ;;  %6134 = vst.msk [vmem:[#allocation5 + $0x140] sm:$0xff] %vm934_vm1, %v9171_v31 }
  0x7c   : > { %6135 = vst.msk [vmem:[#allocation5 + $0x148] sm:$0xff] %vm934_vm1, %v9171_v31  ;;  %6136 = vst.msk [vmem:[#allocation5 + $0x150] sm:$0xff] %vm934_vm1, %v9171_v31 }
  0x7d   : > { %6137 = vst.msk [vmem:[#allocation5 + $0x158] sm:$0xff] %vm934_vm1, %v9171_v31  ;;  %6138 = vst.msk [vmem:[#allocation5 + $0x160] sm:$0xff] %vm934_vm1, %v9171_v31 }
  0x7e   : > { %6139 = vst.msk [vmem:[#allocation5 + $0x168] sm:$0xff] %vm934_vm1, %v9171_v31  ;;  %6140 = vst.msk [vmem:[#allocation5 + $0x170] sm:$0xff] %vm934_vm1, %v9171_v31 }
  0x7f   : > { %6141 = vst.msk [vmem:[#allocation5 + $0x178] sm:$0xff] %vm934_vm1, %v9171_v31  ;;  %6142 = vst.msk [vmem:[#allocation5 + $0x180] sm:$0xff] %vm934_vm1, %v9171_v31 }
  0x80   : > { %6143 = vst.msk [vmem:[#allocation5 + $0x188] sm:$0xff] %vm934_vm1, %v9171_v31  ;;  %6144 = vst.msk [vmem:[#allocation5 + $0x190] sm:$0xff] %vm934_vm1, %v9171_v31 }
  0x81   : > { %6145 = vst.msk [vmem:[#allocation5 + $0x198] sm:$0xff] %vm934_vm1, %v9171_v31  ;;  %6146 = vst.msk [vmem:[#allocation5 + $0x1a0] sm:$0xff] %vm934_vm1, %v9171_v31 }
  0x82   : > { %6147 = vst.msk [vmem:[#allocation5 + $0x1a8] sm:$0xff] %vm934_vm1, %v9171_v31  ;;  %6148 = vst.msk [vmem:[#allocation5 + $0x1b0] sm:$0xff] %vm934_vm1, %v9171_v31 }
  0x83   : > { %6149 = vst.msk [vmem:[#allocation5 + $0x1b8] sm:$0xff] %vm934_vm1, %v9171_v31  ;;  %6150 = vst.msk [vmem:[#allocation5 + $0x1c0] sm:$0xff] %vm934_vm1, %v9171_v31 }
  0x84   : > { %6151 = vst.msk [vmem:[#allocation5 + $0x1c8] sm:$0xff] %vm934_vm1, %v9171_v31  ;;  %6152 = vst.msk [vmem:[#allocation5 + $0x1d0] sm:$0xff] %vm934_vm1, %v9171_v31 }
  0x85   : > { %6153 = vst.msk [vmem:[#allocation5 + $0x1d8] sm:$0xff] %vm934_vm1, %v9171_v31  ;;  %6154 = vst.msk [vmem:[#allocation5 + $0x1e0] sm:$0xff] %vm934_vm1, %v9171_v31 }
  0x86   : > { %6155 = vst.msk [vmem:[#allocation5 + $0x1e8] sm:$0xff] %vm934_vm1, %v9171_v31  ;;  %6156 = vst.msk [vmem:[#allocation5 + $0x1f0] sm:$0xff] %vm934_vm1, %v9171_v31 }
  0x87   : > { %6157 = vst.msk [vmem:[#allocation5 + $0x1f8] sm:$0xff] %vm934_vm1, %v9171_v31  ;;  %6158 = vst.msk [vmem:[#allocation5 + $0x200] sm:$0xff] %vm934_vm1, %v9171_v31 }
  0x88   : > { %6159 = vst.msk [vmem:[#allocation5 + $0x208] sm:$0xff] %vm934_vm1, %v9171_v31  ;;  %6160 = vst.msk [vmem:[#allocation5 + $0x210] sm:$0xff] %vm934_vm1, %v9171_v31 }
  0x89   : > { %6161 = vst.msk [vmem:[#allocation5 + $0x218] sm:$0xff] %vm934_vm1, %v9171_v31  ;;  %6162 = vst.msk [vmem:[#allocation5 + $0x220] sm:$0xff] %vm934_vm1, %v9171_v31 }
  0x8a   : > { %6163 = vst.msk [vmem:[#allocation5 + $0x228] sm:$0xff] %vm934_vm1, %v9171_v31  ;;  %6164 = vst.msk [vmem:[#allocation5 + $0x230] sm:$0xff] %vm934_vm1, %v9171_v31 }
  0x8b   : > { %6165 = vst.msk [vmem:[#allocation5 + $0x238] sm:$0xff] %vm934_vm1, %v9171_v31 }
  0xd4   : > { %v8595_v55 = vpop.f32.mrf.mxu0 }
  0xd5   : > { %v749_v56 = vadd.f32 %v8595_v55, %v9838_v54 }
  0xd6   : > { %v743_v57 = vpop.f32.mrf.mxu0 }
  0xd7   : > { %v903_v58 = vmax.f32 %v749_v56, 0.0  ;;  %v744_v59 = vadd.f32 %v9838_v54, %v743_v57  ;;  %v1303_v57 = vrot.slane %v1051_v50, 1  ;;  %v1056_v50 = vld [vmem:[#allocation2 + $0x80] sm:$0xff] }
  0xd8   : > { %v8598_v60 = vpop.f32.mrf.mxu0 }
  0xd9   : > { %1009 = vst.msk [vmem:[#allocation2 + $0x30] sm:$0xff] %vm934_vm1, %v903_v58  ;;  %v902_v61 = vmax.f32 %v744_v59, 0.0  ;;  %v759_v62 = vadd.f32 %v8598_v60, %v9838_v54  ;;  %v532_v58 = vld [vmem:[%s9283_s25 + $0xc0] sm:$0xff] }
  0xda   : > { %v753_v63 = vpop.f32.mrf.mxu0  ;;  %v564_v60 = vmax.f32 %v532_v58, 0.0 }
  0xdb   : > { %1008 = vst.msk [vmem:[#allocation2 + $0x28] sm:$0xff] %vm934_vm1, %v902_v61  ;;  %v905_v0 = vmax.f32 %v759_v62, 0.0  ;;  %v754_v1 = vadd.f32 %v9838_v54, %v753_v63  ;;  %v533_v61 = vld [vmem:[%s9283_s25 + $0xc8] sm:$0xff] }
  0xdc   : > { %v8601_v3 = vpop.f32.mrf.mxu0  ;;  %v565_v62 = vmax.f32 %v533_v61, 0.0  ;;  %8629 = vmatprep.mubr.msk.f32.mxu0 %vm580_vm0, %v564_v60 }
  0xdd   : > { %1011 = vst.msk [vmem:[#allocation2 + $0x50] sm:$0xff] %vm934_vm1, %v905_v0  ;;  %v904_v6 = vmax.f32 %v754_v1, 0.0  ;;  %v769_v7 = vadd.f32 %v8601_v3, %v9838_v54  ;;  %v1048_v0 = vld [vmem:[#allocation2 + $0x40] sm:$0xff]  ;;  %v2431_v3 = vld [vmem:[%s15091_s3 + $0x18] sm:$0xff] }
  0xde   : > { %v763_v9 = vpop.f32.mrf.mxu0  ;;  %8630 = vmatmul.mubr.msk.f32.gmra.mxu0 %vm580_vm0, %v565_v62  ;;  %v2432_v1 = vld [vmem:[%s15091_s3 + $0x20] sm:$0xf]  ;;  %v1171_v4 = vrot.slane %v1048_v0, 7  ;;  %v10032_v0 = vpop.permute.xlu1 %1494 }
  0xdf   : > { %1010 = vst.msk [vmem:[#allocation2 + $0x48] sm:$0xff] %vm934_vm1, %v904_v6  ;;  %v907_v10 = vmax.f32 %v769_v7, 0.0  ;;  %v764_v11 = vadd.f32 %v9838_v54, %v763_v9  ;;  %8641 = vmatprep.subr.msk.mxu1 %vm2537_vm4, %v2432_v1  ;;  %v2430_v6 = vld [vmem:[%s15091_s3 + $0x10] sm:$0xff]  ;;  %v2428_v9 = vld [vmem:[%s15091_s3] sm:$0xff] }
  0xe0   : > { %v1046_v12 = vld [vmem:[#allocation2 + $0x30] sm:$0xff]  ;;  %v8604_v13 = vpop.f32.mrf.mxu0  ;;  %8642 = vmatpush3.msk.msra.mxu1 %vm2537_vm4, %v2432_v1 }
  0xe1   : > { %1688 = vrot.lane.b32.xlu0 %v1046_v12, %s15105_s30  ;;  %1013 = vst.msk [vmem:[#allocation2 + $0x70] sm:$0xff] %vm934_vm1, %v907_v10  ;;  %v906_v14 = vmax.f32 %v764_v11, 0.0  ;;  %v779_v15 = vadd.f32 %v8604_v13, %v9838_v54  ;;  %v1169_v28 = vrot.slane %v1046_v12, 7  ;;  %v1296_v29 = vrot.slane %v1046_v12, 1  ;;  %8643 = vmatprep.subr.mxu1 %v2431_v3 }
  0xe2   : > { %v9857_v16 = vld [vmem:[#allocation2 + $0x28] sm:$0xff]  ;;  %v773_v17 = vpop.f32.mrf.mxu0  ;;  %8644 = vmatpush3.msra.mxu1 %v2431_v3 }
  0xe3   : > { %1402 = vrot.lane.b32.xlu1 %v9857_v16, %s15149_s26  ;;  %1012 = vst.msk [vmem:[#allocation2 + $0x68] sm:$0xff] %vm934_vm1, %v906_v14  ;;  %v909_v18 = vmax.f32 %v779_v15, 0.0  ;;  %v774_v20 = vadd.f32 %v9838_v54, %v773_v17  ;;  %v1167_v23 = vrot.slane %v9857_v16, 7  ;;  %v1295_v36 = vrot.slane %v9857_v16, 1  ;;  %8645 = vmatprep.subr.mxu1 %v2430_v6 }
  0xe4   : > { %v9862_v19 = vld [vmem:[#allocation2 + $0x50] sm:$0xff]  ;;  %v8607_v21 = vpop.f32.mrf.mxu0  ;;  %v1299_v41 = vsel %vm1289_vm2, %v1296_v29, %v1298_v30  ;;  %8646 = vmatpush3.msra.mxu1 %v2430_v6 }
  0xe5   : > { %1404 = vrot.lane.b32.xlu0 %v1046_v12, %s15149_s26  ;;  %1015 = vst.msk [vmem:[#allocation2 + $0x90] sm:$0xff] %vm934_vm1, %v909_v18  ;;  %v908_v24 = vmax.f32 %v774_v20, 0.0  ;;  %v789_v25 = vadd.f32 %v8607_v21, %v9838_v54  ;;  %v9876_v33 = vsel %vm1160_vm3, %v1167_v23, %v1169_v28  ;;  %v1297_v43 = vsel %vm1289_vm2, %v1295_v36, %v1296_v29  ;;  %v1055_v18 = vld [vmem:[#allocation2 + $0x78] sm:$0xff]  ;;  %v1052_v29 = vld [vmem:[#allocation2 + $0x60] sm:$0xff] }
  0xe6   : > { %v783_v26 = vpop.f32.mrf.mxu0  ;;  %v1049_v48 = vld [vmem:[#allocation2 + $0x48] sm:$0xff]  ;;  %v1301_v56 = vrot.slane %v9862_v19, 1  ;;  %v9906_v59 = vsel %vm1160_vm3, %v1166_v53, %v1167_v23  ;;  %8647 = vmatprep.subr.mxu1 %v2429_v8  ;;  %v1174_v12 = vrot.slane %v9862_v19, 7  ;;  %v1308_v23 = vrot.slane %v1055_v18, 1  ;;  %v538_v18 = vld [vmem:[%s9283_s25 + $0xf0] sm:$0xff] }
  0xe7   : > { %1692 = vrot.lane.b32.xlu1 %v9862_v19, %s15105_s30  ;;  %v784_v27 = vadd.f32 %v9838_v54, %v783_v26  ;;  %1014 = vst.msk [vmem:[#allocation2 + $0x88] sm:$0xff] %vm934_vm1, %v908_v24  ;;  %v911_v31 = vmax.f32 %v789_v25, 0.0  ;;  %v1172_v5 = vrot.slane %v1049_v48, 7  ;;  %8648 = vmatpush3.msra.mxu1 %v2429_v8  ;;  %v1300_v10 = vrot.slane %v1049_v48, 1  ;;  %v534_v24 = vld [vmem:[%s9283_s25 + $0xd0] sm:$0xff]  ;;  %v535_v26 = vld [vmem:[%s9283_s25 + $0xd8] sm:$0xff] }
  0xe8   : > { %v8610_v32 = vpop.f32.mrf.mxu0  ;;  %v1304_v63 = vsel %vm1289_vm2, %v1301_v56, %v1303_v57  ;;  %v9918_v2 = vld [vmem:[#allocation2 + $0x70] sm:$0xff]  ;;  %8649 = vmatprep.subr.mxu1 %v2428_v9  ;;  %v566_v25 = vmax.f32 %v534_v24, 0.0 }
  0xe9   : > { %1686 = vrot.lane.b32.xlu0 %v9857_v16, %s15105_s30  ;;  %1017 = vst.msk [vmem:[#allocation2 + $0xb0] sm:$0xff] %vm934_vm1, %v911_v31  ;;  %v910_v37 = vmax.f32 %v784_v27, 0.0  ;;  %v799_v38 = vadd.f32 %v8610_v32, %v9838_v54  ;;  %v9933_v7 = vsel %vm1160_vm3, %v1171_v4, %v1172_v5  ;;  %8650 = vmatpush3.msra.mxu1 %v2428_v9  ;;  %v1306_v22 = vrot.slane %v9918_v2, 1  ;;  %v10042_v4 = vpop.permute.xlu1 %1496 }
  0xea   : > { %v793_v39 = vpop.f32.mrf.mxu0  ;;  %v1302_v11 = vsel %vm1289_vm2, %v1300_v10, %v1301_v56  ;;  %v9955_v13 = vsel %vm1160_vm3, %v1172_v5, %v1174_v12  ;;  %v1053_v16 = vld [vmem:[#allocation2 + $0x68] sm:$0xff]  ;;  %v567_v27 = vmax.f32 %v535_v26, 0.0  ;;  %8632 = vmatprep.mubr.msk.f32.mxu0 %vm580_vm0, %v566_v25  ;;  %v1176_v31 = vrot.slane %v1052_v29, 7  ;;  %v1063_v12 = vld [vmem:[#allocation2 + $0xb8] sm:$0xff]  ;;  %v1060_v25 = vld [vmem:[#allocation2 + $0xa0] sm:$0xff] }
  0xeb   : > { %1592 = vrot.lane.b32.xlu1 %v9876_v33, %s15107_s16  ;;  %v794_v40 = vadd.f32 %v9838_v54, %v793_v39  ;;  %1016 = vst.msk [vmem:[#allocation2 + $0xa8] sm:$0xff] %vm934_vm1, %v910_v37  ;;  %v913_v42 = vmax.f32 %v799_v38, 0.0  ;;  %v1309_v28 = vsel %vm1289_vm2, %v1306_v22, %v1308_v23  ;;  %v1177_v32 = vrot.slane %v1053_v16, 7 }
  0xec   : > { %v8613_v45 = vpop.f32.mrf.mxu0  ;;  %8633 = vmatmul.mubr.msk.f32.gmra.mxu0 %vm580_vm0, %v567_v27  ;;  %v9975_v30 = vld [vmem:[#allocation2 + $0x90] sm:$0xff]  ;;  %v1305_v37 = vrot.slane %v1053_v16, 1  ;;  %v1179_v39 = vrot.slane %v9918_v2, 7  ;;  %v1181_v56 = vrot.slane %v1056_v50, 7 }
  0xed   : > { %1784 = vrot.lane.b32.xlu0 %v1299_v41, %s15109_s17  ;;  %1019 = vst.msk [vmem:[#allocation2 + $0xd0] sm:$0xff] %vm934_vm1, %v913_v42  ;;  %v912_v44 = vmax.f32 %v794_v40, 0.0  ;;  %v809_v47 = vadd.f32 %v8613_v45, %v9838_v54  ;;  %v9982_v36 = vsel %vm1160_vm3, %v1176_v31, %v1177_v32  ;;  %v1059_v42 = vld [vmem:[#allocation2 + $0x98] sm:$0xff]  ;;  %v536_v45 = vld [vmem:[%s9283_s25 + $0xe0] sm:$0xff]  ;;  %v1184_v5 = vrot.slane %v9975_v30, 7 }
  0xee   : > { %v803_v49 = vpop.f32.mrf.mxu0  ;;  %v1307_v38 = vsel %vm1289_vm2, %v1305_v37, %v1306_v22  ;;  %v9998_v40 = vsel %vm1160_vm3, %v1177_v32, %v1179_v39  ;;  %v568_v46 = vmax.f32 %v536_v45, 0.0  ;;  %v1186_v31 = vrot.slane %v1060_v25, 7  ;;  %v1040_v45 = vld [vmem:[#allocation2] sm:$0xff] }
  0xef   : > { %1782 = vrot.lane.b32.xlu1 %v1297_v43, %s15109_s17  ;;  %1018 = vst.msk [vmem:[#allocation2 + $0xc8] sm:$0xff] %vm934_vm1, %v912_v44  ;;  %v915_v51 = vmax.f32 %v809_v47, 0.0  ;;  %v804_v52 = vadd.f32 %v9838_v54, %v803_v49  ;;  %v1313_v44 = vrot.slane %v1059_v42, 1  ;;  %v537_v47 = vld [vmem:[%s9283_s25 + $0xe8] sm:$0xff]  ;;  %v1161_v50 = vrot.slane %v1040_v45, 7 }
  0xf0   : > { %v8616_v14 = vpop.f32.mrf.mxu0  ;;  %8635 = vmatprep.mubr.msk.f32.mxu0 %vm580_vm0, %v568_v46 }
  0xf1   : > { %1500 = vrot.lane.b32.xlu0 %v1299_v41, %s9173_s27  ;;  %1021 = vst.msk [vmem:[#allocation2 + $0xf0] sm:$0xff] %vm934_vm1, %v915_v51  ;;  %v914_v55 = vmax.f32 %v804_v52, 0.0  ;;  %v819_v15 = vadd.f32 %v8616_v14, %v9838_v54  ;;  %v1057_v41 = vld [vmem:[#allocation2 + $0x88] sm:$0xff]  ;;  %v10014_v52 = vld [vmem:[#allocation2 + $0xb0] sm:$0xff] }
  0xf2   : > { %v813_v17 = vpop.f32.mrf.mxu0  ;;  %v1182_v57 = vrot.slane %v1057_v41, 7  ;;  %v1310_v1 = vrot.slane %v1057_v41, 1  ;;  %v10057_v10 = vld [vmem:[#allocation2 + $0xa8] sm:$0xff] }
  0xf3   : > { %1498 = vrot.lane.b32.xlu1 %v1297_v43, %s9173_s27  ;;  %1020 = vst.msk [vmem:[#allocation2 + $0xe8] sm:$0xff] %vm934_vm1, %v914_v55  ;;  %v814_v20 = vadd.f32 %v9838_v54, %v813_v17  ;;  %v1311_v43 = vrot.slane %v9975_v30, 1  ;;  %v1187_v32 = vrot.slane %v10057_v10, 7 }
  0xf4   : > { %v8619_v51 = vpop.f32.mrf.mxu0  ;;  %v10024_v62 = vsel %vm1160_vm3, %v1181_v56, %v1182_v57  ;;  %v10051_v8 = vsel %vm1160_vm3, %v1182_v57, %v1184_v5  ;;  %v10083_v27 = vld [vmem:[#allocation2 + $0xd0] sm:$0xff]  ;;  %v1189_v57 = vrot.slane %v10014_v52, 7 }
  0xf5   : > { %1976 = vrot.lane.b32.xlu0 %v9862_v19, %s15145_s20  ;;  %v916_v21 = vmax.f32 %v814_v20, 0.0  ;;  %v1314_v49 = vsel %vm1289_vm2, %v1311_v43, %v1313_v44  ;;  %v829_v53 = vadd.f32 %v8619_v51, %v9838_v54  ;;  %v1312_v3 = vsel %vm1289_vm2, %v1310_v1, %v1311_v43  ;;  %v539_v20 = vld [vmem:[%s9283_s25 + $0xf8] sm:$0xff] }
  0xf6   : > { %v823_v55 = vpop.f32.mrf.mxu0  ;;  %v571_v22 = vmax.f32 %v539_v20, 0.0  ;;  %v10099_v43 = vsel %vm1160_vm3, %v1186_v31, %v1187_v32  ;;  %v10140_v5 = vld [vmem:[#allocation2 + $0xc8] sm:$0xff] }
  0xf7   : > { %1974 = vrot.lane.b32.xlu1 %v1049_v48, %s15145_s20  ;;  %1022 = vst.msk [vmem:[#allocation2 + $0x108] sm:$0xff] %vm934_vm1, %v916_v21  ;;  %v919_v58 = vmax.f32 %v829_v53, 0.0  ;;  %v824_v60 = vadd.f32 %v9838_v54, %v823_v55 }
  0xf8   : > { %v8622_v26 = vpop.f32.mrf.mxu0 }
  0xf9   : > { %1408 = vrot.lane.b32.xlu0 %v9862_v19, %s15149_s26  ;;  %v917_v19 = vmax.f32 %v819_v15, 0.0  ;;  %1025 = vst.msk [vmem:[#allocation2 + $0x130] sm:$0xff] %vm934_vm1, %v919_v58  ;;  %v918_v61 = vmax.f32 %v824_v60, 0.0  ;;  %v1316_v15 = vrot.slane %v10014_v52, 1 }
  0xfb   : > { %1690 = vrot.lane.b32.xlu1 %v1049_v48, %s15105_s30  ;;  %1023 = vst.msk [vmem:[#allocation2 + $0x110] sm:$0xff] %vm934_vm1, %v917_v19  ;;  %1024 = vst.msk [vmem:[#allocation2 + $0x128] sm:$0xff] %vm934_vm1, %v918_v61  ;;  %v570_v19 = vmax.f32 %v538_v18, 0.0  ;;  %v10131_v61 = vsel %vm1160_vm3, %v1187_v32, %v1189_v57 }
  0xfd   : > { %1590 = vrot.lane.b32.xlu0 %v9906_v59, %s15107_s16 }
  0xff   : > { %2072 = vrot.lane.b32.xlu1 %v1304_v63, %s15165_s21 }
 0x101   : > { %1406 = vrot.lane.b32.xlu0 %v1049_v48, %s15149_s26  ;;  %v569_v48 = vmax.f32 %v537_v47, 0.0  ;;  %v1315_v47 = vrot.slane %v10057_v10, 1 }
 0x103   : > { %1696 = vrot.lane.b32.xlu1 %v9918_v2, %s15105_s30  ;;  %s15176_s30 = smov 16   ;;  %8636 = vmatmul.mubr.msk.f32.gmra.mxu0 %vm580_vm0, %v569_v48  ;;  %v1317_v53 = vsel %vm1289_vm2, %v1315_v47, %v1316_v15 }
 0x104   : > { %8638 = vmatprep.mubr.msk.f32.mxu0 %vm580_vm0, %v570_v19 }
 0x105   : > { %1788 = vrot.lane.b32.xlu0 %v1304_v63, %s15109_s17 }
 0x107   : > { %1878 = vrot.lane.b32.xlu1 %v9933_v7, %s15160_s22  ;;  %8639 = vmatmul.mubr.msk.f32.gmra.mxu0 %vm580_vm0, %v571_v22 }
 0x109   : > { %1504 = vrot.lane.b32.xlu0 %v1304_v63, %s9173_s27  ;;  %v10029_v63 = vpop.permute.xlu0 %1398 }
 0x10b   : > { %1594 = vrot.lane.b32.xlu1 %v9933_v7, %s15107_s16 }
 0x10d   : > { %1980 = vrot.lane.b32.xlu0 %v9918_v2, %s15145_s20 }
 0x10f   : > { %2070 = vrot.lane.b32.xlu1 %v1302_v11, %s15165_s21 }
 0x111   : > { %1412 = vrot.lane.b32.xlu0 %v9918_v2, %s15149_s26  ;;  %v10038_v2 = vpop.permute.xlu0 %1400 }
 0x113   : > { %1502 = vrot.lane.b32.xlu1 %v1302_v11, %s9173_s27 }
 0x115   : > { %1880 = vrot.lane.b32.xlu0 %v9955_v13, %s15160_s22 }
 0x117   : > { %1978 = vrot.lane.b32.xlu1 %v1053_v16, %s15145_s20 }
 0x119   : > { %1596 = vrot.lane.b32.xlu0 %v9955_v13, %s15107_s16 }
 0x11b   : > { %1694 = vrot.lane.b32.xlu1 %v1053_v16, %s15176_s30 }
 0x11d   : > { %1786 = vrot.lane.b32.xlu0 %v1302_v11, %s15109_s17 }
 0x11f   : > { %2076 = vrot.lane.b32.xlu1 %v1309_v28, %s15165_s21 }
 0x121   : > { %1410 = vrot.lane.b32.xlu0 %v1053_v16, %s15149_s26  ;;  %v1318_v16 = vrot.slane %v1063_v12, 1  ;;  %v1067_v12 = vld [vmem:[#allocation2 + $0xd8] sm:$0xff] }
 0x122   : > { %v1323_v18 = vrot.slane %v1067_v12, 1  ;;  %v1320_v12 = vrot.slane %v10140_v5, 1 }
 0x123   : > { %1700 = vrot.lane.b32.xlu1 %v9975_v30, %s15176_s30  ;;  %v1319_v23 = vsel %vm1289_vm2, %v1316_v15, %v1318_v16  ;;  %v1321_v16 = vrot.slane %v10083_v27, 1 }
 0x125   : > { %1792 = vrot.lane.b32.xlu0 %v1309_v28, %s15109_s17  ;;  %v1324_v25 = vsel %vm1289_vm2, %v1321_v16, %v1323_v18 }
 0x127   : > { %1882 = vrot.lane.b32.xlu1 %v9982_v36, %s15160_s22 }
 0x129   : > { %1508 = vrot.lane.b32.xlu0 %v1309_v28, %s9173_s27  ;;  %v839_v28 = vadd.f32 %v8622_v26, %v9838_v54  ;;  %v1064_v26 = vld [vmem:[#allocation2 + $0xc0] sm:$0xff] }
 0x12b   : > { %1598 = vrot.lane.b32.xlu1 %v9982_v36, %s15107_s16  ;;  %v921_v37 = vmax.f32 %v839_v28, 0.0 }
 0x12d   : > { %1984 = vrot.lane.b32.xlu0 %v9975_v30, %s15145_s20  ;;  %1027 = vst.msk [vmem:[#allocation2 + $0x150] sm:$0xff] %vm934_vm1, %v921_v37 }
 0x12f   : > { %2074 = vrot.lane.b32.xlu1 %v1307_v38, %s15165_s21 }
 0x131   : > { %1416 = vrot.lane.b32.xlu0 %v9975_v30, %s15149_s26  ;;  %v833_v30 = vpop.f32.mrf.mxu0 }
 0x133   : > { %1506 = vrot.lane.b32.xlu1 %v1307_v38, %s9173_s27 }
 0x135   : > { %1884 = vrot.lane.b32.xlu0 %v9998_v40, %s15160_s22 }
 0x137   : > { %1982 = vrot.lane.b32.xlu1 %v1057_v41, %s15145_s20 }
 0x139   : > { %1600 = vrot.lane.b32.xlu0 %v9998_v40, %s15107_s16 }
 0x13b   : > { %1698 = vrot.lane.b32.xlu1 %v1057_v41, %s15176_s30 }
 0x13d   : > { %1790 = vrot.lane.b32.xlu0 %v1307_v38, %s15109_s17  ;;  %v834_v38 = vadd.f32 %v9838_v54, %v833_v30  ;;  %v8625_v30 = vpop.f32.mrf.mxu0 }
 0x13e   : > { %v849_v31 = vadd.f32 %v8625_v30, %v9838_v54 }
 0x13f   : > { %2080 = vrot.lane.b32.xlu1 %v1314_v49, %s15165_s21  ;;  %v843_v45 = vpop.f32.mrf.mxu0 }
 0x141   : > { %1414 = vrot.lane.b32.xlu0 %v1057_v41, %s15149_s26  ;;  %v920_v41 = vmax.f32 %v834_v38, 0.0 }
 0x143   : > { %1704 = vrot.lane.b32.xlu1 %v10014_v52, %s15176_s30  ;;  %1026 = vst.msk [vmem:[#allocation2 + $0x148] sm:$0xff] %vm934_vm1, %v920_v41  ;;  %v1191_v41 = vrot.slane %v1064_v26, 7 }
 0x145   : > { %1796 = vrot.lane.b32.xlu0 %v1314_v49, %s15109_s17 }
 0x147   : > { %1886 = vrot.lane.b32.xlu1 %v10024_v62, %s15160_s22 }
 0x149   : > { %1512 = vrot.lane.b32.xlu0 %v1314_v49, %s9173_s27  ;;  %v1162_v49 = vrot.slane %v9809_v34, 7 }
 0x14b   : > { %1602 = vrot.lane.b32.xlu1 %v10024_v62, %s15107_s16  ;;  %v1163_v56 = vsel %vm1160_vm3, %v1161_v50, %v1162_v49  ;;  %v844_v50 = vadd.f32 %v9838_v54, %v843_v45 }
 0x14c   : > { %v2166_v34 = vsel %vm934_vm1, %v1163_v56, %v10029_v63 }
 0x14d   : > { %1988 = vrot.lane.b32.xlu0 %v10014_v52, %s15145_s20 }
 0x14f   : > { %2078 = vrot.lane.b32.xlu1 %v1312_v3, %s15165_s21 }
 0x151   : > { %1420 = vrot.lane.b32.xlu0 %v10014_v52, %s15149_s26  ;;  %v2198_v52 = vsel %vm580_vm0, %v2166_v34, %v10032_v0 }
 0x153   : > { %v10047_v6 = vpop.permute.xlu0 %1688  ;;  %1510 = vrot.lane.b32.xlu1 %v1312_v3, %s9173_s27 }
 0x155   : > { %v10053_v9 = vpop.permute.xlu1 %1402  ;;  %1888 = vrot.lane.b32.xlu0 %v10051_v8, %s15160_s22 }
 0x157   : > { %v10059_v11 = vpop.permute.xlu0 %1404  ;;  %1986 = vrot.lane.b32.xlu1 %v10057_v10, %s15145_s20 }
 0x159   : > { %v10063_v14 = vpop.permute.xlu1 %1692  ;;  %1604 = vrot.lane.b32.xlu0 %v10051_v8, %s15107_s16 }
 0x15b   : > { %v10068_v17 = vpop.permute.xlu0 %1686  ;;  %1702 = vrot.lane.b32.xlu1 %v10057_v10, %s15176_s30 }
 0x15d   : > { %v10074_v21 = vpop.permute.xlu1 %1592  ;;  %1794 = vrot.lane.b32.xlu0 %v1312_v3, %s15109_s17  ;;  %v1164_v3 = vrot.slane %v9811_v35, 7 }
 0x15f   : > { %v10079_v24 = vpop.permute.xlu0 %1784  ;;  %2084 = vrot.lane.b32.xlu1 %v1319_v23, %s15165_s21  ;;  %v1165_v0 = vsel %vm1160_vm3, %v1162_v49, %v1164_v3  ;;  %v923_v49 = vmax.f32 %v849_v31, 0.0 }
 0x160   : > { %v2167_v20 = vsel %vm934_vm1, %v1165_v0, %v10038_v2 }
 0x161   : > { %v1783_v29 = vpop.permute.xlu1 %1782  ;;  %1418 = vrot.lane.b32.xlu0 %v10057_v10, %s15149_s26  ;;  %v2199_v2 = vsel %vm580_vm0, %v2167_v20, %v10042_v4  ;;  %v1192_v4 = vrot.slane %v10140_v5, 7  ;;  %1029 = vst.msk [vmem:[#allocation2 + $0x170] sm:$0xff] %vm934_vm1, %v923_v49 }
 0x162   : > { %v2232_v32 = vsel %vm2230_vm5, %v2199_v2, %v10074_v21 }
 0x163   : > { %v10090_v39 = vpop.permute.xlu0 %1500  ;;  %1708 = vrot.lane.b32.xlu1 %v10083_v27, %s15176_s30  ;;  %v10193_v56 = vsel %vm1160_vm3, %v1191_v41, %v1192_v4  ;;  %v2169_v41 = vsel %vm934_vm1, %v9876_v33, %v10059_v11 }
 0x165   : > { %v10095_v42 = vpop.permute.xlu1 %1498  ;;  %1800 = vrot.lane.b32.xlu0 %v1319_v23, %s15109_s17 }
 0x167   : > { %v10102_v44 = vpop.permute.xlu0 %1976  ;;  %1890 = vrot.lane.b32.xlu1 %v10099_v43, %s15160_s22 }
 0x169   : > { %v1975_v46 = vpop.permute.xlu1 %1974  ;;  %1516 = vrot.lane.b32.xlu0 %v1319_v23, %s9173_s27 }
 0x16b   : > { %v10108_v48 = vpop.permute.xlu0 %1408  ;;  %1606 = vrot.lane.b32.xlu1 %v10099_v43, %s15107_s16 }
 0x16d   : > { %v10113_v51 = vpop.permute.xlu1 %1690  ;;  %1992 = vrot.lane.b32.xlu0 %v10083_v27, %s15145_s20 }
 0x16f   : > { %2082 = vrot.lane.b32.xlu1 %v1317_v53, %s15165_s21  ;;  %v1591_v55 = vpop.permute.xlu0 %1590 }
 0x170   : > { %v2231_v63 = vsel %vm2230_vm5, %v2198_v52, %v1591_v55 }
 0x171   : > { %v10121_v58 = vpop.permute.xlu1 %2072  ;;  %1424 = vrot.lane.b32.xlu0 %v10083_v27, %s15149_s26  ;;  %v2264_v35 = vsel %vm2263_vm6, %v2231_v63, %v10068_v17 }
 0x172   : > { %v2297_v22 = vsel %vm2296_vm8, %v2264_v35, %v1783_v29  ;;  %v10170_v29 = vld [vmem:[#allocation2 + $0xf0] sm:$0xff] }
 0x173   : > { %1514 = vrot.lane.b32.xlu1 %v1317_v53, %s9173_s27  ;;  %v10128_v60 = vpop.permute.xlu0 %1406  ;;  %v1326_v2 = vrot.slane %v10170_v29, 1 }
 0x175   : > { %v10133_v1 = vpop.permute.xlu1 %1696  ;;  %1892 = vrot.lane.b32.xlu0 %v10131_v61, %s15160_s22 }
 0x177   : > { %1990 = vrot.lane.b32.xlu1 %v10140_v5, %s15145_s20  ;;  %v10145_v10 = vpop.permute.xlu0 %1788 }
 0x179   : > { %v1879_v15 = vpop.permute.xlu1 %1878  ;;  %1608 = vrot.lane.b32.xlu0 %v10131_v61, %s15107_s16 }
 0x17a   : > { %v2330_v17 = vsel %vm2329_vm7, %v2297_v22, %v1879_v15 }
 0x17b   : > { %1706 = vrot.lane.b32.xlu1 %v10140_v5, %s15176_s30  ;;  %v10155_v19 = vpop.permute.xlu0 %1504  ;;  %v2363_v38 = vsel %vm2362_vm9, %v2330_v17, %v1975_v46  ;;  %v922_v46 = vmax.f32 %v844_v50, 0.0  ;;  %v1071_v17 = vld [vmem:[#allocation2 + $0xf8] sm:$0xff] }
 0x17c   : > { %v1328_v31 = vrot.slane %v1071_v17, 1 }
 0x17d   : > { %v10160_v23 = vpop.permute.xlu1 %1594  ;;  %1798 = vrot.lane.b32.xlu0 %v1317_v53, %s15109_s17  ;;  %v2265_v53 = vsel %vm2263_vm6, %v2232_v32, %v10047_v6  ;;  %1028 = vst.msk [vmem:[#allocation2 + $0x168] sm:$0xff] %vm934_vm1, %v922_v46 }
 0x17e   : > { %v2298_v57 = vsel %vm2296_vm8, %v2265_v53, %v10079_v24 }
 0x17f   : > { %2088 = vrot.lane.b32.xlu1 %v1324_v25, %s15165_s21  ;;  %v10166_v28 = vpop.permute.xlu0 %1980 }
 0x181   : > { %v2071_v37 = vpop.permute.xlu1 %2070  ;;  %1422 = vrot.lane.b32.xlu0 %v10140_v5, %s15149_s26 }
 0x182   : > { %v2396_v47 = vsel %vm2395_vm10, %v2363_v38, %v2071_v37  ;;  %v1329_v37 = vsel %vm1289_vm2, %v1326_v2, %v1328_v31  ;;  %v1068_v38 = vld [vmem:[#allocation2 + $0xe0] sm:$0xff] }
 0x183   : > { %1712 = vrot.lane.b32.xlu1 %v10170_v29, %s15176_s30  ;;  %8651 = vmatprep.mubr.msk.f32.mxu1 %vm15111_vm11, %v2396_v47  ;;  %v10184_v21 = vpop.permute.xlu0 %1412  ;;  %v2201_v47 = vsel %vm580_vm0, %v2169_v41, %v10090_v39  ;;  %v1196_v33 = vrot.slane %v1068_v38, 7 }
 0x185   : > { %v10189_v55 = vpop.permute.xlu1 %1502  ;;  %1804 = vrot.lane.b32.xlu0 %v1324_v25, %s15109_s17 }
 0x187   : > { %1894 = vrot.lane.b32.xlu1 %v10193_v56, %s15160_s22  ;;  %v1881_v34 = vpop.permute.xlu0 %1880 }
 0x188   : > { %v2331_v6 = vsel %vm2329_vm7, %v2298_v57, %v1881_v34 }
 0x189   : > { %v2364_v52 = vsel %vm2362_vm9, %v2331_v6, %v10102_v44  ;;  %v1979_v3 = vpop.permute.xlu1 %1978  ;;  %1520 = vrot.lane.b32.xlu0 %v1324_v25, %s9173_s27  ;;  %v1322_v44 = vsel %vm1289_vm2, %v1320_v12, %v1321_v16  ;;  %v10229_v16 = vld [vmem:[#allocation2 + $0xe8] sm:$0xff] }
 0x18a   : > { %v2397_v63 = vsel %vm2395_vm10, %v2364_v52, %v10121_v58  ;;  %v1194_v58 = vrot.slane %v10083_v27, 7  ;;  %v2168_v27 = vsel %vm934_vm1, %v9906_v59, %v10053_v9  ;;  %v1197_v34 = vrot.slane %v10229_v16, 7 }
 0x18b   : > { %1610 = vrot.lane.b32.xlu1 %v10193_v56, %s15107_s16  ;;  %8652 = vmatmul.mubr.msk.f32.vlgmr.msra.gmra.mxu1 %vm15111_vm11, %v2397_v63  ;;  %v1597_v24 = vpop.permute.xlu0 %1596  ;;  %v2200_v25 = vsel %vm580_vm0, %v2168_v27, %v10095_v42 }
 0x18c   : > { %v10223_v18 = vsel %vm1160_vm3, %v1192_v4, %v1194_v58  ;;  %v2233_v26 = vsel %vm2230_vm5, %v2200_v25, %v10160_v23  ;;  %v10265_v4 = vld [vmem:[#allocation2 + $0x110] sm:$0xff]  ;;  %v2234_v50 = vsel %vm2230_vm5, %v2201_v47, %v1597_v24  ;;  %v10287_v24 = vsel %vm1160_vm3, %v1196_v33, %v1197_v34 }
 0x18d   : > { %v10210_v15 = vpop.permute.xlu1 %1694  ;;  %1996 = vrot.lane.b32.xlu0 %v10170_v29, %s15145_s20  ;;  %v2266_v9 = vsel %vm2263_vm6, %v2233_v26, %v10113_v51  ;;  %v8628_v51 = vpop.f32.mrf.mxu0  ;;  %v1325_v25 = vrot.slane %v10229_v16, 1  ;;  %v1331_v47 = vrot.slane %v10265_v4, 1 }
 0x18e   : > { %v859_v49 = vadd.f32 %v8628_v51, %v9838_v54 }
 0x18f   : > { %2086 = vrot.lane.b32.xlu1 %v1322_v44, %s15165_s21  ;;  %v1787_v0 = vpop.permute.xlu0 %1786  ;;  %v853_v11 = vpop.f32.mrf.mxu0 }
 0x190   : > { %v2299_v42 = vsel %vm2296_vm8, %v2266_v9, %v1787_v0  ;;  %v925_v6 = vmax.f32 %v859_v49, 0.0  ;;  %v854_v39 = vadd.f32 %v9838_v54, %v853_v11 }
 0x191   : > { %v2077_v35 = vpop.permute.xlu1 %2076  ;;  %1428 = vrot.lane.b32.xlu0 %v10170_v29, %s15149_s26 }
 0x192   : > { %1031 = vst.msk [vmem:[#allocation2 + $0x190] sm:$0xff] %vm934_vm1, %v925_v6  ;;  %v924_v63 = vmax.f32 %v854_v39, 0.0 }
 0x193   : > { %1518 = vrot.lane.b32.xlu1 %v1322_v44, %s9173_s27  ;;  %v10220_v5 = vpop.permute.xlu0 %1410 }
 0x194   : > { %1030 = vst.msk [vmem:[#allocation2 + $0x188] sm:$0xff] %vm934_vm1, %v924_v63 }
 0x195   : > { %v10225_v20 = vpop.permute.xlu1 %1700  ;;  %1896 = vrot.lane.b32.xlu0 %v10223_v18, %s15160_s22 }
 0x197   : > { %1994 = vrot.lane.b32.xlu1 %v10229_v16, %s15145_s20  ;;  %v10236_v22 = vpop.permute.xlu0 %1792 }
 0x199   : > { %v1883_v30 = vpop.permute.xlu1 %1882  ;;  %1612 = vrot.lane.b32.xlu0 %v10223_v18, %s15107_s16 }
 0x19a   : > { %v2332_v23 = vsel %vm2329_vm7, %v2299_v42, %v1883_v30 }
 0x19b   : > { %1710 = vrot.lane.b32.xlu1 %v10229_v16, %s15176_s30  ;;  %v10247_v59 = vpop.permute.xlu0 %1508  ;;  %v2365_v46 = vsel %vm2362_vm9, %v2332_v23, %v1979_v3  ;;  %v2267_v3 = vsel %vm2263_vm6, %v2234_v50, %v10063_v14 }
 0x19d   : > { %v10252_v32 = vpop.permute.xlu1 %1598  ;;  %1802 = vrot.lane.b32.xlu0 %v1322_v44, %s15109_s17  ;;  %v2300_v44 = vsel %vm2296_vm8, %v2267_v3, %v10145_v10 }
 0x19f   : > { %2092 = vrot.lane.b32.xlu1 %v1329_v37, %s15165_s21  ;;  %v10261_v45 = vpop.permute.xlu0 %1984 }
 0x1a1   : > { %v2075_v53 = vpop.permute.xlu1 %2074  ;;  %1426 = vrot.lane.b32.xlu0 %v10229_v16, %s15149_s26 }
 0x1a2   : > { %v2398_v57 = vsel %vm2395_vm10, %v2365_v46, %v2075_v53 }
 0x1a3   : > { %1716 = vrot.lane.b32.xlu1 %v10265_v4, %s15176_s30  ;;  %v10277_v52 = vpop.permute.xlu0 %1416  ;;  %8654 = vmatprep.mubr.msk.f32.mxu1 %vm15111_vm11, %v2398_v57  ;;  %v2171_v57 = vsel %vm934_vm1, %v9955_v13, %v10108_v48 }
 0x1a4   : > { %v2203_v6 = vsel %vm580_vm0, %v2171_v57, %v10155_v19 }
 0x1a5   : > { %v10283_v12 = vpop.permute.xlu1 %1506  ;;  %1808 = vrot.lane.b32.xlu0 %v1329_v37, %s15109_s17 }
 0x1a7   : > { %1898 = vrot.lane.b32.xlu1 %v10287_v24, %s15160_s22  ;;  %v1885_v0 = vpop.permute.xlu0 %1884 }
 0x1a8   : > { %v2333_v14 = vsel %vm2329_vm7, %v2300_v44, %v1885_v0 }
 0x1a9   : > { %v2366_v58 = vsel %vm2362_vm9, %v2333_v14, %v10166_v28  ;;  %v1983_v27 = vpop.permute.xlu1 %1982  ;;  %1524 = vrot.lane.b32.xlu0 %v1329_v37, %s9173_s27  ;;  %v1327_v28 = vsel %vm1289_vm2, %v1325_v25, %v1326_v2  ;;  %v1073_v2 = vld [vmem:[#allocation2 + $0x108] sm:$0xff]  ;;  %v1075_v37 = vld [vmem:[#allocation2 + $0x118] sm:$0xff] }
 0x1aa   : > { %v2399_v17 = vsel %vm2395_vm10, %v2366_v58, %v2077_v35  ;;  %v1199_v35 = vrot.slane %v10170_v29, 7  ;;  %v2170_v29 = vsel %vm934_vm1, %v9933_v7, %v10128_v60  ;;  %v1333_v49 = vrot.slane %v1075_v37, 1  ;;  %v1072_v60 = vld [vmem:[#allocation2 + $0x100] sm:$0xff] }
 0x1ab   : > { %1614 = vrot.lane.b32.xlu1 %v10287_v24, %s15107_s16  ;;  %v1601_v26 = vpop.permute.xlu0 %1600  ;;  %8655 = vmatmul.mubr.msk.f32.gmra.mxu1 %vm15111_vm11, %v2399_v17  ;;  %v2202_v38 = vsel %vm580_vm0, %v2170_v29, %v10189_v55  ;;  %v1201_v33 = vrot.slane %v1072_v60, 7  ;;  %v1202_v11 = vrot.slane %v1073_v2, 7  ;;  %v1204_v17 = vrot.slane %v10265_v4, 7 }
 0x1ac   : > { %v10318_v9 = vsel %vm1160_vm3, %v1197_v34, %v1199_v35  ;;  %v2235_v41 = vsel %vm2230_vm5, %v2202_v38, %v10252_v32  ;;  %v1334_v46 = vsel %vm1289_vm2, %v1331_v47, %v1333_v49  ;;  %v2236_v3 = vsel %vm2230_vm5, %v2203_v6, %v1601_v26  ;;  %v1076_v38 = vld [vmem:[#allocation2 + $0x120] sm:$0xff] }
 0x1ad   : > { %v10303_v10 = vpop.permute.xlu1 %1698  ;;  %2000 = vrot.lane.b32.xlu0 %v10265_v4, %s15145_s20  ;;  %v2268_v50 = vsel %vm2263_vm6, %v2235_v41, %v10210_v15  ;;  %v8631_v15 = vpop.f32.mrf.mxu0  ;;  %v10362_v48 = vsel %vm1160_vm3, %v1201_v33, %v1202_v11  ;;  %v1077_v41 = vld [vmem:[#allocation2 + $0x128] sm:$0xff] }
 0x1ae   : > { %v869_v39 = vadd.f32 %v8631_v15, %v9838_v54  ;;  %v1207_v49 = vrot.slane %v1077_v41, 7 }
 0x1af   : > { %2090 = vrot.lane.b32.xlu1 %v1327_v28, %s15165_s21  ;;  %v1791_v30 = vpop.permute.xlu0 %1790  ;;  %v863_v0 = vpop.f32.mrf.mxu0 }
 0x1b0   : > { %v2301_v55 = vsel %vm2296_vm8, %v2268_v50, %v1791_v30  ;;  %v927_v14 = vmax.f32 %v869_v39, 0.0  ;;  %v864_v58 = vadd.f32 %v9838_v54, %v863_v0  ;;  %v1330_v54 = vrot.slane %v1073_v2, 1 }
 0x1b1   : > { %v10310_v31 = vpop.permute.xlu1 %2080  ;;  %1432 = vrot.lane.b32.xlu0 %v10265_v4, %s15149_s26  ;;  %v10384_v4 = vsel %vm1160_vm3, %v1202_v11, %v1204_v17  ;;  %v2172_v11 = vsel %vm934_vm1, %v9982_v36, %v10220_v5  ;;  %v2173_v0 = vsel %vm934_vm1, %v9998_v40, %v10184_v21 }
 0x1b2   : > { %1033 = vst.msk [vmem:[#allocation2 + $0x1b0] sm:$0xff] %vm934_vm1, %v927_v14  ;;  %v926_v25 = vmax.f32 %v864_v58, 0.0  ;;  %v2204_v15 = vsel %vm580_vm0, %v2172_v11, %v10283_v12  ;;  %v2205_v14 = vsel %vm580_vm0, %v2173_v0, %v10247_v59  ;;  %v10453_v58 = vld [vmem:[%s15090_s2] ss:$0 sm:$0xff] }
 0x1b3   : > { %1522 = vrot.lane.b32.xlu1 %v1327_v28, %s9173_s27  ;;  %v10315_v16 = vpop.permute.xlu0 %1414 }
 0x1b4   : > { %1032 = vst.msk [vmem:[#allocation2 + $0x1a8] sm:$0xff] %vm934_vm1, %v926_v25  ;;  %v2174_v0 = vsel %vm934_vm1, %v10024_v62, %v10315_v16 }
 0x1b5   : > { %v10320_v42 = vpop.permute.xlu1 %1704  ;;  %1900 = vrot.lane.b32.xlu0 %v10318_v9, %s15160_s22 }
 0x1b7   : > { %1998 = vrot.lane.b32.xlu1 %v1073_v2, %s15145_s20  ;;  %v10328_v23 = vpop.permute.xlu0 %1796 }
 0x1b9   : > { %v1887_v51 = vpop.permute.xlu1 %1886  ;;  %1616 = vrot.lane.b32.xlu0 %v10318_v9, %s15107_s16 }
 0x1ba   : > { %v2334_v32 = vsel %vm2329_vm7, %v2301_v55, %v1887_v51 }
 0x1bb   : > { %1714 = vrot.lane.b32.xlu1 %v1073_v2, %s15176_s30  ;;  %v10338_v7 = vpop.permute.xlu0 %1512  ;;  %v2367_v44 = vsel %vm2362_vm9, %v2334_v32, %v1983_v27  ;;  %v2269_v27 = vsel %vm2263_vm6, %v2236_v3, %v10133_v1 }
 0x1bd   : > { %v10343_v53 = vpop.permute.xlu1 %1602  ;;  %1806 = vrot.lane.b32.xlu0 %v1327_v28, %s15109_s17  ;;  %v2302_v28 = vsel %vm2296_vm8, %v2269_v27, %v10236_v22 }
 0x1be   : > { %v2237_v39 = vsel %vm2230_vm5, %v2204_v15, %v10343_v53  ;;  %v1080_v15 = vld [vmem:[#allocation2 + $0x140] sm:$0xff] }
 0x1bf   : > { %2096 = vrot.lane.b32.xlu1 %v1334_v46, %s15165_s21  ;;  %v10352_v34 = vpop.permute.xlu0 %1988  ;;  %v2270_v5 = vsel %vm2263_vm6, %v2237_v39, %v10303_v10  ;;  %v8634_v10 = vpop.f32.mrf.mxu0 }
 0x1c0   : > { %v879_v27 = vadd.f32 %v10453_v58, %v8634_v10 }
 0x1c1   : > { %v2079_v63 = vpop.permute.xlu1 %2078  ;;  %1430 = vrot.lane.b32.xlu0 %v1073_v2, %s15149_s26  ;;  %v1332_v2 = vsel %vm1289_vm2, %v1330_v54, %v1331_v47  ;;  %v873_v21 = vpop.f32.mrf.mxu0 }
 0x1c2   : > { %v2400_v13 = vsel %vm2395_vm10, %v2367_v44, %v2079_v63  ;;  %v1335_v63 = vrot.slane %v1077_v41, 1 }
 0x1c3   : > { %1902 = vrot.lane.b32.xlu1 %v10362_v48, %s15160_s22  ;;  %v10367_v19 = vpop.permute.xlu0 %1420  ;;  %8657 = vmatprep.mubr.msk.f32.mxu1 %vm15111_vm11, %v2400_v13 }
 0x1c5   : > { %v10374_v26 = vpop.permute.xlu1 %1510  ;;  %1812 = vrot.lane.b32.xlu0 %v1334_v46, %s15109_s17 }
 0x1c7   : > { %1618 = vrot.lane.b32.xlu1 %v10362_v48, %s15107_s16  ;;  %v1889_v30 = vpop.permute.xlu0 %1888 }
 0x1c8   : > { %v2335_v1 = vsel %vm2329_vm7, %v2302_v28, %v1889_v30  ;;  %v929_v28 = vmax.f32 %v879_v27, 0.0  ;;  %v874_v30 = vadd.f32 %v10453_v58, %v873_v21 }
 0x1c9   : > { %v2368_v35 = vsel %vm2362_vm9, %v2335_v1, %v10261_v45  ;;  %v1987_v29 = vpop.permute.xlu1 %1986  ;;  %1904 = vrot.lane.b32.xlu0 %v10384_v4, %s15160_s22  ;;  %v1206_v45 = vrot.slane %v1076_v38, 7 }
 0x1ca   : > { %v2401_v37 = vsel %vm2395_vm10, %v2368_v35, %v10310_v31  ;;  %v10401_v31 = vld [vmem:[#allocation2 + $0x130] sm:$0xff]  ;;  %v1079_v35 = vld [vmem:[#allocation2 + $0x138] sm:$0xff]  ;;  %1035 = vst.msk [vmem:[#allocation2 + $0x1d0] sm:$0xff] %vm934_vm1, %v929_v28 }
 0x1cb   : > { %2094 = vrot.lane.b32.xlu1 %v1332_v2, %s15165_s21  ;;  %v1605_v22 = vpop.permute.xlu0 %1604  ;;  %8658 = vmatmul.mubr.msk.f32.gmra.mxu1 %vm15111_vm11, %v2401_v37  ;;  %v10404_v50 = vsel %vm1160_vm3, %v1206_v45, %v1207_v49  ;;  %v1209_v32 = vrot.slane %v10401_v31, 7  ;;  %v1336_v44 = vrot.slane %v10401_v31, 1 }
 0x1cc   : > { %v2238_v17 = vsel %vm2230_vm5, %v2205_v14, %v1605_v22  ;;  %v1338_v22 = vrot.slane %v1079_v35, 1  ;;  %v2206_v14 = vsel %vm580_vm0, %v2174_v0, %v10374_v26 }
 0x1cd   : > { %v10395_v51 = vpop.permute.xlu1 %1702  ;;  %1620 = vrot.lane.b32.xlu0 %v10384_v4, %s15107_s16  ;;  %v10424_v6 = vsel %vm1160_vm3, %v1207_v49, %v1209_v32  ;;  %v1337_v59 = vsel %vm1289_vm2, %v1335_v63, %v1336_v44 }
 0x1cf   : > { %1526 = vrot.lane.b32.xlu1 %v1332_v2, %s9173_s27  ;;  %v1795_v47 = vpop.permute.xlu0 %1794 }
 0x1d1   : > { %v2085_v60 = vpop.permute.xlu1 %2084  ;;  %1810 = vrot.lane.b32.xlu0 %v1332_v2, %s15109_s17  ;;  %v928_v2 = vmax.f32 %v874_v30, 0.0 }
 0x1d3   : > { %1906 = vrot.lane.b32.xlu1 %v10404_v50, %s15160_s22  ;;  %v10408_v55 = vpop.permute.xlu0 %1418  ;;  %1034 = vst.msk [vmem:[#allocation2 + $0x1c8] sm:$0xff] %vm934_vm1, %v928_v2 }
 0x1d5   : > { %v10411_v33 = vpop.permute.xlu1 %1708  ;;  %1528 = vrot.lane.b32.xlu0 %v1334_v46, %s9173_s27  ;;  %v2303_v46 = vsel %vm2296_vm8, %v2270_v5, %v1795_v47 }
 0x1d7   : > { %1622 = vrot.lane.b32.xlu1 %v10404_v50, %s15107_s16  ;;  %v10419_v57 = vpop.permute.xlu0 %1800 }
 0x1d9   : > { %v1891_v3 = vpop.permute.xlu1 %1890  ;;  %1908 = vrot.lane.b32.xlu0 %v10424_v6, %s15160_s22 }
 0x1da   : > { %v2336_v53 = vsel %vm2329_vm7, %v2303_v46, %v1891_v3 }
 0x1db   : > { %2002 = vrot.lane.b32.xlu1 %v1077_v41, %s15145_s20  ;;  %v10431_v36 = vpop.permute.xlu0 %1516  ;;  %v2369_v40 = vsel %vm2362_vm9, %v2336_v53, %v1987_v29  ;;  %v2271_v29 = vsel %vm2263_vm6, %v2238_v17, %v10225_v20 }
 0x1dc   : > { %v2304_v38 = vsel %vm2296_vm8, %v2271_v29, %v10328_v23  ;;  %v1081_v23 = vld [vmem:[#allocation2 + $0x148] sm:$0xff] }
 0x1dd   : > { %v10436_v12 = vpop.permute.xlu1 %1606  ;;  %1624 = vrot.lane.b32.xlu0 %v10424_v6, %s15107_s16  ;;  %v1212_v3 = vrot.slane %v1081_v23, 7  ;;  %v1340_v21 = vrot.slane %v1081_v23, 1 }
 0x1de   : > { %v2239_v17 = vsel %vm2230_vm5, %v2206_v14, %v10436_v12  ;;  %v1084_v14 = vld [vmem:[#allocation2 + $0x160] sm:$0xff] }
 0x1df   : > { %1718 = vrot.lane.b32.xlu1 %v1077_v41, %s15176_s30  ;;  %v10446_v13 = vpop.permute.xlu0 %1992  ;;  %v2272_v16 = vsel %vm2263_vm6, %v2239_v17, %v10395_v51  ;;  %v8637_v51 = vpop.f32.mrf.mxu0 }
 0x1e0   : > { %v889_v35 = vadd.f32 %v10453_v58, %v8637_v51 }
 0x1e1   : > { %v2083_v25 = vpop.permute.xlu1 %2082  ;;  %2004 = vrot.lane.b32.xlu0 %v10401_v31, %s15145_s20 }
 0x1e2   : > { %v2402_v54 = vsel %vm2395_vm10, %v2369_v40, %v2083_v25 }
 0x1e3   : > { %2098 = vrot.lane.b32.xlu1 %v1337_v59, %s15165_s21  ;;  %v10464_v1 = vpop.permute.xlu0 %1424  ;;  %8660 = vmatprep.mubr.msk.f32.mxu1 %vm15111_vm11, %v2402_v54 }
 0x1e5   : > { %v10470_v37 = vpop.permute.xlu1 %1514  ;;  %1434 = vrot.lane.b32.xlu0 %v1077_v41, %s15149_s26  ;;  %v1339_v41 = vsel %vm1289_vm2, %v1336_v44, %v1338_v22 }
 0x1e7   : > { %1720 = vrot.lane.b32.xlu1 %v10401_v31, %s15176_s30  ;;  %v1893_v45 = vpop.permute.xlu0 %1892 }
 0x1e8   : > { %v2337_v49 = vsel %vm2329_vm7, %v2304_v38, %v1893_v45  ;;  %v883_v38 = vpop.f32.mrf.mxu0  ;;  %v931_v45 = vmax.f32 %v889_v35, 0.0 }
 0x1e9   : > { %v2370_v20 = vsel %vm2362_vm9, %v2337_v49, %v10352_v34  ;;  %v1991_v47 = vpop.permute.xlu1 %1990  ;;  %1814 = vrot.lane.b32.xlu0 %v1337_v59, %s15109_s17  ;;  %v1211_v34 = vrot.slane %v1080_v15, 7  ;;  %v884_v49 = vadd.f32 %v10453_v58, %v883_v38 }
 0x1ea   : > { %v2403_v32 = vsel %vm2395_vm10, %v2370_v20, %v2085_v60  ;;  %v10492_v60 = vld [vmem:[#allocation2 + $0x150] sm:$0xff]  ;;  %v1083_v20 = vld [vmem:[#allocation2 + $0x158] sm:$0xff]  ;;  %1037 = vst.msk [vmem:[#allocation2 + $0x1f0] sm:$0xff] %vm934_vm1, %v931_v45 }
 0x1eb   : > { %2100 = vrot.lane.b32.xlu1 %v1339_v41, %s15165_s21  ;;  %v1609_v11 = vpop.permute.xlu0 %1608  ;;  %8661 = vmatmul.mubr.msk.f32.gmra.mxu1 %vm15111_vm11, %v2403_v32  ;;  %v10495_v53 = vsel %vm1160_vm3, %v1211_v34, %v1212_v3  ;;  %v1341_v54 = vrot.slane %v10492_v60, 1 }
 0x1ed   : > { %v10486_v39 = vpop.permute.xlu1 %1706  ;;  %1436 = vrot.lane.b32.xlu0 %v10401_v31, %s15149_s26  ;;  %v1214_v31 = vrot.slane %v10492_v60, 7 }
 0x1ef   : > { %1530 = vrot.lane.b32.xlu1 %v1337_v59, %s9173_s27  ;;  %v1799_v5 = vpop.permute.xlu0 %1798  ;;  %v10515_v27 = vsel %vm1160_vm3, %v1212_v3, %v1214_v31  ;;  %v2175_v59 = vsel %vm934_vm1, %v10051_v8, %v10277_v52  ;;  %v1342_v52 = vsel %vm1289_vm2, %v1340_v21, %v1341_v54 }
 0x1f0   : > { %v2305_v40 = vsel %vm2296_vm8, %v2272_v16, %v1799_v5  ;;  %v2207_v30 = vsel %vm580_vm0, %v2175_v59, %v10338_v7  ;;  %v2176_v59 = vsel %vm934_vm1, %v10099_v43, %v10408_v55 }
 0x1f1   : > { %v2089_v46 = vpop.permute.xlu1 %2088  ;;  %1816 = vrot.lane.b32.xlu0 %v1339_v41, %s15109_s17  ;;  %v2240_v29 = vsel %vm2230_vm5, %v2207_v30, %v1609_v11  ;;  %v1343_v11 = vrot.slane %v1083_v20, 1  ;;  %v2208_v30 = vsel %vm580_vm0, %v2176_v59, %v10470_v37  ;;  %v1088_v59 = vld [vmem:[#allocation2 + $0x180] sm:$0xff] }
 0x1f3   : > { %1910 = vrot.lane.b32.xlu1 %v10495_v53, %s15160_s22  ;;  %v10499_v63 = vpop.permute.xlu0 %1422 }
 0x1f5   : > { %v10502_v44 = vpop.permute.xlu1 %1712  ;;  %1532 = vrot.lane.b32.xlu0 %v1339_v41, %s9173_s27  ;;  %v930_v41 = vmax.f32 %v884_v49, 0.0 }
 0x1f7   : > { %1626 = vrot.lane.b32.xlu1 %v10495_v53, %s15107_s16  ;;  %v10510_v10 = vpop.permute.xlu0 %1804  ;;  %1036 = vst.msk [vmem:[#allocation2 + $0x1e8] sm:$0xff] %vm934_vm1, %v930_v41 }
 0x1f9   : > { %v1895_v25 = vpop.permute.xlu1 %1894  ;;  %1912 = vrot.lane.b32.xlu0 %v10515_v27, %s15160_s22 }
 0x1fa   : > { %v2338_v12 = vsel %vm2329_vm7, %v2305_v40, %v1895_v25 }
 0x1fb   : > { %2006 = vrot.lane.b32.xlu1 %v1081_v23, %s15145_s20  ;;  %v10522_v62 = vpop.permute.xlu0 %1520  ;;  %v2371_v22 = vsel %vm2362_vm9, %v2338_v12, %v1991_v47  ;;  %v2273_v47 = vsel %vm2263_vm6, %v2240_v29, %v10320_v42 }
 0x1fc   : > { %v2306_v15 = vsel %vm2296_vm8, %v2273_v47, %v10419_v57  ;;  %v1085_v57 = vld [vmem:[#allocation2 + $0x168] sm:$0xff] }
 0x1fd   : > { %v10527_v26 = vpop.permute.xlu1 %1610  ;;  %1628 = vrot.lane.b32.xlu0 %v10515_v27, %s15107_s16  ;;  %v1217_v25 = vrot.slane %v1085_v57, 7  ;;  %v1345_v38 = vrot.slane %v1085_v57, 1 }
 0x1fe   : > { %v2241_v29 = vsel %vm2230_vm5, %v2208_v30, %v10527_v26 }
 0x1ff   : > { %1722 = vrot.lane.b32.xlu1 %v1081_v23, %s15176_s30  ;;  %v10537_v28 = vpop.permute.xlu0 %1996  ;;  %v2274_v55 = vsel %vm2263_vm6, %v2241_v29, %v10486_v39  ;;  %v8640_v39 = vpop.f32.mrf.mxu0 }
 0x200   : > { %v899_v20 = vadd.f32 %v10453_v58, %v8640_v39 }
 0x201   : > { %v2087_v2 = vpop.permute.xlu1 %2086  ;;  %2008 = vrot.lane.b32.xlu0 %v10492_v60, %s15145_s20 }
 0x202   : > { %v2404_v8 = vsel %vm2395_vm10, %v2371_v22, %v2087_v2 }
 0x203   : > { %2102 = vrot.lane.b32.xlu1 %v1342_v52, %s15165_s21  ;;  %v10550_v7 = vpop.permute.xlu0 %1428  ;;  %8663 = vmatprep.mubr.msk.f32.mxu1 %vm15111_vm11, %v2404_v8 }
 0x205   : > { %v10556_v32 = vpop.permute.xlu1 %1518  ;;  %1438 = vrot.lane.b32.xlu0 %v1081_v23, %s15149_s26  ;;  %v1344_v23 = vsel %vm1289_vm2, %v1341_v54, %v1343_v11 }
 0x207   : > { %1724 = vrot.lane.b32.xlu1 %v10492_v60, %s15176_s30  ;;  %v1897_v34 = vpop.permute.xlu0 %1896 }
 0x208   : > { %v2339_v3 = vsel %vm2329_vm7, %v2306_v15, %v1897_v34  ;;  %v893_v15 = vpop.f32.mrf.mxu0  ;;  %v933_v34 = vmax.f32 %v899_v20, 0.0 }
 0x209   : > { %v2372_v42 = vsel %vm2362_vm9, %v2339_v3, %v10446_v13  ;;  %v1995_v5 = vpop.permute.xlu1 %1994  ;;  %1818 = vrot.lane.b32.xlu0 %v1342_v52, %s15109_s17  ;;  %v1216_v13 = vrot.slane %v1084_v14, 7  ;;  %v894_v3 = vadd.f32 %v10453_v58, %v893_v15 }
 0x20a   : > { %v2405_v31 = vsel %vm2395_vm10, %v2372_v42, %v2089_v46  ;;  %v10578_v46 = vld [vmem:[#allocation2 + $0x170] sm:$0xff]  ;;  %v1087_v42 = vld [vmem:[#allocation2 + $0x178] sm:$0xff]  ;;  %1039 = vst.msk [vmem:[#allocation2 + $0x210] sm:$0xff] %vm934_vm1, %v933_v34 }
 0x20b   : > { %2104 = vrot.lane.b32.xlu1 %v1344_v23, %s15165_s21  ;;  %v1613_v0 = vpop.permute.xlu0 %1612  ;;  %8664 = vmatmul.mubr.msk.f32.gmra.mxu1 %vm15111_vm11, %v2405_v31  ;;  %v10581_v12 = vsel %vm1160_vm3, %v1216_v13, %v1217_v25  ;;  %v1346_v8 = vrot.slane %v10578_v46, 1 }
 0x20d   : > { %v10572_v17 = vpop.permute.xlu1 %1710  ;;  %1440 = vrot.lane.b32.xlu0 %v10492_v60, %s15149_s26  ;;  %v1219_v60 = vrot.slane %v10578_v46, 7 }
 0x20f   : > { %1534 = vrot.lane.b32.xlu1 %v1342_v52, %s9173_s27  ;;  %v1803_v16 = vpop.permute.xlu0 %1802  ;;  %v10601_v35 = vsel %vm1160_vm3, %v1217_v25, %v1219_v60  ;;  %v2177_v52 = vsel %vm934_vm1, %v10131_v61, %v10367_v19  ;;  %v1347_v19 = vsel %vm1289_vm2, %v1345_v38, %v1346_v8 }
 0x210   : > { %v2307_v22 = vsel %vm2296_vm8, %v2274_v55, %v1803_v16  ;;  %v2209_v49 = vsel %vm580_vm0, %v2177_v52, %v10431_v36 }
 0x211   : > { %v2093_v40 = vpop.permute.xlu1 %2092  ;;  %1820 = vrot.lane.b32.xlu0 %v1344_v23, %s15109_s17  ;;  %v2242_v47 = vsel %vm2230_vm5, %v2209_v49, %v1613_v0  ;;  %v1348_v0 = vrot.slane %v1087_v42, 1 }
 0x213   : > { %1914 = vrot.lane.b32.xlu1 %v10581_v12, %s15160_s22  ;;  %v10585_v21 = vpop.permute.xlu0 %1426 }
 0x215   : > { %v10588_v54 = vpop.permute.xlu1 %1716  ;;  %1536 = vrot.lane.b32.xlu0 %v1344_v23, %s9173_s27  ;;  %v932_v23 = vmax.f32 %v894_v3, 0.0 }
 0x217   : > { %1630 = vrot.lane.b32.xlu1 %v10581_v12, %s15107_s16  ;;  %v10596_v51 = vpop.permute.xlu0 %1808  ;;  %1038 = vst.msk [vmem:[#allocation2 + $0x208] sm:$0xff] %vm934_vm1, %v932_v23 }
 0x219   : > { %v1899_v2 = vpop.permute.xlu1 %1898  ;;  %1916 = vrot.lane.b32.xlu0 %v10601_v35, %s15160_s22 }
 0x21a   : > { %v2340_v26 = vsel %vm2329_vm7, %v2307_v22, %v1899_v2 }
 0x21b   : > { %2010 = vrot.lane.b32.xlu1 %v1085_v57, %s15145_s20  ;;  %v10608_v43 = vpop.permute.xlu0 %1524  ;;  %v2373_v11 = vsel %vm2362_vm9, %v2340_v26, %v1995_v5  ;;  %v2275_v5 = vsel %vm2263_vm6, %v2242_v47, %v10411_v33  ;;  %v2179_v26 = vsel %vm934_vm1, %v10223_v18, %v10464_v1 }
 0x21c   : > { %v2308_v58 = vsel %vm2296_vm8, %v2275_v5, %v10510_v10  ;;  %v1089_v10 = vld [vmem:[#allocation2 + $0x188] sm:$0xff] }
 0x21d   : > { %v10613_v37 = vpop.permute.xlu1 %1614  ;;  %1632 = vrot.lane.b32.xlu0 %v10601_v35, %s15107_s16  ;;  %v1222_v29 = vrot.slane %v1089_v10, 7  ;;  %v1350_v3 = vrot.slane %v1089_v10, 1 }
 0x21f   : > { %1726 = vrot.lane.b32.xlu1 %v1085_v57, %s15176_s30  ;;  %v10623_v45 = vpop.permute.xlu0 %2000 }
 0x221   : > { %v2091_v41 = vpop.permute.xlu1 %2090  ;;  %2012 = vrot.lane.b32.xlu0 %v10578_v46, %s15145_s20 }
 0x222   : > { %v2406_v61 = vsel %vm2395_vm10, %v2373_v11, %v2091_v41 }
 0x223   : > { %2106 = vrot.lane.b32.xlu1 %v1347_v19, %s15165_s21  ;;  %v10636_v36 = vpop.permute.xlu0 %1432  ;;  %8666 = vmatprep.mubr.msk.f32.mxu1 %vm15111_vm11, %v2406_v61 }
 0x225   : > { %v10642_v31 = vpop.permute.xlu1 %1522  ;;  %1442 = vrot.lane.b32.xlu0 %v1085_v57, %s15149_s26  ;;  %v1349_v57 = vsel %vm1289_vm2, %v1346_v8, %v1348_v0  ;;  %v2211_v8 = vsel %vm580_vm0, %v2179_v26, %v10522_v62  ;;  %v1091_v0 = vld [vmem:[#allocation2 + $0x198] sm:$0xff] }
 0x227   : > { %1728 = vrot.lane.b32.xlu1 %v10578_v46, %s15176_s30  ;;  %v1901_v14 = vpop.permute.xlu0 %1900 }
 0x228   : > { %v2341_v13 = vsel %vm2329_vm7, %v2308_v58, %v1901_v14  ;;  %v1353_v14 = vrot.slane %v1091_v0, 1 }
 0x229   : > { %v2374_v33 = vsel %vm2362_vm9, %v2341_v13, %v10537_v28  ;;  %v1999_v25 = vpop.permute.xlu1 %1998  ;;  %1822 = vrot.lane.b32.xlu0 %v1347_v19, %s15109_s17  ;;  %v1221_v28 = vrot.slane %v1088_v59, 7 }
 0x22a   : > { %v2407_v16 = vsel %vm2395_vm10, %v2374_v33, %v2093_v40  ;;  %v10664_v40 = vld [vmem:[#allocation2 + $0x190] sm:$0xff] }
 0x22b   : > { %2108 = vrot.lane.b32.xlu1 %v1349_v57, %s15165_s21  ;;  %v1617_v60 = vpop.permute.xlu0 %1616  ;;  %8667 = vmatmul.mubr.msk.f32.gmra.mxu1 %vm15111_vm11, %v2407_v16  ;;  %v10667_v22 = vsel %vm1160_vm3, %v1221_v28, %v1222_v29  ;;  %v1224_v39 = vrot.slane %v10664_v40, 7  ;;  %v1351_v42 = vrot.slane %v10664_v40, 1  ;;  %v2180_v16 = vsel %vm934_vm1, %v10287_v24, %v10585_v21  ;;  %v10742_v28 = vld [vmem:[#allocation2 + $0x1a8] sm:$0xff] }
 0x22c   : > { %v2244_v1 = vsel %vm2230_vm5, %v2211_v8, %v1617_v60  ;;  %v9125_v24 = vld [vmem:[%s9283_s25 + $0x8] sm:$0xff] }
 0x22d   : > { %v10658_v30 = vpop.permute.xlu1 %1714  ;;  %1444 = vrot.lane.b32.xlu0 %v10578_v46, %s15149_s26  ;;  %v2178_v46 = vsel %vm934_vm1, %v10193_v56, %v10499_v63  ;;  %v2277_v63 = vsel %vm2263_vm6, %v2244_v1, %v10502_v44  ;;  %v1352_v5 = vsel %vm1289_vm2, %v1350_v3, %v1351_v42 }
 0x22e   : > { %v2210_v52 = vsel %vm580_vm0, %v2178_v46, %v10556_v32  ;;  %v10697_v32 = vsel %vm1160_vm3, %v1222_v29, %v1224_v39  ;;  %v2310_v41 = vsel %vm2296_vm8, %v2277_v63, %v10596_v51  ;;  %v2212_v29 = vsel %vm580_vm0, %v2180_v16, %v10642_v31 }
 0x22f   : > { %1538 = vrot.lane.b32.xlu1 %v1347_v19, %s9173_s27  ;;  %v1807_v2 = vpop.permute.xlu0 %1806  ;;  %v2243_v18 = vsel %vm2230_vm5, %v2210_v52, %v10613_v37  ;;  %v1227_v39 = vrot.slane %v10742_v28, 7 }
 0x230   : > { %v2276_v62 = vsel %vm2263_vm6, %v2243_v18, %v10572_v17 }
 0x231   : > { %v2097_v55 = vpop.permute.xlu1 %2096  ;;  %1824 = vrot.lane.b32.xlu0 %v1349_v57, %s15109_s17  ;;  %v2309_v37 = vsel %vm2296_vm8, %v2276_v62, %v1807_v2 }
 0x233   : > { %1918 = vrot.lane.b32.xlu1 %v10667_v22, %s15160_s22  ;;  %v10677_v38 = vpop.permute.xlu0 %1430 }
 0x235   : > { %v1903_v49 = vpop.permute.xlu1 %1902  ;;  %1540 = vrot.lane.b32.xlu0 %v1349_v57, %s9173_s27  ;;  %v1354_v57 = vsel %vm1289_vm2, %v1351_v42, %v1353_v14 }
 0x236   : > { %v2342_v47 = vsel %vm2329_vm7, %v2309_v37, %v1903_v49  ;;  %v9126_v49 = vld [vmem:[%s9283_s25] sm:$0xff]  ;;  %v1094_v37 = vld [vmem:[#allocation2 + $0x1b0] sm:$0xff] }
 0x237   : > { %1634 = vrot.lane.b32.xlu1 %v10667_v22, %s15107_s16  ;;  %v10690_v56 = vpop.permute.xlu0 %1812  ;;  %v2375_v61 = vsel %vm2362_vm9, %v2342_v47, %v1999_v25  ;;  %v10735_v25 = vld [vmem:[%s15092_s4] ss:$0 sm:$0xff]  ;;  %v1356_v14 = vrot.slane %v1094_v37, 1 }
 0x239   : > { %v1619_v20 = vpop.permute.xlu1 %1618  ;;  %1920 = vrot.lane.b32.xlu0 %v10697_v32, %s15160_s22 }
 0x23b   : > { %2014 = vrot.lane.b32.xlu1 %v1089_v10, %s15145_s20  ;;  %v1905_v44 = vpop.permute.xlu0 %1904 }
 0x23c   : > { %v2343_v11 = vsel %vm2329_vm7, %v2310_v41, %v1905_v44 }
 0x23d   : > { %v2376_v17 = vsel %vm2362_vm9, %v2343_v11, %v10623_v45  ;;  %v2095_v15 = vpop.permute.xlu1 %2094  ;;  %1636 = vrot.lane.b32.xlu0 %v10697_v32, %s15107_s16 }
 0x23e   : > { %v2408_v19 = vsel %vm2395_vm10, %v2375_v61, %v2095_v15  ;;  %v2409_v34 = vsel %vm2395_vm10, %v2376_v17, %v2097_v55  ;;  %v2245_v55 = vsel %vm2230_vm5, %v2212_v29, %v1619_v20  ;;  %v1229_v17 = vrot.slane %v1094_v37, 7 }
 0x23f   : > { %1730 = vrot.lane.b32.xlu1 %v1089_v10, %s15176_s30  ;;  %v1621_v51 = vpop.permute.xlu0 %1620  ;;  %8669 = vmatprep.mubr.msk.f32.mxu1 %vm15111_vm11, %v2408_v19  ;;  %v2278_v18 = vsel %vm2263_vm6, %v2245_v55, %v10658_v30  ;;  %v2181_v30 = vsel %vm934_vm1, %v10318_v9, %v10550_v7 }
 0x240   : > { %8670 = vmatmul.mubr.msk.f32.gmra.mxu1 %vm15111_vm11, %v2409_v34  ;;  %v2213_v44 = vsel %vm580_vm0, %v2181_v30, %v10608_v43  ;;  %v10794_v34 = vsel %vm1160_vm3, %v1227_v39, %v1229_v17  ;;  %v9128_v17 = vld [vmem:[%s9283_s25 + $0x10] sm:$0xff] }
 0x241   : > { %v10718_v45 = vpop.permute.xlu1 %1526  ;;  %2016 = vrot.lane.b32.xlu0 %v10664_v40, %s15145_s20  ;;  %v2246_v15 = vsel %vm2230_vm5, %v2213_v44, %v1621_v51 }
 0x242   : > { %v2279_v43 = vsel %vm2263_vm6, %v2246_v15, %v10588_v54 }
 0x243   : > { %2110 = vrot.lane.b32.xlu1 %v1352_v5, %s15165_s21  ;;  %v1811_v23 = vpop.permute.xlu0 %1810  ;;  %v2312_v42 = vsel %vm2296_vm8, %v2279_v43, %v10690_v56 }
 0x245   : > { %v1907_v58 = vpop.permute.xlu1 %1906  ;;  %1446 = vrot.lane.b32.xlu0 %v1089_v10, %s15149_s26  ;;  %v1092_v10 = vld [vmem:[#allocation2 + $0x1a0] sm:$0xff] }
 0x246   : > { %v1226_v52 = vrot.slane %v1092_v10, 7 }
 0x247   : > { %1732 = vrot.lane.b32.xlu1 %v10664_v40, %s15176_s30  ;;  %v10727_v13 = vpop.permute.xlu0 %1528 }
 0x248   : > { %v10771_v47 = vsel %vm1160_vm3, %v1226_v52, %v1227_v39  ;;  %v10830_v52 = vld [vmem:[#allocation2 + $0x1c8] sm:$0xff] }
 0x249   : > { %v10729_v33 = vpop.permute.xlu1 %1622  ;;  %1826 = vrot.lane.b32.xlu0 %v1352_v5, %s15109_s17  ;;  %v1232_v30 = vrot.slane %v10830_v52, 7 }
 0x24b   : > { %2112 = vrot.lane.b32.xlu1 %v1354_v57, %s15165_s21  ;;  %v8653_v60 = vpop.f32.mrf.mxu1  ;;  %v1909_v59 = vpop.permute.xlu0 %1908 }
 0x24c   : > { %v2613_v2 = vadd.f32 %v8653_v60, %v10735_v25 }
 0x24d   : > { %v2003_v26 = vpop.permute.xlu1 %2002  ;;  %v2607_v46 = vpop.f32.mrf.mxu1  ;;  %1448 = vrot.lane.b32.xlu0 %v10664_v40, %s15149_s26  ;;  %v2311_v40 = vsel %vm2296_vm8, %v2278_v18, %v1811_v23 }
 0x24e   : > { %v10751_v21 = vadd.f32 %v9125_v24, %v2613_v2  ;;  %v2608_v8 = vadd.f32 %v10735_v25, %v2607_v46  ;;  %v2344_v11 = vsel %vm2329_vm7, %v2311_v40, %v1907_v58  ;;  %v1355_v58 = vrot.slane %v10742_v28, 1 }
 0x24f   : > { %1542 = vrot.lane.b32.xlu1 %v1352_v5, %s9173_s27  ;;  %v10756_v31 = vpop.permute.xlu0 %1624  ;;  %v2377_v61 = vsel %vm2362_vm9, %v2344_v11, %v2003_v26  ;;  %v2345_v5 = vsel %vm2329_vm7, %v2312_v42, %v1909_v59  ;;  %v1095_v59 = vld [vmem:[#allocation2 + $0x1b8] sm:$0xff] }
 0x250   : > { %v2799_v1 = vmax.f32 %v10751_v21, 0.0  ;;  %v10762_v63 = vadd.f32 %v9126_v49, %v2608_v8  ;;  %v1357_v16 = vsel %vm1289_vm2, %v1355_v58, %v1356_v14  ;;  %v1358_v29 = vrot.slane %v1095_v59, 1  ;;  %v1096_v8 = vld [vmem:[#allocation2 + $0x1c0] sm:$0xff] }
 0x251   : > { %v10765_v62 = vpop.permute.xlu1 %1718  ;;  %1828 = vrot.lane.b32.xlu0 %v1354_v57, %s15109_s17 }
 0x252   : > { %2904 = vst.msk [vmem:[#allocation3 + $0x30] sm:$0xff] %vm580_vm0, %v2799_v1  ;;  %v2798_v20 = vmax.f32 %v10762_v63, 0.0  ;;  %v1359_v26 = vsel %vm1289_vm2, %v1356_v14, %v1358_v29  ;;  %v9127_v1 = vld [vmem:[%s9283_s25 + $0x18] sm:$0xff] }
 0x253   : > { %1922 = vrot.lane.b32.xlu1 %v10771_v47, %s15160_s22  ;;  %v2005_v41 = vpop.permute.xlu0 %2004 }
 0x254   : > { %2903 = vst.msk [vmem:[#allocation3 + $0x28] sm:$0xff] %vm580_vm0, %v2798_v20  ;;  %v2378_v23 = vsel %vm2362_vm9, %v2345_v5, %v2005_v41  ;;  %v1231_v20 = vrot.slane %v1096_v8, 7  ;;  %v2182_v41 = vsel %vm934_vm1, %v10362_v48, %v10677_v38  ;;  %v1098_v48 = vld [vmem:[#allocation2 + $0x1d0] sm:$0xff] }
 0x255   : > { %v2099_v19 = vpop.permute.xlu1 %2098  ;;  %1544 = vrot.lane.b32.xlu0 %v1354_v57, %s9173_s27  ;;  %v1234_v5 = vrot.slane %v1098_v48, 7  ;;  %v1361_v8 = vrot.slane %v1098_v48, 1 }
 0x256   : > { %v2410_v9 = vsel %vm2395_vm10, %v2377_v61, %v2099_v19 }
 0x257   : > { %1638 = vrot.lane.b32.xlu1 %v10771_v47, %s15107_s16  ;;  %v10788_v7 = vpop.permute.xlu0 %1434  ;;  %8672 = vmatprep.mubr.msk.f32.mxu1 %vm15111_vm11, %v2410_v9  ;;  %v10861_v9 = vsel %vm1160_vm3, %v1231_v20, %v1232_v30  ;;  %v10882_v14 = vsel %vm1160_vm3, %v1232_v30, %v1234_v5 }
 0x259   : > { %v10796_v3 = vpop.permute.xlu1 %1720  ;;  %1924 = vrot.lane.b32.xlu0 %v10794_v34, %s15160_s22 }
 0x25b   : > { %2018 = vrot.lane.b32.xlu1 %v10742_v28, %s15145_s20  ;;  %v1815_v51 = vpop.permute.xlu0 %1814 }
 0x25d   : > { %v2101_v54 = vpop.permute.xlu1 %2100  ;;  %1640 = vrot.lane.b32.xlu0 %v10794_v34, %s15107_s16 }
 0x25e   : > { %v2411_v0 = vsel %vm2395_vm10, %v2378_v23, %v2101_v54 }
 0x25f   : > { %1734 = vrot.lane.b32.xlu1 %v10742_v28, %s15176_s30  ;;  %v10812_v56 = vpop.permute.xlu0 %1436  ;;  %8673 = vmatmul.mubr.msk.f32.gmra.mxu1 %vm15111_vm11, %v2411_v0 }
 0x261   : > { %v10815_v57 = vpop.permute.xlu1 %1530  ;;  %2020 = vrot.lane.b32.xlu0 %v1094_v37, %s15145_s20 }
 0x263   : > { %2114 = vrot.lane.b32.xlu1 %v1357_v16, %s15165_s21  ;;  %v1817_v60 = vpop.permute.xlu0 %1816 }
 0x265   : > { %v1911_v10 = vpop.permute.xlu1 %1910  ;;  %1450 = vrot.lane.b32.xlu0 %v10742_v28, %s15149_s26 }
 0x267   : > { %1736 = vrot.lane.b32.xlu1 %v1094_v37, %s15176_s30  ;;  %v10823_v2 = vpop.permute.xlu0 %1532 }
 0x269   : > { %v10825_v55 = vpop.permute.xlu1 %1626  ;;  %1830 = vrot.lane.b32.xlu0 %v1357_v16, %s15109_s17 }
 0x26b   : > { %2116 = vrot.lane.b32.xlu1 %v1359_v26, %s15165_s21  ;;  %v1913_v46 = vpop.permute.xlu0 %1912  ;;  %v8656_v24 = vpop.f32.mrf.mxu1 }
 0x26c   : > { %v2623_v28 = vadd.f32 %v8656_v24, %v10735_v25  ;;  %v1360_v24 = vrot.slane %v10830_v52, 1 }
 0x26d   : > { %v2007_v39 = vpop.permute.xlu1 %2006  ;;  %1452 = vrot.lane.b32.xlu0 %v1094_v37, %s15149_s26  ;;  %v2617_v18 = vpop.f32.mrf.mxu1  ;;  %v2214_v37 = vsel %vm580_vm0, %v2182_v41, %v10718_v45 }
 0x26e   : > { %v10835_v49 = vadd.f32 %v9127_v1, %v2623_v28  ;;  %v2618_v40 = vadd.f32 %v10735_v25, %v2617_v18  ;;  %v2247_v61 = vsel %vm2230_vm5, %v2214_v37, %v10729_v33 }
 0x26f   : > { %1546 = vrot.lane.b32.xlu1 %v1357_v16, %s9173_s27  ;;  %v10843_v44 = vpop.permute.xlu0 %1628  ;;  %v2280_v38 = vsel %vm2263_vm6, %v2247_v61, %v10765_v62 }
 0x270   : > { %v2801_v11 = vmax.f32 %v10835_v49, 0.0  ;;  %v10849_v15 = vadd.f32 %v9128_v17, %v2618_v40  ;;  %v2313_v43 = vsel %vm2296_vm8, %v2280_v38, %v1815_v51  ;;  %v2183_v51 = vsel %vm934_vm1, %v10384_v4, %v10636_v36  ;;  %v10921_v17 = vld [vmem:[#allocation2 + $0x1e8] sm:$0xff] }
 0x271   : > { %v10853_v19 = vpop.permute.xlu1 %1722  ;;  %1832 = vrot.lane.b32.xlu0 %v1359_v26, %s15109_s17  ;;  %v2346_v42 = vsel %vm2329_vm7, %v2313_v43, %v1911_v10  ;;  %v2215_v58 = vsel %vm580_vm0, %v2183_v51, %v10727_v13  ;;  %v1237_v5 = vrot.slane %v10921_v17, 7  ;;  %v9130_v51 = vld [vmem:[%s9283_s25 + $0x20] sm:$0xff] }
 0x272   : > { %2906 = vst.msk [vmem:[#allocation3 + $0x50] sm:$0xff] %vm580_vm0, %v2801_v11  ;;  %v2800_v45 = vmax.f32 %v10849_v15, 0.0  ;;  %v2379_v62 = vsel %vm2362_vm9, %v2346_v42, %v2007_v39  ;;  %v2248_v16 = vsel %vm2230_vm5, %v2215_v58, %v10756_v31  ;;  %v1099_v39 = vld [vmem:[#allocation2 + $0x1d8] sm:$0xff]  ;;  %v1100_v11 = vld [vmem:[#allocation2 + $0x1e0] sm:$0xff] }
 0x273   : > { %1926 = vrot.lane.b32.xlu1 %v10861_v9, %s15160_s22  ;;  %v2009_v33 = vpop.permute.xlu0 %2008  ;;  %v2281_v4 = vsel %vm2263_vm6, %v2248_v16, %v10796_v3  ;;  %v1363_v1 = vrot.slane %v1099_v39, 1  ;;  %v1236_v42 = vrot.slane %v1100_v11, 7 }
 0x274   : > { %2905 = vst.msk [vmem:[#allocation3 + $0x48] sm:$0xff] %vm580_vm0, %v2800_v45  ;;  %v2314_v36 = vsel %vm2296_vm8, %v2281_v4, %v1817_v60  ;;  %v9129_v45 = vld [vmem:[%s9283_s25 + $0x28] sm:$0xff] }
 0x275   : > { %v2103_v23 = vpop.permute.xlu1 %2102  ;;  %1548 = vrot.lane.b32.xlu0 %v1359_v26, %s9173_s27  ;;  %v2347_v10 = vsel %vm2329_vm7, %v2314_v36, %v1913_v46  ;;  %v1362_v46 = vsel %vm1289_vm2, %v1360_v24, %v1361_v8  ;;  %v1364_v30 = vsel %vm1289_vm2, %v1361_v8, %v1363_v1  ;;  %v10952_v36 = vsel %vm1160_vm3, %v1236_v42, %v1237_v5 }
 0x276   : > { %v2412_v54 = vsel %vm2395_vm10, %v2379_v62, %v2103_v23  ;;  %v2380_v29 = vsel %vm2362_vm9, %v2347_v10, %v2009_v33  ;;  %v2184_v62 = vsel %vm934_vm1, %v10404_v50, %v10788_v7  ;;  %v1102_v50 = vld [vmem:[#allocation2 + $0x1f0] sm:$0xff] }
 0x277   : > { %1642 = vrot.lane.b32.xlu1 %v10861_v9, %s15107_s16  ;;  %v10876_v0 = vpop.permute.xlu0 %1438  ;;  %8675 = vmatprep.mubr.msk.f32.mxu1 %vm15111_vm11, %v2412_v54 }
 0x279   : > { %v10886_v59 = vpop.permute.xlu1 %1724  ;;  %1928 = vrot.lane.b32.xlu0 %v10882_v14, %s15160_s22 }
 0x27b   : > { %2022 = vrot.lane.b32.xlu1 %v10830_v52, %s15145_s20  ;;  %v1819_v13 = vpop.permute.xlu0 %1818 }
 0x27d   : > { %v2105_v26 = vpop.permute.xlu1 %2104  ;;  %1644 = vrot.lane.b32.xlu0 %v10882_v14, %s15107_s16 }
 0x27e   : > { %v2413_v31 = vsel %vm2395_vm10, %v2380_v29, %v2105_v26  ;;  %v1239_v26 = vrot.slane %v1102_v50, 7 }
 0x27f   : > { %1738 = vrot.lane.b32.xlu1 %v10830_v52, %s15176_s30  ;;  %v10903_v3 = vpop.permute.xlu0 %1440  ;;  %8676 = vmatmul.mubr.msk.f32.gmra.mxu1 %vm15111_vm11, %v2413_v31 }
 0x280   : > { %v10973_v39 = vsel %vm1160_vm3, %v1237_v5, %v1239_v26 }
 0x281   : > { %v10906_v60 = vpop.permute.xlu1 %1534  ;;  %2024 = vrot.lane.b32.xlu0 %v1098_v48, %s15145_s20 }
 0x283   : > { %2118 = vrot.lane.b32.xlu1 %v1362_v46, %s15165_s21  ;;  %v1821_v28 = vpop.permute.xlu0 %1820 }
 0x285   : > { %v1915_v18 = vpop.permute.xlu1 %1914  ;;  %1454 = vrot.lane.b32.xlu0 %v10830_v52, %s15149_s26 }
 0x287   : > { %1740 = vrot.lane.b32.xlu1 %v1098_v48, %s15176_s30  ;;  %v10914_v40 = vpop.permute.xlu0 %1536 }
 0x289   : > { %v10916_v20 = vpop.permute.xlu1 %1630  ;;  %1834 = vrot.lane.b32.xlu0 %v1362_v46, %s15109_s17 }
 0x28b   : > { %2120 = vrot.lane.b32.xlu1 %v1364_v30, %s15165_s21  ;;  %v1917_v41 = vpop.permute.xlu0 %1916  ;;  %v8659_v37 = vpop.f32.mrf.mxu1 }
 0x28c   : > { %v2633_v52 = vadd.f32 %v8659_v37, %v10735_v25 }
 0x28d   : > { %v2011_v61 = vpop.permute.xlu1 %2010  ;;  %1456 = vrot.lane.b32.xlu0 %v1098_v48, %s15149_s26  ;;  %v2627_v38 = vpop.f32.mrf.mxu1  ;;  %v2216_v48 = vsel %vm580_vm0, %v2184_v62, %v10815_v57 }
 0x28e   : > { %v10926_v43 = vadd.f32 %v9129_v45, %v2633_v52  ;;  %v2628_v33 = vadd.f32 %v10735_v25, %v2627_v38  ;;  %v2249_v16 = vsel %vm2230_vm5, %v2216_v48, %v10825_v55  ;;  %v1365_v52 = vrot.slane %v10921_v17, 1  ;;  %v1103_v45 = vld [vmem:[#allocation2 + $0x1f8] sm:$0xff] }
 0x28f   : > { %1550 = vrot.lane.b32.xlu1 %v1362_v46, %s9173_s27  ;;  %v10934_v23 = vpop.permute.xlu0 %1632  ;;  %v2282_v7 = vsel %vm2263_vm6, %v2249_v16, %v10853_v19  ;;  %v1368_v42 = vrot.slane %v1103_v45, 1  ;;  %v1104_v16 = vld [vmem:[#allocation2 + $0x200] sm:$0xff]  ;;  %v2187_v45 = vsel %vm934_vm1, %v10515_v27, %v10903_v3 }
 0x290   : > { %v2803_v54 = vmax.f32 %v10926_v43, 0.0  ;;  %v10940_v58 = vadd.f32 %v9130_v51, %v2628_v33  ;;  %v2315_v10 = vsel %vm2296_vm8, %v2282_v7, %v1819_v13  ;;  %v2185_v13 = vsel %vm934_vm1, %v10424_v6, %v10812_v56  ;;  %v11012_v7 = vld [vmem:[#allocation2 + $0x208] sm:$0xff] }
 0x291   : > { %v10944_v4 = vpop.permute.xlu1 %1726  ;;  %1836 = vrot.lane.b32.xlu0 %v1364_v30, %s15109_s17  ;;  %v2348_v29 = vsel %vm2329_vm7, %v2315_v10, %v1915_v18  ;;  %v2217_v46 = vsel %vm580_vm0, %v2185_v13, %v10823_v2 }
 0x292   : > { %2908 = vst.msk [vmem:[#allocation3 + $0x70] sm:$0xff] %vm580_vm0, %v2803_v54  ;;  %v2802_v57 = vmax.f32 %v10940_v58, 0.0  ;;  %v2381_v19 = vsel %vm2362_vm9, %v2348_v29, %v2011_v61  ;;  %v2250_v18 = vsel %vm2230_vm5, %v2217_v46, %v10843_v44  ;;  %v1366_v61 = vrot.slane %v1102_v50, 1 }
 0x293   : > { %1930 = vrot.lane.b32.xlu1 %v10952_v36, %s15160_s22  ;;  %v2013_v55 = vpop.permute.xlu0 %2012  ;;  %v2283_v6 = vsel %vm2263_vm6, %v2250_v18, %v10886_v59  ;;  %v9132_v18 = vld [vmem:[%s9283_s25 + $0x30] sm:$0xff] }
 0x294   : > { %2907 = vst.msk [vmem:[#allocation3 + $0x68] sm:$0xff] %vm580_vm0, %v2802_v57  ;;  %v2316_v56 = vsel %vm2296_vm8, %v2283_v6, %v1821_v28  ;;  %v1369_v48 = vsel %vm1289_vm2, %v1366_v61, %v1368_v42 }
 0x295   : > { %v2107_v31 = vpop.permute.xlu1 %2106  ;;  %1552 = vrot.lane.b32.xlu0 %v1364_v30, %s9173_s27  ;;  %v2349_v30 = vsel %vm2329_vm7, %v2316_v56, %v1917_v41  ;;  %v1367_v41 = vsel %vm1289_vm2, %v1365_v52, %v1366_v61 }
 0x296   : > { %v2414_v24 = vsel %vm2395_vm10, %v2381_v19, %v2107_v31  ;;  %v2382_v37 = vsel %vm2362_vm9, %v2349_v30, %v2013_v55  ;;  %v9131_v55 = vld [vmem:[%s9283_s25 + $0x38] sm:$0xff]  ;;  %v1373_v19 = vrot.slane %v1104_v16, 7  ;;  %v1374_v31 = vrot.slane %v11012_v7, 7 }
 0x297   : > { %1646 = vrot.lane.b32.xlu1 %v10952_v36, %s15107_s16  ;;  %v10967_v8 = vpop.permute.xlu0 %1442  ;;  %8678 = vmatprep.mubr.msk.f32.mxu1 %vm15111_vm11, %v2414_v24  ;;  %v2186_v24 = vsel %vm934_vm1, %v10495_v53, %v10876_v0  ;;  %v1106_v53 = vld [vmem:[#allocation2 + $0x210] sm:$0xff] }
 0x298   : > { %v1376_v52 = vrot.slane %v1106_v53, 7 }
 0x299   : > { %v10977_v1 = vpop.permute.xlu1 %1728  ;;  %1932 = vrot.lane.b32.xlu0 %v10973_v39, %s15160_s22 }
 0x29a   : > { %v1377_v42 = vsel %vm1160_vm3, %v1374_v31, %v1376_v52 }
 0x29b   : > { %2026 = vrot.lane.b32.xlu1 %v10921_v17, %s15145_s20  ;;  %v1823_v2 = vpop.permute.xlu0 %1822 }
 0x29d   : > { %v2109_v11 = vpop.permute.xlu1 %2108  ;;  %1648 = vrot.lane.b32.xlu0 %v10973_v39, %s15107_s16 }
 0x29e   : > { %v2415_v44 = vsel %vm2395_vm10, %v2382_v37, %v2109_v11  ;;  %v1375_v37 = vsel %vm1160_vm3, %v1373_v19, %v1374_v31  ;;  %v1108_v31 = vld [vmem:[#allocation2 + $0x220] sm:$0xff] }
 0x29f   : > { %1742 = vrot.lane.b32.xlu1 %v10921_v17, %s15176_s30  ;;  %v10994_v59 = vpop.permute.xlu0 %1444  ;;  %8679 = vmatmul.mubr.msk.f32.gmra.mxu1 %vm15111_vm11, %v2415_v44 }
 0x2a1   : > { %v10997_v28 = vpop.permute.xlu1 %1538  ;;  %2028 = vrot.lane.b32.xlu0 %v1102_v50, %s15145_s20 }
 0x2a3   : > { %2122 = vrot.lane.b32.xlu1 %v1367_v41, %s15165_s21  ;;  %v1825_v38 = vpop.permute.xlu0 %1824 }
 0x2a5   : > { %v1919_v33 = vpop.permute.xlu1 %1918  ;;  %1458 = vrot.lane.b32.xlu0 %v10921_v17, %s15149_s26 }
 0x2a7   : > { %1744 = vrot.lane.b32.xlu1 %v1102_v50, %s15176_s30  ;;  %v11005_v5 = vpop.permute.xlu0 %1540 }
 0x2a9   : > { %v11007_v62 = vpop.permute.xlu1 %1634  ;;  %1838 = vrot.lane.b32.xlu0 %v1367_v41, %s15109_s17 }
 0x2ab   : > { %2124 = vrot.lane.b32.xlu1 %v1369_v48, %s15165_s21  ;;  %v1921_v54 = vpop.permute.xlu0 %1920  ;;  %v8662_v51 = vpop.f32.mrf.mxu1 }
 0x2ac   : > { %v2643_v17 = vadd.f32 %v8662_v51, %v10735_v25 }
 0x2ad   : > { %v2015_v57 = vpop.permute.xlu1 %2014  ;;  %1460 = vrot.lane.b32.xlu0 %v1102_v50, %s15149_s26  ;;  %v2637_v10 = vpop.f32.mrf.mxu1  ;;  %v2218_v50 = vsel %vm580_vm0, %v2186_v24, %v10906_v60  ;;  %v1109_v24 = vld [vmem:[#allocation2 + $0x228] sm:$0xff]  ;;  %s15230_s26 = smov 64  }
 0x2ae   : > { %v11017_v29 = vadd.f32 %v9131_v55, %v2643_v17  ;;  %v2638_v26 = vadd.f32 %v10735_v25, %v2637_v10  ;;  %v2251_v56 = vsel %vm2230_vm5, %v2218_v50, %v10916_v20  ;;  %v1379_v10 = vrot.slane %v11012_v7, 1 }
 0x2af   : > { %1554 = vrot.lane.b32.xlu1 %v1367_v41, %s9173_s27  ;;  %v11025_v13 = vpop.permute.xlu0 %1636  ;;  %v2284_v0 = vsel %vm2263_vm6, %v2251_v56, %v10944_v4  ;;  %v1380_v55 = vrot.slane %v1106_v53, 1  ;;  %v1388_v56 = vrot.slane %v1109_v24, 7 }
 0x2b0   : > { %15177 = vst [vmem:[#allocation6_spill] sm:$0xff] %v11017_v29  ;;  %v2805_v46 = vmax.f32 %v11017_v29, 0.0  ;;  %v11031_v6 = vadd.f32 %v9132_v18, %v2638_v26  ;;  %v2317_v11 = vsel %vm2296_vm8, %v2284_v0, %v1823_v2  ;;  %v1387_v18 = vrot.slane %v1108_v31, 7 }
 0x2b1   : > { %v11035_v30 = vpop.permute.xlu1 %1730  ;;  %1840 = vrot.lane.b32.xlu0 %v1369_v48, %s15109_s17  ;;  %v2350_v20 = vsel %vm2329_vm7, %v2317_v11, %v1919_v33  ;;  %v2219_v33 = vsel %vm580_vm0, %v2187_v45, %v10914_v40  ;;  %v1381_v26 = vsel %vm1289_vm2, %v1379_v10, %v1380_v55  ;;  %v1111_v45 = vld [vmem:[#allocation2 + $0x238] sm:$0xff]  ;;  %v9134_v10 = vld [vmem:[%s9283_s25 + $0x40] sm:$0xff] }
 0x2b2   : > { %15178 = vst [vmem:[#allocation7_spill] sm:$0xff] %v11031_v6  ;;  %2910 = vst.msk [vmem:[#allocation3 + $0x90] sm:$0xff] %vm580_vm0, %v2805_v46  ;;  %v2804_v60 = vmax.f32 %v11031_v6, 0.0  ;;  %v2383_v61 = vsel %vm2362_vm9, %v2350_v20, %v2015_v57 }
 0x2b3   : > { %1934 = vrot.lane.b32.xlu1 %v1375_v37, %s15160_s22  ;;  %v2017_v44 = vpop.permute.xlu0 %2016 }
 0x2b4   : > { %2909 = vst.msk [vmem:[#allocation3 + $0x88] sm:$0xff] %vm580_vm0, %v2804_v60 }
 0x2b5   : > { %v2111_v41 = vpop.permute.xlu1 %2110  ;;  %1556 = vrot.lane.b32.xlu0 %v1369_v48, %s9173_s27  ;;  %v2252_v48 = vsel %vm2230_vm5, %v2219_v33, %v10934_v23  ;;  %v9133_v33 = vld [vmem:[%s9283_s25 + $0x48] sm:$0xff] }
 0x2b6   : > { %v2416_v4 = vsel %vm2395_vm10, %v2383_v61, %v2111_v41  ;;  %v2285_v27 = vsel %vm2263_vm6, %v2252_v48, %v10977_v1 }
 0x2b7   : > { %1650 = vrot.lane.b32.xlu1 %v1375_v37, %s15107_s16  ;;  %v11054_v2 = vpop.permute.xlu0 %1446  ;;  %8681 = vmatprep.mubr.msk.f32.mxu1 %vm15111_vm11, %v2416_v4  ;;  %v2318_v3 = vsel %vm2296_vm8, %v2285_v27, %v1825_v38  ;;  %v1393_v27 = vrot.slane %v1109_v24, 1 }
 0x2b8   : > { %v2351_v40 = vsel %vm2329_vm7, %v2318_v3, %v1921_v54  ;;  %v1107_v54 = vld [vmem:[#allocation2 + $0x218] sm:$0xff] }
 0x2b9   : > { %v11062_v51 = vpop.permute.xlu1 %1732  ;;  %1936 = vrot.lane.b32.xlu0 %v1377_v42, %s15160_s22  ;;  %v2384_v17 = vsel %vm2362_vm9, %v2351_v40, %v2017_v44  ;;  %v1382_v50 = vrot.slane %v1107_v54, 1  ;;  %v1389_v44 = vsel %vm1160_vm3, %v1387_v18, %v1388_v56  ;;  %v2188_v40 = vsel %vm934_vm1, %v10581_v12, %v10967_v8 }
 0x2ba   : > { %v1396_v54 = vrot.slane %v1111_v45, 1 }
 0x2bb   : > { %2030 = vrot.lane.b32.xlu1 %v11012_v7, %s15145_s20  ;;  %v1827_v16 = vpop.permute.xlu0 %1826  ;;  %v1383_v60 = vsel %vm1289_vm2, %v1380_v55, %v1382_v50 }
 0x2bd   : > { %v2113_v57 = vpop.permute.xlu1 %2112  ;;  %1652 = vrot.lane.b32.xlu0 %v1377_v42, %s15107_s16 }
 0x2be   : > { %v2417_v23 = vsel %vm2395_vm10, %v2384_v17, %v2113_v57  ;;  %v2220_v57 = vsel %vm580_vm0, %v2188_v40, %v10997_v28 }
 0x2bf   : > { %1746 = vrot.lane.b32.xlu1 %v11012_v7, %s15176_s30  ;;  %v11077_v1 = vpop.permute.xlu0 %1448  ;;  %8682 = vmatmul.mubr.msk.f32.gmra.mxu1 %vm15111_vm11, %v2417_v23  ;;  %v1110_v7 = vld [vmem:[#allocation2 + $0x230] sm:$0xff] }
 0x2c0   : > { %v1390_v37 = vrot.slane %v1110_v7, 7  ;;  %v1394_v3 = vrot.slane %v1110_v7, 1 }
 0x2c1   : > { %v11080_v38 = vpop.permute.xlu1 %1542  ;;  %2032 = vrot.lane.b32.xlu0 %v1106_v53, %s15145_s20 }
 0x2c2   : > { %v1391_v61 = vsel %vm1160_vm3, %v1388_v56, %v1390_v37  ;;  %v1395_v28 = vsel %vm1289_vm2, %v1393_v27, %v1394_v3  ;;  %v11128_v56 = vld [vmem:[#allocation3 + $0x8] sm:$0xff] }
 0x2c3   : > { %2126 = vrot.lane.b32.xlu1 %v1381_v26, %s15165_s21  ;;  %v11085_v19 = vpop.permute.xlu0 %1828 }
 0x2c5   : > { %v1923_v46 = vpop.permute.xlu1 %1922  ;;  %1748 = vrot.lane.b32.xlu0 %v1106_v53, %s15176_s30 }
 0x2c7   : > { %1842 = vrot.lane.b32.xlu1 %v1381_v26, %s15109_s17  ;;  %v11089_v0 = vpop.permute.xlu0 %1544  ;;  %v2253_v26 = vsel %vm2230_vm5, %v2220_v57, %v11007_v62  ;;  %v11130_v62 = vld [vmem:[#allocation3 + $0x10] sm:$0xff] }
 0x2c8   : > { %v2286_v12 = vsel %vm2263_vm6, %v2253_v26, %v11035_v30  ;;  %v1397_v30 = vsel %vm1289_vm2, %v1394_v3, %v1396_v54  ;;  %v2942_v54 = vld [vmem:[#allocation3 + $0x38] sm:$0xff] }
 0x2c9   : > { %v11092_v11 = vpop.permute.xlu1 %1638  ;;  %2128 = vrot.lane.b32.xlu0 %v1383_v60, %s15165_s21  ;;  %v2319_v50 = vsel %vm2296_vm8, %v2286_v12, %v1827_v16  ;;  %v11184_v12 = vld [vmem:[#allocation3 + $0x50] sm:$0xff] }
 0x2cb   : > { %1844 = vrot.lane.b32.xlu1 %v1383_v60, %s15109_s17  ;;  %v1925_v53 = vpop.permute.xlu0 %1924  ;;  %v8665_v20 = vpop.f32.mrf.mxu1 }
 0x2cc   : > { %v2653_v52 = vadd.f32 %v8665_v20, %v10735_v25  ;;  %v3184_v20 = vrot.slane %v11130_v62, 1 }
 0x2cd   : > { %v2019_v41 = vpop.permute.xlu1 %2018  ;;  %1938 = vrot.lane.b32.xlu0 %v1389_v44, %s15160_s22  ;;  %v2647_v4 = vpop.f32.mrf.mxu1  ;;  %v2938_v44 = vld [vmem:[#allocation3 + $0x18] sm:$0xff] }
 0x2ce   : > { %v11101_v42 = vadd.f32 %v9133_v33, %v2653_v52  ;;  %v2648_v48 = vadd.f32 %v10735_v25, %v2647_v4 }
 0x2cf   : > { %1940 = vrot.lane.b32.xlu1 %v1391_v61, %s15160_s22  ;;  %v11108_v17 = vpop.permute.xlu0 %1640 }
 0x2d0   : > { %15179 = vst [vmem:[#allocation8_spill] sm:$0xff] %v11101_v42  ;;  %v2807_v23 = vmax.f32 %v11101_v42, 0.0  ;;  %v11114_v55 = vadd.f32 %v9134_v10, %v2648_v48 }
 0x2d1   : > { %v11118_v31 = vpop.permute.xlu1 %1734  ;;  %2034 = vrot.lane.b32.xlu0 %v1109_v24, %s15145_s20  ;;  %v2352_v24 = vsel %vm2329_vm7, %v2319_v50, %v1923_v46  ;;  %v2189_v46 = vsel %vm934_vm1, %v10601_v35, %v10994_v59 }
 0x2d2   : > { %15180 = vst [vmem:[#allocation9_spill] sm:$0xff] %v11114_v55  ;;  %2912 = vst.msk [vmem:[#allocation3 + $0xb0] sm:$0xff] %vm580_vm0, %v2807_v23  ;;  %v2806_v8 = vmax.f32 %v11114_v55, 0.0  ;;  %v2385_v60 = vsel %vm2362_vm9, %v2352_v24, %v2019_v41  ;;  %v2221_v61 = vsel %vm580_vm0, %v2189_v46, %v11005_v5  ;;  %v3186_v41 = vrot.slane %v2938_v44, 1 }
 0x2d3   : > { %2036 = vrot.lane.b32.xlu1 %v1110_v7, %s15145_s20  ;;  %v2021_v18 = vpop.permute.xlu0 %2020  ;;  %v3183_v7 = vrot.slane %v11128_v56, 1  ;;  %v2254_v4 = vsel %vm2230_vm5, %v2221_v61, %v11025_v13  ;;  %v4327_v61 = vld [vmem:[%s15093_s5 + $0x40] sm:$0xff]  ;;  %s8289_s20 = sshll.u32 %s15330_s19, 6 }
 0x2d4   : > { %2911 = vst.msk [vmem:[#allocation3 + $0xa8] sm:$0xff] %vm580_vm0, %v2806_v8  ;;  %v2287_v35 = vsel %vm2263_vm6, %v2254_v4, %v11062_v51  ;;  %v3187_v48 = vsel %vm1289_vm2, %v3184_v20, %v3186_v41  ;;  %v4326_v41 = vld [vmem:[%s15093_s5 + $0x38] sm:$0xff]  ;;  %8699 = vmatprep.subr.mxu0 %v4327_v61 }
 0x2d5   : > { %v2115_v37 = vpop.permute.xlu1 %2114  ;;  %2130 = vrot.lane.b32.xlu0 %v1395_v28, %s15165_s21  ;;  %v3185_v59 = vsel %vm1289_vm2, %v3183_v7, %v3184_v20  ;;  %v2320_v33 = vsel %vm2296_vm8, %v2287_v35, %v11085_v19  ;;  %v2941_v19 = vld [vmem:[#allocation3 + $0x30] sm:$0xff]  ;;  %v9135_v4 = vld [vmem:[%s9283_s25 + $0x58] sm:$0xff]  ;;  %8700 = vmatpush3.msra.mxu0 %v4327_v61  ;;  %v11257_v61 = vld [vmem:[#allocation3 + $0x48] sm:$0xff] }
 0x2d6   : > { %v2418_v16 = vsel %vm2395_vm10, %v2385_v60, %v2115_v37  ;;  %v2353_v13 = vsel %vm2329_vm7, %v2320_v33, %v1925_v53  ;;  %v11176_v53 = vld [vmem:[#allocation3 + $0x28] sm:$0xff]  ;;  %v3063_v28 = vrot.slane %v2941_v19, 7  ;;  %v3189_v50 = vrot.slane %v2941_v19, 1  ;;  %8701 = vmatprep.subr.mxu0 %v4326_v41 }
 0x2d7   : > { %2132 = vrot.lane.b32.xlu1 %v1397_v30, %s15165_s21  ;;  %v11144_v52 = vpop.permute.xlu0 %1450  ;;  %8684 = vmatprep.mubr.msk.f32.mxu1 %vm15111_vm11, %v2418_v16  ;;  %v2386_v27 = vsel %vm2362_vm9, %v2353_v13, %v2021_v18  ;;  %v3061_v26 = vrot.slane %v11176_v53, 7  ;;  %v3191_v18 = vrot.slane %v2942_v54, 1  ;;  %v3188_v30 = vrot.slane %v11176_v53, 1  ;;  %v4325_v54 = vld [vmem:[%s15093_s5 + $0x30] sm:$0xff] }
 0x2d8   : > { %v2190_v13 = vsel %vm934_vm1, %v10667_v22, %v11054_v2  ;;  %8702 = vmatpush3.msra.mxu0 %v4326_v41  ;;  %v2191_v41 = vsel %vm934_vm1, %v10697_v32, %v11077_v1  ;;  %v4321_v32 = vld [vmem:[%s15093_s5 + $0x10] sm:$0xff] }
 0x2d9   : > { %v11151_v45 = vpop.permute.xlu1 %1736  ;;  %3291 = vrot.lane.b32.xlu0 %v11128_v56, %s9173_s27  ;;  %v11198_v60 = vsel %vm1160_vm3, %v3061_v26, %v3063_v28  ;;  %v3192_v7 = vsel %vm1289_vm2, %v3189_v50, %v3191_v18  ;;  %v3190_v33 = vsel %vm1289_vm2, %v3188_v30, %v3189_v50  ;;  %v2939_v28 = vld [vmem:[#allocation3 + $0x20] sm:$0xff]  ;;  %8703 = vmatprep.subr.mxu0 %v4325_v54  ;;  %v4324_v18 = vld [vmem:[%s15093_s5 + $0x28] sm:$0xff] }
 0x2da   : > { %8704 = vmatpush3.msra.mxu0 %v4325_v54 }
 0x2db   : > { %3293 = vrot.lane.b32.xlu1 %v11130_v62, %s9173_s27  ;;  %v11162_v5 = vpop.permute.xlu0 %1830  ;;  %8705 = vmatprep.subr.mxu0 %v4324_v18 }
 0x2dc   : > { %8706 = vmatpush3.msra.mxu0 %v4324_v18 }
 0x2dd   : > { %v2117_v3 = vpop.permute.xlu1 %2116  ;;  %3387 = vrot.lane.b32.xlu0 %v3185_v59, %s15176_s30 }
 0x2de   : > { %v2419_v51 = vsel %vm2395_vm10, %v2386_v27, %v2117_v3  ;;  %v2222_v27 = vsel %vm580_vm0, %v2190_v13, %v11080_v38 }
 0x2df   : > { %3389 = vrot.lane.b32.xlu1 %v3187_v48, %s15176_s30  ;;  %v11170_v40 = vpop.permute.xlu0 %1452  ;;  %8685 = vmatmul.mubr.msk.f32.gmra.mxu1 %vm15111_vm11, %v2419_v51  ;;  %v9136_v51 = vld [vmem:[%s9283_s25 + $0x50] sm:$0xff]  ;;  %v2255_v22 = vsel %vm2230_vm5, %v2222_v27, %v11092_v11  ;;  %v4320_v27 = vld [vmem:[%s15093_s5 + $0x8] sm:$0xff] }
 0x2e0   : > { %v2288_v38 = vsel %vm2263_vm6, %v2255_v22, %v11118_v31  ;;  %v3060_v31 = vrot.slane %v2939_v28, 7 }
 0x2e1   : > { %v11173_v57 = vpop.permute.xlu1 %1546  ;;  %3581 = vrot.lane.b32.xlu0 %v2941_v19, %s15165_s21  ;;  %v2321_v11 = vsel %vm2296_vm8, %v2288_v38, %v11162_v5 }
 0x2e3   : > { %3295 = vrot.lane.b32.xlu1 %v11176_v53, %s9173_s27  ;;  %v11180_v23 = vpop.permute.xlu0 %1832 }
 0x2e5   : > { %v1927_v10 = vpop.permute.xlu1 %1926  ;;  %3297 = vrot.lane.b32.xlu0 %v2941_v19, %s9173_s27 }
 0x2e7   : > { %v11186_v8 = vpop.permute.xlu0 %1548  ;;  %3585 = vrot.lane.b32.xlu1 %v11184_v12, %s15165_s21 }
 0x2e9   : > { %v11190_v24 = vpop.permute.xlu1 %1642  ;;  %3579 = vrot.lane.b32.xlu0 %v11176_v53, %s15165_s21 }
 0x2eb   : > { %v11200_v37 = vpop.permute.xlu0 %1928  ;;  %3485 = vrot.lane.b32.xlu1 %v11198_v60, %s15160_s22  ;;  %v8668_v44 = vpop.f32.mrf.mxu1 }
 0x2ec   : > { %v2663_v16 = vadd.f32 %v8668_v44, %v10735_v25  ;;  %v2354_v44 = vsel %vm2329_vm7, %v2321_v11, %v1927_v10  ;;  %v4322_v10 = vld [vmem:[%s15093_s5 + $0x18] sm:$0xff] }
 0x2ed   : > { %v2023_v20 = vpop.permute.xlu1 %2022  ;;  %3677 = vrot.lane.b32.xlu0 %v3192_v7, %s9180_s24  ;;  %v2657_v46 = vpop.f32.mrf.mxu1 }
 0x2ee   : > { %v11214_v35 = vadd.f32 %v9135_v4, %v2663_v16  ;;  %v2658_v59 = vadd.f32 %v10735_v25, %v2657_v46  ;;  %v4323_v16 = vld [vmem:[%s15093_s5 + $0x20] sm:$0xff] }
 0x2ef   : > { %v11221_v48 = vpop.permute.xlu0 %1644  ;;  %3675 = vrot.lane.b32.xlu1 %v3190_v33, %s9180_s24  ;;  %8707 = vmatprep.subr.mxu0 %v4323_v16  ;;  %v2943_v4 = vld [vmem:[#allocation3 + $0x40] sm:$0xff] }
 0x2f0   : > { %15181 = vst [vmem:[#allocation10_spill] sm:$0xff] %v11214_v35  ;;  %v2809_v3 = vmax.f32 %v11214_v35, 0.0  ;;  %v11228_v19 = vadd.f32 %v9136_v51, %v2658_v59  ;;  %v2223_v59 = vsel %vm580_vm0, %v2191_v41, %v11089_v0  ;;  %8708 = vmatpush3.msra.mxu0 %v4323_v16  ;;  %v3065_v53 = vrot.slane %v2943_v4, 7  ;;  %v9137_v16 = vld [vmem:[%s9283_s25 + $0x68] sm:$0xff]  ;;  %v2999_v35 = vld [vmem:[#allocation3 + $0x200] sm:$0xff] }
 0x2f1   : > { %v11235_v2 = vpop.permute.xlu1 %1738  ;;  %3393 = vrot.lane.b32.xlu0 %v3192_v7, %s15176_s30  ;;  %v2387_v7 = vsel %vm2362_vm9, %v2354_v44, %v2023_v20  ;;  %v2256_v1 = vsel %vm2230_vm5, %v2223_v59, %v11108_v17  ;;  %8709 = vmatprep.subr.mxu0 %v4322_v10  ;;  %v3194_v41 = vrot.slane %v11184_v12, 1  ;;  %v9138_v59 = vld [vmem:[%s9283_s25 + $0x60] sm:$0xff]  ;;  %v3266_v42 = vrot.slane %v2999_v35, 7 }
 0x2f2   : > { %15182 = vst [vmem:[#allocation11_spill] sm:$0xff] %v11228_v19  ;;  %2914 = vst.msk [vmem:[#allocation3 + $0xd0] sm:$0xff] %vm580_vm0, %v2809_v3  ;;  %v2808_v50 = vmax.f32 %v11228_v19, 0.0  ;;  %v2289_v0 = vsel %vm2263_vm6, %v2256_v1, %v11151_v45  ;;  %8710 = vmatpush3.msra.mxu0 %v4322_v10  ;;  %v2946_v10 = vld [vmem:[#allocation3 + $0x58] sm:$0xff] }
 0x2f3   : > { %v2025_v30 = vpop.permute.xlu0 %2024  ;;  %3391 = vrot.lane.b32.xlu1 %v3190_v33, %s15176_s30  ;;  %v11275_v33 = vsel %vm1160_vm3, %v3060_v31, %v3061_v26  ;;  %v3066_v26 = vrot.slane %v11257_v61, 7  ;;  %v2322_v17 = vsel %vm2296_vm8, %v2289_v0, %v11180_v23  ;;  %8711 = vmatprep.subr.mxu0 %v4321_v32  ;;  %v4319_v23 = vld [vmem:[%s15093_s5] sm:$0xff]  ;;  %v3193_v31 = vrot.slane %v11257_v61, 1 }
 0x2f4   : > { %2913 = vst.msk [vmem:[#allocation3 + $0xc8] sm:$0xff] %vm580_vm0, %v2808_v50  ;;  %v2355_v45 = vsel %vm2329_vm7, %v2322_v17, %v11200_v37  ;;  %8712 = vmatpush3.msra.mxu0 %v4321_v32  ;;  %v3068_v37 = vrot.slane %v11184_v12, 7  ;;  %v3196_v0 = vrot.slane %v2946_v10, 1 }
 0x2f5   : > { %v2119_v46 = vpop.permute.xlu1 %2118  ;;  %3869 = vrot.lane.b32.xlu0 %v11184_v12, %s9181_s29  ;;  %v2388_v51 = vsel %vm2362_vm9, %v2355_v45, %v2025_v30  ;;  %8713 = vmatprep.subr.mxu0 %v4320_v27  ;;  %v11308_v28 = vsel %vm1160_vm3, %v3065_v53, %v3066_v26  ;;  %v2947_v45 = vld [vmem:[#allocation3 + $0x60] sm:$0xff] }
 0x2f6   : > { %v2420_v5 = vsel %vm2395_vm10, %v2387_v7, %v2119_v46  ;;  %8714 = vmatpush3.msra.mxu0 %v4320_v27  ;;  %v11317_v18 = vsel %vm1160_vm3, %v3066_v26, %v3068_v37  ;;  %v3197_v27 = vsel %vm1289_vm2, %v3194_v41, %v3196_v0  ;;  %v2192_v37 = vsel %vm934_vm1, %v10771_v47, %v11144_v52 }
 0x2f7   : > { %v11265_v20 = vpop.permute.xlu0 %1454  ;;  %8687 = vmatprep.mubr.msk.f32.mxu1 %vm15111_vm11, %v2420_v5  ;;  %3867 = vrot.lane.b32.xlu1 %v11257_v61, %s9181_s29 }
 0x2f8   : > { %8715 = vmatprep.subr.mxu0 %v4319_v23 }
 0x2f9   : > { %v11282_v13 = vpop.permute.xlu1 %1740  ;;  %3483 = vrot.lane.b32.xlu0 %v11275_v33, %s15160_s22  ;;  %8716 = vmatpush3.msra.mxu0 %v4319_v23  ;;  %v3070_v23 = vrot.slane %v2947_v45, 7 }
 0x2fb   : > { %v11294_v3 = vpop.permute.xlu0 %1834  ;;  %3583 = vrot.lane.b32.xlu1 %v11257_v61, %s15165_s21 }
 0x2fd   : > { %v2121_v54 = vpop.permute.xlu1 %2120  ;;  %3299 = vrot.lane.b32.xlu0 %v11257_v61, %s9173_s27  ;;  %v3195_v61 = vsel %vm1289_vm2, %v3193_v31, %v3194_v41 }
 0x2fe   : > { %v2421_v22 = vsel %vm2395_vm10, %v2388_v51, %v2121_v54  ;;  %v11350_v51 = vld [vmem:[#allocation3 + $0x68] sm:$0xff] }
 0x2ff   : > { %v11311_v38 = vpop.permute.xlu0 %1456  ;;  %8688 = vmatmul.mubr.msk.f32.gmra.mxu1 %vm15111_vm11, %v2421_v22  ;;  %3771 = vrot.lane.b32.xlu1 %v11308_v28, %s9182_s28  ;;  %v3071_v22 = vrot.slane %v11350_v51, 7 }
 0x300   : > { %v8671_v50 = vpop.f32.mrf.mxu1 }
 0x301   : > { %v2673_v11 = vadd.f32 %v8671_v50, %v10735_v25  ;;  %v11320_v30 = vpop.permute.xlu1 %1550  ;;  %3773 = vrot.lane.b32.xlu0 %v11317_v18, %s9182_s28 }
 0x302   : > { %v2667_v44 = vpop.f32.mrf.mxu1 }
 0x303   : > { %v11326_v7 = vadd.f32 %v9137_v16, %v2673_v11  ;;  %v2668_v46 = vadd.f32 %v10735_v25, %v2667_v44  ;;  %v1837_v5 = vpop.permute.xlu0 %1836  ;;  %3487 = vrot.lane.b32.xlu1 %v11308_v28, %s15160_s22  ;;  %v2224_v11 = vsel %vm580_vm0, %v2192_v37, %v11173_v57  ;;  %v11371_v16 = vsel %vm1160_vm3, %v3070_v23, %v3071_v22  ;;  %v2949_v57 = vld [vmem:[#allocation3 + $0x70] sm:$0xff] }
 0x304   : > { %v2257_v44 = vsel %vm2230_vm5, %v2224_v11, %v11190_v24  ;;  %v3073_v41 = vrot.slane %v2949_v57, 7 }
 0x305   : > { %15183 = vst [vmem:[#allocation12_spill] sm:$0xff] %v11326_v7  ;;  %v2811_v4 = vmax.f32 %v11326_v7, 0.0  ;;  %v11334_v32 = vadd.f32 %v9138_v59, %v2668_v46  ;;  %v1931_v1 = vpop.permute.xlu1 %1930  ;;  %3489 = vrot.lane.b32.xlu0 %v11317_v18, %s15160_s22 }
 0x307   : > { %15184 = vst [vmem:[#allocation13_spill] sm:$0xff] %v11334_v32  ;;  %2916 = vst.msk [vmem:[#allocation3 + $0xf0] sm:$0xff] %vm580_vm0, %v2811_v4  ;;  %v2810_v25 = vmax.f32 %v11334_v32, 0.0  ;;  %v11341_v53 = vpop.permute.xlu0 %1552  ;;  %3963 = vrot.lane.b32.xlu1 %v3195_v61, %s15151_s23  ;;  %v2193_v4 = vsel %vm934_vm1, %v10794_v34, %v11170_v40 }
 0x308   : > { %v2225_v59 = vsel %vm580_vm0, %v2193_v4, %v11186_v8 }
 0x309   : > { %2915 = vst.msk [vmem:[#allocation3 + $0xe8] sm:$0xff] %vm580_vm0, %v2810_v25  ;;  %v11345_v26 = vpop.permute.xlu1 %1646  ;;  %3679 = vrot.lane.b32.xlu0 %v3195_v61, %s9180_s24 }
 0x30b   : > { %v1933_v17 = vpop.permute.xlu0 %1932  ;;  %3965 = vrot.lane.b32.xlu1 %v3197_v27, %s15151_s23 }
 0x30d   : > { %v2027_v54 = vpop.permute.xlu1 %2026  ;;  %3301 = vrot.lane.b32.xlu0 %v11184_v12, %s9173_s27  ;;  %v2290_v12 = vsel %vm2263_vm6, %v2257_v44, %v11235_v2  ;;  %v9140_v44 = vld [vmem:[%s9283_s25 + $0x78] sm:$0xff] }
 0x30e   : > { %v2323_v47 = vsel %vm2296_vm8, %v2290_v12, %v11294_v3 }
 0x30f   : > { %v11358_v50 = vpop.permute.xlu0 %1648  ;;  %3395 = vrot.lane.b32.xlu1 %v3195_v61, %s15176_s30  ;;  %v2356_v24 = vsel %vm2329_vm7, %v2323_v47, %v1931_v1  ;;  %v11392_v1 = vsel %vm1160_vm3, %v3071_v22, %v3073_v41  ;;  %v2258_v61 = vsel %vm2230_vm5, %v2225_v59, %v11221_v48  ;;  %v3199_v22 = vrot.slane %v2949_v57, 1 }
 0x310   : > { %v2389_v46 = vsel %vm2362_vm9, %v2356_v24, %v2027_v54  ;;  %v2291_v34 = vsel %vm2263_vm6, %v2258_v61, %v11282_v13  ;;  %v3198_v54 = vrot.slane %v11350_v51, 1 }
 0x311   : > { %v11365_v31 = vpop.permute.xlu1 %1742  ;;  %3681 = vrot.lane.b32.xlu0 %v3197_v27, %s9180_s24  ;;  %v2324_v40 = vsel %vm2296_vm8, %v2291_v34, %v1837_v5 }
 0x312   : > { %v2357_v8 = vsel %vm2329_vm7, %v2324_v40, %v1933_v17  ;;  %v11419_v17 = vld [vmem:[%s15092_s4] ss:$0 sm:$0xff] }
 0x313   : > { %v2029_v52 = vpop.permute.xlu0 %2028  ;;  %3775 = vrot.lane.b32.xlu1 %v11371_v16, %s9182_s28 }
 0x315   : > { %v2123_v10 = vpop.permute.xlu1 %2122  ;;  %3397 = vrot.lane.b32.xlu0 %v3197_v27, %s15176_s30  ;;  %v2390_v27 = vsel %vm2362_vm9, %v2357_v8, %v2029_v52  ;;  %v3200_v52 = vsel %vm1289_vm2, %v3198_v54, %v3199_v22 }
 0x316   : > { %v2422_v2 = vsel %vm2395_vm10, %v2389_v46, %v2123_v10  ;;  %v2950_v46 = vld [vmem:[#allocation3 + $0x78] sm:$0xff] }
 0x317   : > { %v11384_v3 = vpop.permute.xlu0 %1458  ;;  %8690 = vmatprep.mubr.msk.f32.mxu1 %vm15111_vm11, %v2422_v2  ;;  %3491 = vrot.lane.b32.xlu1 %v11371_v16, %s15160_s22  ;;  %v9141_v2 = vld [vmem:[%s9283_s25 + $0x70] sm:$0xff]  ;;  %v3201_v61 = vrot.slane %v2950_v46, 1 }
 0x319   : > { %v11396_v0 = vpop.permute.xlu1 %1744  ;;  %3777 = vrot.lane.b32.xlu0 %v11392_v1, %s9182_s28  ;;  %v3202_v8 = vsel %vm1289_vm2, %v3199_v22, %v3201_v61 }
 0x31b   : > { %v1839_v25 = vpop.permute.xlu0 %1838  ;;  %3871 = vrot.lane.b32.xlu1 %v11350_v51, %s9181_s29 }
 0x31d   : > { %v2125_v48 = vpop.permute.xlu1 %2124  ;;  %3493 = vrot.lane.b32.xlu0 %v11392_v1, %s15160_s22 }
 0x31e   : > { %v2423_v45 = vsel %vm2395_vm10, %v2390_v27, %v2125_v48  ;;  %v11448_v48 = vld [vmem:[#allocation3 + $0x88] sm:$0xff] }
 0x31f   : > { %v11411_v13 = vpop.permute.xlu0 %1460  ;;  %v8674_v5 = vpop.f32.mrf.mxu1  ;;  %8691 = vmatmul.mubr.msk.f32.gmra.mxu1 %vm15111_vm11, %v2423_v45  ;;  %3587 = vrot.lane.b32.xlu1 %v11350_v51, %s15165_s21 }
 0x320   : > { %v2683_v23 = vadd.f32 %v11419_v17, %v8674_v5  ;;  %v3076_v5 = vrot.slane %v11448_v48, 7 }
 0x321   : > { %v11422_v37 = vpop.permute.xlu1 %1554  ;;  %v2677_v11 = vpop.f32.mrf.mxu1  ;;  %3873 = vrot.lane.b32.xlu0 %v2949_v57, %s9181_s29 }
 0x322   : > { %v11426_v12 = vadd.f32 %v9140_v44, %v2683_v23  ;;  %v2678_v47 = vadd.f32 %v11419_v17, %v2677_v11  ;;  %v2194_v23 = vsel %vm934_vm1, %v10861_v9, %v11265_v20 }
 0x323   : > { %v1841_v24 = vpop.permute.xlu0 %1840  ;;  %3967 = vrot.lane.b32.xlu1 %v3200_v52, %s15151_s23  ;;  %v2226_v22 = vsel %vm580_vm0, %v2194_v23, %v11320_v30 }
 0x324   : > { %15185 = vst [vmem:[#allocation14_spill] sm:$0xff] %v11426_v12  ;;  %v2813_v10 = vmax.f32 %v11426_v12, 0.0  ;;  %v11433_v41 = vadd.f32 %v9141_v2, %v2678_v47  ;;  %v2259_v44 = vsel %vm2230_vm5, %v2226_v22, %v11345_v26  ;;  %v2195_v26 = vsel %vm934_vm1, %v10882_v14, %v11311_v38 }
 0x325   : > { %v1935_v4 = vpop.permute.xlu1 %1934  ;;  %3303 = vrot.lane.b32.xlu0 %v11350_v51, %s9173_s27  ;;  %v2951_v51 = vld [vmem:[#allocation3 + $0x80] sm:$0xff] }
 0x326   : > { %15186 = vst [vmem:[#allocation15_spill] sm:$0xff] %v11433_v41  ;;  %2918 = vst.msk [vmem:[#allocation3 + $0x110] sm:$0xff] %vm580_vm0, %v2813_v10  ;;  %v2812_v59 = vmax.f32 %v11433_v41, 0.0  ;;  %v3075_v54 = vrot.slane %v2951_v51, 7 }
 0x327   : > { %v11439_v34 = vpop.permute.xlu0 %1556  ;;  %3589 = vrot.lane.b32.xlu1 %v2949_v57, %s15165_s21 }
 0x328   : > { %2917 = vst.msk [vmem:[#allocation3 + $0x108] sm:$0xff] %vm580_vm0, %v2812_v59  ;;  %v11466_v46 = vsel %vm1160_vm3, %v3075_v54, %v3076_v5 }
 0x329   : > { %v11443_v40 = vpop.permute.xlu1 %1650  ;;  %3683 = vrot.lane.b32.xlu0 %v3200_v52, %s9180_s24 }
 0x32b   : > { %v1937_v27 = vpop.permute.xlu0 %1936  ;;  %3969 = vrot.lane.b32.xlu1 %v3202_v8, %s15151_s23 }
 0x32d   : > { %v2031_v45 = vpop.permute.xlu1 %2030  ;;  %3305 = vrot.lane.b32.xlu0 %v2949_v57, %s9173_s27  ;;  %v2292_v57 = vsel %vm2263_vm6, %v2259_v44, %v11365_v31  ;;  %v2196_v44 = vsel %vm934_vm1, %v10952_v36, %v11384_v3  ;;  %v2197_v36 = vsel %vm934_vm1, %v10973_v39, %v11411_v13 }
 0x32e   : > { %v2325_v9 = vsel %vm2296_vm8, %v2292_v57, %v1839_v25  ;;  %v2227_v25 = vsel %vm580_vm0, %v2195_v26, %v11341_v53 }
 0x32f   : > { %v11455_v11 = vpop.permute.xlu0 %1652  ;;  %3399 = vrot.lane.b32.xlu1 %v3200_v52, %s15176_s30  ;;  %v11471_v52 = vld [vmem:[#allocation3 + $0x90] sm:$0xff]  ;;  %v2358_v30 = vsel %vm2329_vm7, %v2325_v9, %v1935_v4  ;;  %v2260_v61 = vsel %vm2230_vm5, %v2227_v25, %v11358_v50 }
 0x330   : > { %v2391_v10 = vsel %vm2362_vm9, %v2358_v30, %v2031_v45  ;;  %v3078_v59 = vrot.slane %v11471_v52, 7  ;;  %v2293_v14 = vsel %vm2263_vm6, %v2260_v61, %v11396_v0  ;;  %v3204_v22 = vrot.slane %v11471_v52, 1  ;;  %v9142_v30 = vld [vmem:[%s9283_s25 + $0x88] sm:$0xff] }
 0x331   : > { %v1747_v47 = vpop.permute.xlu1 %1746  ;;  %3685 = vrot.lane.b32.xlu0 %v3202_v8, %s9180_s24  ;;  %v2326_v53 = vsel %vm2296_vm8, %v2293_v14, %v1841_v24  ;;  %v3203_v24 = vrot.slane %v11448_v48, 1  ;;  %v9143_v14 = vld [vmem:[%s9283_s25 + $0x80] sm:$0xff] }
 0x332   : > { %v11491_v38 = vsel %vm1160_vm3, %v3076_v5, %v3078_v59  ;;  %v2359_v50 = vsel %vm2329_vm7, %v2326_v53, %v1937_v27 }
 0x333   : > { %v2033_v20 = vpop.permute.xlu0 %2032  ;;  %3779 = vrot.lane.b32.xlu1 %v11466_v46, %s9182_s28 }
 0x334   : > { %v2392_v51 = vsel %vm2362_vm9, %v2359_v50, %v2033_v20  ;;  %v2228_v20 = vsel %vm580_vm0, %v2196_v44, %v11422_v37  ;;  %v2229_v37 = vsel %vm580_vm0, %v2197_v36, %v11439_v34  ;;  %v2956_v44 = vld [vmem:[#allocation3 + $0xa8] sm:$0xff] }
 0x335   : > { %v2127_v31 = vpop.permute.xlu1 %2126  ;;  %3401 = vrot.lane.b32.xlu0 %v3202_v8, %s15176_s30  ;;  %v2261_v3 = vsel %vm2230_vm5, %v2228_v20, %v11443_v40  ;;  %v2262_v39 = vsel %vm2230_vm5, %v2229_v37, %v11455_v11  ;;  %v3081_v20 = vrot.slane %v2956_v44, 7 }
 0x336   : > { %v2424_v2 = vsel %vm2395_vm10, %v2391_v10, %v2127_v31  ;;  %v3205_v31 = vsel %vm1289_vm2, %v3203_v24, %v3204_v22  ;;  %v2294_v59 = vsel %vm2263_vm6, %v2261_v3, %v1747_v47  ;;  %v2957_v3 = vld [vmem:[#allocation3 + $0xb0] sm:$0xff] }
 0x337   : > { %v1749_v4 = vpop.permute.xlu0 %1748  ;;  %8693 = vmatprep.mubr.msk.f32.mxu1 %vm15111_vm11, %v2424_v2  ;;  %3495 = vrot.lane.b32.xlu1 %v11466_v46, %s15160_s22  ;;  %v2954_v2 = vld [vmem:[#allocation3 + $0x98] sm:$0xff] }
 0x338   : > { %v2295_v50 = vsel %vm2263_vm6, %v2262_v39, %v1749_v4 }
 0x339   : > { %v1843_v8 = vpop.permute.xlu1 %1842  ;;  %3781 = vrot.lane.b32.xlu0 %v11491_v38, %s9182_s28 }
 0x33a   : > { %v2327_v13 = vsel %vm2296_vm8, %v2294_v59, %v1843_v8 }
 0x33b   : > { %v2129_v45 = vpop.permute.xlu0 %2128  ;;  %3875 = vrot.lane.b32.xlu1 %v11448_v48, %s9181_s29 }
 0x33c   : > { %v2425_v0 = vsel %vm2395_vm10, %v2392_v51, %v2129_v45  ;;  %v3206_v51 = vrot.slane %v2954_v2, 1 }
 0x33d   : > { %v1845_v54 = vpop.permute.xlu1 %1844  ;;  %8694 = vmatmul.mubr.msk.f32.gmra.mxu1 %vm15111_vm11, %v2425_v0  ;;  %3497 = vrot.lane.b32.xlu0 %v11491_v38, %s15160_s22 }
 0x33e   : > { %v2328_v45 = vsel %vm2296_vm8, %v2295_v50, %v1845_v54  ;;  %v3209_v50 = vrot.slane %v2957_v3, 1 }
 0x33f   : > { %v1939_v5 = vpop.permute.xlu0 %1938  ;;  %v8677_v23 = vpop.f32.mrf.mxu1  ;;  %3591 = vrot.lane.b32.xlu1 %v11448_v48, %s15165_s21 }
 0x340   : > { %v2693_v27 = vadd.f32 %v11419_v17, %v8677_v23  ;;  %v2360_v34 = vsel %vm2329_vm7, %v2327_v13, %v1939_v5  ;;  %v3207_v5 = vsel %vm1289_vm2, %v3204_v22, %v3206_v51  ;;  %v9144_v51 = vld [vmem:[%s9283_s25 + $0x98] sm:$0xff] }
 0x341   : > { %v1941_v57 = vpop.permute.xlu1 %1940  ;;  %v2687_v9 = vpop.f32.mrf.mxu1  ;;  %3877 = vrot.lane.b32.xlu0 %v11471_v52, %s9181_s29 }
 0x342   : > { %v11517_v26 = vadd.f32 %v9142_v30, %v2693_v27  ;;  %v2688_v10 = vadd.f32 %v11419_v17, %v2687_v9  ;;  %v2361_v8 = vsel %vm2329_vm7, %v2328_v45, %v1941_v57  ;;  %v2955_v27 = vld [vmem:[#allocation3 + $0xa0] sm:$0xff] }
 0x343   : > { %v2035_v25 = vpop.permute.xlu0 %2034  ;;  %3971 = vrot.lane.b32.xlu1 %v3205_v31, %s15151_s23  ;;  %v3080_v9 = vrot.slane %v2955_v27, 7 }
 0x344   : > { %15187 = vst [vmem:[#allocation16_spill] sm:$0xff] %v11517_v26  ;;  %v2815_v61 = vmax.f32 %v11517_v26, 0.0  ;;  %v11532_v53 = vadd.f32 %v9143_v14, %v2688_v10  ;;  %v2393_v0 = vsel %vm2362_vm9, %v2360_v34, %v2035_v25  ;;  %v3083_v25 = vrot.slane %v2957_v3, 7 }
 0x345   : > { %v2037_v40 = vpop.permute.xlu1 %2036  ;;  %3307 = vrot.lane.b32.xlu0 %v11448_v48, %s9173_s27  ;;  %v11570_v10 = vsel %vm1160_vm3, %v3080_v9, %v3081_v20  ;;  %v3208_v14 = vrot.slane %v2956_v44, 1  ;;  %v3056_v9 = vrot.slane %v11128_v56, 7 }
 0x346   : > { %15188 = vst [vmem:[#allocation17_spill] sm:$0xff] %v11532_v53  ;;  %2920 = vst.msk [vmem:[#allocation3 + $0x130] sm:$0xff] %vm580_vm0, %v2815_v61  ;;  %v2814_v47 = vmax.f32 %v11532_v53, 0.0  ;;  %v2394_v4 = vsel %vm2362_vm9, %v2361_v8, %v2037_v40  ;;  %v2935_v8 = vld [vmem:[#allocation3] sm:$0xff]  ;;  %v9158_v53 = vld [vmem:[%s9283_s25 + $0xf0] sm:$0xff] }
 0x347   : > { %v2131_v11 = vpop.permute.xlu0 %2130  ;;  %3593 = vrot.lane.b32.xlu1 %v11471_v52, %s15165_s21 }
 0x348   : > { %2919 = vst.msk [vmem:[#allocation3 + $0x128] sm:$0xff] %vm580_vm0, %v2814_v47  ;;  %v2426_v48 = vsel %vm2395_vm10, %v2393_v0, %v2131_v11  ;;  %v3210_v11 = vsel %vm1289_vm2, %v3208_v14, %v3209_v50 }
 0x349   : > { %v2133_v24 = vpop.permute.xlu1 %2132  ;;  %8696 = vmatprep.mubr.msk.f32.mxu1 %vm15111_vm11, %v2426_v48  ;;  %3687 = vrot.lane.b32.xlu0 %v3205_v31, %s9180_s24 }
 0x34a   : > { %v2427_v54 = vsel %vm2395_vm10, %v2394_v4, %v2133_v24  ;;  %v2958_v4 = vld [vmem:[#allocation3 + $0xb8] sm:$0xff] }
 0x34b   : > { %v11555_v23 = vpop.permute.xlu0 %3291  ;;  %8697 = vmatmul.mubr.msk.f32.gmra.mxu1 %vm15111_vm11, %v2427_v54  ;;  %3973 = vrot.lane.b32.xlu1 %v3207_v5, %s15151_s23  ;;  %v9145_v54 = vld [vmem:[%s9283_s25 + $0x90] sm:$0xff]  ;;  %v3211_v14 = vrot.slane %v2958_v4, 1  ;;  %vm4335_vm11 = vcmask 588800  }
 0x34d   : > { %v11559_v57 = vpop.permute.xlu1 %3293  ;;  %3309 = vrot.lane.b32.xlu0 %v11471_v52, %s9173_s27  ;;  %v3212_v56 = vsel %vm1289_vm2, %v3209_v50, %v3211_v14 }
 0x34f   : > { %v11563_v30 = vpop.permute.xlu0 %3387  ;;  %3403 = vrot.lane.b32.xlu1 %v3205_v31, %s15176_s30  ;;  %v11584_v31 = vsel %vm1160_vm3, %v3081_v20, %v3083_v25  ;;  %v3055_v20 = vrot.slane %v2935_v8, 7  ;;  %v11623_v8 = vld [vmem:[#allocation3 + $0xc8] sm:$0xff] }
 0x350   : > { %v3086_v50 = vrot.slane %v11623_v8, 7 }
 0x351   : > { %v11566_v22 = vpop.permute.xlu1 %3389  ;;  %3689 = vrot.lane.b32.xlu0 %v3207_v5, %s9180_s24 }
 0x353   : > { %v11572_v36 = vpop.permute.xlu0 %3581  ;;  %3783 = vrot.lane.b32.xlu1 %v11570_v10, %s9182_s28 }
 0x355   : > { %v11576_v52 = vpop.permute.xlu1 %3295  ;;  %3405 = vrot.lane.b32.xlu0 %v3207_v5, %s15176_s30 }
 0x357   : > { %v11579_v2 = vpop.permute.xlu0 %3297  ;;  %3499 = vrot.lane.b32.xlu1 %v11570_v10, %s15160_s22 }
 0x359   : > { %v11586_v37 = vpop.permute.xlu1 %3585  ;;  %3785 = vrot.lane.b32.xlu0 %v11584_v31, %s9182_s28 }
 0x35b   : > { %v3580_v59 = vpop.permute.xlu0 %3579  ;;  %3879 = vrot.lane.b32.xlu1 %v2956_v44, %s9181_s29 }
 0x35d   : > { %v3486_v61 = vpop.permute.xlu1 %3485  ;;  %3501 = vrot.lane.b32.xlu0 %v11584_v31, %s15160_s22 }
 0x35f   : > { %v11593_v39 = vpop.permute.xlu0 %3677  ;;  %v8680_v13 = vpop.f32.mrf.mxu1  ;;  %3595 = vrot.lane.b32.xlu1 %v2956_v44, %s15165_s21 }
 0x360   : > { %v2703_v40 = vadd.f32 %v11419_v17, %v8680_v13 }
 0x361   : > { %v3676_v34 = vpop.permute.xlu1 %3675  ;;  %v2697_v47 = vpop.f32.mrf.mxu1  ;;  %3881 = vrot.lane.b32.xlu0 %v2957_v3, %s9181_s29 }
 0x362   : > { %v11599_v45 = vadd.f32 %v9144_v51, %v2703_v40  ;;  %v2698_v0 = vadd.f32 %v11419_v17, %v2697_v47  ;;  %v3058_v47 = vrot.slane %v11130_v62, 7 }
 0x363   : > { %v11603_v48 = vpop.permute.xlu0 %3393  ;;  %3975 = vrot.lane.b32.xlu1 %v3210_v11, %s15151_s23 }
 0x364   : > { %15189 = vst [vmem:[#allocation18_spill] sm:$0xff] %v11599_v45  ;;  %v2817_v24 = vmax.f32 %v11599_v45, 0.0  ;;  %v11608_v5 = vadd.f32 %v9145_v54, %v2698_v0  ;;  %v2959_v0 = vld [vmem:[#allocation3 + $0xc0] sm:$0xff]  ;;  %v3059_v54 = vsel %vm1160_vm3, %v3056_v9, %v3058_v47 }
 0x365   : > { %v11610_v27 = vpop.permute.xlu1 %3391  ;;  %3311 = vrot.lane.b32.xlu0 %v2956_v44, %s9173_s27  ;;  %v3057_v44 = vsel %vm1160_vm3, %v3055_v20, %v3056_v9  ;;  %v3085_v20 = vrot.slane %v2959_v0, 7 }
 0x366   : > { %15190 = vst [vmem:[#allocation19_spill] sm:$0xff] %v11608_v5  ;;  %2922 = vst.msk [vmem:[#allocation3 + $0x150] sm:$0xff] %vm580_vm0, %v2817_v24  ;;  %v2816_v25 = vmax.f32 %v11608_v5, 0.0  ;;  %v4059_v4 = vsel %vm580_vm0, %v3057_v44, %v11555_v23  ;;  %v4060_v23 = vsel %vm580_vm0, %v3059_v54, %v11559_v57 }
 0x367   : > { %v3870_v13 = vpop.permute.xlu0 %3869  ;;  %3597 = vrot.lane.b32.xlu1 %v2957_v3, %s15165_s21  ;;  %v4091_v62 = vsel %vm2263_vm6, %v4059_v4, %v11563_v30  ;;  %v4092_v9 = vsel %vm2263_vm6, %v4060_v23, %v11566_v22  ;;  %v11645_v47 = vsel %vm1160_vm3, %v3085_v20, %v3086_v50  ;;  %v3213_v23 = vrot.slane %v11623_v8, 1 }
 0x368   : > { %2921 = vst.msk [vmem:[#allocation3 + $0x148] sm:$0xff] %vm580_vm0, %v2816_v25  ;;  %v4124_v44 = vsel %vm2329_vm7, %v4092_v9, %v3486_v61 }
 0x369   : > { %v3868_v40 = vpop.permute.xlu1 %3867  ;;  %3691 = vrot.lane.b32.xlu0 %v3210_v11, %s9180_s24 }
 0x36b   : > { %v3484_v51 = vpop.permute.xlu0 %3483  ;;  %3977 = vrot.lane.b32.xlu1 %v3212_v56, %s15151_s23 }
 0x36c   : > { %v4123_v25 = vsel %vm2329_vm7, %v4091_v62, %v3484_v51 }
 0x36d   : > { %v11627_v24 = vpop.permute.xlu1 %3583  ;;  %3313 = vrot.lane.b32.xlu0 %v2957_v3, %s9173_s27  ;;  %v4155_v30 = vsel %vm2395_vm10, %v4123_v25, %v3580_v59  ;;  %v4156_v59 = vsel %vm2395_vm10, %v4124_v44, %v11572_v36 }
 0x36e   : > { %v4188_v57 = vsel %vm4187_vm13, %v4155_v30, %v3676_v34 }
 0x36f   : > { %v11635_v14 = vpop.permute.xlu0 %3299  ;;  %3407 = vrot.lane.b32.xlu1 %v3210_v11, %s15176_s30  ;;  %v11650_v11 = vld [vmem:[#allocation3 + $0xd0] sm:$0xff] }
 0x370   : > { %v3088_v61 = vrot.slane %v11650_v11, 7  ;;  %v3214_v44 = vrot.slane %v11650_v11, 1 }
 0x371   : > { %3693 = vrot.lane.b32.xlu0 %v3212_v56, %s9180_s24  ;;  %v3772_v3 = vpop.permute.xlu1 %3771 }
 0x372   : > { %v4221_v0 = vsel %vm4220_vm12, %v4188_v57, %v3772_v3  ;;  %v11665_v34 = vsel %vm1160_vm3, %v3086_v50, %v3088_v61  ;;  %v9146_v57 = vld [vmem:[%s9283_s25 + $0xa8] sm:$0xff]  ;;  %v3215_v61 = vsel %vm1289_vm2, %v3213_v23, %v3214_v44 }
 0x373   : > { %v3774_v51 = vpop.permute.xlu0 %3773  ;;  %3787 = vrot.lane.b32.xlu1 %v11645_v47, %s9182_s28  ;;  %v4254_v36 = vsel %vm4253_vm14, %v4221_v0, %v3868_v40 }
 0x375   : > { %3409 = vrot.lane.b32.xlu0 %v3212_v56, %s15176_s30  ;;  %v11654_v22 = vpop.permute.xlu1 %3487  ;;  %v4189_v56 = vsel %vm4187_vm13, %v4156_v59, %v11593_v39 }
 0x376   : > { %v4222_v62 = vsel %vm4220_vm12, %v4189_v56, %v3774_v51 }
 0x377   : > { %v11660_v4 = vpop.permute.xlu0 %3489  ;;  %3503 = vrot.lane.b32.xlu1 %v11645_v47, %s15160_s22  ;;  %v4255_v39 = vsel %vm4253_vm14, %v4222_v62, %v3870_v13  ;;  %v9147_v62 = vld [vmem:[%s9283_s25 + $0xa0] sm:$0xff] }
 0x379   : > { %3789 = vrot.lane.b32.xlu0 %v11665_v34, %s9182_s28  ;;  %v3964_v54 = vpop.permute.xlu1 %3963 }
 0x37a   : > { %v4287_v20 = vsel %vm4286_vm15, %v4254_v36, %v3964_v54  ;;  %v2962_v36 = vld [vmem:[#allocation3 + $0xd8] sm:$0xff] }
 0x37b   : > { %v3680_v25 = vpop.permute.xlu0 %3679  ;;  %3883 = vrot.lane.b32.xlu1 %v11623_v8, %s9181_s29  ;;  %8717 = vmatprep.mubr.msk.f32.mxu0 %vm4335_vm11, %v4287_v20 }
 0x37d   : > { %3505 = vrot.lane.b32.xlu0 %v11665_v34, %s15160_s22  ;;  %v3966_v50 = vpop.permute.xlu1 %3965 }
 0x37e   : > { %v4288_v40 = vsel %vm4286_vm15, %v4255_v39, %v3966_v50 }
 0x37f   : > { %v8683_v3 = vpop.f32.mrf.mxu1  ;;  %v11682_v9 = vpop.permute.xlu0 %3301  ;;  %3599 = vrot.lane.b32.xlu1 %v11623_v8, %s15165_s21  ;;  %8718 = vmatmul.mubr.msk.f32.vlgmr.msra.gmra.mxu0 %vm4335_vm11, %v4288_v40  ;;  %v3216_v40 = vrot.slane %v2962_v36, 1 }
 0x380   : > { %v2713_v30 = vadd.f32 %v11419_v17, %v8683_v3 }
 0x381   : > { %v2707_v51 = vpop.f32.mrf.mxu1  ;;  %3885 = vrot.lane.b32.xlu0 %v11650_v11, %s9181_s29  ;;  %v11691_v13 = vpop.permute.xlu1 %3395 }
 0x382   : > { %v11694_v59 = vadd.f32 %v9146_v57, %v2713_v30  ;;  %v2708_v0 = vadd.f32 %v11419_v17, %v2707_v51  ;;  %v3217_v30 = vsel %vm1289_vm2, %v3214_v44, %v3216_v40  ;;  %v2963_v51 = vld [vmem:[#allocation3 + $0xe0] sm:$0xff]  ;;  %v2964_v57 = vld [vmem:[#allocation3 + $0xe8] sm:$0xff] }
 0x383   : > { %v3682_v56 = vpop.permute.xlu0 %3681  ;;  %3979 = vrot.lane.b32.xlu1 %v3215_v61, %s15151_s23 }
 0x384   : > { %15191 = vst [vmem:[#allocation20_spill] sm:$0xff] %v11694_v59  ;;  %v2819_v54 = vmax.f32 %v11694_v59, 0.0  ;;  %v11701_v20 = vadd.f32 %v9147_v62, %v2708_v0  ;;  %v4061_v0 = vsel %vm580_vm0, %v11275_v33, %v11576_v52  ;;  %v3090_v62 = vrot.slane %v2963_v51, 7 }
 0x385   : > { %3315 = vrot.lane.b32.xlu0 %v11623_v8, %s9173_s27  ;;  %v3776_v39 = vpop.permute.xlu1 %3775 }
 0x386   : > { %15192 = vst [vmem:[#allocation21_spill] sm:$0xff] %v11701_v20  ;;  %2924 = vst.msk [vmem:[#allocation3 + $0x170] sm:$0xff] %vm580_vm0, %v2819_v54  ;;  %v2818_v50 = vmax.f32 %v11701_v20, 0.0  ;;  %v4093_v54 = vsel %vm2263_vm6, %v4061_v0, %v11610_v27 }
 0x387   : > { %v11707_v3 = vpop.permute.xlu0 %3397  ;;  %3601 = vrot.lane.b32.xlu1 %v11650_v11, %s15165_s21  ;;  %v4125_v44 = vsel %vm2329_vm7, %v4093_v54, %v11654_v22  ;;  %v2965_v22 = vld [vmem:[#allocation3 + $0xf0] sm:$0xff] }
 0x388   : > { %2923 = vst.msk [vmem:[#allocation3 + $0x168] sm:$0xff] %vm580_vm0, %v2818_v50  ;;  %v3091_v50 = vrot.slane %v2964_v57, 7  ;;  %v4157_v33 = vsel %vm2395_vm10, %v4125_v44, %v11627_v24 }
 0x389   : > { %3695 = vrot.lane.b32.xlu0 %v3215_v61, %s9180_s24  ;;  %v11713_v23 = vpop.permute.xlu1 %3491  ;;  %v4190_v27 = vsel %vm4187_vm13, %v4157_v33, %v3680_v25 }
 0x38a   : > { %v11735_v52 = vsel %vm1160_vm3, %v3090_v62, %v3091_v50  ;;  %v4223_v51 = vsel %vm4220_vm12, %v4190_v27, %v3776_v39  ;;  %v3093_v62 = vrot.slane %v2965_v22, 7 }
 0x38b   : > { %v3778_v8 = vpop.permute.xlu0 %3777  ;;  %3981 = vrot.lane.b32.xlu1 %v3217_v30, %s15151_s23 }
 0x38d   : > { %3317 = vrot.lane.b32.xlu0 %v11650_v11, %s9173_s27  ;;  %v3872_v36 = vpop.permute.xlu1 %3871 }
 0x38e   : > { %v4256_v0 = vsel %vm4253_vm14, %v4223_v51, %v3872_v36  ;;  %v3218_v51 = vrot.slane %v2964_v57, 1 }
 0x38f   : > { %v11726_v40 = vpop.permute.xlu0 %3493  ;;  %3411 = vrot.lane.b32.xlu1 %v3215_v61, %s15176_s30  ;;  %v4062_v61 = vsel %vm580_vm0, %v11198_v60, %v11579_v2  ;;  %v11757_v60 = vsel %vm1160_vm3, %v3091_v50, %v3093_v62 }
 0x390   : > { %v4094_v54 = vsel %vm2263_vm6, %v4062_v61, %v11603_v48 }
 0x391   : > { %3697 = vrot.lane.b32.xlu0 %v3217_v30, %s9180_s24  ;;  %v11730_v20 = vpop.permute.xlu1 %3587  ;;  %v4126_v44 = vsel %vm2329_vm7, %v4094_v54, %v11660_v4 }
 0x392   : > { %v4158_v48 = vsel %vm2395_vm10, %v4126_v44, %v11586_v37 }
 0x393   : > { %v3874_v11 = vpop.permute.xlu0 %3873  ;;  %3791 = vrot.lane.b32.xlu1 %v11735_v52, %s9182_s28  ;;  %v4191_v4 = vsel %vm4187_vm13, %v4158_v48, %v3682_v56  ;;  %v3219_v56 = vrot.slane %v2965_v22, 1  ;;  %v2966_v48 = vld [vmem:[#allocation3 + $0xf8] sm:$0xff] }
 0x395   : > { %3413 = vrot.lane.b32.xlu0 %v3217_v30, %s15176_s30  ;;  %v3968_v24 = vpop.permute.xlu1 %3967  ;;  %v4224_v30 = vsel %vm4220_vm12, %v4191_v4, %v3778_v8  ;;  %v3220_v62 = vsel %vm1289_vm2, %v3218_v51, %v3219_v56 }
 0x396   : > { %v4289_v25 = vsel %vm4286_vm15, %v4256_v0, %v3968_v24  ;;  %v4257_v36 = vsel %vm4253_vm14, %v4224_v30, %v3874_v11  ;;  %v9148_v24 = vld [vmem:[%s9283_s25 + $0xb8] sm:$0xff]  ;;  %v9149_v30 = vld [vmem:[%s9283_s25 + $0xb0] sm:$0xff] }
 0x397   : > { %v11751_v33 = vpop.permute.xlu0 %3303  ;;  %3507 = vrot.lane.b32.xlu1 %v11735_v52, %s15160_s22  ;;  %8720 = vmatprep.mubr.msk.f32.mxu0 %vm4335_vm11, %v4289_v25 }
 0x399   : > { %3793 = vrot.lane.b32.xlu0 %v11757_v60, %s9182_s28  ;;  %v11761_v2 = vpop.permute.xlu1 %3589 }
 0x39b   : > { %v3684_v39 = vpop.permute.xlu0 %3683  ;;  %3887 = vrot.lane.b32.xlu1 %v2964_v57, %s9181_s29 }
 0x39d   : > { %3509 = vrot.lane.b32.xlu0 %v11757_v60, %s15160_s22  ;;  %v3970_v50 = vpop.permute.xlu1 %3969 }
 0x39e   : > { %v4290_v27 = vsel %vm4286_vm15, %v4257_v36, %v3970_v50 }
 0x39f   : > { %v8686_v61 = vpop.f32.mrf.mxu1  ;;  %v11772_v0 = vpop.permute.xlu0 %3305  ;;  %3603 = vrot.lane.b32.xlu1 %v2964_v57, %s15165_s21  ;;  %8721 = vmatmul.mubr.msk.f32.gmra.mxu0 %vm4335_vm11, %v4290_v27 }
 0x3a0   : > { %v2723_v37 = vadd.f32 %v11419_v17, %v8686_v61  ;;  %v3221_v61 = vrot.slane %v2966_v48, 1 }
 0x3a1   : > { %v2717_v8 = vpop.f32.mrf.mxu1  ;;  %3889 = vrot.lane.b32.xlu0 %v2965_v22, %s9181_s29  ;;  %v11778_v11 = vpop.permute.xlu1 %3399 }
 0x3a2   : > { %v11781_v54 = vadd.f32 %v9148_v24, %v2723_v37  ;;  %v2718_v25 = vadd.f32 %v11419_v17, %v2717_v8  ;;  %v3222_v8 = vsel %vm1289_vm2, %v3219_v56, %v3221_v61 }
 0x3a3   : > { %v3686_v44 = vpop.permute.xlu0 %3685  ;;  %3983 = vrot.lane.b32.xlu1 %v3220_v62, %s15151_s23 }
 0x3a4   : > { %15193 = vst [vmem:[#allocation22_spill] sm:$0xff] %v11781_v54  ;;  %v2821_v4 = vmax.f32 %v11781_v54, 0.0  ;;  %v11788_v36 = vadd.f32 %v9149_v30, %v2718_v25  ;;  %v2968_v25 = vld [vmem:[#allocation3 + $0x108] sm:$0xff] }
 0x3a5   : > { %3319 = vrot.lane.b32.xlu0 %v2964_v57, %s9173_s27  ;;  %v3780_v50 = vpop.permute.xlu1 %3779  ;;  %v2967_v57 = vld [vmem:[#allocation3 + $0x100] sm:$0xff]  ;;  %v3096_v30 = vrot.slane %v2968_v25, 7 }
 0x3a6   : > { %15194 = vst [vmem:[#allocation23_spill] sm:$0xff] %v11788_v36  ;;  %2926 = vst.msk [vmem:[#allocation3 + $0x190] sm:$0xff] %vm580_vm0, %v2821_v4  ;;  %v2820_v27 = vmax.f32 %v11788_v36, 0.0  ;;  %v3095_v4 = vrot.slane %v2967_v57, 7 }
 0x3a7   : > { %v11793_v37 = vpop.permute.xlu0 %3401  ;;  %3605 = vrot.lane.b32.xlu1 %v2965_v22, %s15165_s21 }
 0x3a8   : > { %2925 = vst.msk [vmem:[#allocation3 + $0x188] sm:$0xff] %vm580_vm0, %v2820_v27  ;;  %v4063_v27 = vsel %vm580_vm0, %v11308_v28, %v11635_v14  ;;  %v11819_v54 = vsel %vm1160_vm3, %v3095_v4, %v3096_v30  ;;  %v4064_v4 = vsel %vm580_vm0, %v11317_v18, %v11682_v9 }
 0x3a9   : > { %3699 = vrot.lane.b32.xlu0 %v3220_v62, %s9180_s24  ;;  %v11798_v51 = vpop.permute.xlu1 %3495  ;;  %v4095_v56 = vsel %vm2263_vm6, %v4063_v27, %v11691_v13  ;;  %v2969_v13 = vld [vmem:[#allocation3 + $0x110] sm:$0xff] }
 0x3aa   : > { %v4127_v61 = vsel %vm2329_vm7, %v4095_v56, %v11713_v23 }
 0x3ab   : > { %v3782_v24 = vpop.permute.xlu0 %3781  ;;  %3985 = vrot.lane.b32.xlu1 %v3222_v8, %s15151_s23  ;;  %v4159_v57 = vsel %vm2395_vm10, %v4127_v61, %v11730_v20  ;;  %v3098_v20 = vrot.slane %v2969_v13, 7 }
 0x3ac   : > { %v4192_v28 = vsel %vm4187_vm13, %v4159_v57, %v3684_v39 }
 0x3ad   : > { %3321 = vrot.lane.b32.xlu0 %v2965_v22, %s9173_s27  ;;  %v3876_v48 = vpop.permute.xlu1 %3875 }
 0x3af   : > { %v11806_v36 = vpop.permute.xlu0 %3497  ;;  %3415 = vrot.lane.b32.xlu1 %v3220_v62, %s15176_s30  ;;  %v4225_v62 = vsel %vm4220_vm12, %v4192_v28, %v3780_v50  ;;  %v4096_v50 = vsel %vm2263_vm6, %v4064_v4, %v11707_v3 }
 0x3b0   : > { %v4258_v23 = vsel %vm4253_vm14, %v4225_v62, %v3876_v48  ;;  %v4128_v48 = vsel %vm2329_vm7, %v4096_v50, %v11726_v40  ;;  %v3223_v62 = vrot.slane %v2968_v25, 1 }
 0x3b1   : > { %3701 = vrot.lane.b32.xlu0 %v3222_v8, %s9180_s24  ;;  %v11814_v22 = vpop.permute.xlu1 %3591  ;;  %v4160_v9 = vsel %vm2395_vm10, %v4128_v48, %v11761_v2 }
 0x3b2   : > { %v4193_v61 = vsel %vm4187_vm13, %v4160_v9, %v3686_v44  ;;  %v3224_v44 = vrot.slane %v2969_v13, 1  ;;  %v2970_v9 = vld [vmem:[#allocation3 + $0x118] sm:$0xff] }
 0x3b3   : > { %v3878_v14 = vpop.permute.xlu0 %3877  ;;  %3795 = vrot.lane.b32.xlu1 %v11819_v54, %s9182_s28  ;;  %v4226_v3 = vsel %vm4220_vm12, %v4193_v61, %v3782_v24 }
 0x3b4   : > { %v3225_v50 = vsel %vm1289_vm2, %v3223_v62, %v3224_v44 }
 0x3b5   : > { %3417 = vrot.lane.b32.xlu0 %v3222_v8, %s15176_s30  ;;  %v3972_v27 = vpop.permute.xlu1 %3971  ;;  %v11839_v8 = vsel %vm1160_vm3, %v3096_v30, %v3098_v20  ;;  %v4259_v30 = vsel %vm4253_vm14, %v4226_v3, %v3878_v14  ;;  %v9151_v3 = vld [vmem:[%s9283_s25 + $0xc0] sm:$0xff] }
 0x3b6   : > { %v4291_v56 = vsel %vm4286_vm15, %v4258_v23, %v3972_v27 }
 0x3b7   : > { %v11831_v39 = vpop.permute.xlu0 %3307  ;;  %3511 = vrot.lane.b32.xlu1 %v11819_v54, %s15160_s22  ;;  %8723 = vmatprep.mubr.msk.f32.mxu0 %vm4335_vm11, %v4291_v56  ;;  %v9150_v56 = vld [vmem:[%s9283_s25 + $0xc8] sm:$0xff] }
 0x3b9   : > { %3797 = vrot.lane.b32.xlu0 %v11839_v8, %s9182_s28  ;;  %v11845_v18 = vpop.permute.xlu1 %3593 }
 0x3bb   : > { %v3688_v57 = vpop.permute.xlu0 %3687  ;;  %3891 = vrot.lane.b32.xlu1 %v2968_v25, %s9181_s29 }
 0x3bd   : > { %3513 = vrot.lane.b32.xlu0 %v11839_v8, %s15160_s22  ;;  %v3974_v40 = vpop.permute.xlu1 %3973 }
 0x3be   : > { %v4292_v28 = vsel %vm4286_vm15, %v4259_v30, %v3974_v40 }
 0x3bf   : > { %v8689_v23 = vpop.f32.mrf.mxu1  ;;  %v11856_v27 = vpop.permute.xlu0 %3309  ;;  %3607 = vrot.lane.b32.xlu1 %v2968_v25, %s15165_s21  ;;  %8724 = vmatmul.mubr.msk.f32.gmra.mxu0 %vm4335_vm11, %v4292_v28 }
 0x3c0   : > { %v2733_v2 = vadd.f32 %v11419_v17, %v8689_v23  ;;  %v3226_v23 = vrot.slane %v2970_v9, 1 }
 0x3c1   : > { %v2727_v24 = vpop.f32.mrf.mxu1  ;;  %3893 = vrot.lane.b32.xlu0 %v2969_v13, %s9181_s29  ;;  %v11862_v14 = vpop.permute.xlu1 %3403 }
 0x3c2   : > { %v11865_v20 = vadd.f32 %v9150_v56, %v2733_v2  ;;  %v2728_v4 = vadd.f32 %v11419_v17, %v2727_v24  ;;  %v3227_v24 = vsel %vm1289_vm2, %v3224_v44, %v3226_v23 }
 0x3c3   : > { %v3690_v48 = vpop.permute.xlu0 %3689  ;;  %3987 = vrot.lane.b32.xlu1 %v3225_v50, %s15151_s23 }
 0x3c4   : > { %15195 = vst [vmem:[#allocation24_spill] sm:$0xff] %v11865_v20  ;;  %v2823_v61 = vmax.f32 %v11865_v20, 0.0  ;;  %v11872_v30 = vadd.f32 %v9151_v3, %v2728_v4  ;;  %v2972_v4 = vld [vmem:[#allocation3 + $0x128] sm:$0xff] }
 0x3c5   : > { %3323 = vrot.lane.b32.xlu0 %v2968_v25, %s9173_s27  ;;  %v3784_v40 = vpop.permute.xlu1 %3783  ;;  %v2971_v25 = vld [vmem:[#allocation3 + $0x120] sm:$0xff]  ;;  %v3101_v3 = vrot.slane %v2972_v4, 7 }
 0x3c6   : > { %15196 = vst [vmem:[#allocation25_spill] sm:$0xff] %v11872_v30  ;;  %2928 = vst.msk [vmem:[#allocation3 + $0x1b0] sm:$0xff] %vm580_vm0, %v2823_v61  ;;  %v2822_v28 = vmax.f32 %v11872_v30, 0.0  ;;  %v3100_v61 = vrot.slane %v2971_v25, 7 }
 0x3c7   : > { %v11877_v2 = vpop.permute.xlu0 %3405  ;;  %3609 = vrot.lane.b32.xlu1 %v2969_v13, %s15165_s21 }
 0x3c8   : > { %2927 = vst.msk [vmem:[#allocation3 + $0x1a8] sm:$0xff] %vm580_vm0, %v2822_v28  ;;  %v4065_v28 = vsel %vm580_vm0, %v11371_v16, %v11751_v33  ;;  %v11903_v20 = vsel %vm1160_vm3, %v3100_v61, %v3101_v3  ;;  %v4066_v61 = vsel %vm580_vm0, %v11392_v1, %v11772_v0 }
 0x3c9   : > { %3703 = vrot.lane.b32.xlu0 %v3225_v50, %s9180_s24  ;;  %v11882_v62 = vpop.permute.xlu1 %3499  ;;  %v4097_v44 = vsel %vm2263_vm6, %v4065_v28, %v11778_v11  ;;  %v2973_v11 = vld [vmem:[#allocation3 + $0x130] sm:$0xff] }
 0x3ca   : > { %v4129_v23 = vsel %vm2329_vm7, %v4097_v44, %v11798_v51 }
 0x3cb   : > { %v3786_v56 = vpop.permute.xlu0 %3785  ;;  %3989 = vrot.lane.b32.xlu1 %v3227_v24, %s15151_s23  ;;  %v4161_v25 = vsel %vm2395_vm10, %v4129_v23, %v11814_v22  ;;  %v3103_v22 = vrot.slane %v2973_v11, 7 }
 0x3cc   : > { %v4194_v16 = vsel %vm4187_vm13, %v4161_v25, %v3688_v57 }
 0x3cd   : > { %3325 = vrot.lane.b32.xlu0 %v2969_v13, %s9173_s27  ;;  %v3880_v9 = vpop.permute.xlu1 %3879 }
 0x3cf   : > { %v11890_v30 = vpop.permute.xlu0 %3501  ;;  %3419 = vrot.lane.b32.xlu1 %v3225_v50, %s15176_s30  ;;  %v4227_v50 = vsel %vm4220_vm12, %v4194_v16, %v3784_v40  ;;  %v4098_v40 = vsel %vm2263_vm6, %v4066_v61, %v11793_v37 }
 0x3d0   : > { %v4260_v51 = vsel %vm4253_vm14, %v4227_v50, %v3880_v9  ;;  %v4130_v9 = vsel %vm2329_vm7, %v4098_v40, %v11806_v36  ;;  %v3228_v50 = vrot.slane %v2972_v4, 1 }
 0x3d1   : > { %3705 = vrot.lane.b32.xlu0 %v3227_v24, %s9180_s24  ;;  %v11898_v13 = vpop.permute.xlu1 %3595  ;;  %v4162_v0 = vsel %vm2395_vm10, %v4130_v9, %v11845_v18 }
 0x3d2   : > { %v4195_v23 = vsel %vm4187_vm13, %v4162_v0, %v3690_v48  ;;  %v3229_v48 = vrot.slane %v2973_v11, 1  ;;  %v2974_v0 = vld [vmem:[#allocation3 + $0x138] sm:$0xff] }
 0x3d3   : > { %v3882_v33 = vpop.permute.xlu0 %3881  ;;  %3799 = vrot.lane.b32.xlu1 %v11903_v20, %s9182_s28  ;;  %v4228_v37 = vsel %vm4220_vm12, %v4195_v23, %v3786_v56 }
 0x3d4   : > { %v3230_v40 = vsel %vm1289_vm2, %v3228_v50, %v3229_v48 }
 0x3d5   : > { %3421 = vrot.lane.b32.xlu0 %v3227_v24, %s15176_s30  ;;  %v3976_v28 = vpop.permute.xlu1 %3975  ;;  %v11923_v24 = vsel %vm1160_vm3, %v3101_v3, %v3103_v22  ;;  %v4261_v3 = vsel %vm4253_vm14, %v4228_v37, %v3882_v33  ;;  %v9153_v37 = vld [vmem:[%s9283_s25 + $0xd0] sm:$0xff] }
 0x3d6   : > { %v4293_v44 = vsel %vm4286_vm15, %v4260_v51, %v3976_v28 }
 0x3d7   : > { %v11915_v57 = vpop.permute.xlu0 %3311  ;;  %3515 = vrot.lane.b32.xlu1 %v11903_v20, %s15160_s22  ;;  %8726 = vmatprep.mubr.msk.f32.mxu0 %vm4335_vm11, %v4293_v44  ;;  %v9152_v44 = vld [vmem:[%s9283_s25 + $0xd8] sm:$0xff] }
 0x3d9   : > { %3801 = vrot.lane.b32.xlu0 %v11923_v24, %s9182_s28  ;;  %v11929_v1 = vpop.permute.xlu1 %3597 }
 0x3db   : > { %v3692_v25 = vpop.permute.xlu0 %3691  ;;  %3895 = vrot.lane.b32.xlu1 %v2972_v4, %s9181_s29 }
 0x3dd   : > { %3517 = vrot.lane.b32.xlu0 %v11923_v24, %s15160_s22  ;;  %v3978_v36 = vpop.permute.xlu1 %3977 }
 0x3de   : > { %v4294_v16 = vsel %vm4286_vm15, %v4261_v3, %v3978_v36 }
 0x3df   : > { %v8692_v51 = vpop.f32.mrf.mxu1  ;;  %v11940_v28 = vpop.permute.xlu0 %3313  ;;  %3611 = vrot.lane.b32.xlu1 %v2972_v4, %s15165_s21  ;;  %8727 = vmatmul.mubr.msk.f32.gmra.mxu0 %vm4335_vm11, %v4294_v16 }
 0x3e0   : > { %v2743_v18 = vadd.f32 %v11419_v17, %v8692_v51  ;;  %v3231_v51 = vrot.slane %v2974_v0, 1 }
 0x3e1   : > { %v2737_v56 = vpop.f32.mrf.mxu1  ;;  %3897 = vrot.lane.b32.xlu0 %v2973_v11, %s9181_s29  ;;  %v11946_v33 = vpop.permute.xlu1 %3407 }
 0x3e2   : > { %v11949_v22 = vadd.f32 %v9152_v44, %v2743_v18  ;;  %v2738_v61 = vadd.f32 %v11419_v17, %v2737_v56  ;;  %v3232_v18 = vsel %vm1289_vm2, %v3229_v48, %v3231_v51  ;;  %v11970_v44 = vld [vmem:[#allocation3 + $0x148] sm:$0xff] }
 0x3e3   : > { %v3694_v9 = vpop.permute.xlu0 %3693  ;;  %3991 = vrot.lane.b32.xlu1 %v3230_v40, %s15151_s23 }
 0x3e4   : > { %15197 = vst [vmem:[#allocation26_spill] sm:$0xff] %v11949_v22  ;;  %v2825_v23 = vmax.f32 %v11949_v22, 0.0  ;;  %v11956_v3 = vadd.f32 %v9153_v37, %v2738_v61  ;;  %v4067_v37 = vsel %vm580_vm0, %v11466_v46, %v11831_v39 }
 0x3e5   : > { %3327 = vrot.lane.b32.xlu0 %v2972_v4, %s9173_s27  ;;  %v3788_v36 = vpop.permute.xlu1 %3787  ;;  %v2975_v4 = vld [vmem:[#allocation3 + $0x140] sm:$0xff]  ;;  %v4099_v48 = vsel %vm2263_vm6, %v4067_v37, %v11862_v14  ;;  %v11995_v14 = vld [vmem:[#allocation3 + $0x150] sm:$0xff] }
 0x3e6   : > { %15198 = vst [vmem:[#allocation27_spill] sm:$0xff] %v11956_v3  ;;  %2930 = vst.msk [vmem:[#allocation3 + $0x1d0] sm:$0xff] %vm580_vm0, %v2825_v23  ;;  %v2824_v16 = vmax.f32 %v11956_v3, 0.0  ;;  %v3105_v0 = vrot.slane %v2975_v4, 7  ;;  %v3106_v23 = vrot.slane %v11970_v44, 7  ;;  %v4131_v51 = vsel %vm2329_vm7, %v4099_v48, %v11882_v62 }
 0x3e7   : > { %v11961_v17 = vpop.permute.xlu0 %3409  ;;  %3613 = vrot.lane.b32.xlu1 %v2973_v11, %s15165_s21  ;;  %v4163_v4 = vsel %vm2395_vm10, %v4131_v51, %v11898_v13 }
 0x3e8   : > { %2929 = vst.msk [vmem:[#allocation3 + $0x1c8] sm:$0xff] %vm580_vm0, %v2824_v16  ;;  %v11990_v3 = vsel %vm1160_vm3, %v3105_v0, %v3106_v23  ;;  %v4196_v46 = vsel %vm4187_vm13, %v4163_v4, %v3692_v25  ;;  %v3108_v0 = vrot.slane %v11995_v14, 7  ;;  %v4068_v25 = vsel %vm580_vm0, %v11491_v38, %v11856_v27 }
 0x3e9   : > { %3707 = vrot.lane.b32.xlu0 %v3230_v40, %s9180_s24  ;;  %v11966_v50 = vpop.permute.xlu1 %3503  ;;  %v4229_v62 = vsel %vm4220_vm12, %v4196_v46, %v3788_v36  ;;  %v4100_v36 = vsel %vm2263_vm6, %v4068_v25, %v11877_v2  ;;  %v3234_v25 = vrot.slane %v11995_v14, 1 }
 0x3eb   : > { %v3790_v56 = vpop.permute.xlu0 %3789  ;;  %3993 = vrot.lane.b32.xlu1 %v3232_v18, %s15151_s23 }
 0x3ed   : > { %3329 = vrot.lane.b32.xlu0 %v2973_v11, %s9173_s27  ;;  %v3884_v61 = vpop.permute.xlu1 %3883 }
 0x3ef   : > { %v11977_v16 = vpop.permute.xlu0 %3505  ;;  %3423 = vrot.lane.b32.xlu1 %v3230_v40, %s15176_s30  ;;  %v4262_v40 = vsel %vm4253_vm14, %v4229_v62, %v3884_v61  ;;  %v4132_v61 = vsel %vm2329_vm7, %v4100_v36, %v11890_v30 }
 0x3f0   : > { %v4164_v27 = vsel %vm2395_vm10, %v4132_v61, %v11929_v1  ;;  %v9154_v1 = vld [vmem:[%s15092_s4] ss:$0 sm:$0xff] }
 0x3f1   : > { %3709 = vrot.lane.b32.xlu0 %v3232_v18, %s9180_s24  ;;  %v11985_v11 = vpop.permute.xlu1 %3599  ;;  %v4197_v51 = vsel %vm4187_vm13, %v4164_v27, %v3694_v9  ;;  %v9156_v27 = vld [vmem:[%s9283_s25 + $0xe0] sm:$0xff] }
 0x3f2   : > { %v4230_v2 = vsel %vm4220_vm12, %v4197_v51, %v3790_v56  ;;  %v9155_v56 = vld [vmem:[%s9283_s25 + $0xe8] sm:$0xff] }
 0x3f3   : > { %v3886_v39 = vpop.permute.xlu0 %3885  ;;  %3803 = vrot.lane.b32.xlu1 %v11990_v3, %s9182_s28 }
 0x3f4   : > { %v4263_v30 = vsel %vm4253_vm14, %v4230_v2, %v3886_v39 }
 0x3f5   : > { %3425 = vrot.lane.b32.xlu0 %v3232_v18, %s15176_s30  ;;  %v3980_v37 = vpop.permute.xlu1 %3979  ;;  %v12013_v18 = vsel %vm1160_vm3, %v3106_v23, %v3108_v0 }
 0x3f6   : > { %v4295_v13 = vsel %vm4286_vm15, %v4262_v40, %v3980_v37  ;;  %v3233_v40 = vrot.slane %v11970_v44, 1 }
 0x3f7   : > { %v12005_v48 = vpop.permute.xlu0 %3315  ;;  %3519 = vrot.lane.b32.xlu1 %v11990_v3, %s15160_s22  ;;  %8729 = vmatprep.mubr.msk.f32.mxu0 %vm4335_vm11, %v4295_v13 }
 0x3f8   : > { %v3235_v2 = vsel %vm1289_vm2, %v3233_v40, %v3234_v25 }
 0x3f9   : > { %3805 = vrot.lane.b32.xlu0 %v12013_v18, %s9182_s28  ;;  %v12019_v38 = vpop.permute.xlu1 %3601 }
 0x3fb   : > { %v12024_v4 = vpop.permute.xlu0 %3695  ;;  %3899 = vrot.lane.b32.xlu1 %v11970_v44, %s9181_s29 }
 0x3fd   : > { %v8695_v23 = vpop.f32.mrf.mxu1  ;;  %3521 = vrot.lane.b32.xlu0 %v12013_v18, %s15160_s22  ;;  %v3982_v46 = vpop.permute.xlu1 %3981 }
 0x3fe   : > { %v2753_v9 = vadd.f32 %v9154_v1, %v8695_v23  ;;  %v4296_v62 = vsel %vm4286_vm15, %v4263_v30, %v3982_v46  ;;  %v2978_v23 = vld [vmem:[#allocation3 + $0x158] sm:$0xff] }
 0x3ff   : > { %v2747_v37 = vpop.f32.mrf.mxu1  ;;  %v12037_v13 = vpop.permute.xlu0 %3317  ;;  %3615 = vrot.lane.b32.xlu1 %v11970_v44, %s15165_s21  ;;  %8730 = vmatmul.mubr.msk.f32.gmra.mxu0 %vm4335_vm11, %v4296_v62  ;;  %v3236_v62 = vrot.slane %v2978_v23, 1 }
 0x400   : > { %v12043_v39 = vadd.f32 %v9155_v56, %v2753_v9  ;;  %v2748_v0 = vadd.f32 %v9154_v1, %v2747_v37 }
 0x401   : > { %3901 = vrot.lane.b32.xlu0 %v11995_v14, %s9181_s29  ;;  %v12048_v36 = vpop.permute.xlu1 %3411  ;;  %v3237_v56 = vsel %vm1289_vm2, %v3234_v25, %v3236_v62  ;;  %v4069_v62 = vsel %vm580_vm0, %v11570_v10, %v11915_v57 }
 0x402   : > { %15199 = vst [vmem:[#allocation28_spill] sm:$0xff] %v12043_v39  ;;  %v2827_v61 = vmax.f32 %v12043_v39, 0.0  ;;  %v12052_v51 = vadd.f32 %v9156_v27, %v2748_v0  ;;  %v12072_v27 = vld [vmem:[#allocation3 + $0x168] sm:$0xff]  ;;  %v9157_v39 = vld [vmem:[%s9283_s25 + $0xf8] sm:$0xff]  ;;  %s15254_s25 = sshll.u32 %s15330_s19, 8 }
 0x403   : > { %v12055_v30 = vpop.permute.xlu0 %3697  ;;  %3995 = vrot.lane.b32.xlu1 %v3235_v2, %s15151_s23  ;;  %v3111_v25 = vrot.slane %v12072_v27, 7 }
 0x404   : > { %15200 = vst [vmem:[#allocation29_spill] sm:$0xff] %v12052_v51  ;;  %2932 = vst.msk [vmem:[#allocation3 + $0x1f0] sm:$0xff] %vm580_vm0, %v2827_v61  ;;  %v2826_v46 = vmax.f32 %v12052_v51, 0.0 }
 0x405   : > { %3331 = vrot.lane.b32.xlu0 %v11970_v44, %s9173_s27  ;;  %v3792_v9 = vpop.permute.xlu1 %3791  ;;  %v2979_v44 = vld [vmem:[#allocation3 + $0x160] sm:$0xff] }
 0x406   : > { %2931 = vst.msk [vmem:[#allocation3 + $0x1e8] sm:$0xff] %vm580_vm0, %v2826_v46  ;;  %v3110_v5 = vrot.slane %v2979_v44, 7 }
 0x407   : > { %v12063_v37 = vpop.permute.xlu0 %3413  ;;  %3617 = vrot.lane.b32.xlu1 %v11995_v14, %s15165_s21 }
 0x409   : > { %3711 = vrot.lane.b32.xlu0 %v3235_v2, %s9180_s24  ;;  %v12068_v40 = vpop.permute.xlu1 %3507 }
 0x40b   : > { %v8698_v0 = vpop.f32.mrf.mxu1  ;;  %v3794_v61 = vpop.permute.xlu0 %3793  ;;  %3997 = vrot.lane.b32.xlu1 %v3237_v56, %s15151_s23 }
 0x40c   : > { %v2763_v23 = vadd.f32 %v9154_v1, %v8698_v0  ;;  %v4101_v0 = vsel %vm2263_vm6, %v4069_v62, %v11946_v33  ;;  %v12102_v33 = vsel %vm1160_vm3, %v3110_v5, %v3111_v25 }
 0x40d   : > { %v2757_v46 = vpop.f32.mrf.mxu1  ;;  %3333 = vrot.lane.b32.xlu0 %v11995_v14, %s9173_s27  ;;  %v3888_v51 = vpop.permute.xlu1 %3887 }
 0x40e   : > { %v12077_v22 = vadd.f32 %v9157_v39, %v2763_v23  ;;  %v2758_v59 = vadd.f32 %v9154_v1, %v2757_v46  ;;  %v4133_v1 = vsel %vm2329_vm7, %v4101_v0, %v11966_v50  ;;  %v2981_v50 = vld [vmem:[#allocation3 + $0x170] sm:$0xff] }
 0x40f   : > { %v12083_v45 = vpop.permute.xlu0 %3509  ;;  %3427 = vrot.lane.b32.xlu1 %v3235_v2, %s15176_s30  ;;  %v4165_v10 = vsel %vm2395_vm10, %v4133_v1, %v11985_v11  ;;  %v3113_v46 = vrot.slane %v2981_v50, 7 }
 0x410   : > { %15201 = vst [vmem:[#allocation30_spill] sm:$0xff] %v12077_v22  ;;  %v2829_v14 = vmax.f32 %v12077_v22, 0.0  ;;  %v12090_v39 = vadd.f32 %v9158_v53, %v2758_v59  ;;  %v4198_v53 = vsel %vm4187_vm13, %v4165_v10, %v12024_v4  ;;  %v4070_v4 = vsel %vm580_vm0, %v11584_v31, %v11940_v28  ;;  %v2992_v22 = vld [vmem:[#allocation3 + $0x1c8] sm:$0xff] }
 0x411   : > { %3713 = vrot.lane.b32.xlu0 %v3237_v56, %s9180_s24  ;;  %v12095_v44 = vpop.permute.xlu1 %3603  ;;  %v4231_v2 = vsel %vm4220_vm12, %v4198_v53, %v3792_v9  ;;  %v12124_v9 = vsel %vm1160_vm3, %v3111_v25, %v3113_v46  ;;  %v3238_v10 = vrot.slane %v12072_v27, 1 }
 0x412   : > { %15202 = vst [vmem:[#allocation31_spill] sm:$0xff] %v12090_v39  ;;  %2934 = vst.msk [vmem:[#allocation3 + $0x210] sm:$0xff] %vm580_vm0, %v2829_v14  ;;  %v2828_v57 = vmax.f32 %v12090_v39, 0.0  ;;  %v4264_v11 = vsel %vm4253_vm14, %v4231_v2, %v3888_v51  ;;  %v4102_v51 = vsel %vm2263_vm6, %v4070_v4, %v11961_v17  ;;  %v2991_v39 = vld [vmem:[#allocation3 + $0x1c0] sm:$0xff] }
 0x413   : > { %v3890_v59 = vpop.permute.xlu0 %3889  ;;  %3807 = vrot.lane.b32.xlu1 %v12102_v33, %s9182_s28  ;;  %v3125_v26 = vrot.slane %v2991_v39, 7 }
 0x414   : > { %2933 = vst.msk [vmem:[#allocation3 + $0x208] sm:$0xff] %vm580_vm0, %v2828_v57 }
 0x415   : > { %3429 = vrot.lane.b32.xlu0 %v3237_v56, %s15176_s30  ;;  %v3984_v23 = vpop.permute.xlu1 %3983  ;;  %v4134_v56 = vsel %vm2329_vm7, %v4102_v51, %v11977_v16  ;;  %v2983_v51 = vld [vmem:[#allocation3 + $0x180] sm:$0xff] }
 0x416   : > { %v4297_v5 = vsel %vm4286_vm15, %v4264_v11, %v3984_v23  ;;  %v4166_v28 = vsel %vm2395_vm10, %v4134_v56, %v12019_v38  ;;  %v2984_v56 = vld [vmem:[#allocation3 + $0x188] sm:$0xff] }
 0x417   : > { %v12116_v62 = vpop.permute.xlu0 %3319  ;;  %3523 = vrot.lane.b32.xlu1 %v12102_v33, %s15160_s22  ;;  %8732 = vmatprep.mubr.msk.f32.mxu0 %vm4335_vm11, %v4297_v5  ;;  %v4199_v0 = vsel %vm4187_vm13, %v4166_v28, %v12055_v30  ;;  %v3239_v30 = vrot.slane %v2981_v50, 1  ;;  %v3115_v28 = vrot.slane %v2983_v51, 7  ;;  %v4072_v51 = vsel %vm580_vm0, %v11665_v34, %v12037_v13 }
 0x418   : > { %v4232_v17 = vsel %vm4220_vm12, %v4199_v0, %v3794_v61  ;;  %v3116_v0 = vrot.slane %v2984_v56, 7 }
 0x419   : > { %3809 = vrot.lane.b32.xlu0 %v12124_v9, %s9182_s28  ;;  %v12130_v31 = vpop.permute.xlu1 %3605  ;;  %v4265_v25 = vsel %vm4253_vm14, %v4232_v17, %v3890_v59  ;;  %v3240_v57 = vsel %vm1289_vm2, %v3238_v10, %v3239_v30  ;;  %v2982_v59 = vld [vmem:[#allocation3 + $0x178] sm:$0xff]  ;;  %v4071_v17 = vsel %vm580_vm0, %v11645_v47, %v12005_v48 }
 0x41a   : > { %v3241_v11 = vrot.slane %v2982_v59, 1 }
 0x41b   : > { %v3700_v14 = vpop.permute.xlu0 %3699  ;;  %3903 = vrot.lane.b32.xlu1 %v12072_v27, %s9181_s29  ;;  %v3000_v55 = vld [vmem:[#allocation3 + $0x208] sm:$0xff] }
 0x41c   : > { %v3242_v46 = vsel %vm1289_vm2, %v3239_v30, %v3241_v11  ;;  %v12181_v30 = vsel %vm1160_vm3, %v3115_v28, %v3116_v0 }
 0x41d   : > { %3525 = vrot.lane.b32.xlu0 %v12124_v9, %s15160_s22  ;;  %v3986_v16 = vpop.permute.xlu1 %3985 }
 0x41e   : > { %v4298_v1 = vsel %vm4286_vm15, %v4265_v25, %v3986_v16  ;;  %v4103_v16 = vsel %vm2263_vm6, %v4071_v17, %v12048_v36  ;;  %v2985_v36 = vld [vmem:[#allocation3 + $0x190] sm:$0xff] }
 0x41f   : > { %v12144_v38 = vpop.permute.xlu0 %3321  ;;  %3619 = vrot.lane.b32.xlu1 %v12072_v27, %s15165_s21  ;;  %8733 = vmatmul.mubr.msk.f32.gmra.mxu0 %vm4335_vm11, %v4298_v1  ;;  %v4135_v1 = vsel %vm2329_vm7, %v4103_v16, %v12068_v40 }
 0x420   : > { %v4167_v10 = vsel %vm2395_vm10, %v4135_v1, %v12095_v44  ;;  %v3118_v44 = vrot.slane %v2985_v36, 7  ;;  %v3243_v1 = vrot.slane %v2984_v56, 1 }
 0x421   : > { %3905 = vrot.lane.b32.xlu0 %v2981_v50, %s9181_s29  ;;  %v12150_v61 = vpop.permute.xlu1 %3415  ;;  %v4200_v47 = vsel %vm4187_vm13, %v4167_v10, %v3700_v14 }
 0x423   : > { %v3702_v53 = vpop.permute.xlu0 %3701  ;;  %3999 = vrot.lane.b32.xlu1 %v3240_v57, %s15151_s23 }
 0x425   : > { %3335 = vrot.lane.b32.xlu0 %v12072_v27, %s9173_s27  ;;  %v3796_v2 = vpop.permute.xlu1 %3795 }
 0x427   : > { %v12156_v23 = vpop.permute.xlu0 %3417  ;;  %3621 = vrot.lane.b32.xlu1 %v2981_v50, %s15165_s21 }
 0x429   : > { %3715 = vrot.lane.b32.xlu0 %v3240_v57, %s9180_s24  ;;  %v12160_v5 = vpop.permute.xlu1 %3511 }
 0x42b   : > { %v3798_v4 = vpop.permute.xlu0 %3797  ;;  %4001 = vrot.lane.b32.xlu1 %v3242_v46, %s15151_s23 }
 0x42d   : > { %3337 = vrot.lane.b32.xlu0 %v2981_v50, %s9173_s27  ;;  %v3892_v27 = vpop.permute.xlu1 %3891 }
 0x42f   : > { %v12168_v25 = vpop.permute.xlu0 %3513  ;;  %3431 = vrot.lane.b32.xlu1 %v3240_v57, %s15176_s30  ;;  %v4233_v57 = vsel %vm4220_vm12, %v4200_v47, %v3796_v2  ;;  %v4104_v2 = vsel %vm2263_vm6, %v4072_v51, %v12063_v37 }
 0x430   : > { %v4266_v40 = vsel %vm4253_vm14, %v4233_v57, %v3892_v27  ;;  %v4136_v27 = vsel %vm2329_vm7, %v4104_v2, %v12083_v45  ;;  %v2987_v2 = vld [vmem:[#allocation3 + $0x1a0] sm:$0xff] }
 0x431   : > { %3717 = vrot.lane.b32.xlu0 %v3242_v46, %s9180_s24  ;;  %v12176_v50 = vpop.permute.xlu1 %3607  ;;  %v4168_v13 = vsel %vm2395_vm10, %v4136_v27, %v12130_v31  ;;  %v3244_v31 = vrot.slane %v2985_v36, 1  ;;  %v12236_v27 = vld [vmem:[#allocation3 + $0x1a8] sm:$0xff] }
 0x432   : > { %v4201_v28 = vsel %vm4187_vm13, %v4168_v13, %v3702_v53  ;;  %v3120_v13 = vrot.slane %v2987_v2, 7  ;;  %v4074_v2 = vsel %vm580_vm0, %v11757_v60, %v12144_v38 }
 0x433   : > { %v3894_v48 = vpop.permute.xlu0 %3893  ;;  %3811 = vrot.lane.b32.xlu1 %v12181_v30, %s9182_s28  ;;  %v4234_v37 = vsel %vm4220_vm12, %v4201_v28, %v3798_v4  ;;  %v3245_v4 = vsel %vm1289_vm2, %v3243_v1, %v3244_v31  ;;  %v3121_v28 = vrot.slane %v12236_v27, 7 }
 0x435   : > { %3433 = vrot.lane.b32.xlu0 %v3242_v46, %s15176_s30  ;;  %v3988_v59 = vpop.permute.xlu1 %3987  ;;  %v12201_v46 = vsel %vm1160_vm3, %v3116_v0, %v3118_v44  ;;  %v4267_v0 = vsel %vm4253_vm14, %v4234_v37, %v3894_v48  ;;  %v2986_v48 = vld [vmem:[#allocation3 + $0x198] sm:$0xff]  ;;  %v4073_v37 = vsel %vm580_vm0, %v11735_v52, %v12116_v62 }
 0x436   : > { %v4299_v11 = vsel %vm4286_vm15, %v4266_v40, %v3988_v59  ;;  %v3246_v40 = vrot.slane %v2986_v48, 1 }
 0x437   : > { %v12193_v14 = vpop.permute.xlu0 %3323  ;;  %3527 = vrot.lane.b32.xlu1 %v12181_v30, %s15160_s22  ;;  %8735 = vmatprep.mubr.msk.f32.mxu0 %vm4335_vm11, %v4299_v11 }
 0x438   : > { %v3247_v44 = vsel %vm1289_vm2, %v3244_v31, %v3246_v40  ;;  %v12256_v31 = vsel %vm1160_vm3, %v3120_v13, %v3121_v28  ;;  %v4075_v41 = vsel %vm580_vm0, %v11819_v54, %v12193_v14 }
 0x439   : > { %3813 = vrot.lane.b32.xlu0 %v12201_v46, %s9182_s28  ;;  %v12207_v34 = vpop.permute.xlu1 %3609 }
 0x43b   : > { %v3704_v17 = vpop.permute.xlu0 %3703  ;;  %3907 = vrot.lane.b32.xlu1 %v2984_v56, %s9181_s29 }
 0x43d   : > { %3529 = vrot.lane.b32.xlu0 %v12201_v46, %s15160_s22  ;;  %v3990_v45 = vpop.permute.xlu1 %3989 }
 0x43e   : > { %v4300_v16 = vsel %vm4286_vm15, %v4267_v0, %v3990_v45  ;;  %v4105_v45 = vsel %vm2263_vm6, %v4073_v37, %v12150_v61  ;;  %v2989_v61 = vld [vmem:[#allocation3 + $0x1b0] sm:$0xff] }
 0x43f   : > { %v12218_v10 = vpop.permute.xlu0 %3325  ;;  %3623 = vrot.lane.b32.xlu1 %v2984_v56, %s15165_s21  ;;  %8736 = vmatmul.mubr.msk.f32.gmra.mxu0 %vm4335_vm11, %v4300_v16  ;;  %v4137_v16 = vsel %vm2329_vm7, %v4105_v45, %v12160_v5  ;;  %v8719_v13 = vpop.f32.mrf.mxu0 }
 0x440   : > { %v4169_v1 = vsel %vm2395_vm10, %v4137_v16, %v12176_v50  ;;  %v3123_v50 = vrot.slane %v2989_v61, 7 }
 0x441   : > { %3909 = vrot.lane.b32.xlu0 %v2985_v36, %s9181_s29  ;;  %v12223_v53 = vpop.permute.xlu1 %3419  ;;  %v4202_v52 = vsel %vm4187_vm13, %v4169_v1, %v3704_v17 }
 0x443   : > { %v3706_v47 = vpop.permute.xlu0 %3705  ;;  %4003 = vrot.lane.b32.xlu1 %v3245_v4, %s15151_s23 }
 0x445   : > { %3339 = vrot.lane.b32.xlu0 %v2984_v56, %s9173_s27  ;;  %v3800_v57 = vpop.permute.xlu1 %3799 }
 0x447   : > { %v12228_v59 = vpop.permute.xlu0 %3421  ;;  %3625 = vrot.lane.b32.xlu1 %v2985_v36, %s15165_s21 }
 0x449   : > { %3719 = vrot.lane.b32.xlu0 %v3245_v4, %s9180_s24  ;;  %v12232_v11 = vpop.permute.xlu1 %3515 }
 0x44b   : > { %v3802_v51 = vpop.permute.xlu0 %3801  ;;  %4005 = vrot.lane.b32.xlu1 %v3247_v44, %s15151_s23 }
 0x44d   : > { %3341 = vrot.lane.b32.xlu0 %v2985_v36, %s9173_s27  ;;  %v3896_v56 = vpop.permute.xlu1 %3895 }
 0x44f   : > { %v12243_v0 = vpop.permute.xlu0 %3517  ;;  %3435 = vrot.lane.b32.xlu1 %v3245_v4, %s15176_s30  ;;  %v4235_v4 = vsel %vm4220_vm12, %v4202_v52, %v3800_v57  ;;  %v4106_v57 = vsel %vm2263_vm6, %v4074_v2, %v12156_v23 }
 0x450   : > { %v4268_v5 = vsel %vm4253_vm14, %v4235_v4, %v3896_v56  ;;  %v4138_v56 = vsel %vm2329_vm7, %v4106_v57, %v12168_v25  ;;  %v12293_v25 = vld [vmem:[%s15094_s6] ss:$0 sm:$0xff] }
 0x451   : > { %3721 = vrot.lane.b32.xlu0 %v3247_v44, %s9180_s24  ;;  %v12251_v36 = vpop.permute.xlu1 %3611  ;;  %v4170_v38 = vsel %vm2395_vm10, %v4138_v56, %v12207_v34 }
 0x452   : > { %v4203_v37 = vsel %vm4187_vm13, %v4170_v38, %v3706_v47  ;;  %v3248_v47 = vrot.slane %v12236_v27, 1 }
 0x453   : > { %v3898_v62 = vpop.permute.xlu0 %3897  ;;  %3815 = vrot.lane.b32.xlu1 %v12256_v31, %s9182_s28  ;;  %v4236_v23 = vsel %vm4220_vm12, %v4203_v37, %v3802_v51  ;;  %v3249_v51 = vrot.slane %v2989_v61, 1  ;;  %v2990_v37 = vld [vmem:[#allocation3 + $0x1b8] sm:$0xff] }
 0x454   : > { %v4269_v16 = vsel %vm4253_vm14, %v4236_v23, %v3898_v62 }
 0x455   : > { %3437 = vrot.lane.b32.xlu0 %v3247_v44, %s15176_s30  ;;  %v3992_v48 = vpop.permute.xlu1 %3991  ;;  %v12276_v44 = vsel %vm1160_vm3, %v3121_v28, %v3123_v50  ;;  %v4498_v28 = vpop.f32.mrf.mxu0  ;;  %v3250_v50 = vsel %vm1289_vm2, %v3248_v47, %v3249_v51 }
 0x456   : > { %v4301_v40 = vsel %vm4286_vm15, %v4268_v5, %v3992_v48  ;;  %v12306_v5 = vadd.f32 %v8719_v13, %v12293_v25  ;;  %v12316_v2 = vadd.f32 %v12293_v25, %v4498_v28 }
 0x457   : > { %v12268_v17 = vpop.permute.xlu0 %3327  ;;  %3531 = vrot.lane.b32.xlu1 %v12256_v31, %s15160_s22  ;;  %8738 = vmatprep.mubr.msk.f32.mxu0 %vm4335_vm11, %v4301_v40 }
 0x459   : > { %3817 = vrot.lane.b32.xlu0 %v12276_v44, %s9182_s28  ;;  %v12282_v60 = vpop.permute.xlu1 %3613 }
 0x45b   : > { %v3708_v45 = vpop.permute.xlu0 %3707  ;;  %3911 = vrot.lane.b32.xlu1 %v12236_v27, %s9181_s29 }
 0x45d   : > { %3533 = vrot.lane.b32.xlu0 %v12276_v44, %s15160_s22  ;;  %v3994_v34 = vpop.permute.xlu1 %3993 }
 0x45e   : > { %v4302_v1 = vsel %vm4286_vm15, %v4269_v16, %v3994_v34  ;;  %v3251_v34 = vrot.slane %v2990_v37, 1  ;;  %v3126_v37 = vrot.slane %v2992_v22, 7 }
 0x45f   : > { %v12300_v52 = vpop.permute.xlu0 %3329  ;;  %v8722_v4 = vpop.f32.mrf.mxu0  ;;  %3627 = vrot.lane.b32.xlu1 %v12236_v27, %s15165_s21  ;;  %8739 = vmatmul.mubr.msk.f32.gmra.mxu0 %vm4335_vm11, %v4302_v1 }
 0x460   : > { %v12309_v62 = vadd.f32 %v8722_v4, %v12293_v25  ;;  %v3252_v4 = vsel %vm1289_vm2, %v3249_v51, %v3251_v34  ;;  %v4107_v51 = vsel %vm2263_vm6, %v4075_v41, %v12223_v53  ;;  %v12365_v32 = vsel %vm1160_vm3, %v3125_v26, %v3126_v37  ;;  %v2993_v41 = vld [vmem:[#allocation3 + $0x1d0] sm:$0xff] }
 0x461   : > { %3913 = vrot.lane.b32.xlu0 %v2989_v61, %s9181_s29  ;;  %v4508_v48 = vpop.f32.mrf.mxu0  ;;  %v12312_v40 = vpop.permute.xlu1 %3423  ;;  %v4139_v34 = vsel %vm2329_vm7, %v4107_v51, %v12232_v11  ;;  %v4076_v26 = vsel %vm580_vm0, %v11839_v8, %v12218_v10 }
 0x462   : > { %v12320_v57 = vmax.f32 %v12306_v5, %v12309_v62  ;;  %v12324_v56 = vmin.f32 %v12306_v5, %v12309_v62  ;;  %v12327_v13 = vadd.f32 %v12293_v25, %v4508_v48  ;;  %v4171_v39 = vsel %vm2395_vm10, %v4139_v34, %v12251_v36 }
 0x463   : > { %v3710_v38 = vpop.permute.xlu0 %3709  ;;  %4007 = vrot.lane.b32.xlu1 %v3250_v50, %s15151_s23  ;;  %v4204_v54 = vsel %vm4187_vm13, %v4171_v39, %v3708_v45  ;;  %v3128_v36 = vrot.slane %v2993_v41, 7 }
 0x464   : > { %v12332_v23 = vmax.f32 %v12316_v2, %v12327_v13  ;;  %v12336_v28 = vmin.f32 %v12316_v2, %v12327_v13 }
 0x465   : > { %3343 = vrot.lane.b32.xlu0 %v12236_v27, %s9173_s27  ;;  %v3804_v16 = vpop.permute.xlu1 %3803 }
 0x466   : > { %v4237_v53 = vsel %vm4220_vm12, %v4204_v54, %v3804_v16  ;;  %v4108_v16 = vsel %vm2263_vm6, %v4076_v26, %v12228_v59 }
 0x467   : > { %v12340_v47 = vpop.permute.xlu0 %3425  ;;  %3629 = vrot.lane.b32.xlu1 %v2989_v61, %s15165_s21 }
 0x469   : > { %3723 = vrot.lane.b32.xlu0 %v3250_v50, %s9180_s24  ;;  %v12344_v1 = vpop.permute.xlu1 %3519 }
 0x46b   : > { %v3806_v48 = vpop.permute.xlu0 %3805  ;;  %4009 = vrot.lane.b32.xlu1 %v3252_v4, %s15151_s23 }
 0x46d   : > { %3345 = vrot.lane.b32.xlu0 %v2989_v61, %s9173_s27  ;;  %v3900_v27 = vpop.permute.xlu1 %3899 }
 0x46e   : > { %v4270_v11 = vsel %vm4253_vm14, %v4237_v53, %v3900_v27  ;;  %v4140_v27 = vsel %vm2329_vm7, %v4108_v16, %v12243_v0  ;;  %v3253_v53 = vrot.slane %v2992_v22, 1 }
 0x46f   : > { %v12352_v12 = vpop.permute.xlu0 %3521  ;;  %3439 = vrot.lane.b32.xlu1 %v3250_v50, %s15176_s30  ;;  %v4172_v10 = vsel %vm2395_vm10, %v4140_v27, %v12282_v60  ;;  %v3254_v60 = vrot.slane %v2993_v41, 1 }
 0x470   : > { %v4205_v34 = vsel %vm4187_vm13, %v4172_v10, %v3710_v38 }
 0x471   : > { %3725 = vrot.lane.b32.xlu0 %v3252_v4, %s9180_s24  ;;  %v12360_v61 = vpop.permute.xlu1 %3615  ;;  %v4238_v59 = vsel %vm4220_vm12, %v4205_v34, %v3806_v48  ;;  %v3255_v48 = vsel %vm1289_vm2, %v3253_v53, %v3254_v60  ;;  %v2995_v34 = vld [vmem:[#allocation3 + $0x1e0] sm:$0xff] }
 0x473   : > { %v3902_v14 = vpop.permute.xlu0 %3901  ;;  %3819 = vrot.lane.b32.xlu1 %v12365_v32, %s9182_s28 }
 0x475   : > { %3441 = vrot.lane.b32.xlu0 %v3252_v4, %s15176_s30  ;;  %v3996_v50 = vpop.permute.xlu1 %3995  ;;  %v12385_v4 = vsel %vm1160_vm3, %v3126_v37, %v3128_v36  ;;  %v4271_v37 = vsel %vm4253_vm14, %v4238_v59, %v3902_v14  ;;  %v12420_v59 = vld [vmem:[#allocation3 + $0x1e8] sm:$0xff] }
 0x476   : > { %v4303_v51 = vsel %vm4286_vm15, %v4270_v11, %v3996_v50  ;;  %v2994_v50 = vld [vmem:[#allocation3 + $0x1d8] sm:$0xff] }
 0x477   : > { %v12377_v45 = vpop.permute.xlu0 %3331  ;;  %3535 = vrot.lane.b32.xlu1 %v12365_v32, %s15160_s22  ;;  %8741 = vmatprep.mubr.msk.f32.mxu0 %vm4335_vm11, %v4303_v51  ;;  %v3256_v36 = vrot.slane %v2994_v50, 1 }
 0x479   : > { %3821 = vrot.lane.b32.xlu0 %v12385_v4, %s9182_s28  ;;  %v12391_v8 = vpop.permute.xlu1 %3617  ;;  %v3257_v27 = vsel %vm1289_vm2, %v3254_v60, %v3256_v36 }
 0x47b   : > { %v3712_v39 = vpop.permute.xlu0 %3711  ;;  %3915 = vrot.lane.b32.xlu1 %v2992_v22, %s9181_s29 }
 0x47d   : > { %3537 = vrot.lane.b32.xlu0 %v12385_v4, %s15160_s22  ;;  %v3998_v0 = vpop.permute.xlu1 %3997 }
 0x47e   : > { %v4304_v54 = vsel %vm4286_vm15, %v4271_v37, %v3998_v0  ;;  %v3130_v37 = vrot.slane %v2995_v34, 7  ;;  %v3131_v0 = vrot.slane %v12420_v59, 7 }
 0x47f   : > { %v12402_v11 = vpop.permute.xlu0 %3333  ;;  %3631 = vrot.lane.b32.xlu1 %v2992_v22, %s15165_s21  ;;  %8742 = vmatmul.mubr.msk.f32.gmra.mxu0 %vm4335_vm11, %v4304_v54  ;;  %v4077_v54 = vsel %vm580_vm0, %v11903_v20, %v12268_v17 }
 0x480   : > { %v4109_v60 = vsel %vm2263_vm6, %v4077_v54, %v12312_v40  ;;  %v12440_v34 = vsel %vm1160_vm3, %v3130_v37, %v3131_v0  ;;  %v2997_v40 = vld [vmem:[#allocation3 + $0x1f0] sm:$0xff]  ;;  %v4078_v37 = vsel %vm580_vm0, %v11923_v24, %v12300_v52 }
 0x481   : > { %3917 = vrot.lane.b32.xlu0 %v2993_v41, %s9181_s29  ;;  %v12407_v38 = vpop.permute.xlu1 %3427  ;;  %v4141_v50 = vsel %vm2329_vm7, %v4109_v60, %v12344_v1 }
 0x482   : > { %v4173_v36 = vsel %vm2395_vm10, %v4141_v50, %v12360_v61  ;;  %v3133_v61 = vrot.slane %v2997_v40, 7  ;;  %v8725_v50 = vpop.f32.mrf.mxu0 }
 0x483   : > { %v3714_v14 = vpop.permute.xlu0 %3713  ;;  %4011 = vrot.lane.b32.xlu1 %v3255_v48, %s15151_s23  ;;  %v4206_v20 = vsel %vm4187_vm13, %v4173_v36, %v3712_v39 }
 0x485   : > { %3347 = vrot.lane.b32.xlu0 %v2992_v22, %s9173_s27  ;;  %v3808_v51 = vpop.permute.xlu1 %3807 }
 0x487   : > { %v12412_v26 = vpop.permute.xlu0 %3429  ;;  %3633 = vrot.lane.b32.xlu1 %v2993_v41, %s15165_s21 }
 0x489   : > { %3727 = vrot.lane.b32.xlu0 %v3255_v48, %s9180_s24  ;;  %v12416_v16 = vpop.permute.xlu1 %3523 }
 0x48b   : > { %v3810_v10 = vpop.permute.xlu0 %3809  ;;  %4013 = vrot.lane.b32.xlu1 %v3257_v27, %s15151_s23 }
 0x48d   : > { %3349 = vrot.lane.b32.xlu0 %v2993_v41, %s9173_s27  ;;  %v3904_v22 = vpop.permute.xlu1 %3903 }
 0x48f   : > { %v12427_v53 = vpop.permute.xlu0 %3525  ;;  %3443 = vrot.lane.b32.xlu1 %v3255_v48, %s15176_s30  ;;  %v4239_v48 = vsel %vm4220_vm12, %v4206_v20, %v3808_v51  ;;  %v4110_v51 = vsel %vm2263_vm6, %v4078_v37, %v12340_v47 }
 0x490   : > { %v4272_v1 = vsel %vm4253_vm14, %v4239_v48, %v3904_v22  ;;  %v4142_v22 = vsel %vm2329_vm7, %v4110_v51, %v12352_v12 }
 0x491   : > { %3729 = vrot.lane.b32.xlu0 %v3257_v27, %s9180_s24  ;;  %v12435_v41 = vpop.permute.xlu1 %3619  ;;  %v4174_v52 = vsel %vm2395_vm10, %v4142_v22, %v12391_v8 }
 0x492   : > { %v4207_v36 = vsel %vm4187_vm13, %v4174_v52, %v3714_v14 }
 0x493   : > { %v3906_v17 = vpop.permute.xlu0 %3905  ;;  %3823 = vrot.lane.b32.xlu1 %v12440_v34, %s9182_s28  ;;  %v4240_v47 = vsel %vm4220_vm12, %v4207_v36, %v3810_v10  ;;  %v3259_v10 = vrot.slane %v2997_v40, 1 }
 0x494   : > { %v4273_v12 = vsel %vm4253_vm14, %v4240_v47, %v3906_v17 }
 0x495   : > { %3445 = vrot.lane.b32.xlu0 %v3257_v27, %s15176_s30  ;;  %v4000_v54 = vpop.permute.xlu1 %3999  ;;  %v12460_v27 = vsel %vm1160_vm3, %v3131_v0, %v3133_v61  ;;  %v4518_v0 = vpop.f32.mrf.mxu0 }
 0x496   : > { %v4305_v60 = vsel %vm4286_vm15, %v4272_v1, %v4000_v54  ;;  %v3258_v1 = vrot.slane %v12420_v59, 1  ;;  %v12495_v22 = vadd.f32 %v12293_v25, %v4518_v0 }
 0x497   : > { %v12452_v39 = vpop.permute.xlu0 %3335  ;;  %3539 = vrot.lane.b32.xlu1 %v12440_v34, %s15160_s22  ;;  %8744 = vmatprep.mubr.msk.f32.mxu0 %vm4335_vm11, %v4305_v60  ;;  %v12485_v60 = vadd.f32 %v8725_v50, %v12293_v25 }
 0x498   : > { %v3260_v51 = vsel %vm1289_vm2, %v3258_v1, %v3259_v10  ;;  %15204 = vst [vmem:[#allocation33_spill] sm:$0xff] %v12495_v22 }
 0x499   : > { %3825 = vrot.lane.b32.xlu0 %v12460_v27, %s9182_s28  ;;  %v12466_v24 = vpop.permute.xlu1 %3621 }
 0x49b   : > { %v3716_v20 = vpop.permute.xlu0 %3715  ;;  %3919 = vrot.lane.b32.xlu1 %v12420_v59, %s9181_s29 }
 0x49d   : > { %3541 = vrot.lane.b32.xlu0 %v12460_v27, %s15160_s22  ;;  %v4002_v48 = vpop.permute.xlu1 %4001 }
 0x49e   : > { %v4306_v54 = vsel %vm4286_vm15, %v4273_v12, %v4002_v48  ;;  %v2998_v12 = vld [vmem:[#allocation3 + $0x1f8] sm:$0xff] }
 0x49f   : > { %v12479_v8 = vpop.permute.xlu0 %3337  ;;  %3635 = vrot.lane.b32.xlu1 %v12420_v59, %s15165_s21  ;;  %v8728_v14 = vpop.f32.mrf.mxu0  ;;  %8745 = vmatmul.mubr.msk.f32.gmra.mxu0 %vm4335_vm11, %v4306_v54  ;;  %v3261_v54 = vrot.slane %v2998_v12, 1  ;;  %v3267_v12 = vrot.slane %v3000_v55, 7 }
 0x4a0   : > { %v12488_v17 = vadd.f32 %v8728_v14, %v12293_v25 }
 0x4a1   : > { %3921 = vrot.lane.b32.xlu0 %v2997_v40, %s9181_s29  ;;  %v12491_v61 = vpop.permute.xlu1 %3431  ;;  %v4528_v37 = vpop.f32.mrf.mxu0  ;;  %v3262_v7 = vsel %vm1289_vm2, %v3259_v10, %v3261_v54 }
 0x4a2   : > { %15203 = vst [vmem:[#allocation32_spill] sm:$0xff] %v12488_v17  ;;  %v12499_v52 = vmax.f32 %v12485_v60, %v12488_v17  ;;  %v12503_v50 = vmin.f32 %v12485_v60, %v12488_v17  ;;  %v12506_v36 = vadd.f32 %v12293_v25, %v4528_v37  ;;  %v3268_v17 = vsel %vm1160_vm3, %v3266_v42, %v3267_v12 }
 0x4a3   : > { %v3718_v47 = vpop.permute.xlu0 %3717  ;;  %4015 = vrot.lane.b32.xlu1 %v3260_v51, %s15151_s23  ;;  %v4080_v42 = vsel %vm580_vm0, %v12013_v18, %v12402_v11 }
 0x4a4   : > { %15205 = vst [vmem:[#allocation34_spill] sm:$0xff] %v12506_v36  ;;  %v12511_v48 = vmax.f32 %v12495_v22, %v12506_v36  ;;  %v12515_v0 = vmin.f32 %v12495_v22, %v12506_v36  ;;  %v4079_v36 = vsel %vm580_vm0, %v11990_v3, %v12377_v45 }
 0x4a5   : > { %3351 = vrot.lane.b32.xlu0 %v12420_v59, %s9173_s27  ;;  %v3812_v1 = vpop.permute.xlu1 %3811  ;;  %v4111_v10 = vsel %vm2263_vm6, %v4079_v36, %v12407_v38 }
 0x4a6   : > { %v4143_v54 = vsel %vm2329_vm7, %v4111_v10, %v12416_v16 }
 0x4a7   : > { %v12519_v14 = vpop.permute.xlu0 %3433  ;;  %3637 = vrot.lane.b32.xlu1 %v2997_v40, %s15165_s21  ;;  %v4175_v35 = vsel %vm2395_vm10, %v4143_v54, %v12435_v41 }
 0x4a8   : > { %v4208_v3 = vsel %vm4187_vm13, %v4175_v35, %v3716_v20  ;;  %v4112_v20 = vsel %vm2263_vm6, %v4080_v42, %v12412_v26 }
 0x4a9   : > { %3731 = vrot.lane.b32.xlu0 %v3260_v51, %s9180_s24  ;;  %v12523_v37 = vpop.permute.xlu1 %3527  ;;  %v4241_v38 = vsel %vm4220_vm12, %v4208_v3, %v3812_v1 }
 0x4ab   : > { %v3814_v19 = vpop.permute.xlu0 %3813  ;;  %4017 = vrot.lane.b32.xlu1 %v3262_v7, %s15151_s23 }
 0x4ad   : > { %3353 = vrot.lane.b32.xlu0 %v2997_v40, %s9173_s27  ;;  %v3908_v59 = vpop.permute.xlu1 %3907 }
 0x4ae   : > { %v4274_v36 = vsel %vm4253_vm14, %v4241_v38, %v3908_v59  ;;  %v3003_v38 = vld [vmem:[#allocation3 + $0x220] sm:$0xff] }
 0x4af   : > { %v12531_v6 = vpop.permute.xlu0 %3529  ;;  %3447 = vrot.lane.b32.xlu1 %v3260_v51, %s15176_s30  ;;  %v3001_v51 = vld [vmem:[#allocation3 + $0x210] sm:$0xff]  ;;  %v3280_v42 = vrot.slane %v3003_v38, 7 }
 0x4b0   : > { %v3269_v29 = vrot.slane %v3001_v51, 7 }
 0x4b1   : > { %3733 = vrot.lane.b32.xlu0 %v3262_v7, %s9180_s24  ;;  %v12539_v40 = vpop.permute.xlu1 %3623 }
 0x4b2   : > { %v3270_v1 = vsel %vm1160_vm3, %v3267_v12, %v3269_v29  ;;  %v3272_v12 = vrot.slane %v3000_v55, 1 }
 0x4b3   : > { %v3910_v45 = vpop.permute.xlu0 %3909  ;;  %3827 = vrot.lane.b32.xlu1 %v3268_v17, %s9182_s28 }
 0x4b5   : > { %3449 = vrot.lane.b32.xlu0 %v3262_v7, %s15176_s30  ;;  %v4004_v16 = vpop.permute.xlu1 %4003  ;;  %v4144_v7 = vsel %vm2329_vm7, %v4112_v20, %v12427_v53 }
 0x4b6   : > { %v4307_v10 = vsel %vm4286_vm15, %v4274_v36, %v4004_v16  ;;  %v4176_v18 = vsel %vm2395_vm10, %v4144_v7, %v12466_v24  ;;  %v3273_v24 = vrot.slane %v3001_v51, 1  ;;  %v3004_v36 = vld [vmem:[#allocation3 + $0x228] sm:$0xff] }
 0x4b7   : > { %v12553_v41 = vpop.permute.xlu0 %3339  ;;  %3543 = vrot.lane.b32.xlu1 %v3268_v17, %s15160_s22  ;;  %8747 = vmatprep.mubr.msk.f32.mxu0 %vm4335_vm11, %v4307_v10  ;;  %v4209_v11 = vsel %vm4187_vm13, %v4176_v18, %v3718_v47  ;;  %v3281_v20 = vrot.slane %v3004_v36, 7 }
 0x4b8   : > { %v4242_v54 = vsel %vm4220_vm12, %v4209_v11, %v3814_v19  ;;  %v3002_v19 = vld [vmem:[#allocation3 + $0x218] sm:$0xff]  ;;  %v3274_v3 = vsel %vm1289_vm2, %v3272_v12, %v3273_v24  ;;  %v3286_v12 = vrot.slane %v3004_v36, 1 }
 0x4b9   : > { %3829 = vrot.lane.b32.xlu0 %v3270_v1, %s9182_s28  ;;  %v12563_v59 = vpop.permute.xlu1 %3625  ;;  %v4275_v26 = vsel %vm4253_vm14, %v4242_v54, %v3910_v45  ;;  %v3275_v16 = vrot.slane %v3002_v19, 1  ;;  %v3282_v54 = vsel %vm1160_vm3, %v3280_v42, %v3281_v20 }
 0x4bb   : > { %v3720_v17 = vpop.permute.xlu0 %3719  ;;  %3923 = vrot.lane.b32.xlu1 %v3000_v55, %s9181_s29  ;;  %v3276_v7 = vsel %vm1289_vm2, %v3273_v24, %v3275_v16  ;;  %v4081_v24 = vsel %vm580_vm0, %v12102_v33, %v12452_v39 }
 0x4bc   : > { %v4113_v38 = vsel %vm2263_vm6, %v4081_v24, %v12491_v61 }
 0x4bd   : > { %3545 = vrot.lane.b32.xlu0 %v3270_v1, %s15160_s22  ;;  %v4006_v29 = vpop.permute.xlu1 %4005  ;;  %v4145_v42 = vsel %vm2329_vm7, %v4113_v38, %v12523_v37 }
 0x4be   : > { %v4308_v53 = vsel %vm4286_vm15, %v4275_v26, %v4006_v29 }
 0x4bf   : > { %v12573_v35 = vpop.permute.xlu0 %3341  ;;  %3639 = vrot.lane.b32.xlu1 %v3000_v55, %s15165_s21  ;;  %8748 = vmatmul.mubr.msk.f32.gmra.mxu0 %vm4335_vm11, %v4308_v53  ;;  %v3005_v55 = vld [vmem:[#allocation3 + $0x230] sm:$0xff]  ;;  %v3006_v53 = vld [vmem:[#allocation3 + $0x238] sm:$0xff] }
 0x4c0   : > { %v3283_v18 = vrot.slane %v3005_v55, 7  ;;  %v3287_v19 = vrot.slane %v3005_v55, 1  ;;  %v3289_v16 = vrot.slane %v3006_v53, 1 }
 0x4c1   : > { %3925 = vrot.lane.b32.xlu0 %v3001_v51, %s9181_s29  ;;  %v12578_v47 = vpop.permute.xlu1 %3435 }
 0x4c2   : > { %v3290_v61 = vsel %vm1289_vm2, %v3287_v19, %v3289_v16 }
 0x4c3   : > { %v3722_v45 = vpop.permute.xlu0 %3721  ;;  %4019 = vrot.lane.b32.xlu1 %v3274_v3, %s15151_s23 }
 0x4c5   : > { %3641 = vrot.lane.b32.xlu0 %v3001_v51, %s15165_s21  ;;  %v3816_v10 = vpop.permute.xlu1 %3815  ;;  %v3284_v51 = vsel %vm1160_vm3, %v3281_v20, %v3283_v18  ;;  %v3288_v18 = vsel %vm1289_vm2, %v3286_v12, %v3287_v19 }
 0x4c7   : > { %v12583_v1 = vpop.permute.xlu0 %3437  ;;  %3735 = vrot.lane.b32.xlu1 %v3274_v3, %s9180_s24 }
 0x4c9   : > { %4021 = vrot.lane.b32.xlu0 %v3276_v7, %s15151_s23  ;;  %v3532_v11 = vpop.permute.xlu1 %3531 }
 0x4cb   : > { %v3818_v26 = vpop.permute.xlu0 %3817  ;;  %3737 = vrot.lane.b32.xlu1 %v3276_v7, %s9180_s24  ;;  %v4177_v7 = vsel %vm2395_vm10, %v4145_v42, %v12539_v40  ;;  %v4082_v40 = vsel %vm580_vm0, %v12124_v9, %v12479_v8 }
 0x4cc   : > { %v4210_v33 = vsel %vm4187_vm13, %v4177_v7, %v3720_v17  ;;  %v4114_v17 = vsel %vm2263_vm6, %v4082_v40, %v12519_v14 }
 0x4cd   : > { %3831 = vrot.lane.b32.xlu0 %v3282_v54, %s9182_s28  ;;  %v3912_v29 = vpop.permute.xlu1 %3911  ;;  %v4243_v54 = vsel %vm4220_vm12, %v4210_v33, %v3816_v10  ;;  %v4146_v10 = vsel %vm2329_vm7, %v4114_v17, %v12531_v6 }
 0x4cf   : > { %v3534_v3 = vpop.permute.xlu0 %3533  ;;  %3833 = vrot.lane.b32.xlu1 %v3284_v51, %s9182_s28  ;;  %v4276_v51 = vsel %vm4253_vm14, %v4243_v54, %v3912_v29  ;;  %v4178_v29 = vsel %vm2395_vm10, %v4146_v10, %v12563_v59 }
 0x4d0   : > { %v4211_v12 = vsel %vm4187_vm13, %v4178_v29, %v3722_v45  ;;  %v4083_v45 = vsel %vm580_vm0, %v12181_v30, %v12553_v41  ;;  %v4084_v30 = vsel %vm580_vm0, %v12201_v46, %v12573_v35 }
 0x4d1   : > { %3927 = vrot.lane.b32.xlu0 %v3004_v36, %s9181_s29  ;;  %v3628_v20 = vpop.permute.xlu1 %3627  ;;  %v4244_v9 = vsel %vm4220_vm12, %v4211_v12, %v3818_v26 }
 0x4d3   : > { %v3914_v39 = vpop.permute.xlu0 %3913  ;;  %3929 = vrot.lane.b32.xlu1 %v3005_v55, %s9181_s29 }
 0x4d4   : > { %v4277_v8 = vsel %vm4253_vm14, %v4244_v9, %v3914_v39  ;;  %v4115_v39 = vsel %vm2263_vm6, %v4083_v45, %v12578_v47  ;;  %v4116_v47 = vsel %vm2263_vm6, %v4084_v30, %v12583_v1 }
 0x4d5   : > { %4023 = vrot.lane.b32.xlu0 %v3288_v18, %s15151_s23  ;;  %v4008_v37 = vpop.permute.xlu1 %4007  ;;  %v4147_v54 = vsel %vm2329_vm7, %v4115_v39, %v3532_v11  ;;  %v4148_v11 = vsel %vm2329_vm7, %v4116_v47, %v3534_v3 }
 0x4d6   : > { %v4309_v36 = vsel %vm4286_vm15, %v4276_v51, %v4008_v37  ;;  %v4179_v51 = vsel %vm2395_vm10, %v4147_v54, %v3628_v20 }
 0x4d7   : > { %v3344_v53 = vpop.permute.xlu0 %3343  ;;  %4025 = vrot.lane.b32.xlu1 %v3290_v61, %s15151_s23  ;;  %8750 = vmatprep.mubr.msk.f32.mxu0 %vm4335_vm11, %v4309_v36  ;;  %s15231_s23 = smov 24  }
 0x4d9   : > { %v3630_v55 = vpop.permute.xlu1 %3629 }
 0x4da   : > { %v4180_v12 = vsel %vm2395_vm10, %v4148_v11, %v3630_v55 }
 0x4db   : > { %v3724_v19 = vpop.permute.xlu0 %3723 }
 0x4dc   : > { %v4212_v37 = vsel %vm4187_vm13, %v4179_v51, %v3724_v19 }
 0x4dd   : > { %v4010_v24 = vpop.permute.xlu1 %4009 }
 0x4de   : > { %v4310_v38 = vsel %vm4286_vm15, %v4277_v8, %v4010_v24 }
 0x4df   : > { %v3346_v16 = vpop.permute.xlu0 %3345  ;;  %8751 = vmatmul.mubr.msk.f32.gmra.mxu0 %vm4335_vm11, %v4310_v38 }
 0x4e1   : > { %v3440_v14 = vpop.permute.xlu1 %3439 }
 0x4e3   : > { %v3726_v42 = vpop.permute.xlu0 %3725 }
 0x4e4   : > { %v4213_v19 = vsel %vm4187_vm13, %v4180_v12, %v3726_v42  ;;  %v4085_v42 = vsel %vm580_vm0, %v12256_v31, %v3344_v53  ;;  %v4086_v31 = vsel %vm580_vm0, %v12276_v44, %v3346_v16 }
 0x4e5   : > { %v3820_v6 = vpop.permute.xlu1 %3819 }
 0x4e6   : > { %v4245_v40 = vsel %vm4220_vm12, %v4212_v37, %v3820_v6 }
 0x4e7   : > { %v3442_v7 = vpop.permute.xlu0 %3441 }
 0x4e9   : > { %v3536_v18 = vpop.permute.xlu1 %3535 }
 0x4eb   : > { %v3822_v33 = vpop.permute.xlu0 %3821 }
 0x4ec   : > { %v4246_v8 = vsel %vm4220_vm12, %v4213_v19, %v3822_v33  ;;  %v4117_v33 = vsel %vm2263_vm6, %v4085_v42, %v3440_v14  ;;  %v4118_v14 = vsel %vm2263_vm6, %v4086_v31, %v3442_v7 }
 0x4ed   : > { %v3916_v59 = vpop.permute.xlu1 %3915  ;;  %v4149_v51 = vsel %vm2329_vm7, %v4117_v33, %v3536_v18 }
 0x4ee   : > { %v4278_v17 = vsel %vm4253_vm14, %v4245_v40, %v3916_v59 }
 0x4ef   : > { %v3538_v26 = vpop.permute.xlu0 %3537 }
 0x4f0   : > { %v4150_v18 = vsel %vm2329_vm7, %v4118_v14, %v3538_v26 }
 0x4f1   : > { %v3632_v61 = vpop.permute.xlu1 %3631 }
 0x4f3   : > { %v3918_v36 = vpop.permute.xlu0 %3917 }
 0x4f4   : > { %v4279_v24 = vsel %vm4253_vm14, %v4246_v8, %v3918_v36  ;;  %v4181_v36 = vsel %vm2395_vm10, %v4149_v51, %v3632_v61 }
 0x4f5   : > { %v4012_v10 = vpop.permute.xlu1 %4011 }
 0x4f6   : > { %v4311_v29 = vsel %vm4286_vm15, %v4278_v17, %v4012_v10 }
 0x4f7   : > { %v3348_v41 = vpop.permute.xlu0 %3347  ;;  %8753 = vmatprep.mubr.msk.f32.mxu0 %vm4335_vm11, %v4311_v29 }
 0x4f9   : > { %v3634_v20 = vpop.permute.xlu1 %3633 }
 0x4fa   : > { %v4182_v11 = vsel %vm2395_vm10, %v4150_v18, %v3634_v20 }
 0x4fb   : > { %v3728_v9 = vpop.permute.xlu0 %3727 }
 0x4fc   : > { %v4214_v40 = vsel %vm4187_vm13, %v4181_v36, %v3728_v9 }
 0x4fd   : > { %v4014_v38 = vpop.permute.xlu1 %4013 }
 0x4fe   : > { %v4312_v46 = vsel %vm4286_vm15, %v4279_v24, %v4014_v38 }
 0x4ff   : > { %v3350_v35 = vpop.permute.xlu0 %3349  ;;  %8754 = vmatmul.mubr.msk.f32.gmra.mxu0 %vm4335_vm11, %v4312_v46 }
 0x501   : > { %v3444_v6 = vpop.permute.xlu1 %3443 }
 0x503   : > { %v3730_v1 = vpop.permute.xlu0 %3729 }
 0x504   : > { %v4215_v12 = vsel %vm4187_vm13, %v4182_v11, %v3730_v1  ;;  %v4087_v1 = vsel %vm580_vm0, %v12365_v32, %v3348_v41 }
 0x505   : > { %v3824_v59 = vpop.permute.xlu1 %3823 }
 0x506   : > { %v4247_v10 = vsel %vm4220_vm12, %v4214_v40, %v3824_v59 }
 0x507   : > { %v3446_v3 = vpop.permute.xlu0 %3445 }
 0x509   : > { %v3540_v45 = vpop.permute.xlu1 %3539 }
 0x50b   : > { %v3826_v39 = vpop.permute.xlu0 %3825 }
 0x50c   : > { %v4248_v9 = vsel %vm4220_vm12, %v4215_v12, %v3826_v39  ;;  %v4119_v39 = vsel %vm2263_vm6, %v4087_v1, %v3444_v6 }
 0x50d   : > { %v3920_v55 = vpop.permute.xlu1 %3919  ;;  %v4151_v33 = vsel %vm2329_vm7, %v4119_v39, %v3540_v45 }
 0x50e   : > { %v4280_v29 = vsel %vm4253_vm14, %v4247_v10, %v3920_v55 }
 0x50f   : > { %v3542_v54 = vpop.permute.xlu0 %3541 }
 0x511   : > { %v3636_v37 = vpop.permute.xlu1 %3635 }
 0x512   : > { %v4183_v36 = vsel %vm2395_vm10, %v4151_v33, %v3636_v37  ;;  %v4689_v33 = vld [vmem:[%s15097_s9] sm:$0xff] }
 0x513   : > { %v3922_v17 = vpop.permute.xlu0 %3921  ;;  %8797 = vmatprep.mubr.f32.mxu1 %v4689_v33 }
 0x514   : > { %v4281_v8 = vsel %vm4253_vm14, %v4248_v9, %v3922_v17 }
 0x515   : > { %v4016_v30 = vpop.permute.xlu1 %4015 }
 0x516   : > { %v4313_v47 = vsel %vm4286_vm15, %v4280_v29, %v4016_v30  ;;  %v4088_v29 = vsel %vm580_vm0, %v12385_v4, %v3350_v35 }
 0x517   : > { %v3352_v53 = vpop.permute.xlu0 %3351  ;;  %8756 = vmatprep.mubr.msk.f32.mxu0 %vm4335_vm11, %v4313_v47  ;;  %v4120_v32 = vsel %vm2263_vm6, %v4088_v29, %v3446_v3 }
 0x518   : > { %v4152_v6 = vsel %vm2329_vm7, %v4120_v32, %v3542_v54  ;;  %v4089_v54 = vsel %vm580_vm0, %v12440_v34, %v3352_v53 }
 0x519   : > { %v3638_v61 = vpop.permute.xlu1 %3637 }
 0x51a   : > { %v4184_v37 = vsel %vm2395_vm10, %v4152_v6, %v3638_v61 }
 0x51b   : > { %v3732_v19 = vpop.permute.xlu0 %3731 }
 0x51c   : > { %v4216_v40 = vsel %vm4187_vm13, %v4183_v36, %v3732_v19 }
 0x51d   : > { %v4018_v24 = vpop.permute.xlu1 %4017 }
 0x51e   : > { %v4314_v44 = vsel %vm4286_vm15, %v4281_v8, %v4018_v24 }
 0x51f   : > { %v3354_v16 = vpop.permute.xlu0 %3353  ;;  %8757 = vmatmul.mubr.msk.f32.gmra.mxu0 %vm4335_vm11, %v4314_v44 }
 0x520   : > { %v4090_v9 = vsel %vm580_vm0, %v12460_v27, %v3354_v16 }
 0x521   : > { %v3448_v38 = vpop.permute.xlu1 %3447 }
 0x522   : > { %v4121_v61 = vsel %vm2263_vm6, %v4089_v54, %v3448_v38 }
 0x523   : > { %v3734_v7 = vpop.permute.xlu0 %3733 }
 0x524   : > { %v4217_v31 = vsel %vm4187_vm13, %v4184_v37, %v3734_v7 }
 0x525   : > { %v3828_v46 = vpop.permute.xlu1 %3827 }
 0x526   : > { %v4249_v10 = vsel %vm4220_vm12, %v4216_v40, %v3828_v46 }
 0x527   : > { %v3450_v26 = vpop.permute.xlu0 %3449 }
 0x528   : > { %v4122_v44 = vsel %vm2263_vm6, %v4090_v9, %v3450_v26 }
 0x529   : > { %v3544_v59 = vpop.permute.xlu1 %3543 }
 0x52a   : > { %v4153_v8 = vsel %vm2329_vm7, %v4121_v61, %v3544_v59 }
 0x52b   : > { %v3830_v55 = vpop.permute.xlu0 %3829 }
 0x52c   : > { %v4250_v18 = vsel %vm4220_vm12, %v4217_v31, %v3830_v55 }
 0x52d   : > { %v3924_v20 = vpop.permute.xlu1 %3923 }
 0x52e   : > { %v4282_v30 = vsel %vm4253_vm14, %v4249_v10, %v3924_v20 }
 0x52f   : > { %v3546_v42 = vpop.permute.xlu0 %3545 }
 0x530   : > { %v4154_v46 = vsel %vm2329_vm7, %v4122_v44, %v3546_v42 }
 0x531   : > { %v3640_v51 = vpop.permute.xlu1 %3639 }
 0x532   : > { %v4185_v7 = vsel %vm2395_vm10, %v4153_v8, %v3640_v51  ;;  %v12714_v51 = vpop.f32.mrf.mxu0 }
 0x533   : > { %v3926_v17 = vpop.permute.xlu0 %3925 }
 0x534   : > { %v4283_v4 = vsel %vm4253_vm14, %v4250_v18, %v3926_v17  ;;  %v12716_v36 = vpop.f32.mrf.mxu0 }
 0x535   : > { %v4020_v47 = vpop.permute.xlu1 %4019 }
 0x536   : > { %v4315_v41 = vsel %vm4286_vm15, %v4282_v30, %v4020_v47  ;;  %v12718_v40 = vpop.f32.mrf.mxu0 }
 0x537   : > { %v3642_v45 = vpop.permute.xlu0 %3641  ;;  %8759 = vmatprep.mubr.msk.f32.mxu0 %vm4335_vm11, %v4315_v41 }
 0x538   : > { %v4186_v34 = vsel %vm2395_vm10, %v4154_v46, %v3642_v45  ;;  %v12720_v17 = vpop.f32.mrf.mxu0 }
 0x539   : > { %v3736_v14 = vpop.permute.xlu1 %3735 }
 0x53a   : > { %v4218_v55 = vsel %vm4187_vm13, %v4185_v7, %v3736_v14  ;;  %v12722_v10 = vpop.f32.mrf.mxu0 }
 0x53b   : > { %v4022_v35 = vpop.permute.xlu0 %4021 }
 0x53c   : > { %v4316_v11 = vsel %vm4286_vm15, %v4283_v4, %v4022_v35  ;;  %v12724_v29 = vpop.f32.mrf.mxu0 }
 0x53d   : > { %v3738_v3 = vpop.permute.xlu1 %3737  ;;  %8760 = vmatmul.mubr.msk.f32.gmra.mxu0 %vm4335_vm11, %v4316_v11 }
 0x53e   : > { %v4219_v38 = vsel %vm4187_vm13, %v4186_v34, %v3738_v3  ;;  %v12726_v30 = vpop.f32.mrf.mxu0 }
 0x53f   : > { %v3832_v12 = vpop.permute.xlu0 %3831 }
 0x540   : > { %v4251_v53 = vsel %vm4220_vm12, %v4218_v55, %v3832_v12  ;;  %v12728_v47 = vpop.f32.mrf.mxu0 }
 0x541   : > { %v3834_v19 = vpop.permute.xlu1 %3833 }
 0x542   : > { %v4252_v59 = vsel %vm4220_vm12, %v4219_v38, %v3834_v19  ;;  %v8743_v32 = vpop.f32.mrf.mxu0 }
 0x543   : > { %v3928_v24 = vpop.permute.xlu0 %3927 }
 0x544   : > { %v4284_v27 = vsel %vm4253_vm14, %v4251_v53, %v3928_v24  ;;  %v12730_v41 = vpop.f32.mrf.mxu0 }
 0x545   : > { %v3930_v20 = vpop.permute.xlu1 %3929 }
 0x546   : > { %v4285_v1 = vsel %vm4253_vm14, %v4252_v59, %v3930_v20 }
 0x547   : > { %v4024_v16 = vpop.permute.xlu0 %4023 }
 0x548   : > { %v4317_v26 = vsel %vm4286_vm15, %v4284_v27, %v4024_v16 }
 0x549   : > { %v4026_v39 = vpop.permute.xlu1 %4025  ;;  %8762 = vmatprep.mubr.msk.f32.mxu0 %vm4335_vm11, %v4317_v26 }
 0x54a   : > { %v4318_v42 = vsel %vm4286_vm15, %v4285_v1, %v4026_v39 }
 0x54b   : > { %8763 = vmatmul.mubr.msk.f32.gmra.mxu0 %vm4335_vm11, %v4318_v42 }
 0x54c   : > { %8885 = vmatprep.mubr.f32.mxu0 %v4689_v33 }
 0x55f   : > { %v8746_v6 = vpop.f32.mrf.mxu0 }
 0x561   : > { %v4588_v45 = vpop.f32.mrf.mxu0 }
 0x57f   : > { %v8749_v37 = vpop.f32.mrf.mxu0 }
 0x580   : > { %v12790_v1 = vadd.f32 %v8749_v37, %v12293_v25  ;;  %v12808_v37 = vadd.f32 %v8746_v6, %v12293_v25  ;;  %v12826_v6 = vadd.f32 %v8743_v32, %v12293_v25  ;;  %v12845_v32 = vadd.f32 %v12726_v30, %v12293_v25 }
 0x581   : > { %v4598_v31 = vpop.f32.mrf.mxu0  ;;  %v12865_v30 = vadd.f32 %v12722_v10, %v12293_v25  ;;  %v12885_v10 = vadd.f32 %v12718_v40, %v12293_v25  ;;  %v12905_v40 = vadd.f32 %v12714_v51, %v12293_v25 }
 0x582   : > { %15215 = vst [vmem:[#allocation44_spill] sm:$0xff] %v12790_v1  ;;  %15217 = vst [vmem:[#allocation46_spill] sm:$0xff] %v12808_v37 }
 0x583   : > { %15219 = vst [vmem:[#allocation48_spill] sm:$0xff] %v12826_v6  ;;  %15221 = vst [vmem:[#allocation50_spill] sm:$0xff] %v12845_v32  ;;  %v12932_v51 = vmax.f32 %v12905_v40, %v12885_v10 }
 0x584   : > { %15223 = vst [vmem:[#allocation52_spill] sm:$0xff] %v12865_v30  ;;  %15225 = vst [vmem:[#allocation54_spill] sm:$0xff] %v12885_v10 }
 0x585   : > { %15227 = vst [vmem:[#allocation56_spill] sm:$0xff] %v12905_v40 }
 0x59f   : > { %v8752_v14 = vpop.f32.mrf.mxu0 }
 0x5a0   : > { %v12772_v27 = vadd.f32 %v8752_v14, %v12293_v25  ;;  %v12813_v14 = vadd.f32 %v12293_v25, %v4598_v31  ;;  %v12831_v31 = vadd.f32 %v12293_v25, %v4588_v45  ;;  %v12851_v45 = vadd.f32 %v12293_v25, %v12730_v41 }
 0x5a1   : > { %v4608_v18 = vpop.f32.mrf.mxu0  ;;  %v12871_v41 = vadd.f32 %v12293_v25, %v12728_v47  ;;  %v12891_v47 = vadd.f32 %v12293_v25, %v12724_v29  ;;  %v9159_v29 = vld [vmem:[%s15094_s6] ss:$0 sm:$0xff] }
 0x5a2   : > { %15213 = vst [vmem:[#allocation42_spill] sm:$0xff] %v12772_v27  ;;  %v12795_v39 = vadd.f32 %v12293_v25, %v4608_v18  ;;  %15218 = vst [vmem:[#allocation47_spill] sm:$0xff] %v12813_v14  ;;  %v12817_v18 = vmax.f32 %v12790_v1, %v12772_v27 }
 0x5a3   : > { %15220 = vst [vmem:[#allocation49_spill] sm:$0xff] %v12831_v31  ;;  %15222 = vst [vmem:[#allocation51_spill] sm:$0xff] %v12851_v45 }
 0x5a4   : > { %15216 = vst [vmem:[#allocation45_spill] sm:$0xff] %v12795_v39  ;;  %15224 = vst [vmem:[#allocation53_spill] sm:$0xff] %v12871_v41 }
 0x5a5   : > { %15226 = vst [vmem:[#allocation55_spill] sm:$0xff] %v12891_v47 }
 0x5bf   : > { %v8755_v4 = vpop.f32.mrf.mxu0 }
 0x5c0   : > { %v12756_v20 = vadd.f32 %v8755_v4, %v12293_v25  ;;  %v12821_v4 = vmin.f32 %v12790_v1, %v12772_v27 }
 0x5c1   : > { %v4618_v35 = vpop.f32.mrf.mxu0 }
 0x5c2   : > { %15211 = vst [vmem:[#allocation40_spill] sm:$0xff] %v12756_v20  ;;  %v12777_v16 = vadd.f32 %v12293_v25, %v4618_v35  ;;  %v12835_v35 = vmax.f32 %v12813_v14, %v12795_v39 }
 0x5c4   : > { %15214 = vst [vmem:[#allocation43_spill] sm:$0xff] %v12777_v16 }
 0x5df   : > { %v8758_v11 = vpop.f32.mrf.mxu0 }
 0x5e0   : > { %v12739_v8 = vadd.f32 %v8758_v11, %v12293_v25  ;;  %v12839_v11 = vmin.f32 %v12813_v14, %v12795_v39  ;;  %v4695_v39 = vld [vmem:[%s15097_s9 + $0x30] sm:$0xff] }
 0x5e1   : > { %v4628_v3 = vpop.f32.mrf.mxu0 }
 0x5e2   : > { %15208 = vst [vmem:[#allocation37_spill] sm:$0xff] %v12739_v8  ;;  %v12759_v34 = vadd.f32 %v12293_v25, %v4628_v3  ;;  %v12781_v59 = vmax.f32 %v12756_v20, %v12739_v8  ;;  %v12785_v26 = vmin.f32 %v12756_v20, %v12739_v8  ;;  %v12855_v3 = vmax.f32 %v12826_v6, %v12808_v37  ;;  %v4691_v8 = vld [vmem:[%s15097_s9 + $0x10] sm:$0xff]  ;;  %v4693_v20 = vld [vmem:[%s15097_s9 + $0x20] sm:$0xff] }
 0x5e4   : > { %15212 = vst [vmem:[#allocation41_spill] sm:$0xff] %v12759_v34  ;;  %v12799_v42 = vmax.f32 %v12777_v16, %v12759_v34  ;;  %v12803_v33 = vmin.f32 %v12777_v16, %v12759_v34  ;;  %v4690_v34 = vld [vmem:[%s15097_s9 + $0x8] sm:$0xff]  ;;  %v4692_v16 = vld [vmem:[%s15097_s9 + $0x18] sm:$0xff] }
 0x5fd   : > { %v8761_v12 = vpop.f32.mrf.mxu0 }
 0x5fe   : > { %v12733_v61 = vadd.f32 %v8761_v12, %v12293_v25  ;;  %v12859_v12 = vmin.f32 %v12826_v6, %v12808_v37 }
 0x5ff   : > { %v4638_v54 = vpop.f32.mrf.mxu0 }
 0x600   : > { %15206 = vst [vmem:[#allocation35_spill] sm:$0xff] %v12733_v61  ;;  %v12742_v44 = vadd.f32 %v12293_v25, %v4638_v54  ;;  %v12875_v54 = vmax.f32 %v12851_v45, %v12831_v31 }
 0x602   : > { %15209 = vst [vmem:[#allocation38_spill] sm:$0xff] %v12742_v44 }
 0x60b   : > { %v8764_v19 = vpop.f32.mrf.mxu0 }
 0x60c   : > { %v12736_v9 = vadd.f32 %v8764_v19, %v12293_v25  ;;  %v12879_v19 = vmin.f32 %v12851_v45, %v12831_v31 }
 0x60d   : > { %v4648_v24 = vpop.f32.mrf.mxu0 }
 0x60e   : > { %15207 = vst [vmem:[#allocation36_spill] sm:$0xff] %v12736_v9  ;;  %v12746_v7 = vmax.f32 %v12733_v61, %v12736_v9  ;;  %v12750_v46 = vmin.f32 %v12733_v61, %v12736_v9  ;;  %v12753_v55 = vadd.f32 %v12293_v25, %v4648_v24  ;;  %v12895_v24 = vmax.f32 %v12865_v30, %v12845_v32 }
 0x60f   : > { %v12913_v61 = vadd.f32 %v9159_v29, %v12720_v17  ;;  %v12921_v9 = vmin.f32 %v12891_v47, %v12871_v41  ;;  %v12928_v25 = vadd.f32 %v9159_v29, %v12716_v36  ;;  %v12936_v17 = vmin.f32 %v12905_v40, %v12885_v10 }
 0x610   : > { %15210 = vst [vmem:[#allocation39_spill] sm:$0xff] %v12753_v55  ;;  %v12763_v53 = vmax.f32 %v12742_v44, %v12753_v55  ;;  %v12767_v38 = vmin.f32 %v12742_v44, %v12753_v55  ;;  %8765 = vmatprep.subr.mxu1 %v12746_v7  ;;  %8853 = vmatprep.subr.mxu0 %v12750_v46 }
 0x611   : > { %8766 = vmatpush3.msra.mxu1 %v12746_v7  ;;  %8854 = vmatpush3.msra.mxu0 %v12750_v46  ;;  %v12899_v44 = vmin.f32 %v12865_v30, %v12845_v32  ;;  %15228 = vst [vmem:[#allocation57_spill] sm:$0xff] %v12913_v61  ;;  %v12917_v55 = vmax.f32 %v12891_v47, %v12871_v41  ;;  %15229 = vst [vmem:[#allocation58_spill] sm:$0xff] %v12928_v25 }
 0x612   : > { %8767 = vmatprep.subr.mxu1 %v12763_v53  ;;  %8855 = vmatprep.subr.mxu0 %v12767_v38  ;;  %v12944_v36 = vmax.f32 %v12928_v25, %v12913_v61  ;;  %v12948_v29 = vmin.f32 %v12928_v25, %v12913_v61 }
 0x613   : > { %8768 = vmatpush3.msra.mxu1 %v12763_v53  ;;  %8856 = vmatpush3.msra.mxu0 %v12767_v38 }
 0x614   : > { %8769 = vmatprep.subr.mxu1 %v12781_v59  ;;  %8857 = vmatprep.subr.mxu0 %v12785_v26 }
 0x615   : > { %8770 = vmatpush3.msra.mxu1 %v12781_v59  ;;  %8858 = vmatpush3.msra.mxu0 %v12785_v26 }
 0x616   : > { %8771 = vmatprep.subr.mxu1 %v12799_v42  ;;  %8859 = vmatprep.subr.mxu0 %v12803_v33 }
 0x617   : > { %8772 = vmatpush3.msra.mxu1 %v12799_v42  ;;  %8860 = vmatpush3.msra.mxu0 %v12803_v33 }
 0x618   : > { %8773 = vmatprep.subr.mxu1 %v12817_v18  ;;  %8861 = vmatprep.subr.mxu0 %v12821_v4 }
 0x619   : > { %8774 = vmatpush3.msra.mxu1 %v12817_v18  ;;  %8862 = vmatpush3.msra.mxu0 %v12821_v4 }
 0x61a   : > { %8775 = vmatprep.subr.mxu1 %v12835_v35  ;;  %8863 = vmatprep.subr.mxu0 %v12839_v11 }
 0x61b   : > { %8776 = vmatpush3.msra.mxu1 %v12835_v35  ;;  %8864 = vmatpush3.msra.mxu0 %v12839_v11 }
 0x61c   : > { %8777 = vmatprep.subr.mxu1 %v12855_v3  ;;  %8865 = vmatprep.subr.mxu0 %v12859_v12 }
 0x61d   : > { %8778 = vmatpush3.msra.mxu1 %v12855_v3  ;;  %8866 = vmatpush3.msra.mxu0 %v12859_v12 }
 0x61e   : > { %8779 = vmatprep.subr.mxu1 %v12875_v54  ;;  %8867 = vmatprep.subr.mxu0 %v12879_v19 }
 0x61f   : > { %8780 = vmatpush3.msra.mxu1 %v12875_v54  ;;  %8868 = vmatpush3.msra.mxu0 %v12879_v19 }
 0x620   : > { %8781 = vmatprep.subr.mxu1 %v12895_v24  ;;  %8869 = vmatprep.subr.mxu0 %v12899_v44 }
 0x621   : > { %8782 = vmatpush3.msra.mxu1 %v12895_v24  ;;  %8870 = vmatpush3.msra.mxu0 %v12899_v44 }
 0x622   : > { %8783 = vmatprep.subr.mxu1 %v12917_v55  ;;  %8871 = vmatprep.subr.mxu0 %v12921_v9 }
 0x623   : > { %8784 = vmatpush3.msra.mxu1 %v12917_v55  ;;  %8872 = vmatpush3.msra.mxu0 %v12921_v9 }
 0x624   : > { %8785 = vmatprep.subr.mxu1 %v12932_v51  ;;  %8873 = vmatprep.subr.mxu0 %v12936_v17 }
 0x625   : > { %8786 = vmatpush3.msra.mxu1 %v12932_v51  ;;  %8874 = vmatpush3.msra.mxu0 %v12936_v17 }
 0x626   : > { %8787 = vmatprep.subr.mxu1 %v12944_v36  ;;  %8875 = vmatprep.subr.mxu0 %v12948_v29 }
 0x627   : > { %8788 = vmatpush3.msra.mxu1 %v12944_v36  ;;  %8876 = vmatpush3.msra.mxu0 %v12948_v29 }
 0x628   : > { %8789 = vmatprep.subr.mxu1 %v12499_v52  ;;  %8877 = vmatprep.subr.mxu0 %v12503_v50 }
 0x629   : > { %8790 = vmatpush3.msra.mxu1 %v12499_v52  ;;  %8878 = vmatpush3.msra.mxu0 %v12503_v50 }
 0x62a   : > { %8791 = vmatprep.subr.mxu1 %v12511_v48  ;;  %8879 = vmatprep.subr.mxu0 %v12515_v0 }
 0x62b   : > { %8792 = vmatpush3.msra.mxu1 %v12511_v48  ;;  %8880 = vmatpush3.msra.mxu0 %v12515_v0 }
 0x62c   : > { %8793 = vmatprep.subr.mxu1 %v12320_v57  ;;  %8881 = vmatprep.subr.mxu0 %v12324_v56 }
 0x62d   : > { %8794 = vmatpush3.msra.mxu1 %v12320_v57  ;;  %8882 = vmatpush3.msra.mxu0 %v12324_v56 }
 0x62e   : > { %8795 = vmatprep.subr.mxu1 %v12332_v23  ;;  %8883 = vmatprep.subr.mxu0 %v12336_v28 }
 0x62f   : > { %8796 = vmatpush3.msra.mxu1 %v12332_v23  ;;  %8884 = vmatpush3.msra.mxu0 %v12336_v28 }
 0x630   : > { %8809 = vmatprep.subr.mxu1 %v12746_v7  ;;  %8798 = vmatmul.mubr.f32.vlgmr.msra.gmra.mxu1 %v4690_v34 }
 0x631   : > { %8810 = vmatpush3.msra.mxu1 %v12746_v7  ;;  %8800 = vmatprep.mubr.f32.mxu1 %v4691_v8  ;;  %v4694_v7 = vld [vmem:[%s15097_s9 + $0x28] sm:$0xff] }
 0x632   : > { %8811 = vmatprep.subr.mxu1 %v12763_v53  ;;  %8886 = vmatmul.mubr.f32.vlgmr.msra.gmra.mxu0 %v4690_v34  ;;  %v4697_v34 = vld [vmem:[%s15098_s10] sm:$0xff] }
 0x633   : > { %8812 = vmatpush3.msra.mxu1 %v12763_v53  ;;  %8888 = vmatprep.mubr.f32.mxu0 %v4691_v8  ;;  %v4696_v8 = vld [vmem:[%s15097_s9 + $0x38] sm:$0xff]  ;;  %v5198_v53 = vld [vmem:[#allocation4 + $0x10] sm:$0xff] }
 0x634   : > { %8813 = vmatprep.subr.mxu1 %v12781_v59  ;;  %8801 = vmatmul.mubr.f32.gmra.mxu1 %v4692_v16 }
 0x635   : > { %8814 = vmatpush3.msra.mxu1 %v12781_v59  ;;  %8803 = vmatprep.mubr.f32.mxu1 %v4693_v20 }
 0x636   : > { %8815 = vmatprep.subr.mxu1 %v12799_v42  ;;  %8889 = vmatmul.mubr.f32.gmra.mxu0 %v4692_v16 }
 0x637   : > { %8816 = vmatpush3.msra.mxu1 %v12799_v42  ;;  %8891 = vmatprep.mubr.f32.mxu0 %v4693_v20  ;;  %v4699_v20 = vld [vmem:[%s15098_s10 + $0x10] sm:$0xff] }
 0x638   : > { %8817 = vmatprep.subr.mxu1 %v12817_v18  ;;  %8804 = vmatmul.mubr.f32.gmra.mxu1 %v4694_v7 }
 0x639   : > { %8818 = vmatpush3.msra.mxu1 %v12817_v18  ;;  %8806 = vmatprep.mubr.f32.mxu1 %v4695_v39 }
 0x63a   : > { %8819 = vmatprep.subr.mxu1 %v12835_v35  ;;  %8892 = vmatmul.mubr.f32.gmra.mxu0 %v4694_v7 }
 0x63b   : > { %8820 = vmatpush3.msra.mxu1 %v12835_v35  ;;  %8894 = vmatprep.mubr.f32.mxu0 %v4695_v39 }
 0x63c   : > { %8821 = vmatprep.subr.mxu1 %v12855_v3  ;;  %8807 = vmatmul.mubr.f32.gmra.mxu1 %v4696_v8 }
 0x63d   : > { %8822 = vmatpush3.msra.mxu1 %v12855_v3  ;;  %8841 = vmatprep.mubr.f32.mxu1 %v4697_v34 }
 0x63e   : > { %8823 = vmatprep.subr.mxu1 %v12875_v54  ;;  %8895 = vmatmul.mubr.f32.gmra.mxu0 %v4696_v8 }
 0x63f   : > { %8824 = vmatpush3.msra.mxu1 %v12875_v54 }
 0x640   : > { %8825 = vmatprep.subr.mxu1 %v12895_v24 }
 0x641   : > { %8826 = vmatpush3.msra.mxu1 %v12895_v24 }
 0x642   : > { %8827 = vmatprep.subr.mxu1 %v12917_v55 }
 0x643   : > { %8828 = vmatpush3.msra.mxu1 %v12917_v55  ;;  %v4698_v55 = vld [vmem:[%s15098_s10 + $0x8] sm:$0xff] }
 0x644   : > { %8829 = vmatprep.subr.mxu1 %v12932_v51 }
 0x645   : > { %8830 = vmatpush3.msra.mxu1 %v12932_v51 }
 0x646   : > { %8831 = vmatprep.subr.mxu1 %v12944_v36 }
 0x647   : > { %8832 = vmatpush3.msra.mxu1 %v12944_v36 }
 0x648   : > { %8833 = vmatprep.subr.mxu1 %v12499_v52 }
 0x649   : > { %8834 = vmatpush3.msra.mxu1 %v12499_v52  ;;  %v4701_v52 = vld [vmem:[%s15098_s10 + $0x20] sm:$0xff] }
 0x64a   : > { %8835 = vmatprep.subr.mxu1 %v12511_v48 }
 0x64b   : > { %8836 = vmatpush3.msra.mxu1 %v12511_v48  ;;  %v4703_v48 = vld [vmem:[%s15098_s10 + $0x30] sm:$0xff] }
 0x64c   : > { %8837 = vmatprep.subr.mxu1 %v12320_v57 }
 0x64d   : > { %8838 = vmatpush3.msra.mxu1 %v12320_v57  ;;  %v4700_v57 = vld [vmem:[%s15098_s10 + $0x18] sm:$0xff] }
 0x64e   : > { %8839 = vmatprep.subr.mxu1 %v12332_v23 }
 0x64f   : > { %8840 = vmatpush3.msra.mxu1 %v12332_v23  ;;  %v4702_v23 = vld [vmem:[%s15098_s10 + $0x28] sm:$0xff] }
 0x650   : > { %8842 = vmatmul.mubr.f32.vlgmr.msra.gmra.mxu1 %v4698_v55  ;;  %8897 = vmatprep.subr.mxu1 %v12750_v46 }
 0x651   : > { %8898 = vmatpush3.msra.mxu1 %v12750_v46  ;;  %8844 = vmatprep.mubr.f32.mxu1 %v4699_v20  ;;  %v4704_v46 = vld [vmem:[%s15098_s10 + $0x38] sm:$0xff] }
 0x652   : > { %8899 = vmatprep.subr.mxu1 %v12767_v38 }
 0x653   : > { %8900 = vmatpush3.msra.mxu1 %v12767_v38  ;;  %v5283_v38 = vrot.slane %v5198_v53, 1 }
 0x654   : > { %8901 = vmatprep.subr.mxu1 %v12785_v26  ;;  %8845 = vmatmul.mubr.f32.gmra.mxu1 %v4700_v57 }
 0x655   : > { %8902 = vmatpush3.msra.mxu1 %v12785_v26  ;;  %8847 = vmatprep.mubr.f32.mxu1 %v4701_v52 }
 0x656   : > { %8903 = vmatprep.subr.mxu1 %v12803_v33 }
 0x657   : > { %8904 = vmatpush3.msra.mxu1 %v12803_v33 }
 0x658   : > { %8905 = vmatprep.subr.mxu1 %v12821_v4  ;;  %8848 = vmatmul.mubr.f32.gmra.mxu1 %v4702_v23 }
 0x659   : > { %8906 = vmatpush3.msra.mxu1 %v12821_v4  ;;  %8850 = vmatprep.mubr.f32.mxu1 %v4703_v48 }
 0x65a   : > { %8907 = vmatprep.subr.mxu1 %v12839_v11 }
 0x65b   : > { %8908 = vmatpush3.msra.mxu1 %v12839_v11 }
 0x65c   : > { %8909 = vmatprep.subr.mxu1 %v12859_v12  ;;  %8851 = vmatmul.mubr.f32.gmra.mxu1 %v4704_v46 }
 0x65d   : > { %8910 = vmatpush3.msra.mxu1 %v12859_v12  ;;  %8929 = vmatprep.mubr.f32.mxu1 %v4697_v34 }
 0x65e   : > { %8911 = vmatprep.subr.mxu1 %v12879_v19 }
 0x65f   : > { %8912 = vmatpush3.msra.mxu1 %v12879_v19 }
 0x660   : > { %8913 = vmatprep.subr.mxu1 %v12899_v44 }
 0x661   : > { %8914 = vmatpush3.msra.mxu1 %v12899_v44  ;;  %v13085_v44 = vld [vmem:[#allocation4 + $0xe0] sm:$0xff] }
 0x662   : > { %8915 = vmatprep.subr.mxu1 %v12921_v9 }
 0x663   : > { %8916 = vmatpush3.msra.mxu1 %v12921_v9  ;;  %v5223_v9 = vld [vmem:[#allocation4 + $0xd8] sm:$0xff] }
 0x664   : > { %8917 = vmatprep.subr.mxu1 %v12936_v17 }
 0x665   : > { %8918 = vmatpush3.msra.mxu1 %v12936_v17 }
 0x666   : > { %8919 = vmatprep.subr.mxu1 %v12948_v29 }
 0x667   : > { %8920 = vmatpush3.msra.mxu1 %v12948_v29 }
 0x668   : > { %8921 = vmatprep.subr.mxu1 %v12503_v50 }
 0x669   : > { %8922 = vmatpush3.msra.mxu1 %v12503_v50  ;;  %v13083_v50 = vld [vmem:[#allocation4 + $0x8] sm:$0xff] }
 0x66a   : > { %8923 = vmatprep.subr.mxu1 %v12515_v0  ;;  %5324 = vrot.lane.b32.xlu0 %v13083_v50, %s9173_s27 }
 0x66b   : > { %8924 = vmatpush3.msra.mxu1 %v12515_v0  ;;  %v5318_v0 = vrot.slane %v13085_v44, 7 }
 0x66c   : > { %8925 = vmatprep.subr.mxu1 %v12324_v56 }
 0x66d   : > { %8926 = vmatpush3.msra.mxu1 %v12324_v56  ;;  %v5317_v56 = vrot.slane %v5223_v9, 7 }
 0x66e   : > { %8927 = vmatprep.subr.mxu1 %v12336_v28 }
 0x66f   : > { %8928 = vmatpush3.msra.mxu1 %v12336_v28  ;;  %v5282_v28 = vrot.slane %v13083_v50, 1  ;;  %v5319_v16 = vsel %vm1160_vm3, %v5317_v56, %v5318_v0 }
 0x670   : > { %8930 = vmatmul.mubr.f32.vlgmr.msra.gmra.mxu1 %v4698_v55  ;;  %5458 = vrot.lane.b32.xlu1 %v5319_v16, %s9182_s28 }
 0x671   : > { %8932 = vmatprep.mubr.f32.mxu1 %v4699_v20  ;;  %v5284_v59 = vsel %vm1289_vm2, %v5282_v28, %v5283_v38 }
 0x672   : > { %5348 = vrot.lane.b32.xlu0 %v5284_v59, %s15176_s30 }
 0x674   : > { %8933 = vmatmul.mubr.f32.gmra.mxu1 %v4700_v57  ;;  %5482 = vrot.lane.b32.xlu1 %v13085_v44, %s9181_s29 }
 0x675   : > { %8935 = vmatprep.mubr.f32.mxu1 %v4701_v52 }
 0x678   : > { %8936 = vmatmul.mubr.f32.gmra.mxu1 %v4702_v23 }
 0x679   : > { %8938 = vmatprep.mubr.f32.mxu1 %v4703_v48 }
 0x67c   : > { %8939 = vmatmul.mubr.f32.gmra.mxu1 %v4704_v46 }
 0x6f0   : > { %v8799_v26 = vpop.f32.mrf.mxu1 }
 0x6f2   : > { %v4771_v39 = vpop.f32.mrf.mxu1  ;;  %v8887_v51 = vpop.f32.mrf.mxu0 }
 0x6f4   : > { %v8802_v42 = vpop.f32.mrf.mxu1  ;;  %v4989_v36 = vpop.f32.mrf.mxu0 }
 0x6f6   : > { %v4781_v33 = vpop.f32.mrf.mxu1  ;;  %v8890_v29 = vpop.f32.mrf.mxu0 }
 0x6f8   : > { %v8805_v18 = vpop.f32.mrf.mxu1  ;;  %v4999_v8 = vpop.f32.mrf.mxu0 }
 0x6fa   : > { %v4791_v4 = vpop.f32.mrf.mxu1  ;;  %v8893_v20 = vpop.f32.mrf.mxu0 }
 0x6fc   : > { %v8808_v35 = vpop.f32.mrf.mxu1  ;;  %v5009_v0 = vpop.f32.mrf.mxu0 }
 0x6fe   : > { %v13097_v11 = vpop.f32.mrf.mxu1 }
 0x710   : > { %v8843_v3 = vpop.f32.mrf.mxu1 }
 0x711   : > { %v4916_v57 = vmax.f32 %v8799_v26, %v8843_v3  ;;  %v8896_v26 = vpop.f32.mrf.mxu0 }
 0x712   : > { %v4876_v12 = vpop.f32.mrf.mxu1 }
 0x713   : > { %v4915_v48 = vmax.f32 %v4771_v39, %v4876_v12 }
 0x714   : > { %v8846_v54 = vpop.f32.mrf.mxu1 }
 0x715   : > { %v4918_v53 = vmax.f32 %v8802_v42, %v8846_v54 }
 0x716   : > { %v4886_v19 = vpop.f32.mrf.mxu1 }
 0x717   : > { %v4917_v27 = vmax.f32 %v4781_v33, %v4886_v19 }
 0x718   : > { %v8849_v24 = vpop.f32.mrf.mxu1 }
 0x719   : > { %v4920_v3 = vmax.f32 %v8805_v18, %v8849_v24 }
 0x71a   : > { %v4896_v17 = vpop.f32.mrf.mxu1 }
 0x71b   : > { %v4919_v42 = vmax.f32 %v4791_v4, %v4896_v17  ;;  %v5204_v4 = vld [vmem:[#allocation4 + $0x40] sm:$0xff] }
 0x71c   : > { %v8852_v7 = vpop.f32.mrf.mxu1 }
 0x71e   : > { %v4906_v34 = vpop.f32.mrf.mxu1 }
 0x730   : > { %v8931_v55 = vpop.f32.mrf.mxu1 }
 0x731   : > { %v5134_v52 = vmin.f32 %v8887_v51, %v8931_v55  ;;  %v5019_v55 = vpop.f32.mrf.mxu0 }
 0x732   : > { %v5094_v23 = vpop.f32.mrf.mxu1 }
 0x733   : > { %v5142_v46 = vadd.f32 %v5134_v52, %v4916_v57  ;;  %v5133_v9 = vmin.f32 %v4989_v36, %v5094_v23  ;;  %v4922_v57 = vmax.f32 %v8808_v35, %v8852_v7  ;;  %v5289_v23 = vrot.slane %v5204_v4, 1 }
 0x734   : > { %v8934_v56 = vpop.f32.mrf.mxu1 }
 0x735   : > { %v5150_v28 = vmax.f32 %v5142_v46, 0.0  ;;  %v5141_v38 = vadd.f32 %v5133_v9, %v4915_v48  ;;  %v5136_v16 = vmin.f32 %v8890_v29, %v8934_v56  ;;  %v5199_v56 = vld [vmem:[#allocation4 + $0x18] sm:$0xff] }
 0x736   : > { %v5104_v59 = vpop.f32.mrf.mxu1 }
 0x737   : > { %5189 = vst.msk [vmem:[#allocation4 + $0x38] sm:$0xff] %vm580_vm0, %v5150_v28  ;;  %v5149_v14 = vmax.f32 %v5141_v38, 0.0  ;;  %v5144_v1 = vadd.f32 %v5136_v16, %v4918_v53  ;;  %v5135_v31 = vmin.f32 %v4999_v8, %v5104_v59  ;;  %v5245_v38 = vrot.slane %v5199_v56, 7  ;;  %v5581_v56 = vld [vmem:[%s15095_s7 + $0x8] sm:$0xff] }
 0x738   : > { %v8937_v37 = vpop.f32.mrf.mxu1 }
 0x739   : > { %5188 = vst.msk [vmem:[#allocation4 + $0x20] sm:$0xff] %vm580_vm0, %v5149_v14  ;;  %v5152_v39 = vmax.f32 %v5144_v1, 0.0  ;;  %v5143_v12 = vadd.f32 %v5135_v31, %v4917_v27  ;;  %v5138_v51 = vmin.f32 %v8893_v20, %v8937_v37  ;;  %v4921_v27 = vmax.f32 %v13097_v11, %v4906_v34  ;;  %v5202_v34 = vld [vmem:[#allocation4 + $0x30] sm:$0xff] }
 0x73a   : > { %v5114_v36 = vpop.f32.mrf.mxu1  ;;  %v5248_v46 = vrot.slane %v5202_v34, 7  ;;  %v5582_v34 = vld [vmem:[%s15095_s7 + $0x10] sm:$0xff] }
 0x73b   : > { %5191 = vst.msk [vmem:[#allocation4 + $0x68] sm:$0xff] %vm580_vm0, %v5152_v39  ;;  %v5151_v54 = vmax.f32 %v5143_v12, 0.0  ;;  %v5146_v29 = vadd.f32 %v5138_v51, %v4920_v3  ;;  %v5137_v33 = vmin.f32 %v5009_v0, %v5114_v36  ;;  %v5210_v12 = vld [vmem:[#allocation4 + $0x70] sm:$0xff] }
 0x73c   : > { %v8940_v19 = vpop.f32.mrf.mxu1 }
 0x73d   : > { %5190 = vst.msk [vmem:[#allocation4 + $0x50] sm:$0xff] %vm580_vm0, %v5151_v54  ;;  %v5154_v8 = vmax.f32 %v5146_v29, 0.0  ;;  %v5145_v52 = vadd.f32 %v5137_v33, %v4919_v42  ;;  %v5140_v18 = vmin.f32 %v8896_v26, %v8940_v19  ;;  %v5208_v26 = vld [vmem:[#allocation4 + $0x60] sm:$0xff]  ;;  %v5295_v42 = vrot.slane %v5210_v12, 1  ;;  %v5201_v54 = vld [vmem:[#allocation4 + $0x28] sm:$0xff] }
 0x73e   : > { %v5124_v24 = vpop.f32.mrf.mxu1  ;;  %v5203_v14 = vld [vmem:[#allocation4 + $0x38] sm:$0xff]  ;;  %v5254_v3 = vrot.slane %v5208_v26, 7  ;;  %v5286_v19 = vrot.slane %v5201_v54, 1 }
 0x73f   : > { %5193 = vst.msk [vmem:[#allocation4 + $0x98] sm:$0xff] %vm580_vm0, %v5154_v8  ;;  %v5153_v1 = vmax.f32 %v5145_v52, 0.0  ;;  %v5148_v37 = vadd.f32 %v5140_v18, %v4922_v57  ;;  %v5139_v31 = vmin.f32 %v5019_v55, %v5124_v24  ;;  %5398 = vrot.lane.b32.xlu0 %v5203_v14, %s15165_s21  ;;  %5328 = vrot.lane.b32.xlu1 %v5203_v14, %s9173_s27  ;;  %v5288_v20 = vrot.slane %v5203_v14, 1  ;;  %v5207_v55 = vld [vmem:[#allocation4 + $0x58] sm:$0xff]  ;;  %v5205_v24 = vld [vmem:[#allocation4 + $0x48] sm:$0xff] }
 0x740   : > { %v5200_v7 = vld [vmem:[#allocation4 + $0x20] sm:$0xff]  ;;  %v5249_v9 = vrot.slane %v5203_v14, 7  ;;  %v5292_v18 = vrot.slane %v5207_v55, 1 }
 0x741   : > { %5192 = vst.msk [vmem:[#allocation4 + $0x80] sm:$0xff] %vm580_vm0, %v5153_v1  ;;  %v5156_v35 = vmax.f32 %v5148_v37, 0.0  ;;  %v5147_v17 = vadd.f32 %v5139_v31, %v4921_v27  ;;  %v5290_v48 = vsel %vm1289_vm2, %v5288_v20, %v5289_v23  ;;  %v5246_v0 = vrot.slane %v5200_v7, 7  ;;  %v5588_v37 = vld [vmem:[%s15095_s7 + $0x40] sm:$0xff]  ;;  %v5587_v31 = vld [vmem:[%s15095_s7 + $0x38] sm:$0xff] }
 0x742   : > { %v13116_v53 = vsel %vm1160_vm3, %v5248_v46, %v5249_v9  ;;  %v5209_v28 = vld [vmem:[#allocation4 + $0x68] sm:$0xff]  ;;  %v5285_v29 = vrot.slane %v5200_v7, 1  ;;  %v5251_v27 = vrot.slane %v5205_v24, 7  ;;  %8941 = vmatprep.subr.mxu0 %v5588_v37  ;;  %v5583_v23 = vld [vmem:[%s15095_s7 + $0x18] sm:$0xff]  ;;  %v5216_v9 = vld [vmem:[#allocation4 + $0xa0] sm:$0xff] }
 0x743   : > { %5195 = vst.msk [vmem:[#allocation4 + $0xc8] sm:$0xff] %vm580_vm0, %v5156_v35  ;;  %v5155_v11 = vmax.f32 %v5147_v17, 0.0  ;;  %5468 = vrot.lane.b32.xlu1 %v5203_v14, %s9181_s29  ;;  %5396 = vrot.lane.b32.xlu0 %v5200_v7, %s15165_s21  ;;  %v13122_v16 = vsel %vm1160_vm3, %v5245_v38, %v5246_v0  ;;  %v5255_v39 = vrot.slane %v5209_v28, 7  ;;  %v5294_v36 = vrot.slane %v5209_v28, 1  ;;  %v5586_v35 = vld [vmem:[%s15095_s7 + $0x30] sm:$0xff]  ;;  %v5585_v17 = vld [vmem:[%s15095_s7 + $0x28] sm:$0xff] }
 0x744   : > { %v5206_v59 = vld [vmem:[#allocation4 + $0x50] sm:$0xff]  ;;  %v5287_v57 = vsel %vm1289_vm2, %v5285_v29, %v5286_v19  ;;  %8942 = vmatpush3.msra.mxu0 %v5588_v37  ;;  %v5301_v38 = vrot.slane %v5216_v9, 1 }
 0x745   : > { %5194 = vst.msk [vmem:[#allocation4 + $0xb0] sm:$0xff] %vm580_vm0, %v5155_v11  ;;  %v13133_v51 = vsel %vm1160_vm3, %v5254_v3, %v5255_v39  ;;  %v5296_v33 = vsel %vm1289_vm2, %v5294_v36, %v5295_v42  ;;  %v5291_v52 = vrot.slane %v5206_v59, 1  ;;  %v5252_v1 = vrot.slane %v5206_v59, 7  ;;  %8943 = vmatprep.subr.mxu0 %v5587_v31  ;;  %v5214_v11 = vld [vmem:[#allocation4 + $0x90] sm:$0xff]  ;;  %v5213_v39 = vld [vmem:[#allocation4 + $0x88] sm:$0xff]  ;;  %v5211_v42 = vld [vmem:[#allocation4 + $0x78] sm:$0xff] }
 0x746   : > { %v5215_v8 = vld [vmem:[#allocation4 + $0x98] sm:$0xff]  ;;  %8944 = vmatpush3.msra.mxu0 %v5587_v31  ;;  %v5298_v36 = vrot.slane %v5213_v39, 1  ;;  %v5257_v29 = vrot.slane %v5211_v42, 7  ;;  %v5222_v24 = vld [vmem:[#allocation4 + $0xd0] sm:$0xff] }
 0x747   : > { %5422 = vrot.lane.b32.xlu0 %v5290_v48, %s9180_s24  ;;  %5326 = vrot.lane.b32.xlu1 %v5200_v7, %s9173_s27  ;;  %v5293_v14 = vsel %vm1289_vm2, %v5291_v52, %v5292_v18  ;;  %v13154_v4 = vsel %vm1160_vm3, %v5251_v27, %v5252_v1  ;;  %v5584_v7 = vld [vmem:[%s15095_s7 + $0x20] sm:$0xff]  ;;  %v5261_v46 = vrot.slane %v5215_v8, 7  ;;  %v5313_v1 = vrot.slane %v5222_v24, 1 }
 0x748   : > { %8945 = vmatprep.subr.mxu0 %v5586_v35  ;;  %v5212_v20 = vld [vmem:[#allocation4 + $0x80] sm:$0xff]  ;;  %v5243_v24 = vrot.slane %v13083_v50, 7 }
 0x749   : > { %8946 = vmatpush3.msra.mxu0 %v5586_v35  ;;  %v5297_v12 = vrot.slane %v5212_v20, 1  ;;  %v5217_v35 = vld [vmem:[#allocation4 + $0xa8] sm:$0xff] }
 0x74a   : > { %8947 = vmatprep.subr.mxu0 %v5585_v17  ;;  %v5221_v3 = vld [vmem:[#allocation4 + $0xc8] sm:$0xff] }
 0x74b   : > { %5374 = vrot.lane.b32.xlu1 %v13116_v53, %s15160_s22  ;;  %5332 = vrot.lane.b32.xlu0 %v5209_v28, %s9173_s27  ;;  %v5299_v54 = vsel %vm1289_vm2, %v5297_v12, %v5298_v36  ;;  %v5312_v27 = vrot.slane %v5221_v3, 1 }
 0x74c   : > { %8948 = vmatpush3.msra.mxu0 %v5585_v17  ;;  %v5218_v55 = vld [vmem:[#allocation4 + $0xb0] sm:$0xff]  ;;  %v13223_v17 = vpop.permute.xlu1 %5458 }
 0x74d   : > { %8949 = vmatprep.subr.mxu0 %v5584_v7  ;;  %v5303_v37 = vrot.slane %v5218_v55, 1 }
 0x74e   : > { %8950 = vmatpush3.msra.mxu0 %v5584_v7  ;;  %v5314_v7 = vsel %vm1289_vm2, %v5312_v27, %v5313_v1 }
 0x74f   : > { %5352 = vrot.lane.b32.xlu1 %v5290_v48, %s15176_s30  ;;  %5372 = vrot.lane.b32.xlu0 %v13122_v16, %s15160_s22 }
 0x750   : > { %8951 = vmatprep.subr.mxu0 %v5583_v23  ;;  %v13236_v9 = vpop.permute.xlu1 %5482 }
 0x751   : > { %8952 = vmatpush3.msra.mxu0 %v5583_v23  ;;  %v5263_v23 = vrot.slane %v5217_v35, 7 }
 0x752   : > { %8953 = vmatprep.subr.mxu0 %v5582_v34 }
 0x753   : > { %5444 = vrot.lane.b32.xlu1 %v13116_v53, %s9182_s28  ;;  %5330 = vrot.lane.b32.xlu0 %v5206_v59, %s9173_s27 }
 0x754   : > { %8954 = vmatpush3.msra.mxu0 %v5582_v34  ;;  %v5325_v34 = vpop.permute.xlu0 %5324 }
 0x755   : > { %8955 = vmatprep.subr.mxu0 %v5581_v56 }
 0x756   : > { %8956 = vmatpush3.msra.mxu0 %v5581_v56  ;;  %v5321_v56 = vrot.slane %v13085_v44, 1 }
 0x757   : > { %5492 = vrot.lane.b32.xlu1 %v5290_v48, %s15230_s26  ;;  %5470 = vrot.lane.b32.xlu0 %v5206_v59, %s9181_s29  ;;  %v5260_v48 = vrot.slane %v5214_v11, 7  ;;  %v5264_v11 = vrot.slane %v5218_v55, 7 }
 0x759   : > { %v13185_v0 = vsel %vm1160_vm3, %v5260_v48, %v5261_v46  ;;  %v5225_v48 = vld [vmem:[#allocation4 + $0xe8] sm:$0xff]  ;;  %v13230_v46 = vsel %vm1160_vm3, %v5263_v23, %v5264_v11 }
 0x75b   : > { %5402 = vrot.lane.b32.xlu1 %v5209_v28, %s15165_s21  ;;  %5378 = vrot.lane.b32.xlu0 %v13133_v51, %s15160_s22  ;;  %s15236_s22 = smov 32  }
 0x75f   : > { %5472 = vrot.lane.b32.xlu1 %v5209_v28, %s9181_s29  ;;  %5426 = vrot.lane.b32.xlu0 %v5296_v33, %s9180_s24  ;;  %v5300_v28 = vrot.slane %v5215_v8, 1 }
 0x761   : > { %v5302_v26 = vsel %vm1289_vm2, %v5300_v28, %v5301_v38  ;;  %v5322_v28 = vrot.slane %v5225_v48, 1  ;;  %v5349_v38 = vpop.permute.xlu0 %5348 }
 0x763   : > { %5350 = vrot.lane.b32.xlu1 %v5287_v57, %s15176_s30  ;;  %5336 = vrot.lane.b32.xlu0 %v5215_v8, %s9173_s27 }
 0x767   : > { %5420 = vrot.lane.b32.xlu1 %v5287_v57, %s9180_s24  ;;  %5354 = vrot.lane.b32.xlu0 %v5293_v14, %s15176_s30  ;;  %v5220_v57 = vld [vmem:[#allocation4 + $0xc0] sm:$0xff] }
 0x768   : > { %v5308_v52 = vrot.slane %v5220_v57, 7 }
 0x76b   : > { %5400 = vrot.lane.b32.xlu1 %v5206_v59, %s15165_s21  ;;  %5446 = vrot.lane.b32.xlu0 %v13154_v4, %s9182_s28  ;;  %v5580_v59 = vld [vmem:[%s15095_s7] sm:$0xff] }
 0x76c   : > { %8957 = vmatprep.subr.mxu0 %v5580_v59 }
 0x76d   : > { %8958 = vmatpush3.msra.mxu0 %v5580_v59  ;;  %v5323_v59 = vsel %vm1289_vm2, %v5321_v56, %v5322_v28 }
 0x76f   : > { %5356 = vrot.lane.b32.xlu1 %v5296_v33, %s15176_s30  ;;  %5424 = vrot.lane.b32.xlu0 %v5293_v14, %s9180_s24 }
 0x773   : > { %5448 = vrot.lane.b32.xlu1 %v13133_v51, %s9182_s28  ;;  %5334 = vrot.lane.b32.xlu0 %v5212_v20, %s9173_s27 }
 0x777   : > { %5496 = vrot.lane.b32.xlu1 %v5296_v33, %s15230_s26  ;;  %5474 = vrot.lane.b32.xlu0 %v5212_v20, %s9181_s29  ;;  %v5258_v33 = vrot.slane %v5212_v20, 7 }
 0x779   : > { %v13205_v19 = vsel %vm1160_vm3, %v5257_v29, %v5258_v33 }
 0x77b   : > { %5406 = vrot.lane.b32.xlu1 %v5215_v8, %s15165_s21  ;;  %5382 = vrot.lane.b32.xlu0 %v13185_v0, %s15231_s23 }
 0x77f   : > { %5476 = vrot.lane.b32.xlu1 %v5215_v8, %s9181_s29  ;;  %5430 = vrot.lane.b32.xlu0 %v5302_v26, %s9180_s24  ;;  %v5309_v8 = vrot.slane %v5221_v3, 7 }
 0x781   : > { %v5310_v18 = vsel %vm1160_vm3, %v5308_v52, %v5309_v8  ;;  %v5196_v8 = vld [vmem:[#allocation4] sm:$0xff] }
 0x783   : > { %5376 = vrot.lane.b32.xlu1 %v13154_v4, %s15231_s23  ;;  %5410 = vrot.lane.b32.xlu0 %v5221_v3, %s15165_s21 }
 0x787   : > { %5494 = vrot.lane.b32.xlu1 %v5293_v14, %s15230_s26  ;;  %5480 = vrot.lane.b32.xlu0 %v5221_v3, %s9181_s29  ;;  %v5219_v14 = vld [vmem:[#allocation4 + $0xb8] sm:$0xff] }
 0x788   : > { %v5304_v31 = vrot.slane %v5219_v14, 1  ;;  %v5242_v14 = vrot.slane %v5196_v8, 7 }
 0x78b   : > { %5404 = vrot.lane.b32.xlu1 %v5212_v20, %s15165_s21  ;;  %5358 = vrot.lane.b32.xlu0 %v5299_v54, %s15176_s30  ;;  %v5305_v20 = vsel %vm1289_vm2, %v5303_v37, %v5304_v31  ;;  %v5244_v37 = vsel %vm1160_vm3, %v5242_v14, %v5243_v24 }
 0x78f   : > { %5360 = vrot.lane.b32.xlu1 %v5302_v26, %s15176_s30  ;;  %5450 = vrot.lane.b32.xlu0 %v13205_v19, %s9182_s28 }
 0x793   : > { %5452 = vrot.lane.b32.xlu1 %v13185_v0, %s9182_s28  ;;  %5428 = vrot.lane.b32.xlu0 %v5299_v54, %s9180_s24 }
 0x797   : > { %5500 = vrot.lane.b32.xlu1 %v5302_v26, %s15230_s26  ;;  %5338 = vrot.lane.b32.xlu0 %v5218_v55, %s9173_s27 }
 0x79b   : > { %5380 = vrot.lane.b32.xlu1 %v13205_v19, %s15231_s23  ;;  %5478 = vrot.lane.b32.xlu0 %v5218_v55, %s9181_s29 }
 0x79f   : > { %5498 = vrot.lane.b32.xlu1 %v5299_v54, %s15230_s26  ;;  %5386 = vrot.lane.b32.xlu0 %v5310_v18, %s15231_s23 }
 0x7a3   : > { %5408 = vrot.lane.b32.xlu1 %v5218_v55, %s15165_s21  ;;  %5456 = vrot.lane.b32.xlu0 %v5310_v18, %s9182_s28  ;;  %s15234_s21 = smov 20  }
 0x7a7   : > { %5434 = vrot.lane.b32.xlu1 %v5314_v7, %s9180_s24  ;;  %5362 = vrot.lane.b32.xlu0 %v5305_v20, %s15176_s30 }
 0x7ab   : > { %5454 = vrot.lane.b32.xlu0 %v13230_v46, %s9182_s28  ;;  %5384 = vrot.lane.b32.xlu1 %v13230_v46, %s15231_s23  ;;  %s15232_s28 = smov 4  }
 0x7af   : > { %5502 = vrot.lane.b32.xlu0 %v5305_v20, %s15230_s26  ;;  %5432 = vrot.lane.b32.xlu1 %v5305_v20, %s9180_s24  ;;  %s507_s24 = scalar_lea.vmem %s15103_s15, %s8289_s20  ;;  %s14450_s20 = scalar_lea.vmem %s15102_s14, %s15254_s25 }
 0x7b1   : > { %v5399_v26 = vpop.permute.xlu0 %5398  ;;  %v5329_v3 = vpop.permute.xlu1 %5328 }
 0x7b3   : > { %5504 = vrot.lane.b32.xlu0 %v5314_v7, %s15230_s26  ;;  %5506 = vrot.lane.b32.xlu1 %v5323_v59, %s15230_s26  ;;  %v5516_v7 = vsel %vm580_vm0, %v5244_v37, %v5325_v34  ;;  %s15233_s26 = smov 28  }
 0x7b4   : > { %v5524_v20 = vsel %vm2263_vm6, %v5516_v7, %v5349_v38 }
 0x7b5   : > { %v5469_v39 = vpop.permute.xlu1 %5468  ;;  %v5397_v12 = vpop.permute.xlu0 %5396 }
 0x7b9   : > { %v5423_v36 = vpop.permute.xlu0 %5422  ;;  %v5327_v42 = vpop.permute.xlu1 %5326 }
 0x7bd   : > { %v5375_v54 = vpop.permute.xlu1 %5374  ;;  %v13244_v44 = vpop.permute.xlu0 %5332 }
 0x7c1   : > { %v5353_v29 = vpop.permute.xlu1 %5352  ;;  %v5373_v33 = vpop.permute.xlu0 %5372 }
 0x7c2   : > { %v5532_v48 = vsel %vm2329_vm7, %v5524_v20, %v5373_v33 }
 0x7c3   : > { %v5540_v50 = vsel %vm2395_vm10, %v5532_v48, %v5397_v12  ;;  %v5517_v12 = vsel %vm580_vm0, %v13122_v16, %v5327_v42 }
 0x7c5   : > { %v5445_v55 = vpop.permute.xlu1 %5444  ;;  %v13246_v57 = vpop.permute.xlu0 %5330 }
 0x7c9   : > { %v5493_v52 = vpop.permute.xlu1 %5492  ;;  %v5471_v18 = vpop.permute.xlu0 %5470 }
 0x7cd   : > { %v13249_v27 = vpop.permute.xlu1 %5402  ;;  %v5379_v1 = vpop.permute.xlu0 %5378 }
 0x7d1   : > { %v5473_v31 = vpop.permute.xlu1 %5472  ;;  %v13252_v35 = vpop.permute.xlu0 %5426 }
 0x7d5   : > { %v5351_v23 = vpop.permute.xlu1 %5350  ;;  %v13256_v11 = vpop.permute.xlu0 %5336 }
 0x7d6   : > { %v5525_v48 = vsel %vm2263_vm6, %v5517_v12, %v5351_v23 }
 0x7d9   : > { %v5421_v56 = vpop.permute.xlu1 %5420  ;;  %v5355_v28 = vpop.permute.xlu0 %5354 }
 0x7da   : > { %v5548_v59 = vsel %vm4187_vm13, %v5540_v50, %v5421_v56  ;;  %v5533_v56 = vsel %vm2329_vm7, %v5525_v48, %v5375_v54 }
 0x7db   : > { %v5556_v8 = vsel %vm4220_vm12, %v5548_v59, %v5445_v55  ;;  %v5541_v59 = vsel %vm2395_vm10, %v5533_v56, %v5399_v26 }
 0x7dc   : > { %v5564_v24 = vsel %vm4253_vm14, %v5556_v8, %v5469_v39  ;;  %v5518_v8 = vsel %vm580_vm0, %v13116_v53, %v5329_v3 }
 0x7dd   : > { %v5401_v14 = vpop.permute.xlu1 %5400  ;;  %v5447_v45 = vpop.permute.xlu0 %5446  ;;  %v5572_v34 = vsel %vm4286_vm15, %v5564_v24, %v5493_v52  ;;  %v5526_v24 = vsel %vm2263_vm6, %v5518_v8, %v5353_v29 }
 0x7de   : > { %8959 = vmatprep.mubr.msk.f32.mxu0 %vm4335_vm11, %v5572_v34  ;;  %v5549_v34 = vsel %vm4187_vm13, %v5541_v59, %v5423_v36 }
 0x7df   : > { %v5557_v23 = vsel %vm4220_vm12, %v5549_v34, %v5447_v45 }
 0x7e0   : > { %v5565_v26 = vsel %vm4253_vm14, %v5557_v23, %v5471_v18  ;;  %v5519_v18 = vsel %vm580_vm0, %v13154_v4, %v13246_v57 }
 0x7e1   : > { %v5357_v38 = vpop.permute.xlu1 %5356  ;;  %v5425_v37 = vpop.permute.xlu0 %5424 }
 0x7e5   : > { %v5449_v7 = vpop.permute.xlu1 %5448  ;;  %v5335_v33 = vpop.permute.xlu0 %5334 }
 0x7e9   : > { %v5497_v20 = vpop.permute.xlu1 %5496  ;;  %v5475_v6 = vpop.permute.xlu0 %5474 }
 0x7ed   : > { %v13268_v55 = vpop.permute.xlu1 %5406  ;;  %v5383_v39 = vpop.permute.xlu0 %5382 }
 0x7f1   : > { %v5477_v50 = vpop.permute.xlu1 %5476  ;;  %v13271_v52 = vpop.permute.xlu0 %5430 }
 0x7f5   : > { %v5377_v16 = vpop.permute.xlu1 %5376  ;;  %v5411_v42 = vpop.permute.xlu0 %5410 }
 0x7f6   : > { %v5534_v12 = vsel %vm2329_vm7, %v5526_v24, %v5377_v16  ;;  %v5520_v16 = vsel %vm580_vm0, %v13133_v51, %v13244_v44 }
 0x7f7   : > { %v5542_v54 = vsel %vm2395_vm10, %v5534_v12, %v5401_v14  ;;  %v5528_v23 = vsel %vm2263_vm6, %v5520_v16, %v5357_v38  ;;  %v5521_v38 = vsel %vm580_vm0, %v13205_v19, %v5335_v33 }
 0x7f8   : > { %v5550_v48 = vsel %vm4187_vm13, %v5542_v54, %v5425_v37 }
 0x7f9   : > { %v5495_v41 = vpop.permute.xlu1 %5494  ;;  %v13283_v56 = vpop.permute.xlu0 %5480  ;;  %v5558_v53 = vsel %vm4220_vm12, %v5550_v48, %v5449_v7  ;;  %v5527_v7 = vsel %vm2263_vm6, %v5519_v18, %v5355_v28 }
 0x7fa   : > { %v5573_v3 = vsel %vm4286_vm15, %v5565_v26, %v5495_v41  ;;  %v5566_v36 = vsel %vm4253_vm14, %v5558_v53, %v5473_v31  ;;  %v5535_v31 = vsel %vm2329_vm7, %v5527_v7, %v5379_v1 }
 0x7fb   : > { %8960 = vmatmul.mubr.msk.f32.vlgmr.msra.gmra.mxu0 %vm4335_vm11, %v5573_v3  ;;  %v5574_v45 = vsel %vm4286_vm15, %v5566_v36, %v5497_v20  ;;  %v5543_v20 = vsel %vm2395_vm10, %v5535_v31, %v13249_v27 }
 0x7fc   : > { %8962 = vmatprep.mubr.msk.f32.mxu0 %vm4335_vm11, %v5574_v45  ;;  %v5551_v4 = vsel %vm4187_vm13, %v5543_v20, %v13252_v35 }
 0x7fd   : > { %v5405_v29 = vpop.permute.xlu1 %5404  ;;  %v5359_v14 = vpop.permute.xlu0 %5358 }
 0x7fe   : > { %v5529_v36 = vsel %vm2263_vm6, %v5521_v38, %v5359_v14  ;;  %v5522_v14 = vsel %vm580_vm0, %v13185_v0, %v13256_v11  ;;  %v6269_v38 = vld [vmem:[#allocation5 + $0x230] sm:$0xff] }
 0x801   : > { %v5361_v37 = vpop.permute.xlu1 %5360  ;;  %v5451_v59 = vpop.permute.xlu0 %5450 }
 0x802   : > { %v5559_v12 = vsel %vm4220_vm12, %v5551_v4, %v5451_v59 }
 0x803   : > { %v5567_v26 = vsel %vm4253_vm14, %v5559_v12, %v5475_v6 }
 0x805   : > { %v5453_v8 = vpop.permute.xlu1 %5452  ;;  %v5429_v41 = vpop.permute.xlu0 %5428 }
 0x809   : > { %v5501_v24 = vpop.permute.xlu1 %5500  ;;  %v5339_v34 = vpop.permute.xlu0 %5338 }
 0x80a   : > { %v5523_v59 = vsel %vm580_vm0, %v13230_v46, %v5339_v34 }
 0x80d   : > { %v5381_v57 = vpop.permute.xlu1 %5380  ;;  %v5479_v28 = vpop.permute.xlu0 %5478 }
 0x80e   : > { %v5536_v1 = vsel %vm2329_vm7, %v5528_v23, %v5381_v57 }
 0x80f   : > { %v5544_v54 = vsel %vm2395_vm10, %v5536_v1, %v5405_v29  ;;  %v5537_v29 = vsel %vm2329_vm7, %v5529_v36, %v5383_v39  ;;  %v5530_v39 = vsel %vm2263_vm6, %v5522_v14, %v5361_v37  ;;  %v6547_v36 = vrot.slane %v6269_v38, 7 }
 0x810   : > { %v5552_v48 = vsel %vm4187_vm13, %v5544_v54, %v5429_v41  ;;  %v5545_v19 = vsel %vm2395_vm10, %v5537_v29, %v13268_v55 }
 0x811   : > { %v5499_v27 = vpop.permute.xlu1 %5498  ;;  %v5387_v53 = vpop.permute.xlu0 %5386  ;;  %v5560_v51 = vsel %vm4220_vm12, %v5552_v48, %v5453_v8  ;;  %v5553_v46 = vsel %vm4187_vm13, %v5545_v19, %v13271_v52  ;;  %v6202_v48 = vld [vmem:[#allocation5 + $0x18] sm:$0xff] }
 0x812   : > { %v5575_v44 = vsel %vm4286_vm15, %v5567_v26, %v5499_v27  ;;  %v5568_v35 = vsel %vm4253_vm14, %v5560_v51, %v5477_v50  ;;  %v6267_v27 = vld [vmem:[#allocation5 + $0x220] sm:$0xff]  ;;  %v6450_v26 = vrot.slane %v6202_v48, 1  ;;  %v5741_v48 = vld [vmem:[%s15099_s11 + $0x40] sm:$0xff] }
 0x813   : > { %8963 = vmatmul.mubr.msk.f32.gmra.mxu0 %vm4335_vm11, %v5575_v44  ;;  %v5576_v3 = vsel %vm4286_vm15, %v5568_v35, %v5501_v24  ;;  %v6544_v51 = vrot.slane %v6267_v27, 7  ;;  %v5742_v27 = vld [vmem:[%s15099_s11 + $0x48] sm:$0xff] }
 0x814   : > { %8965 = vmatprep.mubr.msk.f32.mxu0 %vm4335_vm11, %v5576_v3 }
 0x815   : > { %v5409_v45 = vpop.permute.xlu1 %5408  ;;  %v5457_v6 = vpop.permute.xlu0 %5456 }
 0x819   : > { %v5435_v18 = vpop.permute.xlu1 %5434  ;;  %v5363_v50 = vpop.permute.xlu0 %5362 }
 0x81a   : > { %v5531_v7 = vsel %vm2263_vm6, %v5523_v59, %v5363_v50 }
 0x81b   : > { %v5539_v33 = vsel %vm2329_vm7, %v5531_v7, %v5387_v53  ;;  %v6268_v53 = vld [vmem:[#allocation5 + $0x228] sm:$0xff] }
 0x81c   : > { %v5547_v8 = vsel %vm2395_vm10, %v5539_v33, %v5411_v42  ;;  %v6545_v44 = vrot.slane %v6268_v53, 7 }
 0x81d   : > { %v5455_v41 = vpop.permute.xlu0 %5454  ;;  %v5385_v31 = vpop.permute.xlu1 %5384  ;;  %v5555_v55 = vsel %vm4187_vm13, %v5547_v8, %v5435_v18 }
 0x81e   : > { %v5561_v24 = vsel %vm4220_vm12, %v5553_v46, %v5455_v41  ;;  %v5538_v34 = vsel %vm2329_vm7, %v5530_v39, %v5385_v31  ;;  %v5563_v52 = vsel %vm4220_vm12, %v5555_v55, %v13223_v17  ;;  %v5733_v17 = vld [vmem:[%s15099_s11] sm:$0xff]  ;;  %v6546_v3 = vsel %vm1160_vm3, %v6544_v51, %v6545_v44 }
 0x81f   : > { %v5569_v20 = vsel %vm4253_vm14, %v5561_v24, %v5479_v28  ;;  %v5546_v0 = vsel %vm2395_vm10, %v5538_v34, %v5409_v45  ;;  %v5571_v12 = vsel %vm4253_vm14, %v5563_v52, %v13236_v9  ;;  %8987 = vmatprep.mubr.msk.f32.mxu1 %vm4286_vm15, %v5733_v17  ;;  %v6548_v45 = vsel %vm1160_vm3, %v6545_v44, %v6547_v36  ;;  %v5740_v17 = vld [vmem:[%s15099_s11 + $0x38] sm:$0xff]  ;;  %v5745_v51 = vld [vmem:[%s15099_s11 + $0x60] sm:$0xff]  ;;  %v5746_v44 = vld [vmem:[%s15099_s11 + $0x68] sm:$0xff] }
 0x820   : > { %v5748_v36 = vld [vmem:[%s15099_s11 + $0x78] sm:$0xff] }
 0x821   : > { %v5503_v16 = vpop.permute.xlu0 %5502  ;;  %v5433_v11 = vpop.permute.xlu1 %5432 }
 0x822   : > { %v5577_v42 = vsel %vm4286_vm15, %v5569_v20, %v5503_v16  ;;  %v5554_v37 = vsel %vm4187_vm13, %v5546_v0, %v5433_v11 }
 0x823   : > { %v5562_v23 = vsel %vm4220_vm12, %v5554_v37, %v5457_v6  ;;  %8966 = vmatmul.mubr.msk.f32.gmra.mxu0 %vm4335_vm11, %v5577_v42  ;;  %v8210_v6 = vld [vmem:[%s15096_s8] ss:$0 sm:$0xff] }
 0x824   : > { %v5570_v4 = vsel %vm4253_vm14, %v5562_v23, %v13283_v56  ;;  %v13355_v56 = vld [vmem:[#allocation5 + $0x10] sm:$0xff] }
 0x825   : > { %v5505_v57 = vpop.permute.xlu0 %5504  ;;  %v5507_v28 = vpop.permute.xlu1 %5506  ;;  %v6448_v9 = vrot.slane %v13355_v56, 1  ;;  %6557 = vrot.lane.b32.xlu1 %v13355_v56, %s15232_s28 }
 0x826   : > { %v5578_v1 = vsel %vm4286_vm15, %v5570_v4, %v5505_v57  ;;  %v5579_v54 = vsel %vm4286_vm15, %v5571_v12, %v5507_v28  ;;  %v5734_v4 = vld [vmem:[%s15099_s11 + $0x8] sm:$0xff]  ;;  %v5735_v57 = vld [vmem:[%s15099_s11 + $0x10] sm:$0xff]  ;;  %v5736_v28 = vld [vmem:[%s15099_s11 + $0x18] sm:$0xff] }
 0x827   : > { %8968 = vmatprep.mubr.msk.f32.mxu0 %vm4335_vm11, %v5578_v1  ;;  %v6451_v35 = vsel %vm1289_vm2, %v6448_v9, %v6450_v26  ;;  %v5737_v12 = vld [vmem:[%s15099_s11 + $0x20] sm:$0xff]  ;;  %v5738_v1 = vld [vmem:[%s15099_s11 + $0x28] sm:$0xff]  ;;  %v5743_v26 = vld [vmem:[%s15099_s11 + $0x50] sm:$0xff] }
 0x828   : > { %8969 = vmatmul.mubr.msk.f32.gmra.mxu0 %vm4335_vm11, %v5579_v54  ;;  %v5739_v54 = vld [vmem:[%s15099_s11 + $0x30] sm:$0xff] }
 0x829   : > { %6653 = vrot.lane.b32.xlu1 %v6451_v35, %s9173_s27  ;;  %v13437_v35 = vld [vmem:[#allocation5 + $0x8] sm:$0xff] }
 0x82a   : > { %6555 = vrot.lane.b32.xlu0 %v13437_v35, %s15232_s28 }
 0x82d   : > { %7095 = vrot.lane.b32.xlu1 %v6546_v3, %s15231_s23  ;;  %v5747_v3 = vld [vmem:[%s15099_s11 + $0x70] sm:$0xff] }
 0x831   : > { %7097 = vrot.lane.b32.xlu1 %v6548_v45, %s15231_s23 }
 0x835   : > { %7191 = vrot.lane.b32.xlu1 %v6268_v53, %s15233_s26  ;;  %v5744_v53 = vld [vmem:[%s15099_s11 + $0x58] sm:$0xff] }
 0x839   : > { %7193 = vrot.lane.b32.xlu1 %v6269_v38, %s15233_s26  ;;  %v6447_v38 = vrot.slane %v13437_v35, 1 }
 0x83b   : > { %v6449_v45 = vsel %vm1289_vm2, %v6447_v38, %v6448_v9  ;;  %v5751_v9 = vld [vmem:[%s15099_s11 + $0x90] sm:$0xff] }
 0x83c   : > { %6651 = vrot.lane.b32.xlu0 %v6449_v45, %s9173_s27 }
 0x8bb   : > { %v8961_v29 = vpop.f32.mrf.mxu0 }
 0x8bc   : > { %v5692_v59 = vadd.f32 %v8961_v29, %v8210_v6  ;;  %v5750_v29 = vld [vmem:[%s15099_s11 + $0x88] sm:$0xff] }
 0x8bd   : > { %v5686_v18 = vpop.f32.mrf.mxu0 }
 0x8be   : > { %5726 = vst.msk [vmem:[%s507_s24 + $0x8] sm:$0xff] %vm934_vm1, %v5692_v59  ;;  %v5687_v50 = vadd.f32 %v8210_v6, %v5686_v18  ;;  %v5766_v52 = vmax.f32 %v5692_v59, 0.0  ;;  %v5752_v59 = vld [vmem:[%s15099_s11 + $0x98] sm:$0xff]  ;;  %v6322_v18 = vrot.slane %v13355_v56, 7 }
 0x8c0   : > { %5725 = vst.msk [vmem:[%s507_s24] sm:$0xff] %vm934_vm1, %v5687_v50  ;;  %v5765_v23 = vmax.f32 %v5687_v50, 0.0  ;;  %v15167_v50 = vrot.slane %v13437_v35, 7 }
 0x8d3   : > { %v8964_v7 = vpop.f32.mrf.mxu0 }
 0x8d4   : > { %v5702_v19 = vadd.f32 %v8964_v7, %v8210_v6  ;;  %v13475_v7 = vsel %vm1160_vm3, %v15167_v50, %v6322_v18  ;;  %v6226_v50 = vld [vmem:[#allocation5 + $0xd8] sm:$0xff] }
 0x8d5   : > { %v5696_v33 = vpop.f32.mrf.mxu0 }
 0x8d6   : > { %5728 = vst.msk [vmem:[%s507_s24 + $0x18] sm:$0xff] %vm934_vm1, %v5702_v19  ;;  %v5697_v14 = vadd.f32 %v8210_v6, %v5696_v33  ;;  %v5768_v42 = vmax.f32 %v5702_v19, 0.0  ;;  %v5753_v19 = vld [vmem:[%s15099_s11 + $0xa0] sm:$0xff]  ;;  %v5754_v33 = vld [vmem:[%s15099_s11 + $0xa8] sm:$0xff] }
 0x8d8   : > { %5727 = vst.msk [vmem:[%s507_s24 + $0x10] sm:$0xff] %vm934_vm1, %v5697_v14  ;;  %v5767_v37 = vmax.f32 %v5697_v14, 0.0  ;;  %v5755_v14 = vld [vmem:[%s15099_s11 + $0xb0] sm:$0xff] }
 0x8e3   : > { %v8967_v8 = vpop.f32.mrf.mxu0 }
 0x8e4   : > { %v5712_v39 = vadd.f32 %v8967_v8, %v8210_v6 }
 0x8e5   : > { %v5706_v46 = vpop.f32.mrf.mxu0 }
 0x8e6   : > { %5730 = vst.msk [vmem:[%s507_s24 + $0x28] sm:$0xff] %vm934_vm1, %v5712_v39  ;;  %v5707_v41 = vadd.f32 %v8210_v6, %v5706_v46  ;;  %v5770_v0 = vmax.f32 %v5712_v39, 0.0  ;;  %v5756_v46 = vld [vmem:[%s15099_s11 + $0xb8] sm:$0xff] }
 0x8e8   : > { %5729 = vst.msk [vmem:[%s507_s24 + $0x20] sm:$0xff] %vm934_vm1, %v5707_v41  ;;  %v8970_v31 = vpop.f32.mrf.mxu0  ;;  %v5769_v11 = vmax.f32 %v5707_v41, 0.0 }
 0x8e9   : > { %v5722_v24 = vadd.f32 %v8970_v31, %v8210_v6 }
 0x8ea   : > { %v5716_v34 = vpop.f32.mrf.mxu0 }
 0x8eb   : > { %5732 = vst.msk [vmem:[%s507_s24 + $0x38] sm:$0xff] %vm934_vm1, %v5722_v24  ;;  %v5772_v55 = vmax.f32 %v5722_v24, 0.0  ;;  %v5717_v20 = vadd.f32 %v8210_v6, %v5716_v34  ;;  %v5749_v6 = vld [vmem:[%s15099_s11 + $0x80] sm:$0xff]  ;;  %v6206_v34 = vld [vmem:[#allocation5 + $0x38] sm:$0xff] }
 0x8ed   : > { %5731 = vst.msk [vmem:[%s507_s24 + $0x30] sm:$0xff] %vm934_vm1, %v5717_v20  ;;  %v5771_v16 = vmax.f32 %v5717_v20, 0.0  ;;  %8971 = vmatprep.subr.mxu1 %v5772_v55  ;;  %s15235_s24 = smov 12  }
 0x8ee   : > { %8972 = vmatpush3.msra.mxu1 %v5772_v55 }
 0x8ef   : > { %8973 = vmatprep.subr.mxu1 %v5771_v16 }
 0x8f0   : > { %8974 = vmatpush3.msra.mxu1 %v5771_v16 }
 0x8f1   : > { %8975 = vmatprep.subr.mxu1 %v5770_v0 }
 0x8f2   : > { %8976 = vmatpush3.msra.mxu1 %v5770_v0  ;;  %v6455_v0 = vrot.slane %v6206_v34, 1 }
 0x8f3   : > { %8977 = vmatprep.subr.mxu1 %v5769_v11 }
 0x8f4   : > { %8978 = vmatpush3.msra.mxu1 %v5769_v11 }
 0x8f5   : > { %8979 = vmatprep.subr.mxu1 %v5768_v42 }
 0x8f6   : > { %8980 = vmatpush3.msra.mxu1 %v5768_v42 }
 0x8f7   : > { %8981 = vmatprep.subr.mxu1 %v5767_v37 }
 0x8f8   : > { %8982 = vmatpush3.msra.mxu1 %v5767_v37 }
 0x8f9   : > { %8983 = vmatprep.subr.mxu1 %v5766_v52 }
 0x8fa   : > { %8984 = vmatpush3.msra.mxu1 %v5766_v52 }
 0x8fb   : > { %8985 = vmatprep.subr.mxu1 %v5765_v23 }
 0x8fc   : > { %8986 = vmatpush3.msra.mxu1 %v5765_v23 }
 0x8fd   : > { %8988 = vmatmul.mubr.msk.f32.vlgmr.msra.gmra.mxu1 %vm4286_vm15, %v5734_v4 }
 0x8fe   : > { %8990 = vmatprep.mubr.msk.f32.mxu1 %vm4286_vm15, %v5735_v57 }
 0x901   : > { %8991 = vmatmul.mubr.msk.f32.gmra.mxu1 %vm4286_vm15, %v5736_v28 }
 0x902   : > { %8993 = vmatprep.mubr.msk.f32.mxu1 %vm4286_vm15, %v5737_v12 }
 0x905   : > { %8994 = vmatmul.mubr.msk.f32.gmra.mxu1 %vm4286_vm15, %v5738_v1  ;;  %v6203_v1 = vld [vmem:[#allocation5 + $0x20] sm:$0xff] }
 0x906   : > { %8996 = vmatprep.mubr.msk.f32.mxu1 %vm4286_vm15, %v5739_v54 }
 0x909   : > { %8997 = vmatmul.mubr.msk.f32.gmra.mxu1 %vm4286_vm15, %v5740_v17 }
 0x90a   : > { %8999 = vmatprep.mubr.msk.f32.mxu1 %vm4286_vm15, %v5741_v48 }
 0x90d   : > { %9000 = vmatmul.mubr.msk.f32.gmra.mxu1 %vm4286_vm15, %v5742_v27  ;;  %v6324_v27 = vrot.slane %v6203_v1, 7 }
 0x90e   : > { %9002 = vmatprep.mubr.msk.f32.mxu1 %vm4286_vm15, %v5743_v26 }
 0x911   : > { %9003 = vmatmul.mubr.msk.f32.gmra.mxu1 %vm4286_vm15, %v5744_v53  ;;  %v6210_v53 = vld [vmem:[#allocation5 + $0x58] sm:$0xff] }
 0x912   : > { %9005 = vmatprep.mubr.msk.f32.mxu1 %vm4286_vm15, %v5745_v51 }
 0x915   : > { %9006 = vmatmul.mubr.msk.f32.gmra.mxu1 %vm4286_vm15, %v5746_v44 }
 0x916   : > { %9008 = vmatprep.mubr.msk.f32.mxu1 %vm4286_vm15, %v5747_v3  ;;  %v6460_v3 = vrot.slane %v6210_v53, 1 }
 0x919   : > { %9009 = vmatmul.mubr.msk.f32.gmra.mxu1 %vm4286_vm15, %v5748_v36  ;;  %v5757_v36 = vld [vmem:[%s15099_s11 + $0xc0] sm:$0xff] }
 0x91a   : > { %9011 = vmatprep.mubr.msk.f32.mxu1 %vm4286_vm15, %v5749_v6  ;;  %v5758_v6 = vld [vmem:[%s15099_s11 + $0xc8] sm:$0xff] }
 0x91d   : > { %9012 = vmatmul.mubr.msk.f32.gmra.mxu1 %vm4286_vm15, %v5750_v29 }
 0x91e   : > { %9014 = vmatprep.mubr.msk.f32.mxu1 %vm4286_vm15, %v5751_v9 }
 0x921   : > { %9015 = vmatmul.mubr.msk.f32.gmra.mxu1 %vm4286_vm15, %v5752_v59 }
 0x922   : > { %9017 = vmatprep.mubr.msk.f32.mxu1 %vm4286_vm15, %v5753_v19 }
 0x925   : > { %9018 = vmatmul.mubr.msk.f32.gmra.mxu1 %vm4286_vm15, %v5754_v33  ;;  %v7583_v33 = vld [vmem:[%s15100_s12 + $0x20] sm:$0xf] }
 0x926   : > { %9020 = vmatprep.mubr.msk.f32.mxu1 %vm4286_vm15, %v5755_v14  ;;  %9035 = vmatprep.subr.msk.mxu0 %vm2537_vm4, %v7583_v33  ;;  %v7582_v14 = vld [vmem:[%s15100_s12 + $0x18] sm:$0xff] }
 0x927   : > { %9093 = vmatprep.subr.msk.mxu1 %vm2537_vm4, %v7583_v33  ;;  %9036 = vmatpush3.msk.msra.mxu0 %vm2537_vm4, %v7583_v33 }
 0x928   : > { %9098 = vmatpush3.msk.msra.mxu1 %vm2537_vm4, %v7583_v33  ;;  %9037 = vmatprep.subr.mxu0 %v7582_v14  ;;  %vm15242_vm4 = vcmask 293888  }
 0x929   : > { %9021 = vmatmul.mubr.msk.f32.gmra.mxu1 %vm4286_vm15, %v5756_v46  ;;  %9038 = vmatpush3.msra.mxu0 %v7582_v14  ;;  %v7580_v46 = vld [vmem:[%s15100_s12 + $0x8] sm:$0xff]  ;;  %vm15243_vm11 = vmmov %vm15242_vm4 }
 0x92a   : > { %9023 = vmatprep.mubr.msk.f32.mxu1 %vm4286_vm15, %v5757_v36  ;;  %9094 = vmatprep.subr.mxu1 %v7582_v14  ;;  %vm15244_vm12 = vmmov %vm15242_vm4 }
 0x92b   : > { %9099 = vmatpush3.msra.mxu1 %v7582_v14  ;;  %vm15245_vm13 = vmmov %vm15242_vm4 }
 0x92c   : > { %vm15246_vm14 = vmmov %vm15242_vm4 }
 0x92d   : > { %9024 = vmatmul.mubr.msk.f32.gmra.mxu1 %vm4286_vm15, %v5758_v6 }
 0x9bd   : > { %v8989_v56 = vpop.f32.mrf.mxu1 }
 0x9be   : > { %6168 = vst.msk [vmem:[#allocation5 + $0x30] sm:$0xff] %vm934_vm1, %v8989_v56 }
 0x9bf   : > { %v5935_v8 = vpop.f32.mrf.mxu1 }
 0x9c0   : > { %6167 = vst.msk [vmem:[#allocation5 + $0x28] sm:$0xff] %vm934_vm1, %v5935_v8  ;;  %v7581_v8 = vld [vmem:[%s15100_s12 + $0x10] sm:$0xff] }
 0x9c1   : > { %v8992_v39 = vpop.f32.mrf.mxu1  ;;  %9039 = vmatprep.subr.mxu0 %v7581_v8  ;;  %9095 = vmatprep.subr.mxu1 %v7581_v8 }
 0x9c2   : > { %6170 = vst.msk [vmem:[#allocation5 + $0x50] sm:$0xff] %vm934_vm1, %v8992_v39  ;;  %9040 = vmatpush3.msra.mxu0 %v7581_v8  ;;  %9100 = vmatpush3.msra.mxu1 %v7581_v8 }
 0x9c3   : > { %v5945_v41 = vpop.f32.mrf.mxu1  ;;  %9041 = vmatprep.subr.mxu0 %v7580_v46  ;;  %9096 = vmatprep.subr.mxu1 %v7580_v46 }
 0x9c4   : > { %6169 = vst.msk [vmem:[#allocation5 + $0x48] sm:$0xff] %vm934_vm1, %v5945_v41  ;;  %v6207_v41 = vld [vmem:[#allocation5 + $0x40] sm:$0xff]  ;;  %9042 = vmatpush3.msra.mxu0 %v7580_v46  ;;  %9101 = vmatpush3.msra.mxu1 %v7580_v46 }
 0x9c5   : > { %v6205_v31 = vld [vmem:[#allocation5 + $0x30] sm:$0xff]  ;;  %v8995_v24 = vpop.f32.mrf.mxu1  ;;  %v6329_v34 = vrot.slane %v6207_v41, 7 }
 0x9c6   : > { %6561 = vrot.lane.b32.xlu1 %v6205_v31, %s15232_s28  ;;  %6172 = vst.msk [vmem:[#allocation5 + $0x70] sm:$0xff] %vm934_vm1, %v8995_v24  ;;  %v6453_v16 = vrot.slane %v6205_v31, 1  ;;  %v6327_v17 = vrot.slane %v6205_v31, 7  ;;  %v7579_v24 = vld [vmem:[%s15100_s12] sm:$0xff] }
 0x9c7   : > { %v6204_v55 = vld [vmem:[#allocation5 + $0x28] sm:$0xff]  ;;  %v5955_v20 = vpop.f32.mrf.mxu1  ;;  %9043 = vmatprep.subr.mxu0 %v7579_v24  ;;  %9097 = vmatprep.subr.mxu1 %v7579_v24 }
 0x9c8   : > { %6559 = vrot.lane.b32.xlu0 %v6204_v55, %s15232_s28  ;;  %6171 = vst.msk [vmem:[#allocation5 + $0x68] sm:$0xff] %vm934_vm1, %v5955_v20  ;;  %v6456_v37 = vsel %vm1289_vm2, %v6453_v16, %v6455_v0  ;;  %v6452_v28 = vrot.slane %v6204_v55, 1  ;;  %v6325_v54 = vrot.slane %v6204_v55, 7  ;;  %9044 = vmatpush3.msra.mxu0 %v7579_v24 }
 0x9c9   : > { %v8998_v11 = vpop.f32.mrf.mxu1  ;;  %v13506_v52 = vld [vmem:[#allocation5 + $0x50] sm:$0xff]  ;;  %9102 = vmatpush3.msra.mxu1 %v7579_v24  ;;  %v13675_v24 = vpop.permute.xlu0 %6555 }
 0x9ca   : > { %6845 = vrot.lane.b32.xlu1 %v6205_v31, %s15176_s30  ;;  %6174 = vst.msk [vmem:[#allocation5 + $0x90] sm:$0xff] %vm934_vm1, %v8998_v11  ;;  %v6454_v48 = vsel %vm1289_vm2, %v6452_v28, %v6453_v16  ;;  %v13523_v26 = vsel %vm1160_vm3, %v6325_v54, %v6327_v17  ;;  %v13528_v51 = vsel %vm1160_vm3, %v6324_v27, %v6325_v54  ;;  %v6458_v38 = vrot.slane %v13506_v52, 1  ;;  %v6211_v17 = vld [vmem:[#allocation5 + $0x60] sm:$0xff] }
 0x9cb   : > { %v5965_v42 = vpop.f32.mrf.mxu1  ;;  %v6208_v44 = vld [vmem:[#allocation5 + $0x48] sm:$0xff]  ;;  %v6332_v19 = vrot.slane %v13506_v52, 7  ;;  %v6334_v53 = vrot.slane %v6211_v17, 7 }
 0x9cc   : > { %6843 = vrot.lane.b32.xlu0 %v6204_v55, %s15176_s30  ;;  %6173 = vst.msk [vmem:[#allocation5 + $0x88] sm:$0xff] %vm934_vm1, %v5965_v42  ;;  %v6461_v45 = vsel %vm1289_vm2, %v6458_v38, %v6460_v3  ;;  %v6330_v18 = vrot.slane %v6208_v44, 7  ;;  %v6457_v39 = vrot.slane %v6208_v44, 1  ;;  %v6214_v55 = vld [vmem:[#allocation5 + $0x78] sm:$0xff]  ;;  %v5759_v42 = vld [vmem:[%s15099_s11 + $0xd0] sm:$0xff] }
 0x9cd   : > { %v9001_v23 = vpop.f32.mrf.mxu1  ;;  %v13548_v9 = vld [vmem:[#allocation5 + $0x70] sm:$0xff]  ;;  %v6465_v11 = vrot.slane %v6214_v55, 1  ;;  %9026 = vmatprep.mubr.msk.f32.mxu1 %vm4286_vm15, %v5759_v42 }
 0x9ce   : > { %6657 = vrot.lane.b32.xlu1 %v6456_v37, %s9173_s27  ;;  %6176 = vst.msk [vmem:[#allocation5 + $0xb0] sm:$0xff] %vm934_vm1, %v9001_v23  ;;  %v13560_v56 = vsel %vm1160_vm3, %v6330_v18, %v6332_v19  ;;  %v6459_v31 = vsel %vm1289_vm2, %v6457_v39, %v6458_v38  ;;  %v13591_v20 = vsel %vm1160_vm3, %v6329_v34, %v6330_v18  ;;  %v6463_v0 = vrot.slane %v13548_v9, 1  ;;  %v5762_v18 = vld [vmem:[%s15099_s11 + $0xe8] sm:$0xff] }
 0x9cf   : > { %v5975_v4 = vpop.f32.mrf.mxu1  ;;  %v6212_v16 = vld [vmem:[#allocation5 + $0x68] sm:$0xff] }
 0x9d0   : > { %7133 = vrot.lane.b32.xlu0 %v13506_v52, %s15233_s26  ;;  %6175 = vst.msk [vmem:[#allocation5 + $0xa8] sm:$0xff] %vm934_vm1, %v5975_v4  ;;  %v6335_v28 = vrot.slane %v6212_v16, 7  ;;  %v6462_v54 = vrot.slane %v6212_v16, 1 }
 0x9d1   : > { %v9004_v57 = vpop.f32.mrf.mxu1  ;;  %v6217_v4 = vld [vmem:[#allocation5 + $0x90] sm:$0xff] }
 0x9d2   : > { %6941 = vrot.lane.b32.xlu1 %v6456_v37, %s15234_s21  ;;  %6178 = vst.msk [vmem:[#allocation5 + $0xd0] sm:$0xff] %vm934_vm1, %v9004_v57  ;;  %v6466_v37 = vsel %vm1289_vm2, %v6463_v0, %v6465_v11  ;;  %v6464_v27 = vsel %vm1289_vm2, %v6462_v54, %v6463_v0  ;;  %v13635_v3 = vsel %vm1160_vm3, %v6334_v53, %v6335_v28  ;;  %v6342_v46 = vrot.slane %v6217_v4, 7  ;;  %v13684_v11 = vpop.permute.xlu0 %6651 }
 0x9d3   : > { %v5985_v12 = vpop.f32.mrf.mxu1  ;;  %v6216_v36 = vld [vmem:[#allocation5 + $0x88] sm:$0xff] }
 0x9d4   : > { %6849 = vrot.lane.b32.xlu0 %v13506_v52, %s15176_s30  ;;  %6177 = vst.msk [vmem:[#allocation5 + $0xc8] sm:$0xff] %vm934_vm1, %v5985_v12  ;;  %v6337_v12 = vrot.slane %v13548_v9, 7  ;;  %v6340_v39 = vrot.slane %v6216_v36, 7  ;;  %v6467_v34 = vrot.slane %v6216_v36, 1 }
 0x9d5   : > { %v9007_v29 = vpop.f32.mrf.mxu1  ;;  %v13659_v14 = vld [vmem:[#allocation5 + $0xb0] sm:$0xff] }
 0x9d6   : > { %6565 = vrot.lane.b32.xlu1 %v13506_v52, %s15232_s28  ;;  %6180 = vst.msk [vmem:[#allocation5 + $0xf0] sm:$0xff] %vm934_vm1, %v9007_v29  ;;  %v5760_v52 = vld [vmem:[%s15099_s11 + $0xd8] sm:$0xff]  ;;  %v13618_v1 = vsel %vm1160_vm3, %v6335_v28, %v6337_v12  ;;  %v5761_v29 = vld [vmem:[%s15099_s11 + $0xe0] sm:$0xff]  ;;  %v5763_v28 = vld [vmem:[%s15099_s11 + $0xf0] sm:$0xff]  ;;  %v6473_v54 = vrot.slane %v13659_v14, 1 }
 0x9d7   : > { %v5995_v59 = vpop.f32.mrf.mxu1  ;;  %9027 = vmatmul.mubr.msk.f32.gmra.mxu1 %vm4286_vm15, %v5760_v52  ;;  %v6220_v12 = vld [vmem:[#allocation5 + $0xa8] sm:$0xff] }
 0x9d8   : > { %6655 = vrot.lane.b32.xlu0 %v6454_v48, %s9173_s27  ;;  %6179 = vst.msk [vmem:[#allocation5 + $0xe8] sm:$0xff] %vm934_vm1, %v5995_v59  ;;  %9029 = vmatprep.mubr.msk.f32.mxu1 %vm4286_vm15, %v5761_v29 }
 0x9d9   : > { %v9010_v23 = vpop.f32.mrf.mxu1 }
 0x9da   : > { %6749 = vrot.lane.b32.xlu1 %v13523_v26, %s15235_s24  ;;  %6182 = vst.msk [vmem:[#allocation5 + $0x110] sm:$0xff] %vm934_vm1, %v9010_v23  ;;  %v6222_v23 = vld [vmem:[#allocation5 + $0xb8] sm:$0xff] }
 0x9db   : > { %v6005_v57 = vpop.f32.mrf.mxu1  ;;  %9030 = vmatmul.mubr.msk.f32.gmra.mxu1 %vm4286_vm15, %v5762_v18  ;;  %v6475_v17 = vrot.slane %v6222_v23, 1  ;;  %v13727_v18 = vld [vmem:[#allocation5 + $0xd0] sm:$0xff] }
 0x9dc   : > { %6747 = vrot.lane.b32.xlu0 %v13528_v51, %s15235_s24  ;;  %6181 = vst.msk [vmem:[#allocation5 + $0x108] sm:$0xff] %vm934_vm1, %v6005_v57  ;;  %9032 = vmatprep.mubr.msk.f32.mxu1 %vm4286_vm15, %v5763_v28  ;;  %v6352_v22 = vrot.slane %v13727_v18, 7 }
 0x9dd   : > { %v9013_v19 = vpop.f32.mrf.mxu1  ;;  %v13796_v25 = vld [vmem:[#allocation5 + $0xf0] sm:$0xff] }
 0x9de   : > { %6847 = vrot.lane.b32.xlu1 %v6208_v44, %s15176_s30  ;;  %6184 = vst.msk [vmem:[#allocation5 + $0x130] sm:$0xff] %vm934_vm1, %v9013_v19 }
 0x9df   : > { %v6015_v8 = vpop.f32.mrf.mxu1 }
 0x9e0   : > { %6939 = vrot.lane.b32.xlu0 %v6454_v48, %s15234_s21  ;;  %v13626_v48 = vpop.permute.xlu1 %6557  ;;  %6183 = vst.msk [vmem:[#allocation5 + $0x128] sm:$0xff] %vm934_vm1, %v6015_v8 }
 0x9e1   : > { %v7324_v30 = vsel %vm934_vm1, %v13475_v7, %v13626_v48 }
 0x9e2   : > { %6661 = vrot.lane.b32.xlu1 %v6461_v45, %s9173_s27 }
 0x9e4   : > { %6563 = vrot.lane.b32.xlu0 %v6208_v44, %s15232_s28  ;;  %v13632_v38 = vpop.permute.xlu1 %6653 }
 0x9e6   : > { %6945 = vrot.lane.b32.xlu1 %v6461_v45, %s15234_s21 }
 0x9e8   : > { %7131 = vrot.lane.b32.xlu0 %v6208_v44, %s15233_s26  ;;  %v6218_v44 = vld [vmem:[#allocation5 + $0x98] sm:$0xff] }
 0x9e9   : > { %v6470_v6 = vrot.slane %v6218_v44, 1 }
 0x9ea   : > { %6569 = vrot.lane.b32.xlu1 %v13548_v9, %s15232_s28 }
 0x9ec   : > { %7229 = vrot.lane.b32.xlu0 %v6461_v45, %s15236_s22  ;;  %v6468_v45 = vrot.slane %v6217_v4, 1 }
 0x9ee   : > { %6753 = vrot.lane.b32.xlu1 %v13560_v56, %s15235_s24  ;;  %v6471_v59 = vsel %vm1289_vm2, %v6468_v45, %v6470_v6  ;;  %v6469_v0 = vsel %vm1289_vm2, %v6467_v34, %v6468_v45  ;;  %v9016_v6 = vpop.f32.mrf.mxu1 }
 0x9ef   : > { %6186 = vst.msk [vmem:[#allocation5 + $0x150] sm:$0xff] %vm934_vm1, %v9016_v6 }
 0x9f0   : > { %7137 = vrot.lane.b32.xlu0 %v13548_v9, %s15233_s26  ;;  %v6025_v8 = vpop.f32.mrf.mxu1 }
 0x9f1   : > { %6185 = vst.msk [vmem:[#allocation5 + $0x148] sm:$0xff] %vm934_vm1, %v6025_v8 }
 0x9f2   : > { %7037 = vrot.lane.b32.xlu1 %v13560_v56, %s15231_s23  ;;  %v9019_v32 = vpop.f32.mrf.mxu1 }
 0x9f3   : > { %6188 = vst.msk [vmem:[#allocation5 + $0x170] sm:$0xff] %vm934_vm1, %v9019_v32  ;;  %v7356_v32 = vsel %vm580_vm0, %v7324_v30, %v13632_v38 }
 0x9f4   : > { %6853 = vrot.lane.b32.xlu0 %v13548_v9, %s15176_s30  ;;  %v13646_v9 = vpop.permute.xlu1 %7095  ;;  %v6035_v40 = vpop.f32.mrf.mxu1 }
 0x9f5   : > { %15237 = vst [vmem:[#allocation59_spill] sm:$0xff] %v13646_v9  ;;  %6187 = vst.msk [vmem:[#allocation5 + $0x168] sm:$0xff] %vm934_vm1, %v6035_v40 }
 0x9f6   : > { %7227 = vrot.lane.b32.xlu1 %v6459_v31, %s15236_s22 }
 0x9f8   : > { %6659 = vrot.lane.b32.xlu0 %v6459_v31, %s9173_s27  ;;  %v13657_v33 = vpop.permute.xlu1 %7097 }
 0x9f9   : > { %15238 = vst [vmem:[#allocation60_spill] sm:$0xff] %v13657_v33  ;;  %v6199_v33 = vld [vmem:[#allocation5] sm:$0xff] }
 0x9fa   : > { %6943 = vrot.lane.b32.xlu1 %v6459_v31, %s15234_s21  ;;  %v13669_v31 = vsel %vm1160_vm3, %v6340_v39, %v6342_v46  ;;  %v6347_v46 = vrot.slane %v13659_v14, 7  ;;  %v6319_v47 = vrot.slane %v6199_v33, 7 }
 0x9fc   : > { %6751 = vrot.lane.b32.xlu0 %v13591_v20, %s15235_s24  ;;  %v13666_v41 = vpop.permute.xlu1 %7191 }
 0x9fd   : > { %15239 = vst [vmem:[#allocation61_spill] sm:$0xff] %v13666_v41 }
 0x9fe   : > { %6851 = vrot.lane.b32.xlu1 %v6212_v16, %s15176_s30 }
 0xa00   : > { %7035 = vrot.lane.b32.xlu0 %v13591_v20, %s15231_s23  ;;  %v13679_v55 = vpop.permute.xlu1 %7193 }
 0xa01   : > { %15240 = vst [vmem:[#allocation62_spill] sm:$0xff] %v13679_v55 }
 0xa02   : > { %6665 = vrot.lane.b32.xlu1 %v6466_v37, %s9173_s27 }
 0xa04   : > { %6567 = vrot.lane.b32.xlu0 %v6212_v16, %s15232_s28 }
 0xa06   : > { %6949 = vrot.lane.b32.xlu1 %v6466_v37, %s15234_s21 }
 0xa08   : > { %7135 = vrot.lane.b32.xlu0 %v6212_v16, %s15233_s26  ;;  %v6215_v16 = vld [vmem:[#allocation5 + $0x80] sm:$0xff] }
 0xa09   : > { %v6339_v42 = vrot.slane %v6215_v16, 7 }
 0xa0a   : > { %6573 = vrot.lane.b32.xlu1 %v6217_v4, %s15232_s28 }
 0xa0c   : > { %7233 = vrot.lane.b32.xlu0 %v6466_v37, %s15236_s22 }
 0xa0e   : > { %6757 = vrot.lane.b32.xlu1 %v13618_v1, %s15235_s24 }
 0xa10   : > { %7141 = vrot.lane.b32.xlu0 %v6217_v4, %s15233_s26 }
 0xa12   : > { %7041 = vrot.lane.b32.xlu1 %v13618_v1, %s15231_s23 }
 0xa14   : > { %6857 = vrot.lane.b32.xlu0 %v6217_v4, %s15176_s30  ;;  %v13694_v4 = vsel %vm1160_vm3, %v6339_v42, %v6340_v39  ;;  %v6345_v39 = vrot.slane %v6220_v12, 7 }
 0xa16   : > { %7231 = vrot.lane.b32.xlu1 %v6464_v27, %s15236_s22 }
 0xa18   : > { %6663 = vrot.lane.b32.xlu0 %v6464_v27, %s9173_s27 }
 0xa1a   : > { %6947 = vrot.lane.b32.xlu1 %v6464_v27, %s15234_s21  ;;  %v5764_v27 = vld [vmem:[%s15099_s11 + $0xf8] sm:$0xff] }
 0xa1b   : > { %9033 = vmatmul.mubr.msk.f32.gmra.mxu1 %vm4286_vm15, %v5764_v27  ;;  %v6219_v27 = vld [vmem:[#allocation5 + $0xa0] sm:$0xff]  ;;  %vm15247_vm15 = vmmov %vm15242_vm4 }
 0xa1c   : > { %6755 = vrot.lane.b32.xlu0 %v13635_v3, %s15235_s24  ;;  %v6344_v8 = vrot.slane %v6219_v27, 7  ;;  %v6480_v27 = vrot.slane %v6226_v50, 1 }
 0xa1e   : > { %6855 = vrot.lane.b32.xlu1 %v6216_v36, %s15176_s30  ;;  %v13765_v55 = vsel %vm1160_vm3, %v6344_v8, %v6345_v39 }
 0xa20   : > { %7039 = vrot.lane.b32.xlu0 %v13635_v3, %s15231_s23 }
 0xa22   : > { %6669 = vrot.lane.b32.xlu1 %v6471_v59, %s9173_s27 }
 0xa24   : > { %6571 = vrot.lane.b32.xlu0 %v6216_v36, %s15232_s28 }
 0xa26   : > { %6953 = vrot.lane.b32.xlu1 %v6471_v59, %s15234_s21 }
 0xa28   : > { %7139 = vrot.lane.b32.xlu0 %v6216_v36, %s15233_s26  ;;  %v6476_v36 = vsel %vm1289_vm2, %v6473_v54, %v6475_v17 }
 0xa2a   : > { %6577 = vrot.lane.b32.xlu1 %v13659_v14, %s15232_s28 }
 0xa2c   : > { %7237 = vrot.lane.b32.xlu0 %v6471_v59, %s15236_s22 }
 0xa2e   : > { %6761 = vrot.lane.b32.xlu1 %v13669_v31, %s15235_s24 }
 0xa30   : > { %7145 = vrot.lane.b32.xlu0 %v13659_v14, %s15233_s26 }
 0xa32   : > { %7045 = vrot.lane.b32.xlu1 %v13669_v31, %s15231_s23 }
 0xa34   : > { %6861 = vrot.lane.b32.xlu0 %v13659_v14, %s15176_s30  ;;  %v6472_v14 = vrot.slane %v6220_v12, 1 }
 0xa36   : > { %7235 = vrot.lane.b32.xlu1 %v6469_v0, %s15236_s22 }
 0xa38   : > { %v13687_v37 = vpop.permute.xlu1 %6561  ;;  %6667 = vrot.lane.b32.xlu0 %v6469_v0, %s9173_s27 }
 0xa3a   : > { %v13690_v52 = vpop.permute.xlu0 %6559  ;;  %6951 = vrot.lane.b32.xlu1 %v6469_v0, %s15234_s21  ;;  %v13740_v0 = vsel %vm1160_vm3, %v6345_v39, %v6347_v46 }
 0xa3c   : > { %v13696_v57 = vpop.permute.xlu1 %6845  ;;  %6759 = vrot.lane.b32.xlu0 %v13694_v4, %s15235_s24 }
 0xa3e   : > { %v13708_v53 = vpop.permute.xlu0 %6843  ;;  %6859 = vrot.lane.b32.xlu1 %v6220_v12, %s15176_s30 }
 0xa40   : > { %v13712_v44 = vpop.permute.xlu1 %6657  ;;  %7043 = vrot.lane.b32.xlu0 %v13694_v4, %s15231_s23 }
 0xa42   : > { %v13717_v45 = vpop.permute.xlu0 %7133  ;;  %6673 = vrot.lane.b32.xlu1 %v6476_v36, %s9173_s27 }
 0xa44   : > { %v13721_v29 = vpop.permute.xlu1 %6941  ;;  %6575 = vrot.lane.b32.xlu0 %v6220_v12, %s15232_s28 }
 0xa46   : > { %v13724_v59 = vpop.permute.xlu0 %6849  ;;  %6957 = vrot.lane.b32.xlu1 %v6476_v36, %s15234_s21 }
 0xa48   : > { %v13729_v19 = vpop.permute.xlu1 %6565  ;;  %7143 = vrot.lane.b32.xlu0 %v6220_v12, %s15233_s26 }
 0xa4a   : > { %v13734_v34 = vpop.permute.xlu0 %6655  ;;  %6581 = vrot.lane.b32.xlu1 %v13727_v18, %s15232_s28 }
 0xa4c   : > { %v6750_v16 = vpop.permute.xlu1 %6749  ;;  %7241 = vrot.lane.b32.xlu0 %v6476_v36, %s15236_s22  ;;  %v6474_v36 = vsel %vm1289_vm2, %v6472_v14, %v6473_v54  ;;  %v13771_v54 = vld [vmem:[#allocation5 + $0xc8] sm:$0xff]  ;;  %v6478_v14 = vrot.slane %v13727_v18, 1 }
 0xa4d   : > { %v7388_v7 = vsel %vm2230_vm5, %v7356_v32, %v6750_v16  ;;  %v6350_v48 = vrot.slane %v13771_v54, 7 }
 0xa4e   : > { %v6748_v42 = vpop.permute.xlu0 %6747  ;;  %6765 = vrot.lane.b32.xlu1 %v13740_v0, %s15235_s24  ;;  %v6481_v39 = vsel %vm1289_vm2, %v6478_v14, %v6480_v27  ;;  %v15241_v27 = vrot.slane %v13437_v35, 7  ;;  %v7420_v30 = vsel %vm2263_vm6, %v7388_v7, %v13696_v57 }
 0xa4f   : > { %v13820_v40 = vsel %vm1160_vm3, %v6350_v48, %v6352_v22  ;;  %v7452_v57 = vsel %vm2296_vm8, %v7420_v30, %v13721_v29 }
 0xa50   : > { %v13744_v23 = vpop.permute.xlu1 %6847  ;;  %7149 = vrot.lane.b32.xlu0 %v13727_v18, %s15233_s26  ;;  %v6321_v10 = vsel %vm1160_vm3, %v6319_v47, %v15241_v27 }
 0xa51   : > { %v7323_v47 = vsel %vm934_vm1, %v6321_v10, %v13675_v24 }
 0xa52   : > { %v13748_v28 = vpop.permute.xlu0 %6939  ;;  %7049 = vrot.lane.b32.xlu1 %v13740_v0, %s15231_s23 }
 0xa54   : > { %v13752_v17 = vpop.permute.xlu1 %6661  ;;  %6865 = vrot.lane.b32.xlu0 %v13727_v18, %s15176_s30  ;;  %v7355_v18 = vsel %vm580_vm0, %v7323_v47, %v13684_v11  ;;  %v6477_v11 = vrot.slane %v13771_v54, 1 }
 0xa55   : > { %v7387_v10 = vsel %vm2230_vm5, %v7355_v18, %v6748_v42 }
 0xa56   : > { %v13757_v6 = vpop.permute.xlu0 %6563  ;;  %7239 = vrot.lane.b32.xlu1 %v6474_v36, %s15236_s22  ;;  %v7419_v22 = vsel %vm2263_vm6, %v7387_v10, %v13708_v53  ;;  %v6223_v53 = vld [vmem:[#allocation5 + $0xc0] sm:$0xff]  ;;  %v13868_v10 = vld [vmem:[#allocation5 + $0xe8] sm:$0xff] }
 0xa57   : > { %v7451_v42 = vsel %vm2296_vm8, %v7419_v22, %v13748_v28  ;;  %v6479_v28 = vsel %vm1289_vm2, %v6477_v11, %v6478_v14 }
 0xa58   : > { %v13760_v46 = vpop.permute.xlu1 %6945  ;;  %6671 = vrot.lane.b32.xlu0 %v6474_v36, %s9173_s27 }
 0xa5a   : > { %v7132_v12 = vpop.permute.xlu0 %7131  ;;  %6955 = vrot.lane.b32.xlu1 %v6474_v36, %s15234_s21 }
 0xa5c   : > { %v13767_v41 = vpop.permute.xlu1 %6569  ;;  %6763 = vrot.lane.b32.xlu0 %v13765_v55, %s15235_s24 }
 0xa5e   : > { %v7230_v9 = vpop.permute.xlu0 %7229  ;;  %6863 = vrot.lane.b32.xlu1 %v13771_v54, %s15176_s30 }
 0xa60   : > { %v13776_v36 = vpop.permute.xlu1 %6753  ;;  %7047 = vrot.lane.b32.xlu0 %v13765_v55, %s15231_s23 }
 0xa62   : > { %v13781_v8 = vpop.permute.xlu0 %7137  ;;  %6677 = vrot.lane.b32.xlu1 %v6481_v39, %s9173_s27 }
 0xa64   : > { %v7038_v50 = vpop.permute.xlu1 %7037  ;;  %6579 = vrot.lane.b32.xlu0 %v13771_v54, %s15232_s28 }
 0xa65   : > { %v7484_v16 = vsel %vm2329_vm7, %v7452_v57, %v7038_v50  ;;  %v6483_v57 = vrot.slane %v13796_v25, 1 }
 0xa66   : > { %v13790_v61 = vpop.permute.xlu0 %6853  ;;  %6961 = vrot.lane.b32.xlu1 %v6481_v39, %s15234_s21  ;;  %v7516_v29 = vsel %vm2362_vm9, %v7484_v16, %v13717_v45  ;;  %v6349_v45 = vrot.slane %v6223_v53, 7  ;;  %v13890_v53 = vld [vmem:[#allocation5 + $0x110] sm:$0xff] }
 0xa67   : > { %v7548_v47 = vsel %vm2395_vm10, %v7516_v29, %v7230_v9 }
 0xa68   : > { %v7228_v33 = vpop.permute.xlu1 %7227  ;;  %7147 = vrot.lane.b32.xlu0 %v13771_v54, %s15233_s26  ;;  %v13862_v14 = vsel %vm1160_vm3, %v6349_v45, %v6350_v48 }
 0xa6a   : > { %v13808_v35 = vpop.permute.xlu0 %6659  ;;  %6585 = vrot.lane.b32.xlu1 %v13796_v25, %s15232_s28 }
 0xa6c   : > { %v13814_v38 = vpop.permute.xlu1 %6943  ;;  %7245 = vrot.lane.b32.xlu0 %v6481_v39, %s15236_s22 }
 0xa6e   : > { %v13823_v24 = vpop.permute.xlu0 %6751  ;;  %6769 = vrot.lane.b32.xlu1 %v13820_v40, %s15235_s24 }
 0xa70   : > { %v13830_v27 = vpop.permute.xlu1 %6851  ;;  %7153 = vrot.lane.b32.xlu0 %v13796_v25, %s15233_s26 }
 0xa72   : > { %v7036_v39 = vpop.permute.xlu0 %7035  ;;  %7053 = vrot.lane.b32.xlu1 %v13820_v40, %s15231_s23 }
 0xa73   : > { %v7483_v50 = vsel %vm2329_vm7, %v7451_v42, %v7036_v39  ;;  %v9022_v39 = vpop.f32.mrf.mxu1 }
 0xa74   : > { %v7515_v32 = vsel %vm2362_vm9, %v7483_v50, %v7132_v12  ;;  %v13845_v7 = vpop.permute.xlu1 %6665  ;;  %6869 = vrot.lane.b32.xlu0 %v13796_v25, %s15176_s30  ;;  %6190 = vst.msk [vmem:[#allocation5 + $0x190] sm:$0xff] %vm934_vm1, %v9022_v39 }
 0xa75   : > { %v7547_v54 = vsel %vm2395_vm10, %v7515_v32, %v7228_v33  ;;  %v6230_v33 = vld [vmem:[#allocation5 + $0xf8] sm:$0xff]  ;;  %v7326_v32 = vsel %vm934_vm1, %v13523_v26, %v13687_v37  ;;  %v7325_v26 = vsel %vm934_vm1, %v13528_v51, %v13690_v52 }
 0xa76   : > { %9045 = vmatprep.mubr.msk.f32.mxu0 %vm15242_vm4, %v7547_v54  ;;  %v13853_v30 = vpop.permute.xlu0 %6567  ;;  %7243 = vrot.lane.b32.xlu1 %v6479_v28, %s15236_s22  ;;  %v6485_v16 = vrot.slane %v6230_v33, 1  ;;  %v7358_v54 = vsel %vm580_vm0, %v7326_v32, %v13712_v44  ;;  %v6355_v33 = vrot.slane %v13868_v10, 7  ;;  %v7357_v44 = vsel %vm580_vm0, %v7325_v26, %v13734_v34 }
 0xa77   : > { %9046 = vmatmul.mubr.msk.f32.vlgmr.msra.gmra.mxu0 %vm15243_vm11, %v7548_v47  ;;  %v6045_v47 = vpop.f32.mrf.mxu1  ;;  %v7390_v45 = vsel %vm2230_vm5, %v7358_v54, %v13776_v36  ;;  %vm15248_vm11 = vmmov %vm15242_vm4 }
 0xa78   : > { %v13857_v12 = vpop.permute.xlu1 %6949  ;;  %6675 = vrot.lane.b32.xlu0 %v6479_v28, %s9173_s27  ;;  %v6486_v48 = vsel %vm1289_vm2, %v6483_v57, %v6485_v16  ;;  %v6357_v16 = vrot.slane %v13796_v25, 7  ;;  %6189 = vst.msk [vmem:[#allocation5 + $0x188] sm:$0xff] %vm934_vm1, %v6045_v47  ;;  %v7422_v36 = vsel %vm2263_vm6, %v7390_v45, %v13724_v59  ;;  %v7389_v25 = vsel %vm2230_vm5, %v7357_v44, %v13823_v24 }
 0xa79   : > { %v7421_v34 = vsel %vm2263_vm6, %v7389_v25, %v13744_v23  ;;  %v7454_v59 = vsel %vm2296_vm8, %v7422_v36, %v13760_v46 }
 0xa7a   : > { %v7136_v18 = vpop.permute.xlu0 %7135  ;;  %6959 = vrot.lane.b32.xlu1 %v6479_v28, %s15234_s21  ;;  %v13918_v51 = vsel %vm1160_vm3, %v6355_v33, %v6357_v16  ;;  %v7453_v54 = vsel %vm2296_vm8, %v7421_v34, %v13814_v38  ;;  %v6488_v34 = vrot.slane %v13890_v53, 1 }
 0xa7c   : > { %v13864_v9 = vpop.permute.xlu1 %6573  ;;  %6767 = vrot.lane.b32.xlu0 %v13862_v14, %s15235_s24 }
 0xa7e   : > { %v7234_v22 = vpop.permute.xlu0 %7233  ;;  %6867 = vrot.lane.b32.xlu1 %v13868_v10, %s15176_s30 }
 0xa80   : > { %v13873_v11 = vpop.permute.xlu1 %6757  ;;  %7051 = vrot.lane.b32.xlu0 %v13862_v14, %s15231_s23 }
 0xa82   : > { %v13878_v42 = vpop.permute.xlu0 %7141  ;;  %6681 = vrot.lane.b32.xlu1 %v6486_v48, %s9173_s27 }
 0xa84   : > { %v7042_v29 = vpop.permute.xlu1 %7041  ;;  %6583 = vrot.lane.b32.xlu0 %v13868_v10, %s15232_s28 }
 0xa85   : > { %v7486_v24 = vsel %vm2329_vm7, %v7454_v59, %v7042_v29 }
 0xa86   : > { %v13884_v50 = vpop.permute.xlu0 %6857  ;;  %6965 = vrot.lane.b32.xlu1 %v6486_v48, %s15234_s21  ;;  %v7518_v23 = vsel %vm2362_vm9, %v7486_v24, %v13781_v8 }
 0xa87   : > { %v7550_v8 = vsel %vm2395_vm10, %v7518_v23, %v7234_v22  ;;  %v13965_v22 = vld [vmem:[#allocation5 + $0x108] sm:$0xff] }
 0xa88   : > { %v7232_v28 = vpop.permute.xlu1 %7231  ;;  %7151 = vrot.lane.b32.xlu0 %v13868_v10, %s15233_s26 }
 0xa8a   : > { %v13904_v37 = vpop.permute.xlu0 %6663  ;;  %6589 = vrot.lane.b32.xlu1 %v13890_v53, %s15232_s28 }
 0xa8c   : > { %v13914_v39 = vpop.permute.xlu1 %6947  ;;  %7249 = vrot.lane.b32.xlu0 %v6486_v48, %s15236_s22  ;;  %v6482_v48 = vrot.slane %v13868_v10, 1  ;;  %v6227_v10 = vld [vmem:[#allocation5 + $0xe0] sm:$0xff] }
 0xa8e   : > { %v13920_v52 = vpop.permute.xlu0 %6755  ;;  %6773 = vrot.lane.b32.xlu1 %v13918_v51, %s15235_s24  ;;  %v6484_v38 = vsel %vm1289_vm2, %v6482_v48, %v6483_v57 }
 0xa90   : > { %v13929_v32 = vpop.permute.xlu1 %6855  ;;  %7157 = vrot.lane.b32.xlu0 %v13890_v53, %s15233_s26 }
 0xa92   : > { %v7040_v47 = vpop.permute.xlu0 %7039  ;;  %7057 = vrot.lane.b32.xlu1 %v13918_v51, %s15231_s23 }
 0xa93   : > { %v7485_v46 = vsel %vm2329_vm7, %v7453_v54, %v7040_v47  ;;  %v9025_v47 = vpop.f32.mrf.mxu1 }
 0xa94   : > { %v7517_v29 = vsel %vm2362_vm9, %v7485_v46, %v7136_v18  ;;  %v13942_v45 = vpop.permute.xlu1 %6669  ;;  %6873 = vrot.lane.b32.xlu0 %v13890_v53, %s15176_s30  ;;  %v6354_v18 = vrot.slane %v6227_v10, 7  ;;  %6192 = vst.msk [vmem:[#allocation5 + $0x1b0] sm:$0xff] %vm934_vm1, %v9025_v47  ;;  %v13987_v10 = vld [vmem:[#allocation5 + $0x130] sm:$0xff] }
 0xa95   : > { %v7549_v16 = vsel %vm2395_vm10, %v7517_v29, %v7232_v28  ;;  %v6234_v28 = vld [vmem:[#allocation5 + $0x118] sm:$0xff]  ;;  %v7328_v29 = vsel %vm934_vm1, %v13560_v56, %v13729_v19  ;;  %v7327_v56 = vsel %vm934_vm1, %v13591_v20, %v13757_v6 }
 0xa96   : > { %9048 = vmatprep.mubr.msk.f32.mxu0 %vm15244_vm12, %v7549_v16  ;;  %v13949_v26 = vpop.permute.xlu0 %6571  ;;  %7247 = vrot.lane.b32.xlu1 %v6484_v38, %s15236_s22  ;;  %v13959_v57 = vsel %vm1160_vm3, %v6354_v18, %v6355_v33  ;;  %v6490_v59 = vrot.slane %v6234_v28, 1  ;;  %v7360_v16 = vsel %vm580_vm0, %v7328_v29, %v13752_v17  ;;  %v6360_v28 = vrot.slane %v13965_v22, 7  ;;  %vm15249_vm12 = vmmov %vm15242_vm4 }
 0xa97   : > { %9049 = vmatmul.mubr.msk.f32.gmra.mxu0 %vm15245_vm13, %v7550_v8  ;;  %v6055_v8 = vpop.f32.mrf.mxu1  ;;  %v7392_v18 = vsel %vm2230_vm5, %v7360_v16, %v13873_v11  ;;  %v7359_v17 = vsel %vm580_vm0, %v7327_v56, %v13808_v35  ;;  %vm15250_vm13 = vmmov %vm15242_vm4 }
 0xa98   : > { %v13954_v44 = vpop.permute.xlu1 %6953  ;;  %6679 = vrot.lane.b32.xlu0 %v6484_v38, %s9173_s27  ;;  %v6491_v33 = vsel %vm1289_vm2, %v6488_v34, %v6490_v59  ;;  %v6362_v59 = vrot.slane %v13890_v53, 7  ;;  %6191 = vst.msk [vmem:[#allocation5 + $0x1a8] sm:$0xff] %vm934_vm1, %v6055_v8  ;;  %v7424_v11 = vsel %vm2263_vm6, %v7392_v18, %v13790_v61  ;;  %v7391_v53 = vsel %vm2230_vm5, %v7359_v17, %v13920_v52 }
 0xa99   : > { %v7423_v35 = vsel %vm2263_vm6, %v7391_v53, %v13830_v27  ;;  %v7456_v61 = vsel %vm2296_vm8, %v7424_v11, %v13857_v12 }
 0xa9a   : > { %v7140_v36 = vpop.permute.xlu0 %7139  ;;  %6963 = vrot.lane.b32.xlu1 %v6484_v38, %s15234_s21  ;;  %v14015_v20 = vsel %vm1160_vm3, %v6360_v28, %v6362_v59  ;;  %v7455_v16 = vsel %vm2296_vm8, %v7423_v35, %v13914_v39  ;;  %v6493_v35 = vrot.slane %v13987_v10, 1 }
 0xa9c   : > { %v13961_v25 = vpop.permute.xlu1 %6577  ;;  %6771 = vrot.lane.b32.xlu0 %v13959_v57, %s15235_s24 }
 0xa9e   : > { %v7238_v24 = vpop.permute.xlu0 %7237  ;;  %6871 = vrot.lane.b32.xlu1 %v13965_v22, %s15176_s30 }
 0xaa0   : > { %v13970_v48 = vpop.permute.xlu1 %6761  ;;  %7055 = vrot.lane.b32.xlu0 %v13959_v57, %s15231_s23 }
 0xaa2   : > { %v13975_v54 = vpop.permute.xlu0 %7145  ;;  %6685 = vrot.lane.b32.xlu1 %v6491_v33, %s9173_s27 }
 0xaa4   : > { %v7046_v23 = vpop.permute.xlu1 %7045  ;;  %6587 = vrot.lane.b32.xlu0 %v13965_v22, %s15232_s28 }
 0xaa5   : > { %v7488_v52 = vsel %vm2329_vm7, %v7456_v61, %v7046_v23 }
 0xaa6   : > { %v13981_v46 = vpop.permute.xlu0 %6861  ;;  %6969 = vrot.lane.b32.xlu1 %v6491_v33, %s15234_s21  ;;  %v7520_v27 = vsel %vm2362_vm9, %v7488_v52, %v13878_v42 }
 0xaa7   : > { %v7552_v42 = vsel %vm2395_vm10, %v7520_v27, %v7238_v24  ;;  %v14062_v24 = vld [vmem:[#allocation5 + $0x128] sm:$0xff] }
 0xaa8   : > { %v7236_v38 = vpop.permute.xlu1 %7235  ;;  %7155 = vrot.lane.b32.xlu0 %v13965_v22, %s15233_s26 }
 0xaaa   : > { %v14001_v19 = vpop.permute.xlu0 %6667  ;;  %6593 = vrot.lane.b32.xlu1 %v13987_v10, %s15232_s28 }
 0xaac   : > { %v14011_v47 = vpop.permute.xlu1 %6951  ;;  %7253 = vrot.lane.b32.xlu0 %v6491_v33, %s15236_s22  ;;  %v6487_v33 = vrot.slane %v13965_v22, 1  ;;  %v6231_v22 = vld [vmem:[#allocation5 + $0x100] sm:$0xff] }
 0xaae   : > { %v14017_v6 = vpop.permute.xlu0 %6759  ;;  %6777 = vrot.lane.b32.xlu1 %v14015_v20, %s15235_s24  ;;  %v6489_v39 = vsel %vm1289_vm2, %v6487_v33, %v6488_v34 }
 0xab0   : > { %v14026_v29 = vpop.permute.xlu1 %6859  ;;  %7161 = vrot.lane.b32.xlu0 %v13987_v10, %s15233_s26 }
 0xab2   : > { %v7044_v8 = vpop.permute.xlu0 %7043  ;;  %7061 = vrot.lane.b32.xlu1 %v14015_v20, %s15231_s23 }
 0xab3   : > { %v7487_v12 = vsel %vm2329_vm7, %v7455_v16, %v7044_v8  ;;  %v9028_v8 = vpop.f32.mrf.mxu1 }
 0xab4   : > { %v7519_v23 = vsel %vm2362_vm9, %v7487_v12, %v7140_v36  ;;  %v14039_v18 = vpop.permute.xlu1 %6673  ;;  %6877 = vrot.lane.b32.xlu0 %v13987_v10, %s15176_s30  ;;  %v6359_v36 = vrot.slane %v6231_v22, 7  ;;  %6194 = vst.msk [vmem:[#allocation5 + $0x1d0] sm:$0xff] %vm934_vm1, %v9028_v8  ;;  %v14084_v22 = vld [vmem:[#allocation5 + $0x150] sm:$0xff] }
 0xab5   : > { %v7551_v59 = vsel %vm2395_vm10, %v7519_v23, %v7236_v38  ;;  %v6238_v38 = vld [vmem:[#allocation5 + $0x138] sm:$0xff]  ;;  %v7330_v23 = vsel %vm934_vm1, %v13618_v1, %v13767_v41  ;;  %v7329_v1 = vsel %vm934_vm1, %v13635_v3, %v13853_v30 }
 0xab6   : > { %9051 = vmatprep.mubr.msk.f32.mxu0 %vm15246_vm14, %v7551_v59  ;;  %v14046_v56 = vpop.permute.xlu0 %6575  ;;  %7251 = vrot.lane.b32.xlu1 %v6489_v39, %s15236_s22  ;;  %v14056_v34 = vsel %vm1160_vm3, %v6359_v36, %v6360_v28  ;;  %v6495_v61 = vrot.slane %v6238_v38, 1  ;;  %v7362_v59 = vsel %vm580_vm0, %v7330_v23, %v13845_v7  ;;  %v6365_v38 = vrot.slane %v14062_v24, 7  ;;  %vm15251_vm14 = vmmov %vm15242_vm4 }
 0xab7   : > { %9052 = vmatmul.mubr.msk.f32.gmra.mxu0 %vm15247_vm15, %v7552_v42  ;;  %v6065_v42 = vpop.f32.mrf.mxu1  ;;  %v7394_v36 = vsel %vm2230_vm5, %v7362_v59, %v13970_v48  ;;  %v7361_v7 = vsel %vm580_vm0, %v7329_v1, %v13904_v37  ;;  %vm15252_vm15 = vmmov %vm15242_vm4 }
 0xab8   : > { %v14051_v17 = vpop.permute.xlu1 %6957  ;;  %6683 = vrot.lane.b32.xlu0 %v6489_v39, %s9173_s27  ;;  %v6496_v28 = vsel %vm1289_vm2, %v6493_v35, %v6495_v61  ;;  %v6367_v61 = vrot.slane %v13987_v10, 7  ;;  %6193 = vst.msk [vmem:[#allocation5 + $0x1c8] sm:$0xff] %vm934_vm1, %v6065_v42  ;;  %v7426_v48 = vsel %vm2263_vm6, %v7394_v36, %v13884_v50  ;;  %v7393_v10 = vsel %vm2230_vm5, %v7361_v7, %v14017_v6 }
 0xab9   : > { %v7425_v37 = vsel %vm2263_vm6, %v7393_v10, %v13929_v32  ;;  %v7458_v50 = vsel %vm2296_vm8, %v7426_v48, %v13954_v44 }
 0xaba   : > { %v7144_v11 = vpop.permute.xlu0 %7143  ;;  %6967 = vrot.lane.b32.xlu1 %v6489_v39, %s15234_s21  ;;  %v14112_v3 = vsel %vm1160_vm3, %v6365_v38, %v6367_v61  ;;  %v7457_v59 = vsel %vm2296_vm8, %v7425_v37, %v14011_v47  ;;  %v6498_v37 = vrot.slane %v14084_v22, 1 }
 0xabc   : > { %v14058_v53 = vpop.permute.xlu1 %6581  ;;  %6775 = vrot.lane.b32.xlu0 %v14056_v34, %s15235_s24 }
 0xabe   : > { %v7242_v52 = vpop.permute.xlu0 %7241  ;;  %6875 = vrot.lane.b32.xlu1 %v14062_v24, %s15176_s30 }
 0xac0   : > { %v14067_v33 = vpop.permute.xlu1 %6765  ;;  %7059 = vrot.lane.b32.xlu0 %v14056_v34, %s15231_s23 }
 0xac2   : > { %v14072_v16 = vpop.permute.xlu0 %7149  ;;  %6689 = vrot.lane.b32.xlu1 %v6496_v28, %s9173_s27 }
 0xac4   : > { %v7050_v27 = vpop.permute.xlu1 %7049  ;;  %6591 = vrot.lane.b32.xlu0 %v14062_v24, %s15232_s28 }
 0xac5   : > { %v7490_v6 = vsel %vm2329_vm7, %v7458_v50, %v7050_v27 }
 0xac6   : > { %v14078_v12 = vpop.permute.xlu0 %6865  ;;  %6973 = vrot.lane.b32.xlu1 %v6496_v28, %s15234_s21  ;;  %v7522_v32 = vsel %vm2362_vm9, %v7490_v6, %v13975_v54 }
 0xac7   : > { %v7554_v54 = vsel %vm2395_vm10, %v7522_v32, %v7242_v52  ;;  %v14159_v52 = vld [vmem:[#allocation5 + $0x148] sm:$0xff] }
 0xac8   : > { %v7240_v39 = vpop.permute.xlu1 %7239  ;;  %7159 = vrot.lane.b32.xlu0 %v14062_v24, %s15233_s26 }
 0xaca   : > { %v14098_v41 = vpop.permute.xlu0 %6671  ;;  %6597 = vrot.lane.b32.xlu1 %v14084_v22, %s15232_s28 }
 0xacc   : > { %v14108_v8 = vpop.permute.xlu1 %6955  ;;  %7257 = vrot.lane.b32.xlu0 %v6496_v28, %s15236_s22  ;;  %v6492_v28 = vrot.slane %v14062_v24, 1  ;;  %v6235_v24 = vld [vmem:[#allocation5 + $0x120] sm:$0xff] }
 0xace   : > { %v14114_v30 = vpop.permute.xlu0 %6763  ;;  %6781 = vrot.lane.b32.xlu1 %v14112_v3, %s15235_s24  ;;  %v6494_v47 = vsel %vm1289_vm2, %v6492_v28, %v6493_v35 }
 0xad0   : > { %v14123_v23 = vpop.permute.xlu1 %6863  ;;  %7165 = vrot.lane.b32.xlu0 %v14084_v22, %s15233_s26 }
 0xad2   : > { %v7048_v42 = vpop.permute.xlu0 %7047  ;;  %7065 = vrot.lane.b32.xlu1 %v14112_v3, %s15231_s23 }
 0xad3   : > { %v7489_v44 = vsel %vm2329_vm7, %v7457_v59, %v7048_v42  ;;  %v9031_v42 = vpop.f32.mrf.mxu1 }
 0xad4   : > { %v7521_v27 = vsel %vm2362_vm9, %v7489_v44, %v7144_v11  ;;  %v14136_v36 = vpop.permute.xlu1 %6677  ;;  %6881 = vrot.lane.b32.xlu0 %v14084_v22, %s15176_s30  ;;  %v6364_v11 = vrot.slane %v6235_v24, 7  ;;  %6196 = vst.msk [vmem:[#allocation5 + $0x1f0] sm:$0xff] %vm934_vm1, %v9031_v42  ;;  %v14181_v24 = vld [vmem:[#allocation5 + $0x170] sm:$0xff] }
 0xad5   : > { %v7553_v61 = vsel %vm2395_vm10, %v7521_v27, %v7240_v39  ;;  %v6242_v39 = vld [vmem:[#allocation5 + $0x158] sm:$0xff]  ;;  %v7332_v27 = vsel %vm934_vm1, %v13669_v31, %v13864_v9  ;;  %v7331_v31 = vsel %vm934_vm1, %v13694_v4, %v13949_v26 }
 0xad6   : > { %9054 = vmatprep.mubr.msk.f32.mxu0 %vm15242_vm4, %v7553_v61  ;;  %v14143_v1 = vpop.permute.xlu0 %6579  ;;  %7255 = vrot.lane.b32.xlu1 %v6494_v47, %s15236_s22  ;;  %v14153_v35 = vsel %vm1160_vm3, %v6364_v11, %v6365_v38  ;;  %v6500_v50 = vrot.slane %v6242_v39, 1  ;;  %v7364_v61 = vsel %vm580_vm0, %v7332_v27, %v13942_v45  ;;  %v6370_v11 = vrot.slane %v14159_v52, 7 }
 0xad7   : > { %9055 = vmatmul.mubr.msk.f32.gmra.mxu0 %vm15248_vm11, %v7554_v54  ;;  %v7396_v54 = vsel %vm2230_vm5, %v7364_v61, %v14067_v33  ;;  %v6372_v39 = vrot.slane %v14084_v22, 7  ;;  %v7363_v45 = vsel %vm580_vm0, %v7331_v31, %v14001_v19  ;;  %vm15253_vm11 = vmmov %vm15242_vm4 }
 0xad8   : > { %v14148_v7 = vpop.permute.xlu1 %6961  ;;  %6687 = vrot.lane.b32.xlu0 %v6494_v47, %s9173_s27  ;;  %v6501_v38 = vsel %vm1289_vm2, %v6498_v37, %v6500_v50  ;;  %v7428_v50 = vsel %vm2263_vm6, %v7396_v54, %v13981_v46  ;;  %v7395_v33 = vsel %vm2230_vm5, %v7363_v45, %v14114_v30 }
 0xad9   : > { %v14208_v4 = vsel %vm1160_vm3, %v6370_v11, %v6372_v39  ;;  %v7427_v19 = vsel %vm2263_vm6, %v7395_v33, %v14026_v29  ;;  %v7460_v46 = vsel %vm2296_vm8, %v7428_v50, %v14051_v17  ;;  %v6075_v29 = vpop.f32.mrf.mxu1 }
 0xada   : > { %v7148_v48 = vpop.permute.xlu0 %7147  ;;  %6971 = vrot.lane.b32.xlu1 %v6494_v47, %s15234_s21  ;;  %v7459_v27 = vsel %vm2296_vm8, %v7427_v19, %v14108_v8  ;;  %6195 = vst.msk [vmem:[#allocation5 + $0x1e8] sm:$0xff] %vm934_vm1, %v6075_v29  ;;  %v6239_v8 = vld [vmem:[#allocation5 + $0x140] sm:$0xff] }
 0xadc   : > { %v14155_v10 = vpop.permute.xlu1 %6585  ;;  %6779 = vrot.lane.b32.xlu0 %v14153_v35, %s15235_s24 }
 0xade   : > { %v7246_v6 = vpop.permute.xlu0 %7245  ;;  %6879 = vrot.lane.b32.xlu1 %v14159_v52, %s15176_s30 }
 0xae0   : > { %v14164_v28 = vpop.permute.xlu1 %6769  ;;  %7063 = vrot.lane.b32.xlu0 %v14153_v35, %s15231_s23 }
 0xae2   : > { %v14169_v59 = vpop.permute.xlu0 %7153  ;;  %6693 = vrot.lane.b32.xlu1 %v6501_v38, %s9173_s27 }
 0xae4   : > { %v7054_v32 = vpop.permute.xlu1 %7053  ;;  %6595 = vrot.lane.b32.xlu0 %v14159_v52, %s15232_s28 }
 0xae5   : > { %v7492_v22 = vsel %vm2329_vm7, %v7460_v46, %v7054_v32  ;;  %v6503_v46 = vrot.slane %v14181_v24, 1 }
 0xae6   : > { %v14175_v44 = vpop.permute.xlu0 %6869  ;;  %6977 = vrot.lane.b32.xlu1 %v6501_v38, %s15234_s21  ;;  %v7524_v17 = vsel %vm2362_vm9, %v7492_v22, %v14072_v16 }
 0xae7   : > { %v7556_v16 = vsel %vm2395_vm10, %v7524_v17, %v7246_v6  ;;  %v14256_v6 = vld [vmem:[#allocation5 + $0x168] sm:$0xff] }
 0xae8   : > { %v7244_v47 = vpop.permute.xlu1 %7243  ;;  %7163 = vrot.lane.b32.xlu0 %v14159_v52, %s15233_s26 }
 0xaea   : > { %v14194_v9 = vpop.permute.xlu0 %6675  ;;  %6601 = vrot.lane.b32.xlu1 %v14181_v24, %s15232_s28 }
 0xaec   : > { %v14204_v42 = vpop.permute.xlu1 %6959  ;;  %7261 = vrot.lane.b32.xlu0 %v6501_v38, %s15236_s22  ;;  %v6497_v38 = vrot.slane %v14159_v52, 1 }
 0xaee   : > { %v14210_v26 = vpop.permute.xlu0 %6767  ;;  %6785 = vrot.lane.b32.xlu1 %v14208_v4, %s15235_s24  ;;  %v6499_v31 = vsel %vm1289_vm2, %v6497_v38, %v6498_v37 }
 0xaf0   : > { %v14219_v30 = vpop.permute.xlu1 %6867  ;;  %7169 = vrot.lane.b32.xlu0 %v14181_v24, %s15233_s26 }
 0xaf2   : > { %v7052_v61 = vpop.permute.xlu0 %7051  ;;  %7069 = vrot.lane.b32.xlu1 %v14208_v4, %s15231_s23 }
 0xaf3   : > { %v7491_v32 = vsel %vm2329_vm7, %v7459_v27, %v7052_v61  ;;  %v9034_v27 = vpop.f32.mrf.mxu1 }
 0xaf4   : > { %v7523_v54 = vsel %vm2362_vm9, %v7491_v32, %v7148_v48  ;;  %v14233_v39 = vpop.permute.xlu1 %6681  ;;  %6885 = vrot.lane.b32.xlu0 %v14181_v24, %s15176_s30  ;;  %v6369_v48 = vrot.slane %v6239_v8, 7  ;;  %6198 = vst.msk [vmem:[#allocation5 + $0x210] sm:$0xff] %vm934_vm1, %v9034_v27  ;;  %v7334_v8 = vsel %vm934_vm1, %v13740_v0, %v13961_v25  ;;  %v7333_v0 = vsel %vm934_vm1, %v13765_v55, %v14046_v56 }
 0xaf5   : > { %v7555_v52 = vsel %vm2395_vm10, %v7523_v54, %v7244_v47  ;;  %v6246_v47 = vld [vmem:[#allocation5 + $0x178] sm:$0xff] }
 0xaf6   : > { %9057 = vmatprep.mubr.msk.f32.mxu0 %vm15249_vm12, %v7555_v52  ;;  %v14240_v45 = vpop.permute.xlu0 %6583  ;;  %7259 = vrot.lane.b32.xlu1 %v6499_v31, %s15236_s22  ;;  %v14250_v37 = vsel %vm1160_vm3, %v6369_v48, %v6370_v11  ;;  %v6505_v22 = vrot.slane %v6246_v47, 1  ;;  %v6085_v11 = vpop.f32.mrf.mxu1  ;;  %v14279_v52 = vld [vmem:[#allocation5 + $0x190] sm:$0xff]  ;;  %v6375_v47 = vrot.slane %v14256_v6, 7  ;;  %vm15255_vm12 = vmmov %vm15242_vm4 }
 0xaf7   : > { %9058 = vmatmul.mubr.msk.f32.gmra.mxu0 %vm15250_vm13, %v7556_v16  ;;  %6197 = vst.msk [vmem:[#allocation5 + $0x208] sm:$0xff] %vm934_vm1, %v6085_v11  ;;  %vm15256_vm13 = vmmov %vm15242_vm4 }
 0xaf8   : > { %v14245_v50 = vpop.permute.xlu1 %6965  ;;  %6691 = vrot.lane.b32.xlu0 %v6499_v31, %s9173_s27  ;;  %v6506_v29 = vsel %vm1289_vm2, %v6503_v46, %v6505_v22  ;;  %v6377_v22 = vrot.slane %v14181_v24, 7 }
 0xafa   : > { %v7152_v33 = vpop.permute.xlu0 %7151  ;;  %6975 = vrot.lane.b32.xlu1 %v6499_v31, %s15234_s21  ;;  %v7366_v31 = vsel %vm580_vm0, %v7334_v8, %v14039_v18  ;;  %v7365_v18 = vsel %vm580_vm0, %v7333_v0, %v14098_v41  ;;  %v14306_v55 = vsel %vm1160_vm3, %v6375_v47, %v6377_v22 }
 0xafb   : > { %v7398_v48 = vsel %vm2230_vm5, %v7366_v31, %v14164_v28  ;;  %v7397_v28 = vsel %vm2230_vm5, %v7365_v18, %v14210_v26 }
 0xafc   : > { %v14252_v19 = vpop.permute.xlu1 %6589  ;;  %6783 = vrot.lane.b32.xlu0 %v14250_v37, %s15235_s24  ;;  %v7430_v27 = vsel %vm2263_vm6, %v7398_v48, %v14078_v12  ;;  %v7429_v41 = vsel %vm2263_vm6, %v7397_v28, %v14123_v23 }
 0xafd   : > { %v7462_v12 = vsel %vm2296_vm8, %v7430_v27, %v14148_v7  ;;  %v7461_v8 = vsel %vm2296_vm8, %v7429_v41, %v14204_v42  ;;  %v6508_v41 = vrot.slane %v14279_v52, 1 }
 0xafe   : > { %v7250_v38 = vpop.permute.xlu0 %7249  ;;  %6883 = vrot.lane.b32.xlu1 %v14256_v6, %s15176_s30 }
 0xb00   : > { %v14262_v61 = vpop.permute.xlu1 %6773  ;;  %7067 = vrot.lane.b32.xlu0 %v14250_v37, %s15231_s23 }
 0xb02   : > { %v14268_v17 = vpop.permute.xlu0 %7157  ;;  %6697 = vrot.lane.b32.xlu1 %v6506_v29, %s9173_s27 }
 0xb04   : > { %v7058_v32 = vpop.permute.xlu1 %7057  ;;  %6599 = vrot.lane.b32.xlu0 %v14256_v6, %s15232_s28 }
 0xb05   : > { %v7494_v24 = vsel %vm2329_vm7, %v7462_v12, %v7058_v32 }
 0xb06   : > { %v14273_v54 = vpop.permute.xlu0 %6873  ;;  %6981 = vrot.lane.b32.xlu1 %v6506_v29, %s15234_s21  ;;  %v7526_v23 = vsel %vm2362_vm9, %v7494_v24, %v14169_v59 }
 0xb07   : > { %v7558_v59 = vsel %vm2395_vm10, %v7526_v23, %v7250_v38  ;;  %v14351_v38 = vld [vmem:[#allocation5 + $0x188] sm:$0xff] }
 0xb08   : > { %v7248_v16 = vpop.permute.xlu1 %7247  ;;  %7167 = vrot.lane.b32.xlu0 %v14256_v6, %s15233_s26 }
 0xb0a   : > { %v14292_v25 = vpop.permute.xlu0 %6679  ;;  %6605 = vrot.lane.b32.xlu1 %v14279_v52, %s15232_s28 }
 0xb0c   : > { %v14302_v11 = vpop.permute.xlu1 %6963  ;;  %7265 = vrot.lane.b32.xlu0 %v6506_v29, %s15236_s22  ;;  %v6502_v29 = vrot.slane %v14256_v6, 1  ;;  %v6243_v6 = vld [vmem:[#allocation5 + $0x160] sm:$0xff] }
 0xb0e   : > { %v6772_v56 = vpop.permute.xlu0 %6771  ;;  %6789 = vrot.lane.b32.xlu1 %v14306_v55, %s15235_s24  ;;  %v6504_v42 = vsel %vm1289_vm2, %v6502_v29, %v6503_v46 }
 0xb10   : > { %v14315_v26 = vpop.permute.xlu1 %6871  ;;  %7173 = vrot.lane.b32.xlu0 %v14279_v52, %s15233_s26 }
 0xb12   : > { %v7056_v31 = vpop.permute.xlu0 %7055  ;;  %7073 = vrot.lane.b32.xlu1 %v14306_v55, %s15231_s23 }
 0xb13   : > { %v7493_v7 = vsel %vm2329_vm7, %v7461_v8, %v7056_v31 }
 0xb14   : > { %v7525_v32 = vsel %vm2362_vm9, %v7493_v7, %v7152_v33  ;;  %v14328_v48 = vpop.permute.xlu1 %6685  ;;  %6889 = vrot.lane.b32.xlu0 %v14279_v52, %s15176_s30  ;;  %v6374_v33 = vrot.slane %v6243_v6, 7  ;;  %v7336_v7 = vsel %vm934_vm1, %v13820_v40, %v14058_v53  ;;  %v7335_v40 = vsel %vm934_vm1, %v13862_v14, %v14143_v1 }
 0xb15   : > { %v7557_v22 = vsel %vm2395_vm10, %v7525_v32, %v7248_v16  ;;  %v6250_v16 = vld [vmem:[#allocation5 + $0x198] sm:$0xff]  ;;  %v14372_v32 = vld [vmem:[#allocation5 + $0x1b0] sm:$0xff]  ;;  %v7368_v6 = vsel %vm580_vm0, %v7336_v7, %v14136_v36  ;;  %v7367_v36 = vsel %vm580_vm0, %v7335_v40, %v14194_v9 }
 0xb16   : > { %9060 = vmatprep.mubr.msk.f32.mxu0 %vm15251_vm14, %v7557_v22  ;;  %v14335_v0 = vpop.permute.xlu0 %6587  ;;  %7263 = vrot.lane.b32.xlu1 %v6504_v42, %s15236_s22  ;;  %v14345_v46 = vsel %vm1160_vm3, %v6374_v33, %v6375_v47  ;;  %v6510_v12 = vrot.slane %v6250_v16, 1  ;;  %v6382_v33 = vrot.slane %v14279_v52, 7  ;;  %v14431_v40 = vld [vmem:[%s15101_s13] ss:$0 sm:$0xff]  ;;  %vm15257_vm14 = vmmov %vm15242_vm4 }
 0xb17   : > { %9061 = vmatmul.mubr.msk.f32.gmra.mxu0 %vm15252_vm15, %v7558_v59  ;;  %v6380_v59 = vrot.slane %v14351_v38, 7  ;;  %vm15258_vm15 = vmmov %vm15242_vm4 }
 0xb18   : > { %v14340_v18 = vpop.permute.xlu1 %6969  ;;  %6695 = vrot.lane.b32.xlu0 %v6504_v42, %s9173_s27  ;;  %v6511_v47 = vsel %vm1289_vm2, %v6508_v41, %v6510_v12 }
 0xb19   : > { %v14398_v52 = vsel %vm1160_vm3, %v6380_v59, %v6382_v33 }
 0xb1a   : > { %v7156_v27 = vpop.permute.xlu0 %7155  ;;  %6979 = vrot.lane.b32.xlu1 %v6504_v42, %s15234_s21  ;;  %v7400_v42 = vsel %vm2230_vm5, %v7368_v6, %v14262_v61  ;;  %v7399_v61 = vsel %vm2230_vm5, %v7367_v36, %v6772_v56 }
 0xb1b   : > { %v7432_v16 = vsel %vm2263_vm6, %v7400_v42, %v14175_v44  ;;  %v7431_v1 = vsel %vm2263_vm6, %v7399_v61, %v14219_v30 }
 0xb1c   : > { %v14347_v28 = vpop.permute.xlu1 %6593  ;;  %6787 = vrot.lane.b32.xlu0 %v14345_v46, %s15235_s24  ;;  %v7464_v44 = vsel %vm2296_vm8, %v7432_v16, %v14245_v50  ;;  %v7463_v7 = vsel %vm2296_vm8, %v7431_v1, %v14302_v11 }
 0xb1e   : > { %v7254_v24 = vpop.permute.xlu0 %7253  ;;  %6887 = vrot.lane.b32.xlu1 %v14351_v38, %s15176_s30 }
 0xb20   : > { %v14356_v29 = vpop.permute.xlu1 %6777  ;;  %7071 = vrot.lane.b32.xlu0 %v14345_v46, %s15231_s23 }
 0xb22   : > { %v14361_v8 = vpop.permute.xlu0 %7161  ;;  %6701 = vrot.lane.b32.xlu1 %v6511_v47, %s9173_s27 }
 0xb24   : > { %v7062_v31 = vpop.permute.xlu1 %7061  ;;  %6603 = vrot.lane.b32.xlu0 %v14351_v38, %s15232_s28 }
 0xb25   : > { %v7496_v9 = vsel %vm2329_vm7, %v7464_v44, %v7062_v31 }
 0xb26   : > { %v14366_v23 = vpop.permute.xlu0 %6877  ;;  %6985 = vrot.lane.b32.xlu1 %v6511_v47, %s15234_s21  ;;  %v7528_v30 = vsel %vm2362_vm9, %v7496_v9, %v14268_v17  ;;  %v7915_v9 = vadd.f32 %v12316_v2, %v10762_v63 }
 0xb28   : > { %v7252_v22 = vpop.permute.xlu1 %7251  ;;  %7171 = vrot.lane.b32.xlu0 %v14351_v38, %s15233_s26 }
 0xb2a   : > { %v14385_v53 = vpop.permute.xlu0 %6683  ;;  %6609 = vrot.lane.b32.xlu1 %v14372_v32, %s15232_s28 }
 0xb2c   : > { %v14394_v12 = vpop.permute.xlu1 %6967  ;;  %7269 = vrot.lane.b32.xlu0 %v6511_v47, %s15236_s22  ;;  %v6507_v47 = vrot.slane %v14351_v38, 1  ;;  %v6247_v38 = vld [vmem:[#allocation5 + $0x180] sm:$0xff] }
 0xb2d   : > { %v6379_v16 = vrot.slane %v6247_v38, 7 }
 0xb2e   : > { %v14400_v14 = vpop.permute.xlu0 %6775  ;;  %6793 = vrot.lane.b32.xlu1 %v14398_v52, %s15235_s24  ;;  %v6509_v33 = vsel %vm1289_vm2, %v6507_v47, %v6508_v41  ;;  %v7916_v41 = vadd.f32 %v12306_v5, %v10751_v21  ;;  %v6254_v5 = vld [vmem:[#allocation5 + $0x1b8] sm:$0xff] }
 0xb2f   : > { %v14457_v47 = vsel %vm1160_vm3, %v6379_v16, %v6380_v59  ;;  %v6515_v63 = vrot.slane %v6254_v5, 1 }
 0xb30   : > { %v14409_v56 = vpop.permute.xlu1 %6875  ;;  %7177 = vrot.lane.b32.xlu0 %v14372_v32, %s15233_s26 }
 0xb32   : > { %v7060_v6 = vpop.permute.xlu0 %7059  ;;  %7077 = vrot.lane.b32.xlu1 %v14398_v52, %s15231_s23 }
 0xb33   : > { %v7495_v50 = vsel %vm2329_vm7, %v7463_v7, %v7060_v6 }
 0xb34   : > { %v7527_v31 = vsel %vm2362_vm9, %v7495_v50, %v7156_v27  ;;  %v14422_v42 = vpop.permute.xlu1 %6689  ;;  %6893 = vrot.lane.b32.xlu0 %v14372_v32, %s15176_s30  ;;  %v7560_v27 = vsel %vm2395_vm10, %v7528_v30, %v7254_v24  ;;  %v14465_v30 = vld [vmem:[#allocation5 + $0x1a8] sm:$0xff]  ;;  %v6513_v50 = vrot.slane %v14372_v32, 1 }
 0xb35   : > { %v7559_v11 = vsel %vm2395_vm10, %v7527_v31, %v7252_v22  ;;  %v6512_v5 = vrot.slane %v14465_v30, 1 }
 0xb36   : > { %9063 = vmatprep.mubr.msk.f32.mxu0 %vm15242_vm4, %v7559_v11  ;;  %v14434_v17 = vpop.permute.xlu0 %6591  ;;  %7267 = vrot.lane.b32.xlu1 %v6509_v33, %s15236_s22  ;;  %v6516_v31 = vsel %vm1289_vm2, %v6513_v50, %v6515_v63 }
 0xb37   : > { %v9047_v36 = vpop.f32.mrf.mxu0  ;;  %9064 = vmatmul.mubr.msk.f32.gmra.mxu0 %vm15253_vm11, %v7560_v27  ;;  %v7338_v27 = vsel %vm934_vm1, %v13918_v51, %v14155_v10  ;;  %v7337_v51 = vsel %vm934_vm1, %v13959_v57, %v14240_v45  ;;  %vm15260_vm11 = vmmov %vm15242_vm4 }
 0xb38   : > { %v7762_v22 = vadd.f32 %v9047_v36, %v14431_v40  ;;  %v14442_v61 = vpop.permute.xlu1 %6973  ;;  %6699 = vrot.lane.b32.xlu0 %v6509_v33, %s9173_s27  ;;  %v14488_v36 = vld [vmem:[#allocation5 + $0x1d0] sm:$0xff]  ;;  %v7370_v16 = vsel %vm580_vm0, %v7338_v27, %v14233_v39  ;;  %v7369_v39 = vsel %vm580_vm0, %v7337_v51, %v14292_v25 }
 0xb39   : > { %v7756_v24 = vpop.f32.mrf.mxu0 }
 0xb3a   : > { %v7948_v1 = vadd.f32 %v7916_v41, %v7762_v22  ;;  %v7757_v44 = vadd.f32 %v14431_v40, %v7756_v24  ;;  %v7160_v21 = vpop.permute.xlu0 %7159  ;;  %6983 = vrot.lane.b32.xlu1 %v6509_v33, %s15234_s21  ;;  %v7402_v41 = vsel %vm2230_vm5, %v7370_v16, %v14356_v29  ;;  %v6385_v24 = vrot.slane %v14465_v30, 7 }
 0xb3b   : > { %v7401_v29 = vsel %vm2230_vm5, %v7369_v39, %v14400_v14 }
 0xb3c   : > { %7980 = vst.msk [vmem:[%s14450_s20 + $0x8] sm:$0xff] %vm580_vm0, %v7948_v1  ;;  %v7947_v7 = vadd.f32 %v7915_v9, %v7757_v44  ;;  %v14461_v6 = vpop.permute.xlu1 %6597  ;;  %6791 = vrot.lane.b32.xlu0 %v14457_v47, %s15235_s24  ;;  %v6387_v1 = vrot.slane %v14372_v32, 7  ;;  %v7434_v44 = vsel %vm2263_vm6, %v7402_v41, %v14273_v54  ;;  %v7433_v25 = vsel %vm2263_vm6, %v7401_v29, %v14315_v26 }
 0xb3d   : > { %v7466_v54 = vsel %vm2296_vm8, %v7434_v44, %v14340_v18 }
 0xb3e   : > { %7979 = vst.msk [vmem:[%s14450_s20] sm:$0xff] %vm580_vm0, %v7947_v7  ;;  %v7258_v2 = vpop.permute.xlu0 %7257  ;;  %6891 = vrot.lane.b32.xlu1 %v14465_v30, %s15176_s30  ;;  %v14515_v57 = vsel %vm1160_vm3, %v6385_v24, %v6387_v1  ;;  %v7465_v7 = vsel %vm2296_vm8, %v7433_v25, %v14394_v12  ;;  %v6514_v12 = vsel %vm1289_vm2, %v6512_v5, %v6513_v50  ;;  %v6258_v25 = vld [vmem:[#allocation5 + $0x1d8] sm:$0xff]  ;;  %v6518_v5 = vrot.slane %v14488_v36, 1 }
 0xb40   : > { %v14472_v59 = vpop.permute.xlu1 %6781  ;;  %7075 = vrot.lane.b32.xlu0 %v14457_v47, %s15231_s23 }
 0xb42   : > { %v14477_v38 = vpop.permute.xlu0 %7165  ;;  %6705 = vrot.lane.b32.xlu1 %v6516_v31, %s9173_s27 }
 0xb44   : > { %v7066_v11 = vpop.permute.xlu1 %7065  ;;  %6607 = vrot.lane.b32.xlu0 %v14465_v30, %s15232_s28 }
 0xb45   : > { %v7498_v32 = vsel %vm2329_vm7, %v7466_v54, %v7066_v11 }
 0xb46   : > { %v14482_v33 = vpop.permute.xlu0 %6881  ;;  %6989 = vrot.lane.b32.xlu1 %v6516_v31, %s15234_s21  ;;  %v7530_v26 = vsel %vm2362_vm9, %v7498_v32, %v14361_v8  ;;  %v6256_v32 = vld [vmem:[#allocation5 + $0x1c8] sm:$0xff] }
 0xb47   : > { %v7562_v8 = vsel %vm2395_vm10, %v7530_v26, %v7258_v2  ;;  %v7917_v2 = vadd.f32 %v12327_v13, %v10849_v15 }
 0xb48   : > { %v7256_v22 = vpop.permute.xlu1 %7255  ;;  %7175 = vrot.lane.b32.xlu0 %v14465_v30, %s15233_s26  ;;  %v6251_v30 = vld [vmem:[#allocation5 + $0x1a0] sm:$0xff] }
 0xb49   : > { %v6384_v41 = vrot.slane %v6251_v30, 7  ;;  %v14587_v30 = vld [vmem:[#allocation5 + $0x1f0] sm:$0xff] }
 0xb4a   : > { %v14501_v10 = vpop.permute.xlu0 %6687  ;;  %6613 = vrot.lane.b32.xlu1 %v14488_v36, %s15232_s28 }
 0xb4b   : > { %v14562_v54 = vsel %vm1160_vm3, %v6384_v41, %v6385_v24 }
 0xb4c   : > { %v14511_v9 = vpop.permute.xlu1 %6971  ;;  %7273 = vrot.lane.b32.xlu0 %v6516_v31, %s15236_s22 }
 0xb4e   : > { %v14517_v45 = vpop.permute.xlu0 %6779  ;;  %6797 = vrot.lane.b32.xlu1 %v14515_v57, %s15235_s24 }
 0xb50   : > { %v14526_v14 = vpop.permute.xlu1 %6879  ;;  %7181 = vrot.lane.b32.xlu0 %v14488_v36, %s15233_s26 }
 0xb52   : > { %v7064_v63 = vpop.permute.xlu0 %7063  ;;  %7081 = vrot.lane.b32.xlu1 %v14515_v57, %s15231_s23 }
 0xb53   : > { %v7497_v18 = vsel %vm2329_vm7, %v7465_v7, %v7064_v63  ;;  %v6520_v7 = vrot.slane %v6258_v25, 1 }
 0xb54   : > { %v7529_v31 = vsel %vm2362_vm9, %v7497_v18, %v7160_v21  ;;  %v14539_v11 = vpop.permute.xlu1 %6693  ;;  %6897 = vrot.lane.b32.xlu0 %v14488_v36, %s15176_s30 }
 0xb55   : > { %v7561_v27 = vsel %vm2395_vm10, %v7529_v31, %v7256_v22  ;;  %v7918_v22 = vadd.f32 %v12309_v62, %v10835_v49  ;;  %v6521_v24 = vsel %vm1289_vm2, %v6518_v5, %v6520_v7  ;;  %v7340_v31 = vsel %vm934_vm1, %v14015_v20, %v14252_v19 }
 0xb56   : > { %9066 = vmatprep.mubr.msk.f32.mxu0 %vm15255_vm12, %v7561_v27  ;;  %v14546_v16 = vpop.permute.xlu0 %6595  ;;  %7271 = vrot.lane.b32.xlu1 %v6514_v12, %s15236_s22  ;;  %v7372_v27 = vsel %vm580_vm0, %v7340_v31, %v14328_v48  ;;  %v6517_v19 = vrot.slane %v6256_v32, 1  ;;  %v6255_v48 = vld [vmem:[#allocation5 + $0x1c0] sm:$0xff]  ;;  %v7920_v31 = vadd.f32 %v12485_v60, %v10926_v43 }
 0xb57   : > { %v9050_v21 = vpop.f32.mrf.mxu0  ;;  %9067 = vmatmul.mubr.msk.f32.gmra.mxu0 %vm15256_vm13, %v7562_v8  ;;  %v7404_v8 = vsel %vm2230_vm5, %v7372_v27, %v14472_v59 }
 0xb58   : > { %v7772_v1 = vadd.f32 %v9050_v21, %v14431_v40  ;;  %v14554_v51 = vpop.permute.xlu1 %6977  ;;  %6703 = vrot.lane.b32.xlu0 %v6514_v12, %s9173_s27  ;;  %v7339_v21 = vsel %vm934_vm1, %v14056_v34, %v14335_v0  ;;  %v6389_v0 = vrot.slane %v6255_v48, 7  ;;  %v6260_v48 = vld [vmem:[#allocation5 + $0x1e8] sm:$0xff] }
 0xb59   : > { %v7766_v50 = vpop.f32.mrf.mxu0  ;;  %v7371_v20 = vsel %vm580_vm0, %v7339_v21, %v14385_v53 }
 0xb5a   : > { %v7950_v39 = vadd.f32 %v7918_v22, %v7772_v1  ;;  %v7767_v44 = vadd.f32 %v14431_v40, %v7766_v50  ;;  %v7164_v29 = vpop.permute.xlu0 %7163  ;;  %6987 = vrot.lane.b32.xlu1 %v6514_v12, %s15234_s21  ;;  %v7436_v1 = vsel %vm2263_vm6, %v7404_v8, %v14366_v23  ;;  %v7403_v59 = vsel %vm2230_vm5, %v7371_v20, %v14517_v45 }
 0xb5b   : > { %v7435_v53 = vsel %vm2263_vm6, %v7403_v59, %v14409_v56  ;;  %v7468_v50 = vsel %vm2296_vm8, %v7436_v1, %v14442_v61  ;;  %v6519_v23 = vsel %vm1289_vm2, %v6517_v19, %v6518_v5  ;;  %v6262_v1 = vld [vmem:[#allocation5 + $0x1f8] sm:$0xff] }
 0xb5c   : > { %7982 = vst.msk [vmem:[%s14450_s20 + $0x18] sm:$0xff] %vm580_vm0, %v7950_v39  ;;  %v7949_v49 = vadd.f32 %v7917_v2, %v7767_v44  ;;  %v6602_v62 = vpop.permute.xlu1 %6601  ;;  %6795 = vrot.lane.b32.xlu0 %v14562_v54, %s15235_s24  ;;  %v6390_v39 = vrot.slane %v6256_v32, 7  ;;  %v6392_v2 = vrot.slane %v14488_v36, 7  ;;  %v7467_v25 = vsel %vm2296_vm8, %v7435_v53, %v14511_v9 }
 0xb5d   : > { %v7346_v5 = vsel %vm934_vm1, %v14306_v55, %v6602_v62 }
 0xb5e   : > { %7981 = vst.msk [vmem:[%s14450_s20 + $0x10] sm:$0xff] %vm580_vm0, %v7949_v49  ;;  %v7262_v15 = vpop.permute.xlu0 %7261  ;;  %6895 = vrot.lane.b32.xlu1 %v6256_v32, %s15176_s30 }
 0xb60   : > { %v14572_v13 = vpop.permute.xlu1 %6785  ;;  %7079 = vrot.lane.b32.xlu0 %v14562_v54, %s15231_s23 }
 0xb62   : > { %v14577_v63 = vpop.permute.xlu0 %7169  ;;  %6709 = vrot.lane.b32.xlu1 %v6521_v24, %s9173_s27 }
 0xb64   : > { %v7070_v26 = vpop.permute.xlu1 %7069  ;;  %6611 = vrot.lane.b32.xlu0 %v6256_v32, %s15232_s28 }
 0xb65   : > { %v7500_v45 = vsel %vm2329_vm7, %v7468_v50, %v7070_v26 }
 0xb66   : > { %v14581_v18 = vpop.permute.xlu0 %6885  ;;  %6993 = vrot.lane.b32.xlu1 %v6521_v24, %s15234_s21  ;;  %v7532_v56 = vsel %vm2362_vm9, %v7500_v45, %v14477_v38  ;;  %v14644_v38 = vsel %vm1160_vm3, %v6390_v39, %v6392_v2  ;;  %v14678_v2 = vld [vmem:[#allocation5 + $0x210] sm:$0xff] }
 0xb67   : > { %v7564_v55 = vsel %vm2395_vm10, %v7532_v56, %v7262_v15  ;;  %v15259_v15 = vld [vmem:[#allocation33_spill] sm:$0xff] }
 0xb68   : > { %v7260_v12 = vpop.permute.xlu1 %7259  ;;  %7179 = vrot.lane.b32.xlu0 %v6256_v32, %s15233_s26  ;;  %v14632_v32 = vsel %vm1160_vm3, %v6389_v0, %v6390_v39  ;;  %v7919_v20 = vadd.f32 %v15259_v15, %v10940_v58  ;;  %v6523_v0 = vrot.slane %v14587_v30, 1  ;;  %v6525_v58 = vrot.slane %v6262_v1, 1 }
 0xb6a   : > { %v14597_v41 = vpop.permute.xlu0 %6691  ;;  %6617 = vrot.lane.b32.xlu1 %v14587_v30, %s15232_s28  ;;  %v6526_v39 = vsel %vm1289_vm2, %v6523_v0, %v6525_v58  ;;  %v15262_v58 = vld [vmem:[#allocation32_spill] sm:$0xff] }
 0xb6c   : > { %v14607_v22 = vpop.permute.xlu1 %6975  ;;  %7277 = vrot.lane.b32.xlu0 %v6521_v24, %s15236_s22 }
 0xb6e   : > { %v14610_v34 = vpop.permute.xlu0 %6783  ;;  %7185 = vrot.lane.b32.xlu1 %v14587_v30, %s15233_s26 }
 0xb70   : > { %v14620_v44 = vpop.permute.xlu1 %6883  ;;  %6707 = vrot.lane.b32.xlu0 %v6519_v23, %s9173_s27 }
 0xb72   : > { %v7068_v49 = vpop.permute.xlu0 %7067  ;;  %6901 = vrot.lane.b32.xlu1 %v14587_v30, %s15176_s30 }
 0xb73   : > { %v7499_v61 = vsel %vm2329_vm7, %v7467_v25, %v7068_v49  ;;  %v7342_v49 = vsel %vm934_vm1, %v14112_v3, %v14347_v28 }
 0xb74   : > { %v7531_v36 = vsel %vm2362_vm9, %v7499_v61, %v7164_v29  ;;  %v6698_v7 = vpop.permute.xlu1 %6697  ;;  %6799 = vrot.lane.b32.xlu0 %v14632_v32, %s15235_s24  ;;  %v7374_v56 = vsel %vm580_vm0, %v7342_v49, %v14422_v42  ;;  %v6522_v42 = vrot.slane %v6260_v48, 1  ;;  %v6537_v49 = vrot.slane %v14678_v2, 1 }
 0xb75   : > { %v14640_v9 = vsel %vm580_vm0, %v7346_v5, %v6698_v7  ;;  %v7563_v24 = vsel %vm2395_vm10, %v7531_v36, %v7260_v12  ;;  %v7341_v5 = vsel %vm934_vm1, %v14153_v35, %v14434_v17  ;;  %v6395_v17 = vrot.slane %v6260_v48, 7 }
 0xb76   : > { %9069 = vmatprep.mubr.msk.f32.mxu0 %vm15257_vm14, %v7563_v24  ;;  %v6600_v26 = vpop.permute.xlu0 %6599  ;;  %6801 = vrot.lane.b32.xlu1 %v14644_v38, %s15235_s24  ;;  %v7373_v3 = vsel %vm580_vm0, %v7341_v5, %v14501_v10  ;;  %v15263_v5 = vld [vmem:[#allocation7_spill] sm:$0xff] }
 0xb77   : > { %v9053_v29 = vpop.f32.mrf.mxu0  ;;  %9070 = vmatmul.mubr.msk.f32.gmra.mxu0 %vm15258_vm15, %v7564_v55  ;;  %v7345_v36 = vsel %vm934_vm1, %v14345_v46, %v6600_v26  ;;  %v7405_v24 = vsel %vm2230_vm5, %v7373_v3, %v14610_v34  ;;  %v6259_v46 = vld [vmem:[#allocation5 + $0x1e0] sm:$0xff]  ;;  %v6397_v26 = vrot.slane %v14587_v30, 7  ;;  %v6524_v34 = vsel %vm1289_vm2, %v6522_v42, %v6523_v0  ;;  %v6264_v42 = vld [vmem:[#allocation5 + $0x208] sm:$0xff] }
 0xb78   : > { %v7782_v62 = vadd.f32 %v9053_v29, %v14431_v40  ;;  %v14654_v27 = vpop.permute.xlu1 %6981  ;;  %7083 = vrot.lane.b32.xlu0 %v14632_v32, %s15231_s23  ;;  %v7437_v55 = vsel %vm2263_vm6, %v7405_v24, %v14526_v14  ;;  %v6394_v29 = vrot.slane %v6259_v46, 7  ;;  %v15261_v0 = vld [vmem:[#allocation6_spill] sm:$0xff]  ;;  %v6533_v46 = vrot.slane %v14678_v2, 7 }
 0xb79   : > { %v7776_v12 = vpop.f32.mrf.mxu0  ;;  %v14725_v30 = vsel %vm1160_vm3, %v6395_v17, %v6397_v26  ;;  %v6531_v26 = vrot.slane %v6264_v42, 7 }
 0xb7a   : > { %v7952_v8 = vadd.f32 %v7920_v31, %v7782_v62  ;;  %v7777_v21 = vadd.f32 %v14431_v40, %v7776_v12  ;;  %v7168_v19 = vpop.permute.xlu0 %7167  ;;  %7085 = vrot.lane.b32.xlu1 %v14644_v38, %s15231_s23  ;;  %v7469_v12 = vsel %vm2296_vm8, %v7437_v55, %v14607_v22 }
 0xb7c   : > { %7984 = vst.msk [vmem:[%s14450_s20 + $0x28] sm:$0xff] %vm580_vm0, %v7952_v8  ;;  %v7951_v43 = vadd.f32 %v7919_v20, %v7777_v21  ;;  %v6606_v60 = vpop.permute.xlu1 %6605  ;;  %6615 = vrot.lane.b32.xlu0 %v6260_v48, %s15232_s28  ;;  %v14735_v21 = vsel %vm1160_vm3, %v6394_v29, %v6395_v17 }
 0xb7d   : > { %v7348_v15 = vsel %vm934_vm1, %v14398_v52, %v6606_v60  ;;  %v6266_v52 = vld [vmem:[#allocation5 + $0x218] sm:$0xff] }
 0xb7e   : > { %7983 = vst.msk [vmem:[%s14450_s20 + $0x20] sm:$0xff] %vm580_vm0, %v7951_v43  ;;  %v7266_v59 = vpop.permute.xlu0 %7265  ;;  %7275 = vrot.lane.b32.xlu1 %v6519_v23, %s15236_s22 }
 0xb80   : > { %v14670_v53 = vpop.permute.xlu1 %6789  ;;  %7183 = vrot.lane.b32.xlu0 %v6260_v48, %s15233_s26 }
 0xb82   : > { %v14673_v50 = vpop.permute.xlu0 %7173  ;;  %6991 = vrot.lane.b32.xlu1 %v6519_v23, %s15234_s21  ;;  %v7406_v23 = vsel %vm2230_vm5, %v7374_v56, %v14572_v13 }
 0xb83   : > { %v7438_v13 = vsel %vm2263_vm6, %v7406_v23, %v14482_v33 }
 0xb84   : > { %v7074_v45 = vpop.permute.xlu1 %7073  ;;  %6997 = vrot.lane.b32.xlu0 %v6526_v39, %s15234_s21  ;;  %v7470_v33 = vsel %vm2296_vm8, %v7438_v13, %v14554_v51 }
 0xb85   : > { %v7502_v62 = vsel %vm2329_vm7, %v7470_v33, %v7074_v45  ;;  %v9160_v33 = vld [vmem:[#allocation5 + $0x228] sm:$0xff] }
 0xb86   : > { %v14680_v25 = vpop.permute.xlu0 %6889  ;;  %6899 = vrot.lane.b32.xlu1 %v6260_v48, %s15176_s30  ;;  %v7534_v14 = vsel %vm2362_vm9, %v7502_v62, %v14577_v63  ;;  %v6550_v29 = vrot.slane %v9160_v33, 1  ;;  %v9161_v62 = vld [vmem:[#allocation5 + $0x230] sm:$0xff] }
 0xb87   : > { %v7566_v1 = vsel %vm2395_vm10, %v7534_v14, %v7266_v59  ;;  %v6539_v59 = vrot.slane %v6266_v52, 1  ;;  %v6270_v14 = vld [vmem:[#allocation5 + $0x238] sm:$0xff] }
 0xb88   : > { %v7264_v61 = vpop.permute.xlu1 %7263  ;;  %6905 = vrot.lane.b32.xlu0 %v14678_v2, %s15176_s30 }
 0xb89   : > { %v14770_v17 = vsel %vm1289_vm2, %v6537_v49, %v6539_v59  ;;  %v7343_v59 = vsel %vm934_vm1, %v14250_v37, %v14546_v16 }
 0xb8a   : > { %v6696_v7 = vpop.permute.xlu0 %6695  ;;  %6713 = vrot.lane.b32.xlu1 %v6526_v39, %s9173_s27 }
 0xb8b   : > { %v14701_v28 = vsel %vm580_vm0, %v7345_v36, %v6696_v7  ;;  %v15264_v36 = vld [vmem:[#allocation34_spill] sm:$0xff] }
 0xb8c   : > { %v14707_v35 = vpop.permute.xlu1 %6979  ;;  %7189 = vrot.lane.b32.xlu0 %v14678_v2, %s15233_s26  ;;  %v7921_v7 = vadd.f32 %v15264_v36, %v15263_v5 }
 0xb8e   : > { %v14712_v10 = vpop.permute.xlu0 %6787  ;;  %7281 = vrot.lane.b32.xlu1 %v6526_v39, %s15236_s22  ;;  %v7922_v39 = vadd.f32 %v15262_v58, %v15261_v0 }
 0xb90   : > { %v14721_v31 = vpop.permute.xlu1 %6887  ;;  %6711 = vrot.lane.b32.xlu0 %v6524_v34, %s9173_s27 }
 0xb92   : > { %v7072_v8 = vpop.permute.xlu0 %7071  ;;  %6805 = vrot.lane.b32.xlu1 %v14725_v30, %s15235_s24 }
 0xb93   : > { %v7501_v51 = vsel %vm2329_vm7, %v7469_v12, %v7072_v8  ;;  %v6551_v12 = vrot.slane %v9161_v62, 1 }
 0xb94   : > { %v7533_v20 = vsel %vm2362_vm9, %v7501_v51, %v7168_v19  ;;  %v6702_v48 = vpop.permute.xlu1 %6701  ;;  %6803 = vrot.lane.b32.xlu0 %v14735_v21, %s15235_s24  ;;  %v6534_v51 = vsel %vm1160_vm3, %v6531_v26, %v6533_v46 }
 0xb95   : > { %v14743_v22 = vsel %vm580_vm0, %v7348_v15, %v6702_v48  ;;  %v7565_v43 = vsel %vm2395_vm10, %v7533_v20, %v7264_v61  ;;  %v6552_v48 = vsel %vm1289_vm2, %v6550_v29, %v6551_v12 }
 0xb96   : > { %9072 = vmatprep.mubr.msk.f32.mxu0 %vm15242_vm4, %v7565_v43  ;;  %v6604_v63 = vpop.permute.xlu0 %6603  ;;  %7089 = vrot.lane.b32.xlu1 %v14725_v30, %s15231_s23 }
 0xb97   : > { %v9056_v19 = vpop.f32.mrf.mxu0  ;;  %9073 = vmatmul.mubr.msk.f32.gmra.mxu0 %vm15260_vm11, %v7566_v1  ;;  %v6553_v1 = vrot.slane %v6270_v14, 1  ;;  %v15270_v14 = vld [vmem:[#allocation58_spill] sm:$0xff] }
 0xb98   : > { %v7792_v60 = vadd.f32 %v9056_v19, %v14431_v40  ;;  %v14754_v45 = vpop.permute.xlu1 %6985  ;;  %7087 = vrot.lane.b32.xlu0 %v14735_v21, %s15231_s23 }
 0xb99   : > { %v7786_v56 = vpop.f32.mrf.mxu0  ;;  %v6554_v0 = vsel %vm1289_vm2, %v6551_v12, %v6553_v1 }
 0xb9a   : > { %v7954_v61 = vadd.f32 %v7922_v39, %v7792_v60  ;;  %v7787_v23 = vadd.f32 %v14431_v40, %v7786_v56  ;;  %v14762_v3 = vpop.permute.xlu0 %7171  ;;  %6995 = vrot.lane.b32.xlu1 %v6524_v34, %s15234_s21 }
 0xb9c   : > { %7986 = vst.msk [vmem:[%s14450_s20 + $0x38] sm:$0xff] %vm580_vm0, %v7954_v61  ;;  %v7953_v13 = vadd.f32 %v7921_v7, %v7787_v23  ;;  %v6610_v24 = vpop.permute.xlu1 %6609  ;;  %7279 = vrot.lane.b32.xlu0 %v6524_v34, %s15236_s22  ;;  %v6263_v34 = vld [vmem:[#allocation5 + $0x200] sm:$0xff]  ;;  %v7375_v61 = vsel %vm580_vm0, %v7343_v59, %v14597_v41 }
 0xb9d   : > { %v6530_v43 = vrot.slane %v6263_v34, 7  ;;  %v7407_v37 = vsel %vm2230_vm5, %v7375_v61, %v14712_v10  ;;  %v15269_v34 = vld [vmem:[#allocation9_spill] sm:$0xff] }
 0xb9e   : > { %7985 = vst.msk [vmem:[%s14450_s20 + $0x30] sm:$0xff] %vm580_vm0, %v7953_v13  ;;  %v7270_v55 = vpop.permute.xlu0 %7269  ;;  %7001 = vrot.lane.b32.xlu1 %v14770_v17, %s15234_s21 }
 0xb9f   : > { %v6532_v60 = vsel %vm1160_vm3, %v6530_v43, %v6531_v26  ;;  %v15268_v26 = vld [vmem:[#allocation56_spill] sm:$0xff] }
 0xba0   : > { %v6794_v8 = vpop.permute.xlu1 %6793  ;;  %6903 = vrot.lane.b32.xlu0 %v6264_v42, %s15176_s30 }
 0xba1   : > { %v7410_v2 = vsel %vm2230_vm5, %v14640_v9, %v6794_v8  ;;  %v7344_v9 = vsel %vm934_vm1, %v14208_v4, %v14461_v6  ;;  %v7347_v4 = vsel %vm934_vm1, %v14457_v47, %v6604_v63  ;;  %v7439_v63 = vsel %vm2263_vm6, %v7407_v37, %v14620_v44 }
 0xba2   : > { %v14782_v15 = vsel %vm2263_vm6, %v7410_v2, %v14680_v25  ;;  %v14784_v20 = vpop.permute.xlu0 %7177  ;;  %6809 = vrot.lane.b32.xlu1 %v6534_v51, %s15235_s24  ;;  %v6536_v25 = vrot.slane %v6264_v42, 1  ;;  %v7376_v58 = vsel %vm580_vm0, %v7344_v9, %v14539_v11  ;;  %v7471_v10 = vsel %vm2296_vm8, %v7439_v63, %v14707_v35 }
 0xba3   : > { %v7408_v56 = vsel %vm2230_vm5, %v7376_v58, %v14670_v53 }
 0xba4   : > { %v7078_v52 = vpop.permute.xlu1 %7077  ;;  %7187 = vrot.lane.b32.xlu0 %v6264_v42, %s15233_s26  ;;  %v6538_v23 = vsel %vm1289_vm2, %v6536_v25, %v6537_v49  ;;  %v7440_v53 = vsel %vm2263_vm6, %v7408_v56, %v14581_v18  ;;  %vm15265_vm2 = vmmov %vm15242_vm4 }
 0xba5   : > { %v7472_v41 = vsel %vm2296_vm8, %v7440_v53, %v14654_v27  ;;  %vm15266_vm3 = vmmov %vm15265_vm2 }
 0xba6   : > { %v6894_v19 = vpop.permute.xlu0 %6893  ;;  %7287 = vrot.lane.b32.xlu1 %v6552_v48, %s15236_s22  ;;  %v7504_v49 = vsel %vm2329_vm7, %v7472_v41, %v7078_v52  ;;  %vm15271_vm12 = vmmov %vm15265_vm2  ;;  %v15273_v41 = vld [vmem:[#allocation10_spill] sm:$0xff] }
 0xba7   : > { %v7536_v44 = vsel %vm2362_vm9, %v7504_v49, %v14673_v50  ;;  %vm15272_vm13 = vmmov %vm15265_vm2 }
 0xba8   : > { %v7268_v39 = vpop.permute.xlu1 %7267  ;;  %6807 = vrot.lane.b32.xlu0 %v6532_v60, %s15235_s24  ;;  %v7568_v46 = vsel %vm2395_vm10, %v7536_v44, %v7270_v55  ;;  %v7923_v55 = vadd.f32 %v15270_v14, %v15269_v34  ;;  %vm15277_vm14 = vmmov %vm15265_vm2 }
 0xba9   : > { %vm15278_vm15 = vmmov %vm15265_vm2 }
 0xbaa   : > { %v6700_v6 = vpop.permute.xlu0 %6699  ;;  %7289 = vrot.lane.b32.xlu1 %v6554_v0, %s15236_s22  ;;  %vm15283_vm4 = vmmov %vm15265_vm2 }
 0xbab   : > { %v14809_v11 = vsel %vm580_vm0, %v7347_v4, %v6700_v6  ;;  %vm15284_vm11 = vmmov %vm15265_vm2 }
 0xbac   : > { %v6984_v16 = vpop.permute.xlu1 %6983  ;;  %6999 = vrot.lane.b32.xlu0 %v6538_v23, %s15234_s21 }
 0xbae   : > { %v6792_v47 = vpop.permute.xlu0 %6791 }
 0xbaf   : > { %v7409_v5 = vsel %vm2230_vm5, %v14701_v28, %v6792_v47  ;;  %v7350_v28 = vsel %vm934_vm1, %v14515_v57, %v6610_v24  ;;  %v15267_v24 = vld [vmem:[#allocation8_spill] sm:$0xff] }
 0xbb0   : > { %v7441_v18 = vsel %vm2263_vm6, %v7409_v5, %v14721_v31  ;;  %v14826_v36 = vpop.permute.xlu1 %6891  ;;  %7091 = vrot.lane.b32.xlu0 %v6532_v60, %s15231_s23  ;;  %v7924_v33 = vadd.f32 %v15268_v26, %v15267_v24  ;;  %v15274_v5 = vld [vmem:[#allocation54_spill] sm:$0xff] }
 0xbb1   : > { %v7926_v49 = vadd.f32 %v15274_v5, %v15273_v41 }
 0xbb2   : > { %v7076_v7 = vpop.permute.xlu0 %7075 }
 0xbb3   : > { %v7503_v27 = vsel %vm2329_vm7, %v7471_v10, %v7076_v7 }
 0xbb4   : > { %v7535_v42 = vsel %vm2362_vm9, %v7503_v27, %v14762_v3  ;;  %v6706_v31 = vpop.permute.xlu1 %6705  ;;  %7093 = vrot.lane.b32.xlu0 %v6534_v51, %s15231_s23  ;;  %v15275_v27 = vld [vmem:[#allocation11_spill] sm:$0xff] }
 0xbb5   : > { %v14840_v13 = vsel %vm580_vm0, %v7350_v28, %v6706_v31  ;;  %v7567_v35 = vsel %vm2395_vm10, %v7535_v42, %v7268_v39  ;;  %v15276_v28 = vld [vmem:[#allocation57_spill] sm:$0xff] }
 0xbb6   : > { %9075 = vmatprep.mubr.msk.f32.mxu0 %vm15265_vm2, %v7567_v35  ;;  %v14844_v50 = vpop.permute.xlu0 %6607  ;;  %v7925_v42 = vadd.f32 %v15276_v28, %v15275_v27 }
 0xbb7   : > { %v9059_v57 = vpop.f32.mrf.mxu0  ;;  %9076 = vmatmul.mubr.msk.f32.gmra.mxu0 %vm15266_vm3, %v7568_v46 }
 0xbb8   : > { %v7802_v3 = vadd.f32 %v9059_v57, %v14431_v40  ;;  %v14851_v29 = vpop.permute.xlu1 %6989  ;;  %7283 = vrot.lane.b32.xlu0 %v6538_v23, %s15236_s22 }
 0xbb9   : > { %v7796_v62 = vpop.f32.mrf.mxu0 }
 0xbba   : > { %v7956_v12 = vadd.f32 %v7924_v33, %v7802_v3  ;;  %v7797_v8 = vadd.f32 %v14431_v40, %v7796_v62  ;;  %v7176_v2 = vpop.permute.xlu0 %7175 }
 0xbbc   : > { %7988 = vst.msk [vmem:[%s14450_s20 + $0x48] sm:$0xff] %vm580_vm0, %v7956_v12  ;;  %v7955_v51 = vadd.f32 %v7923_v55, %v7797_v8  ;;  %v6614_v48 = vpop.permute.xlu1 %6613  ;;  %7285 = vrot.lane.b32.xlu0 %v14770_v17, %s15236_s22  ;;  %v7474_v17 = vsel %vm2296_vm8, %v14782_v15, %v14754_v45 }
 0xbbd   : > { %v7352_v53 = vsel %vm934_vm1, %v14644_v38, %v6614_v48 }
 0xbbe   : > { %7987 = vst.msk [vmem:[%s14450_s20 + $0x40] sm:$0xff] %vm580_vm0, %v7955_v51  ;;  %v7274_v43 = vpop.permute.xlu0 %7273 }
 0xbc0   : > { %v6798_v1 = vpop.permute.xlu1 %6797 }
 0xbc1   : > { %v7412_v52 = vsel %vm2230_vm5, %v14743_v22, %v6798_v1  ;;  %v7473_v22 = vsel %vm2296_vm8, %v7441_v18, %v6984_v16 }
 0xbc2   : > { %v7444_v9 = vsel %vm2263_vm6, %v7412_v52, %v6894_v19  ;;  %v7182_v25 = vpop.permute.xlu0 %7181 }
 0xbc3   : > { %v7476_v48 = vsel %vm2296_vm8, %v7444_v9, %v14851_v29 }
 0xbc4   : > { %v7082_v60 = vpop.permute.xlu1 %7081 }
 0xbc5   : > { %v7506_v4 = vsel %vm2329_vm7, %v7474_v17, %v7082_v60  ;;  %v15279_v17 = vld [vmem:[#allocation12_spill] sm:$0xff] }
 0xbc6   : > { %v6898_v0 = vpop.permute.xlu0 %6897  ;;  %v7538_v19 = vsel %vm2362_vm9, %v7506_v4, %v14784_v20  ;;  %v15280_v4 = vld [vmem:[#allocation52_spill] sm:$0xff] }
 0xbc7   : > { %v7570_v20 = vsel %vm2395_vm10, %v7538_v19, %v7274_v43 }
 0xbc8   : > { %v7272_v58 = vpop.permute.xlu1 %7271 }
 0xbca   : > { %v14866_v39 = vpop.permute.xlu0 %6703 }
 0xbcc   : > { %v6988_v56 = vpop.permute.xlu1 %6987 }
 0xbce   : > { %v6796_v59 = vpop.permute.xlu0 %6795 }
 0xbcf   : > { %v7411_v12 = vsel %vm2230_vm5, %v14809_v11, %v6796_v59 }
 0xbd0   : > { %v14872_v6 = vpop.permute.xlu1 %6895  ;;  %v7443_v14 = vsel %vm2263_vm6, %v7411_v12, %v14826_v36 }
 0xbd2   : > { %v7080_v61 = vpop.permute.xlu0 %7079 }
 0xbd3   : > { %v7505_v23 = vsel %vm2329_vm7, %v7473_v22, %v7080_v61  ;;  %v7928_v22 = vadd.f32 %v15280_v4, %v15279_v17 }
 0xbd4   : > { %v7537_v37 = vsel %vm2362_vm9, %v7505_v23, %v7176_v2  ;;  %v6710_v47 = vpop.permute.xlu1 %6709 }
 0xbd5   : > { %v14882_v45 = vsel %vm580_vm0, %v7352_v53, %v6710_v47  ;;  %v7569_v15 = vsel %vm2395_vm10, %v7537_v37, %v7272_v58  ;;  %v15281_v37 = vld [vmem:[#allocation13_spill] sm:$0xff]  ;;  %v15282_v47 = vld [vmem:[#allocation55_spill] sm:$0xff] }
 0xbd6   : > { %9078 = vmatprep.mubr.msk.f32.mxu0 %vm15271_vm12, %v7569_v15  ;;  %v6612_v16 = vpop.permute.xlu0 %6611  ;;  %v7927_v15 = vadd.f32 %v15282_v47, %v15281_v37  ;;  %v15290_v47 = vld [vmem:[#allocation59_spill] sm:$0xff] }
 0xbd7   : > { %v9062_v63 = vpop.f32.mrf.mxu0  ;;  %9079 = vmatmul.mubr.msk.f32.gmra.mxu0 %vm15272_vm13, %v7570_v20  ;;  %v7351_v24 = vsel %vm934_vm1, %v14632_v32, %v6612_v16  ;;  %v7475_v32 = vsel %vm2296_vm8, %v7443_v14, %v6988_v56 }
 0xbd8   : > { %v7812_v38 = vadd.f32 %v9062_v63, %v14431_v40  ;;  %v14891_v18 = vpop.permute.xlu1 %6993 }
 0xbd9   : > { %v7806_v10 = vpop.f32.mrf.mxu0 }
 0xbda   : > { %v7958_v7 = vadd.f32 %v7926_v49, %v7812_v38  ;;  %v7807_v44 = vadd.f32 %v14431_v40, %v7806_v10  ;;  %v7180_v31 = vpop.permute.xlu0 %7179  ;;  %v7349_v49 = vsel %vm934_vm1, %v14562_v54, %v14844_v50 }
 0xbdc   : > { %7990 = vst.msk [vmem:[%s14450_s20 + $0x58] sm:$0xff] %vm580_vm0, %v7958_v7  ;;  %v7957_v35 = vadd.f32 %v7925_v42, %v7807_v44  ;;  %v14898_v46 = vpop.permute.xlu1 %6617  ;;  %v7381_v7 = vsel %vm580_vm0, %v7349_v49, %v14866_v39 }
 0xbdd   : > { %v7354_v14 = vsel %vm934_vm1, %v14725_v30, %v14898_v46 }
 0xbde   : > { %7989 = vst.msk [vmem:[%s14450_s20 + $0x50] sm:$0xff] %vm580_vm0, %v7957_v35  ;;  %v7278_v57 = vpop.permute.xlu0 %7277 }
 0xbe0   : > { %v7186_v3 = vpop.permute.xlu1 %7185 }
 0xbe2   : > { %v6708_v26 = vpop.permute.xlu0 %6707 }
 0xbe3   : > { %v14905_v33 = vsel %vm580_vm0, %v7351_v24, %v6708_v26 }
 0xbe4   : > { %v6902_v62 = vpop.permute.xlu1 %6901 }
 0xbe6   : > { %v6800_v8 = vpop.permute.xlu0 %6799 }
 0xbe7   : > { %v7413_v27 = vsel %vm2230_vm5, %v7381_v7, %v6800_v8 }
 0xbe8   : > { %v6802_v34 = vpop.permute.xlu1 %6801  ;;  %v7445_v35 = vsel %vm2263_vm6, %v7413_v27, %v14872_v6 }
 0xbe9   : > { %v7414_v55 = vsel %vm2230_vm5, %v14840_v13, %v6802_v34 }
 0xbea   : > { %v7446_v2 = vsel %vm2263_vm6, %v7414_v55, %v6898_v0  ;;  %v7084_v51 = vpop.permute.xlu0 %7083 }
 0xbeb   : > { %v7507_v1 = vsel %vm2329_vm7, %v7475_v32, %v7084_v51 }
 0xbec   : > { %v7086_v43 = vpop.permute.xlu1 %7085  ;;  %v7539_v36 = vsel %vm2362_vm9, %v7507_v1, %v7180_v31  ;;  %v15286_v1 = vld [vmem:[#allocation50_spill] sm:$0xff] }
 0xbed   : > { %v7508_v11 = vsel %vm2329_vm7, %v7476_v48, %v7086_v43  ;;  %v15285_v43 = vld [vmem:[#allocation14_spill] sm:$0xff] }
 0xbee   : > { %v6616_v52 = vpop.permute.xlu0 %6615  ;;  %v7540_v60 = vsel %vm2362_vm9, %v7508_v11, %v7182_v25  ;;  %v7930_v11 = vadd.f32 %v15286_v1, %v15285_v43 }
 0xbef   : > { %v7572_v56 = vsel %vm2395_vm10, %v7540_v60, %v7278_v57  ;;  %v7478_v57 = vsel %vm2296_vm8, %v7446_v2, %v14891_v18  ;;  %v7353_v60 = vsel %vm934_vm1, %v14735_v21, %v6616_v52  ;;  %vm15293_vm1 = vmmov %vm15265_vm2 }
 0xbf0   : > { %v7276_v58 = vpop.permute.xlu1 %7275  ;;  %vm15294_vm2 = vmmov %vm15293_vm1 }
 0xbf1   : > { %v7571_v13 = vsel %vm2395_vm10, %v7539_v36, %v7276_v58 }
 0xbf2   : > { %9081 = vmatprep.mubr.msk.f32.mxu0 %vm15277_vm14, %v7571_v13  ;;  %v7184_v0 = vpop.permute.xlu0 %7183 }
 0xbf3   : > { %9082 = vmatmul.mubr.msk.f32.gmra.mxu0 %vm15278_vm15, %v7572_v56  ;;  %v15287_v56 = vld [vmem:[#allocation15_spill] sm:$0xff] }
 0xbf4   : > { %v6992_v29 = vpop.permute.xlu1 %6991 }
 0xbf5   : > { %v7477_v54 = vsel %vm2296_vm8, %v7445_v35, %v6992_v29  ;;  %v15288_v29 = vld [vmem:[#allocation53_spill] sm:$0xff] }
 0xbf6   : > { %v14925_v9 = vpop.permute.xlu0 %6997 }
 0xbf7   : > { %v9065_v59 = vpop.f32.mrf.mxu0 }
 0xbf8   : > { %v7822_v25 = vadd.f32 %v9065_v59, %v14431_v40  ;;  %v14930_v61 = vpop.permute.xlu1 %6899  ;;  %v7929_v59 = vadd.f32 %v15288_v29, %v15287_v56  ;;  %v15306_v56 = vld [vmem:[#allocation44_spill] sm:$0xff] }
 0xbf9   : > { %v7816_v19 = vpop.f32.mrf.mxu0 }
 0xbfa   : > { %v7960_v23 = vadd.f32 %v7928_v22, %v7822_v25  ;;  %v7817_v53 = vadd.f32 %v14431_v40, %v7816_v19  ;;  %v6906_v16 = vpop.permute.xlu0 %6905  ;;  %v15289_v19 = vld [vmem:[#allocation60_spill] sm:$0xff] }
 0xbfc   : > { %7992 = vst.msk [vmem:[%s14450_s20 + $0x68] sm:$0xff] %vm580_vm0, %v7960_v23  ;;  %v7959_v20 = vadd.f32 %v7927_v15, %v7817_v53  ;;  %v6714_v63 = vpop.permute.xlu1 %6713 }
 0xbfe   : > { %7991 = vst.msk [vmem:[%s14450_s20 + $0x60] sm:$0xff] %vm580_vm0, %v7959_v20  ;;  %v14939_v38 = vpop.permute.xlu0 %7189 }
 0xc00   : > { %v7282_v41 = vpop.permute.xlu1 %7281 }
 0xc02   : > { %v6712_v5 = vpop.permute.xlu0 %6711 }
 0xc03   : > { %v7385_v46 = vsel %vm580_vm0, %v7353_v60, %v6712_v5  ;;  %v15304_v60 = vld [vmem:[#allocation49_spill] sm:$0xff] }
 0xc04   : > { %v6806_v10 = vpop.permute.xlu1 %6805 }
 0xc05   : > { %v7416_v44 = vsel %vm2230_vm5, %v14882_v45, %v6806_v10 }
 0xc06   : > { %v7448_v28 = vsel %vm2263_vm6, %v7416_v44, %v6902_v62  ;;  %v6804_v42 = vpop.permute.xlu0 %6803 }
 0xc08   : > { %v7090_v31 = vpop.permute.xlu1 %7089 }
 0xc09   : > { %v7510_v50 = vsel %vm2329_vm7, %v7478_v57, %v7090_v31 }
 0xc0a   : > { %v7088_v39 = vpop.permute.xlu0 %7087  ;;  %v7542_v26 = vsel %vm2362_vm9, %v7510_v50, %v7186_v3  ;;  %v7386_v3 = vsel %vm580_vm0, %v7354_v14, %v6714_v63  ;;  %v7415_v63 = vsel %vm2230_vm5, %v14905_v33, %v6804_v42  ;;  %v7480_v42 = vsel %vm2296_vm8, %v7448_v28, %v14925_v9 }
 0xc0b   : > { %v7509_v24 = vsel %vm2329_vm7, %v7477_v54, %v7088_v39  ;;  %v7574_v18 = vsel %vm2395_vm10, %v7542_v26, %v7282_v41  ;;  %v15292_v41 = vld [vmem:[#allocation62_spill] sm:$0xff]  ;;  %v7447_v44 = vsel %vm2263_vm6, %v7415_v63, %v14930_v61  ;;  %v15298_v26 = vld [vmem:[#allocation48_spill] sm:$0xff]  ;;  %v15312_v63 = vld [vmem:[#allocation45_spill] sm:$0xff] }
 0xc0c   : > { %v6996_v45 = vpop.permute.xlu1 %6995  ;;  %v7541_v62 = vsel %vm2362_vm9, %v7509_v24, %v7184_v0 }
 0xc0d   : > { %v7479_v27 = vsel %vm2296_vm8, %v7447_v44, %v6996_v45  ;;  %v15297_v45 = vld [vmem:[#allocation16_spill] sm:$0xff] }
 0xc0e   : > { %v7280_v12 = vpop.permute.xlu0 %7279  ;;  %v15314_v44 = vld [vmem:[#allocation40_spill] sm:$0xff] }
 0xc0f   : > { %v7573_v8 = vsel %vm2395_vm10, %v7541_v62, %v7280_v12  ;;  %v7932_v62 = vadd.f32 %v15298_v26, %v15297_v45 }
 0xc10   : > { %9084 = vmatprep.mubr.msk.f32.mxu0 %vm15283_vm4, %v7573_v8  ;;  %v7002_v6 = vpop.permute.xlu1 %7001 }
 0xc11   : > { %9085 = vmatmul.mubr.msk.f32.gmra.mxu0 %vm15284_vm11, %v7574_v18  ;;  %v15299_v18 = vld [vmem:[#allocation17_spill] sm:$0xff] }
 0xc12   : > { %v6904_v34 = vpop.permute.xlu0 %6903 }
 0xc14   : > { %v6810_v55 = vpop.permute.xlu1 %6809 }
 0xc15   : > { %v7418_v2 = vsel %vm2230_vm5, %v7386_v3, %v6810_v55 }
 0xc16   : > { %v7188_v51 = vpop.permute.xlu0 %7187  ;;  %v7450_v36 = vsel %vm2263_vm6, %v7418_v2, %v6906_v16  ;;  %v15291_v16 = vld [vmem:[#allocation61_spill] sm:$0xff]  ;;  %v15301_v2 = vld [vmem:[#allocation18_spill] sm:$0xff] }
 0xc17   : > { %v9068_v32 = vpop.f32.mrf.mxu0  ;;  %v7482_v4 = vsel %vm2296_vm8, %v7450_v36, %v7002_v6 }
 0xc18   : > { %v7832_v48 = vadd.f32 %v9068_v32, %v14431_v40  ;;  %v7288_v13 = vpop.permute.xlu1 %7287  ;;  %v7514_v23 = vsel %vm2329_vm7, %v7482_v4, %v15289_v19  ;;  %v15308_v4 = vld [vmem:[#allocation47_spill] sm:$0xff] }
 0xc19   : > { %v7826_v30 = vpop.f32.mrf.mxu0  ;;  %v7546_v5 = vsel %vm2362_vm9, %v7514_v23, %v15292_v41  ;;  %v15309_v23 = vld [vmem:[#allocation22_spill] sm:$0xff] }
 0xc1a   : > { %v7962_v58 = vadd.f32 %v7930_v11, %v7832_v48  ;;  %v7827_v0 = vadd.f32 %v14431_v40, %v7826_v30  ;;  %v6808_v25 = vpop.permute.xlu0 %6807  ;;  %v15303_v11 = vld [vmem:[#allocation19_spill] sm:$0xff] }
 0xc1b   : > { %v7417_v17 = vsel %vm2230_vm5, %v7385_v46, %v6808_v25  ;;  %vm15295_vm5 = vmmov %vm15293_vm1  ;;  %v7933_v36 = vadd.f32 %v15304_v60, %v15303_v11 }
 0xc1c   : > { %7994 = vst.msk [vmem:[%s14450_s20 + $0x78] sm:$0xff] %vm580_vm0, %v7962_v58  ;;  %v7961_v21 = vadd.f32 %v7929_v59, %v7827_v0  ;;  %v7449_v52 = vsel %vm2263_vm6, %v7417_v17, %v6904_v34  ;;  %v7290_v37 = vpop.permute.xlu1 %7289  ;;  %vm15296_vm6 = vmmov %vm15293_vm1  ;;  %v15300_v34 = vld [vmem:[#allocation51_spill] sm:$0xff]  ;;  %v9162_v58 = vld [vmem:[%s15101_s13] ss:$0 sm:$0xff] }
 0xc1d   : > { %v7578_v7 = vsel %vm2395_vm10, %v7546_v5, %v7290_v37  ;;  %v15305_v0 = vld [vmem:[#allocation20_spill] sm:$0xff]  ;;  %v15307_v17 = vld [vmem:[#allocation21_spill] sm:$0xff] }
 0xc1e   : > { %7993 = vst.msk [vmem:[%s14450_s20 + $0x70] sm:$0xff] %vm580_vm0, %v7961_v21  ;;  %v7000_v22 = vpop.permute.xlu0 %6999  ;;  %v7936_v29 = vadd.f32 %v15306_v56, %v15305_v0  ;;  %v7935_v21 = vadd.f32 %v15308_v4, %v15307_v17 }
 0xc1f   : > { %v7481_v53 = vsel %vm2296_vm8, %v7449_v52, %v7000_v22 }
 0xc20   : > { %v7513_v15 = vsel %vm2329_vm7, %v7481_v53, %v15290_v47  ;;  %v15310_v53 = vld [vmem:[#allocation42_spill] sm:$0xff] }
 0xc21   : > { %v7545_v20 = vsel %vm2362_vm9, %v7513_v15, %v15291_v16  ;;  %v7938_v37 = vadd.f32 %v15310_v53, %v15309_v23 }
 0xc22   : > { %v7092_v49 = vpop.permute.xlu0 %7091  ;;  %v7577_v10 = vsel %vm2395_vm10, %v7545_v20, %v7288_v13  ;;  %v15311_v20 = vld [vmem:[#allocation23_spill] sm:$0xff] }
 0xc23   : > { %9090 = vmatprep.mubr.msk.f32.mxu1 %vm15293_vm1, %v7577_v10  ;;  %v7511_v33 = vsel %vm2329_vm7, %v7479_v27, %v7092_v49  ;;  %v7937_v41 = vadd.f32 %v15312_v63, %v15311_v20 }
 0xc24   : > { %9091 = vmatmul.mubr.msk.f32.vlgmr.msra.gmra.mxu1 %vm15294_vm2, %v7578_v7  ;;  %v7543_v35 = vsel %vm2362_vm9, %v7511_v33, %v7188_v51  ;;  %v15302_v51 = vld [vmem:[#allocation46_spill] sm:$0xff]  ;;  %v15313_v7 = vld [vmem:[#allocation24_spill] sm:$0xff] }
 0xc25   : > { %v7934_v32 = vadd.f32 %v15302_v51, %v15301_v2  ;;  %v7940_v27 = vadd.f32 %v15314_v44, %v15313_v7 }
 0xc26   : > { %v7094_v31 = vpop.permute.xlu0 %7093 }
 0xc27   : > { %v7512_v54 = vsel %vm2329_vm7, %v7480_v42, %v7094_v31 }
 0xc28   : > { %v7544_v61 = vsel %vm2362_vm9, %v7512_v54, %v14939_v38  ;;  %v7931_v38 = vadd.f32 %v15300_v34, %v15299_v18 }
 0xc2a   : > { %v7284_v57 = vpop.permute.xlu0 %7283 }
 0xc2b   : > { %v7575_v50 = vsel %vm2395_vm10, %v7543_v35, %v7284_v57  ;;  %v15315_v35 = vld [vmem:[#allocation25_spill] sm:$0xff]  ;;  %v15316_v57 = vld [vmem:[#allocation43_spill] sm:$0xff] }
 0xc2c   : > { %9087 = vmatprep.mubr.msk.f32.mxu0 %vm15295_vm5, %v7575_v50  ;;  %v7939_v54 = vadd.f32 %v15316_v57, %v15315_v35 }
 0xc2e   : > { %v7286_v39 = vpop.permute.xlu0 %7285 }
 0xc2f   : > { %v7576_v24 = vsel %vm2395_vm10, %v7544_v61, %v7286_v39 }
 0xc30   : > { %9088 = vmatmul.mubr.msk.f32.gmra.mxu0 %vm15296_vm6, %v7576_v24  ;;  %v15317_v24 = vld [vmem:[#allocation26_spill] sm:$0xff] }
 0xc37   : > { %v9071_v9 = vpop.f32.mrf.mxu0 }
 0xc38   : > { %v7842_v28 = vadd.f32 %v9071_v9, %v14431_v40  ;;  %v15318_v9 = vld [vmem:[#allocation37_spill] sm:$0xff] }
 0xc39   : > { %v7836_v12 = vpop.f32.mrf.mxu0 }
 0xc3a   : > { %v7964_v8 = vadd.f32 %v7932_v62, %v7842_v28  ;;  %v7837_v6 = vadd.f32 %v14431_v40, %v7836_v12  ;;  %v7942_v28 = vadd.f32 %v15318_v9, %v15317_v24  ;;  %v15319_v12 = vld [vmem:[#allocation27_spill] sm:$0xff] }
 0xc3c   : > { %7996 = vst.msk [vmem:[%s14450_s20 + $0x88] sm:$0xff] %vm580_vm0, %v7964_v8  ;;  %v7963_v14 = vadd.f32 %v7931_v38, %v7837_v6  ;;  %v15320_v8 = vld [vmem:[#allocation41_spill] sm:$0xff] }
 0xc3d   : > { %v7941_v6 = vadd.f32 %v15320_v8, %v15319_v12 }
 0xc3e   : > { %7995 = vst.msk [vmem:[%s14450_s20 + $0x80] sm:$0xff] %vm580_vm0, %v7963_v14  ;;  %v15321_v14 = vld [vmem:[#allocation30_spill] sm:$0xff] }
 0xc57   : > { %v9074_v55 = vpop.f32.mrf.mxu0 }
 0xc58   : > { %v7852_v3 = vadd.f32 %v9074_v55, %v14431_v40  ;;  %v15322_v55 = vld [vmem:[#allocation36_spill] sm:$0xff] }
 0xc59   : > { %v7846_v48 = vpop.f32.mrf.mxu0 }
 0xc5a   : > { %v7966_v43 = vadd.f32 %v7934_v32, %v7852_v3  ;;  %v7847_v1 = vadd.f32 %v14431_v40, %v7846_v48  ;;  %v7946_v3 = vadd.f32 %v15322_v55, %v15321_v14  ;;  %v15323_v48 = vld [vmem:[#allocation31_spill] sm:$0xff] }
 0xc5c   : > { %7998 = vst.msk [vmem:[%s14450_s20 + $0x98] sm:$0xff] %vm580_vm0, %v7966_v43  ;;  %v7965_v30 = vadd.f32 %v7933_v36, %v7847_v1  ;;  %v15324_v43 = vld [vmem:[#allocation39_spill] sm:$0xff] }
 0xc5d   : > { %v7945_v1 = vadd.f32 %v15324_v43, %v15323_v48 }
 0xc5e   : > { %7997 = vst.msk [vmem:[%s14450_s20 + $0x90] sm:$0xff] %vm580_vm0, %v7965_v30  ;;  %v15325_v30 = vld [vmem:[#allocation28_spill] sm:$0xff] }
 0xc77   : > { %v9077_v46 = vpop.f32.mrf.mxu0 }
 0xc78   : > { %v7862_v13 = vadd.f32 %v9162_v58, %v9077_v46  ;;  %v15326_v46 = vld [vmem:[#allocation35_spill] sm:$0xff] }
 0xc79   : > { %v7856_v59 = vpop.f32.mrf.mxu0 }
 0xc7a   : > { %v7968_v40 = vadd.f32 %v7936_v29, %v7862_v13  ;;  %v7857_v25 = vadd.f32 %v9162_v58, %v7856_v59  ;;  %v7944_v13 = vadd.f32 %v15326_v46, %v15325_v30  ;;  %v15327_v59 = vld [vmem:[#allocation29_spill] sm:$0xff] }
 0xc7c   : > { %8000 = vst.msk [vmem:[%s14450_s20 + $0xa8] sm:$0xff] %vm580_vm0, %v7968_v40  ;;  %v7967_v52 = vadd.f32 %v7935_v21, %v7857_v25  ;;  %v15328_v40 = vld [vmem:[#allocation38_spill] sm:$0xff] }
 0xc7d   : > { %v7943_v25 = vadd.f32 %v15328_v40, %v15327_v59 }
 0xc7e   : > { %7999 = vst.msk [vmem:[%s14450_s20 + $0xa0] sm:$0xff] %vm580_vm0, %v7967_v52 }
 0xc97   : > { %v9080_v22 = vpop.f32.mrf.mxu0 }
 0xc98   : > { %v7872_v19 = vadd.f32 %v9162_v58, %v9080_v22 }
 0xc99   : > { %v7866_v47 = vpop.f32.mrf.mxu0 }
 0xc9a   : > { %v7970_v15 = vadd.f32 %v7938_v37, %v7872_v19  ;;  %v7867_v16 = vadd.f32 %v9162_v58, %v7866_v47 }
 0xc9c   : > { %8002 = vst.msk [vmem:[%s14450_s20 + $0xb8] sm:$0xff] %vm580_vm0, %v7970_v15  ;;  %v7969_v5 = vadd.f32 %v7937_v41, %v7867_v16 }
 0xc9e   : > { %8001 = vst.msk [vmem:[%s14450_s20 + $0xb0] sm:$0xff] %vm580_vm0, %v7969_v5 }
 0xcb3   : > { %v9083_v49 = vpop.f32.mrf.mxu0 }
 0xcb4   : > { %v7882_v10 = vadd.f32 %v9162_v58, %v9083_v49 }
 0xcb5   : > { %v7876_v31 = vpop.f32.mrf.mxu0 }
 0xcb6   : > { %v7972_v33 = vadd.f32 %v7940_v27, %v7882_v10  ;;  %v7877_v42 = vadd.f32 %v9162_v58, %v7876_v31 }
 0xcb8   : > { %8004 = vst.msk [vmem:[%s14450_s20 + $0xc8] sm:$0xff] %vm580_vm0, %v7972_v33  ;;  %v7971_v50 = vadd.f32 %v7939_v54, %v7877_v42 }
 0xcba   : > { %8003 = vst.msk [vmem:[%s14450_s20 + $0xc0] sm:$0xff] %vm580_vm0, %v7971_v50 }
 0xcd1   : > { %v9086_v61 = vpop.f32.mrf.mxu0 }
 0xcd2   : > { %v7892_v39 = vadd.f32 %v9162_v58, %v9086_v61 }
 0xcd3   : > { %v7886_v45 = vpop.f32.mrf.mxu0 }
 0xcd4   : > { %v7974_v26 = vadd.f32 %v7942_v28, %v7892_v39  ;;  %v7887_v62 = vadd.f32 %v9162_v58, %v7886_v45 }
 0xcd6   : > { %8006 = vst.msk [vmem:[%s14450_s20 + $0xd8] sm:$0xff] %vm580_vm0, %v7974_v26  ;;  %v7973_v18 = vadd.f32 %v7941_v6, %v7887_v62 }
 0xcd8   : > { %8005 = vst.msk [vmem:[%s14450_s20 + $0xd0] sm:$0xff] %vm580_vm0, %v7973_v18 }
 0xce4   : > { %v9092_v34 = vpop.f32.mrf.mxu1 }
 0xce5   : > { %v7912_v38 = vadd.f32 %v9162_v58, %v9092_v34 }
 0xce6   : > { %v7906_v2 = vpop.f32.mrf.mxu1 }
 0xce7   : > { %v7978_v51 = vadd.f32 %v7946_v3, %v7912_v38  ;;  %v7907_v32 = vadd.f32 %v9162_v58, %v7906_v2 }
 0xce9   : > { %8010 = vst.msk [vmem:[%s14450_s20 + $0xf8] sm:$0xff] %vm580_vm0, %v7978_v51  ;;  %v7977_v11 = vadd.f32 %v7945_v1, %v7907_v32 }
 0xceb   : > { %8009 = vst.msk [vmem:[%s14450_s20 + $0xf0] sm:$0xff] %vm580_vm0, %v7977_v11 }
 0xcf0   : > { %v9089_v60 = vpop.f32.mrf.mxu0 }
 0xcf1   : > { %v7902_v36 = vadd.f32 %v9162_v58, %v9089_v60 }
 0xcf2   : > { %v7896_v0 = vpop.f32.mrf.mxu0 }
 0xcf3   : > { %v7976_v56 = vadd.f32 %v7944_v13, %v7902_v36  ;;  %v7897_v29 = vadd.f32 %v9162_v58, %v7896_v0 }
 0xcf5   : > { %8008 = vst.msk [vmem:[%s14450_s20 + $0xe8] sm:$0xff] %vm580_vm0, %v7976_v56  ;;  %v7975_v17 = vadd.f32 %v7943_v25, %v7897_v29 }
 0xcf7   : > { %8007 = vst.msk [vmem:[%s14450_s20 + $0xe0] sm:$0xff] %vm580_vm0, %v7975_v17 }
 0xcf8 PF: > { %s26_s18 = sadd.s32 1, %s9169_s18  }
 0xcf9   : > { %p23_p4 = scmp.ge.s32.totalorder %s26_s18, 4  }
 0xcfb   :  { %25 = sbr.rel (!%p23_p4) target bundleno = 1 (0x1), region = 122 }

</bundles_post_ra>
